<compile_context>
chip_gen: v7x
topology: tpu7x:2x2x1
jax: 0.10.0
libtpu: 0.0.40
codegen_flags: <defaults>
</compile_context>

<pallas_src>
import math
from functools import partial

import jax
import jax.numpy as jnp
from jax.experimental import pallas as pl
from jax.experimental.pallas import tpu as pltpu


# -----------------------------------------------------------------------------
# Pallas kernel: windowed DFT (two MXU dots) + magnitude + fused loss partials
# -----------------------------------------------------------------------------
def _stft_loss_kernel(x_ref, y_ref, basis_ref, out_ref, *, n_half):
    # x_ref / y_ref : (tile_r, fft)        bf16 frames (window folded into basis)
    # basis_ref     : (fft, 2*n_half)      bf16, cols [0:n_half)=win*cos(k),
    #                 [n_half:2*n_half)=win*sin(k) for k = 0..n_half-1.
    #                 Nyquist bin (k = n_half) is handled in the wrapper.
    basis = basis_ref[...]
    xres = jnp.dot(x_ref[...], basis, preferred_element_type=jnp.float32)
    yres = jnp.dot(y_ref[...], basis, preferred_element_type=jnp.float32)

    # torch: clamp(real**2 + imag**2, min=1e-7)  (power; mag = sqrt(power))
    x_p = jnp.maximum(xres[:, :n_half] * xres[:, :n_half]
                      + xres[:, n_half:] * xres[:, n_half:], 1e-7)
    y_p = jnp.maximum(yres[:, :n_half] * yres[:, :n_half]
                      + yres[:, n_half:] * yres[:, n_half:], 1e-7)

    diff = jnp.sqrt(y_p) - jnp.sqrt(x_p)
    s0 = jnp.sum(diff * diff)                                   # ||y_mag-x_mag||_F^2
    s1 = jnp.sum(y_p)                                           # ||y_mag||_F^2 (power==mag^2)
    s2 = 0.5 * jnp.sum(jnp.abs(jnp.log(y_p) - jnp.log(x_p)))    # L1 log-mag (no sqrt in chain)

    # Zero-padded rows give x_p == y_p == 1e-7 exactly -> 0 to s0/s2, clamp-floor
    # constant to s1 that the wrapper subtracts -> no masking in the hot loop.
    lane = jax.lax.broadcasted_iota(jnp.int32, (8, 128), 1)
    out_ref[0] = jnp.where(lane == 0, s0,
                 jnp.where(lane == 1, s1,
                 jnp.where(lane == 2, s2, 0.0)))


# -----------------------------------------------------------------------------
# Host-side glue: framing (torch.stft semantics) and windowed DFT basis
# -----------------------------------------------------------------------------
def _frame_signal(x, fft_size, hop_size):
    # TODO(synk): in-kernel strided framing via manual DMA (memory_space=pl.ANY)
    # would remove this XLA reflect-pad/gather pass entirely; kept host-side.
    pad = fft_size // 2
    xp = jnp.pad(x, ((0, 0), (pad, pad)), mode="reflect")       # center=True reflect
    b, t_padded = xp.shape
    n_frames = 1 + (t_padded - fft_size) // hop_size
    starts = jnp.arange(n_frames) * hop_size
    idx = starts[:, None] + jnp.arange(fft_size)[None, :]
    frames = xp[:, idx]                                         # (B, n_frames, fft)
    return frames.reshape(b * n_frames, fft_size), n_frames


def _hann_window_padded(fft_size, win_length):
    # torch.hann_window(win_length) -> periodic Hann, centered zero-pad to fft_size
    n = jnp.arange(win_length, dtype=jnp.float32)
    win = 0.5 - 0.5 * jnp.cos(2.0 * math.pi * n / win_length)
    lpad = (fft_size - win_length) // 2
    return jnp.pad(win, (lpad, fft_size - win_length - lpad))


def _windowed_dft_basis(fft_size, win_length, dtype):
    win = _hann_window_padded(fft_size, win_length)
    n_half = fft_size // 2                                      # k = 0 .. n_half-1
    nn = jnp.arange(fft_size, dtype=jnp.int32)[:, None]
    kk = jnp.arange(n_half, dtype=jnp.int32)[None, :]
    phase = (nn * kk) % fft_size                                # exact int reduction
    ang = (2.0 * math.pi / fft_size) * phase.astype(jnp.float32)
    cosb = jnp.cos(ang) * win[:, None]                          # (fft, n_half)
    sinb = jnp.sin(ang) * win[:, None]                          # sign irrelevant for |.|
    return jnp.concatenate([cosb, sinb], axis=1).astype(dtype)  # (fft, 2*n_half)


# -----------------------------------------------------------------------------
# STFTLoss.forward  ->  (sc_loss, mag_loss)
# -----------------------------------------------------------------------------
def stft_loss(x, y, fft_size=1024, shift_size=120, win_length=600,
              tile_r=512, compute_dtype=jnp.bfloat16):
    # TODO(synk): use_delta=True branch (LogSTFTDeltaLoss) not implemented
    # (module default is use_delta=False).
    assert x.ndim == 2 and y.ndim == 2
    assert fft_size % 256 == 0, "fft_size must keep the half-spectrum lane-dense"
    assert x.shape[1] > fft_size // 2, "signal too short for reflect center-padding"

    n_half = fft_size // 2                    # kernel bins k = 0..n_half-1
    n_freq = n_half + 1                       # + Nyquist bin (wrapper-side)

    # bf16 before framing halves the ~fft/hop x HBM blow-up of the framing gather.
    xf, _ = _frame_signal(x.astype(compute_dtype), fft_size, shift_size)
    yf, _ = _frame_signal(y.astype(compute_dtype), fft_size, shift_size)
    n_rows = xf.shape[0]                      # B * n_frames

    # --- Nyquist bin correction (k = n_half): cos basis = win*(-1)^n, sin = 0 ----
    win = _hann_window_padded(fft_size, win_length)
    sign = jnp.where(jnp.arange(fft_size) % 2 == 0, 1.0, -1.0)
    nyq_basis = (win * sign).astype(compute_dtype)
    x_nq = jnp.dot(xf, nyq_basis, preferred_element_type=jnp.float32)
    y_nq = jnp.dot(yf, nyq_basis, preferred_element_type=jnp.float32)
    x_np_ = jnp.maximum(x_nq * x_nq, 1e-7)
    y_np_ = jnp.maximum(y_nq * y_nq, 1e-7)
    s0_nyq = jnp.sum((jnp.sqrt(y_np_) - jnp.sqrt(x_np_)) ** 2)
    s1_nyq = jnp.sum(y_np_)
    s2_nyq = 0.5 * jnp.sum(jnp.abs(jnp.log(y_np_) - jnp.log(x_np_)))

    # --- adaptive tiling: >=2 tiles (one per v7x TC), even count, tile_r % 16 == 0
    num_tiles = max(2, pl.cdiv(n_rows, tile_r))
    if num_tiles % 2:
        num_tiles += 1
    tile_r = max(16, pl.cdiv(pl.cdiv(n_rows, num_tiles), 16) * 16)
    num_tiles = pl.cdiv(n_rows, tile_r)
    r_pad = num_tiles * tile_r

    xf = jnp.pad(xf, ((0, r_pad - n_rows), (0, 0)))
    yf = jnp.pad(yf, ((0, r_pad - n_rows), (0, 0)))

    basis = _windowed_dft_basis(fft_size, win_length, compute_dtype)  # (fft, 2*n_half)

    kernel = partial(_stft_loss_kernel, n_half=n_half)
    partials = pl.pallas_call(
        kernel,
        out_shape=jax.ShapeDtypeStruct((num_tiles, 8, 128), jnp.float32),
        grid_spec=pltpu.PrefetchScalarGridSpec(
            num_scalar_prefetch=0,
            grid=(num_tiles,),
            in_specs=[
                pl.BlockSpec((tile_r, fft_size), lambda i: (i, 0)),
                pl.BlockSpec((tile_r, fft_size), lambda i: (i, 0)),
                # constant index map: block index never changes, so Pallas keeps the
                # basis resident in VMEM (no per-step re-DMA).
                pl.BlockSpec((fft_size, 2 * n_half), lambda i: (0, 0)),
            ],
            out_specs=pl.BlockSpec((1, 8, 128), lambda i: (i, 0, 0)),
        ),
        compiler_params=pltpu.CompilerParams(
            dimension_semantics=("parallel",),      # independent row tiles (v7x 2xTC)
            vmem_limit_bytes=56 << 20,              # fits v7x's 64 MiB physical VMEM
        ),
    )(xf, yf, basis)

    # Final tiny reduction in JAX (lanes 0..2 of sublane 0 hold the partial sums).
    sums = jnp.sum(partials[:, 0, :3], axis=0)

    # Padded rows each add exactly the clamp floor (1e-7) per bin to ||y||^2 only.
    s0 = sums[0] + s0_nyq
    s1 = sums[1] + s1_nyq - jnp.float32(1e-7) * ((r_pad - n_rows) * n_half)
    s2 = sums[2] + s2_nyq

    sc_loss = jnp.sqrt(s0) / jnp.sqrt(s1)            # ||y-x||_F / ||y||_F
    mag_loss = s2 / (n_rows * n_freq)                # mean |log y - log x|
    return sc_loss, mag_loss


# -----------------------------------------------------------------------------
# Pure-JAX f32 reference (rfft) for a loose sanity check
# -----------------------------------------------------------------------------
def _reference_stft_loss(x, y, fft_size, shift_size, win_length):
    win = _hann_window_padded(fft_size, win_length)

    def mag(sig):
        frames, _ = _frame_signal(sig, fft_size, shift_size)
        spec = jnp.fft.rfft(frames * win[None, :], axis=-1)
        p = jnp.real(spec) ** 2 + jnp.imag(spec) ** 2
        return jnp.sqrt(jnp.maximum(p, 1e-7))

    xm, ym = mag(x), mag(y)
    sc = jnp.sqrt(jnp.sum((ym - xm) ** 2)) / jnp.sqrt(jnp.sum(ym ** 2))
    ml = jnp.mean(jnp.abs(jnp.log(ym) - jnp.log(xm)))
    return sc, ml


if __name__ == "__main__":
    key = jax.random.PRNGKey(0)
    k1, k2 = jax.random.split(key)
    B, T = 2, 4800   # long enough for the reflect pad (fft//2 = 512)
    x = jax.random.normal(k1, (B, T), dtype=jnp.float32)
    y = jax.random.normal(k2, (B, T), dtype=jnp.float32)

    sc, mag = jax.jit(stft_loss)(x, y)
    jax.block_until_ready((sc, mag))

    # Loose tolerance: kernel matmuls run in bf16 (f32 accumulation / post-math).
    ref_sc, ref_mag = _reference_stft_loss(x, y, 1024, 120, 600)
    assert abs(float(sc) - float(ref_sc)) <= 5e-2 * abs(float(ref_sc)) + 1e-3, (sc, ref_sc)
    assert abs(float(mag) - float(ref_mag)) <= 5e-2 * abs(float(ref_mag)) + 1e-3, (mag, ref_mag)

    print("KERNEL_OK")
</pallas_src>

<mosaic_0001>
module attributes {stable_mosaic.version = 11 : i64} {
  func.func @_stft_loss_kernel(%arg0: i32, %arg1: memref<48x1024xbf16, #tpu.memory_space<vmem>>, %arg2: memref<48x1024xbf16, #tpu.memory_space<vmem>>, %arg3: memref<1024x1024xbf16, #tpu.memory_space<vmem>>, %arg4: memref<1x8x128xf32, #tpu.memory_space<vmem>>) attributes {dimension_semantics = [#tpu.dimension_semantics<parallel>], iteration_bounds = array<i64: 2>, scalar_prefetch = 0 : i64, scratch_operands = 0 : i64, tpu.core_type = #tpu.core_type<tc>, window_params = [{transform_indices = @transform_0, window_bounds = array<i64: 48, 1024>}, {transform_indices = @transform_1, window_bounds = array<i64: 48, 1024>}, {pipeline_mode = #tpu.pipeline_mode<synchronous>, transform_indices = @transform_2, window_bounds = array<i64: 1024, 1024>}, {transform_indices = @transform_3, window_bounds = array<i64: 1, 8, 128>}]} {
    %c0 = arith.constant 0 : index
    %c0_0 = arith.constant 0 : index
    %0 = vector.load %arg3[%c0, %c0_0] : memref<1024x1024xbf16, #tpu.memory_space<vmem>>, vector<1024x1024xbf16>
    %c0_1 = arith.constant 0 : index
    %c0_2 = arith.constant 0 : index
    %1 = vector.load %arg1[%c0_1, %c0_2] : memref<48x1024xbf16, #tpu.memory_space<vmem>>, vector<48x1024xbf16>
    %cst = arith.constant dense<0.000000e+00> : vector<48x1024xf32>
    %2 = tpu.matmul %1, %0, %cst {dimension_numbers = #tpu.dot_dimension_numbers<[1], [0], [0], [1], [0, 0, 1, 1], [], []>} : vector<48x1024xbf16>, vector<1024x1024xbf16>, vector<48x1024xf32> -> vector<48x1024xf32>
    %c0_3 = arith.constant 0 : index
    %c0_4 = arith.constant 0 : index
    %3 = vector.load %arg2[%c0_3, %c0_4] : memref<48x1024xbf16, #tpu.memory_space<vmem>>, vector<48x1024xbf16>
    %cst_5 = arith.constant dense<0.000000e+00> : vector<48x1024xf32>
    %4 = tpu.matmul %3, %0, %cst_5 {dimension_numbers = #tpu.dot_dimension_numbers<[1], [0], [0], [1], [0, 0, 1, 1], [], []>} : vector<48x1024xbf16>, vector<1024x1024xbf16>, vector<48x1024xf32> -> vector<48x1024xf32>
    %5 = vector.extract_strided_slice %2 {offsets = [0, 0], sizes = [48, 512], strides = [1, 1]} : vector<48x1024xf32> to vector<48x512xf32>
    %6 = vector.extract_strided_slice %2 {offsets = [0, 0], sizes = [48, 512], strides = [1, 1]} : vector<48x1024xf32> to vector<48x512xf32>
    %7 = arith.mulf %5, %6 : vector<48x512xf32>
    %8 = vector.extract_strided_slice %2 {offsets = [0, 512], sizes = [48, 512], strides = [1, 1]} : vector<48x1024xf32> to vector<48x512xf32>
    %9 = vector.extract_strided_slice %2 {offsets = [0, 512], sizes = [48, 512], strides = [1, 1]} : vector<48x1024xf32> to vector<48x512xf32>
    %10 = arith.mulf %8, %9 : vector<48x512xf32>
    %11 = arith.addf %7, %10 : vector<48x512xf32>
    %cst_6 = arith.constant 1.000000e-07 : f32
    %12 = vector.broadcast %cst_6 : f32 to vector<48x512xf32>
    %13 = arith.maximumf %11, %12 : vector<48x512xf32>
    %14 = vector.extract_strided_slice %4 {offsets = [0, 0], sizes = [48, 512], strides = [1, 1]} : vector<48x1024xf32> to vector<48x512xf32>
    %15 = vector.extract_strided_slice %4 {offsets = [0, 0], sizes = [48, 512], strides = [1, 1]} : vector<48x1024xf32> to vector<48x512xf32>
    %16 = arith.mulf %14, %15 : vector<48x512xf32>
    %17 = vector.extract_strided_slice %4 {offsets = [0, 512], sizes = [48, 512], strides = [1, 1]} : vector<48x1024xf32> to vector<48x512xf32>
    %18 = vector.extract_strided_slice %4 {offsets = [0, 512], sizes = [48, 512], strides = [1, 1]} : vector<48x1024xf32> to vector<48x512xf32>
    %19 = arith.mulf %17, %18 : vector<48x512xf32>
    %20 = arith.addf %16, %19 : vector<48x512xf32>
    %cst_7 = arith.constant 1.000000e-07 : f32
    %21 = vector.broadcast %cst_7 : f32 to vector<48x512xf32>
    %22 = arith.maximumf %20, %21 : vector<48x512xf32>
    %23 = math.sqrt %22 : vector<48x512xf32>
    %24 = math.sqrt %13 : vector<48x512xf32>
    %25 = arith.subf %23, %24 : vector<48x512xf32>
    %26 = arith.mulf %25, %25 : vector<48x512xf32>
    %27 = vector.shape_cast %26 : vector<48x512xf32> to vector<1x48x512xf32>
    %cst_8 = arith.constant dense<0.000000e+00> : vector<1xf32>
    %28 = vector.multi_reduction <add>, %27, %cst_8 [1, 2] : vector<1x48x512xf32> to vector<1xf32>
    %29 = vector.shape_cast %28 : vector<1xf32> to vector<1x1x1xf32>
    %30 = vector.extract %29[0, 0, 0] : f32 from vector<1x1x1xf32>
    %31 = vector.shape_cast %22 : vector<48x512xf32> to vector<1x48x512xf32>
    %cst_9 = arith.constant dense<0.000000e+00> : vector<1xf32>
    %32 = vector.multi_reduction <add>, %31, %cst_9 [1, 2] : vector<1x48x512xf32> to vector<1xf32>
    %33 = vector.shape_cast %32 : vector<1xf32> to vector<1x1x1xf32>
    %34 = vector.extract %33[0, 0, 0] : f32 from vector<1x1x1xf32>
    %35 = math.log %22 : vector<48x512xf32>
    %36 = math.log %13 : vector<48x512xf32>
    %37 = arith.subf %35, %36 : vector<48x512xf32>
    %38 = math.absf %37 : vector<48x512xf32>
    %39 = vector.shape_cast %38 : vector<48x512xf32> to vector<1x48x512xf32>
    %cst_10 = arith.constant dense<0.000000e+00> : vector<1xf32>
    %40 = vector.multi_reduction <add>, %39, %cst_10 [1, 2] : vector<1x48x512xf32> to vector<1xf32>
    %41 = vector.shape_cast %40 : vector<1xf32> to vector<1x1x1xf32>
    %42 = vector.extract %41[0, 0, 0] : f32 from vector<1x1x1xf32>
    %cst_11 = arith.constant 5.000000e-01 : f32
    %43 = arith.mulf %cst_11, %42 : f32
    %44 = tpu.iota {dimensions = array<i32: 1>} : vector<8x128xi32>
    %c0_i32 = arith.constant 0 : i32
    %45 = vector.broadcast %c0_i32 : i32 to vector<8x128xi32>
    %46 = arith.cmpi eq, %44, %45 : vector<8x128xi32>
    %c1_i32 = arith.constant 1 : i32
    %47 = vector.broadcast %c1_i32 : i32 to vector<8x128xi32>
    %48 = arith.cmpi eq, %44, %47 : vector<8x128xi32>
    %c2_i32 = arith.constant 2 : i32
    %49 = vector.broadcast %c2_i32 : i32 to vector<8x128xi32>
    %50 = arith.cmpi eq, %44, %49 : vector<8x128xi32>
    %cst_12 = arith.constant 0.000000e+00 : f32
    %51 = vector.broadcast %43 : f32 to vector<8x128xf32>
    %52 = vector.broadcast %cst_12 : f32 to vector<8x128xf32>
    %53 = arith.select %50, %51, %52 : vector<8x128xi1>, vector<8x128xf32>
    %54 = vector.broadcast %34 : f32 to vector<8x128xf32>
    %55 = arith.select %48, %54, %53 : vector<8x128xi1>, vector<8x128xf32>
    %56 = vector.broadcast %30 : f32 to vector<8x128xf32>
    %57 = arith.select %46, %56, %55 : vector<8x128xi1>, vector<8x128xf32>
    %c0_13 = arith.constant 0 : index
    %c0_14 = arith.constant 0 : index
    %c0_15 = arith.constant 0 : index
    %58 = vector.load %arg4[%c0_13, %c0_14, %c0_15] : memref<1x8x128xf32, #tpu.memory_space<vmem>>, vector<1x8x128xf32>
    %59 = vector.shape_cast %58 : vector<1x8x128xf32> to vector<8x128xf32>
    %60 = vector.shape_cast %57 : vector<8x128xf32> to vector<1x8x128xf32>
    tpu.vector_store %arg4[%c0_13, %c0_14, %c0_15], %60 {strides = array<i32>} : memref<1x8x128xf32, #tpu.memory_space<vmem>>, vector<1x8x128xf32>,
    return
  }
  func.func @transform_0(%arg0: i32) -> (i32, i32) {
    %c0_i32 = arith.constant 0 : i32
    %c0_i32_0 = arith.constant 0 : i32
    return %arg0, %c0_i32 : i32, i32
  }
  func.func @transform_1(%arg0: i32) -> (i32, i32) {
    %c0_i32 = arith.constant 0 : i32
    %c0_i32_0 = arith.constant 0 : i32
    return %arg0, %c0_i32 : i32, i32
  }
  func.func @transform_2(%arg0: i32) -> (i32, i32) {
    %c0_i32 = arith.constant 0 : i32
    %c0_i32_0 = arith.constant 0 : i32
    %c0_i32_1 = arith.constant 0 : i32
    return %c0_i32, %c0_i32_0 : i32, i32
  }
  func.func @transform_3(%arg0: i32) -> (i32, i32, i32) {
    %c0_i32 = arith.constant 0 : i32
    %c0_i32_0 = arith.constant 0 : i32
    %c0_i32_1 = arith.constant 0 : i32
    return %arg0, %c0_i32, %c0_i32_0 : i32, i32, i32
  }
}

</mosaic_0001>

<bundles_post_ra>
// kernel: stft_loss.1
= control target key start
LH: loop header
LB: loop body
LE: loop exit
PB: predicated region body
PF: predicated region fallthrough
CT: control target
= control target key end

     0   :  { %s7565_s12 = smov 0   ;;  %s12804_s0 = inlined_call_operand.vmem [shape: bf16[96,1024], index: 0, kind: input, shape index: {}]   ;;  %s12805_s1 = inlined_call_operand.vmem [shape: bf16[96,1024], index: 1, kind: input, shape index: {}]   ;;  %s12806_s2 = inlined_call_operand.vmem [shape: bf16[1024,1024], index: 2, kind: input, shape index: {}]   ;;  %s12807_s3 = inlined_call_operand.vmem [shape: f32[2,8,128], index: 3, kind: output, shape index: {}]  }
   0x1 LB: > { %s7571_s13 = sadd.s32 4294967295, %s7543_s12   ;;  %p6473_p0 = scmp.ge.s32.totalorder %s7543_s12, 1  ;;  %s7543_s12 = sphi %s7565_s12, %s13_s12  }
   0x2   : > { %p151_p1 = scmp.lt.s32.totalorder %s7543_s12, 3 }
   0x4   : > { %p152_p2 = pnand %p6473_p0, %p151_p1 }
   0x6   : > { %155 = sbr.rel (%p152_p2) target bundleno = 1620 (0x654), region = 32 }
   0xd   : > { %v199_v0 = vld [vmem:[%s12806_s2] sm:$0xff]  ;;  %v200_v2 = vld [vmem:[%s12806_s2 + $0x8] sm:$0xff]  ;;  %s181_s11 = smul.u32 6, %s7571_s13  ;;  %p195_p4 = scmp.lt.s32.totalorder %s7571_s13, 1 }
   0xe   : > { %v203_v1 = vld [vmem:[%s12806_s2 + $0x20] sm:$0xff]  ;;  %v204_v4 = vld [vmem:[%s12806_s2 + $0x28] sm:$0xff] }
   0xf   : > { %v7584_v3 = vcombine.high %v199_v0, %v203_v1  ;;  %v7589_v5 = vcombine.low %v199_v0, %v203_v1  ;;  %v207_v6 = vld [vmem:[%s12806_s2 + $0x40] sm:$0xff]  ;;  %v7597_v8 = vcombine.high %v200_v2, %v204_v4  ;;  %v7599_v9 = vcombine.low %v200_v2, %v204_v4  ;;  %v208_v11 = vld [vmem:[%s12806_s2 + $0x48] sm:$0xff]  ;;  %p182_p3 = scmp.lt.s32.totalorder %s181_s11, 11  ;;  %s14409_s13 = smov (!%p195_p4, %s7571_s13), 1 }
  0x10   : > { %v211_v7 = vld [vmem:[%s12806_s2 + $0x60] sm:$0xff]  ;;  %v212_v12 = vld [vmem:[%s12806_s2 + $0x68] sm:$0xff] }
  0x11   : > { %v7601_v10 = vcombine.high %v207_v6, %v211_v7  ;;  %v215_v13 = vld [vmem:[%s12806_s2 + $0x80] sm:$0xff]  ;;  %3415 = vmatprep.subr.bf16.mxu0 %v7584_v3  ;;  %v7613_v14 = vcombine.high %v208_v11, %v212_v12  ;;  %v216_v16 = vld [vmem:[%s12806_s2 + $0x88] sm:$0xff]  ;;  %3667 = vmatprep.subr.bf16.mxu1 %v7597_v8  ;;  %v7627_v18 = vcombine.low %v207_v6, %v211_v7  ;;  %s14407_s11 = smov (!%p182_p3, %s181_s11), 11 }
  0x12   : > { %v219_v15 = vld [vmem:[%s12806_s2 + $0xa0] sm:$0xff]  ;;  %v220_v17 = vld [vmem:[%s12806_s2 + $0xa8] sm:$0xff]  ;;  %3416 = vmatpush1.bf16.msra.mxu0 %v7589_v5  ;;  %3668 = vmatpush1.bf16.msra.mxu1 %v7599_v9  ;;  %v7631_v19 = vcombine.low %v208_v11, %v212_v12  ;;  %s7041_s14 = sshll.u32 %s14407_s11, 5 }
  0x13   : > { %3417 = vmatprep.subr.bf16.mxu0 %v7601_v10  ;;  %v7633_v20 = vcombine.high %v215_v13, %v219_v15  ;;  %3669 = vmatprep.subr.bf16.mxu1 %v7613_v14  ;;  %v7636_v21 = vcombine.high %v216_v16, %v220_v17  ;;  %v223_v22 = vld [vmem:[%s12806_s2 + $0xc0] sm:$0xff]  ;;  %v224_v24 = vld [vmem:[%s12806_s2 + $0xc8] sm:$0xff]  ;;  %v7651_v26 = vcombine.low %v215_v13, %v219_v15  ;;  %s7724_s21 = scalar_lea.vmem %s12804_s0, %s7041_s14  ;;  %s10918_s29 = scalar_lea.vmem %s12805_s1, %s7041_s14 }
  0x14   : > { %v227_v23 = vld [vmem:[%s12806_s2 + $0xe0] sm:$0xff]  ;;  %v228_v25 = vld [vmem:[%s12806_s2 + $0xe8] sm:$0xff]  ;;  %v7655_v27 = vcombine.low %v216_v16, %v220_v17 }
  0x15   : > { %v7657_v28 = vcombine.high %v223_v22, %v227_v23  ;;  %v7660_v29 = vcombine.high %v224_v24, %v228_v25  ;;  %v231_v30 = vld [vmem:[%s12806_s2 + $0x100] sm:$0xff]  ;;  %v232_v32 = vld [vmem:[%s12806_s2 + $0x108] sm:$0xff]  ;;  %v7677_v34 = vcombine.low %v223_v22, %v227_v23  ;;  %v7681_v35 = vcombine.low %v224_v24, %v228_v25 }
  0x16   : > { %3418 = vmatpush1.bf16.msra.mxu0 %v7627_v18  ;;  %3670 = vmatpush1.bf16.msra.mxu1 %v7631_v19  ;;  %v235_v31 = vld [vmem:[%s12806_s2 + $0x120] sm:$0xff]  ;;  %v236_v33 = vld [vmem:[%s12806_s2 + $0x128] sm:$0xff] }
  0x17   : > { %3419 = vmatprep.subr.bf16.mxu0 %v7633_v20  ;;  %3671 = vmatprep.subr.bf16.mxu1 %v7636_v21  ;;  %v7683_v36 = vcombine.high %v231_v30, %v235_v31  ;;  %v7686_v37 = vcombine.high %v232_v32, %v236_v33  ;;  %v239_v38 = vld [vmem:[%s12806_s2 + $0x140] sm:$0xff]  ;;  %v240_v40 = vld [vmem:[%s12806_s2 + $0x148] sm:$0xff]  ;;  %v7702_v42 = vcombine.low %v231_v30, %v235_v31 }
  0x18   : > { %v243_v39 = vld [vmem:[%s12806_s2 + $0x160] sm:$0xff]  ;;  %v244_v41 = vld [vmem:[%s12806_s2 + $0x168] sm:$0xff]  ;;  %v7706_v43 = vcombine.low %v232_v32, %v236_v33 }
  0x19   : > { %v7708_v44 = vcombine.high %v239_v38, %v243_v39  ;;  %v7711_v45 = vcombine.high %v240_v40, %v244_v41  ;;  %v247_v46 = vld [vmem:[%s12806_s2 + $0x180] sm:$0xff]  ;;  %v248_v48 = vld [vmem:[%s12806_s2 + $0x188] sm:$0xff]  ;;  %v7733_v50 = vcombine.low %v239_v38, %v243_v39  ;;  %v7737_v51 = vcombine.low %v240_v40, %v244_v41 }
  0x1a   : > { %3420 = vmatpush1.bf16.msra.mxu0 %v7651_v26  ;;  %3672 = vmatpush1.bf16.msra.mxu1 %v7655_v27  ;;  %v251_v47 = vld [vmem:[%s12806_s2 + $0x1a0] sm:$0xff]  ;;  %v252_v49 = vld [vmem:[%s12806_s2 + $0x1a8] sm:$0xff] }
  0x1b   : > { %3421 = vmatprep.subr.bf16.mxu0 %v7657_v28  ;;  %3673 = vmatprep.subr.bf16.mxu1 %v7660_v29  ;;  %13300 = vst [vmem:[#allocation2_spill] sm:$0xff] %v7737_v51  ;;  %v7739_v52 = vcombine.high %v247_v46, %v251_v47  ;;  %v7742_v53 = vld [vmem:[%s7724_s21] sm:$0xff]  ;;  %v7748_v55 = vcombine.high %v248_v48, %v252_v49  ;;  %v256_v59 = vld [vmem:[%s12806_s2 + $0x1c8] sm:$0xff] }
  0x1c   : > { %v7745_v54 = vld [vmem:[%s7724_s21 + $0x20] sm:$0xff]  ;;  %v260_v60 = vld [vmem:[%s12806_s2 + $0x1e8] sm:$0xff]  ;;  %v7767_v61 = vcombine.low %v247_v46, %v251_v47  ;;  %v7772_v62 = vcombine.low %v248_v48, %v252_v49 }
  0x1d   : > { %13301 = vst [vmem:[#allocation3_spill] sm:$0xff] %v7739_v52  ;;  %13302 = vst [vmem:[#allocation4_spill] sm:$0xff] %v7748_v55  ;;  %v255_v56 = vld [vmem:[%s12806_s2 + $0x1c0] sm:$0xff]  ;;  %v7758_v58 = vcombine.high %v7742_v53, %v7745_v54  ;;  %v7777_v0 = vcombine.high %v256_v59, %v260_v60  ;;  %v264_v4 = vld [vmem:[%s12806_s2 + $0x208] sm:$0xff]  ;;  %v7797_v11 = vcombine.low %v256_v59, %v260_v60 }
  0x1e   : > { %3422 = vmatpush1.bf16.msra.mxu0 %v7677_v34  ;;  %3674 = vmatpush1.bf16.msra.mxu1 %v7681_v35  ;;  %v259_v57 = vld [vmem:[%s12806_s2 + $0x1e0] sm:$0xff]  ;;  %13303 = vst [vmem:[#allocation5_spill] sm:$0xff] %v7767_v61  ;;  %13304 = vst [vmem:[#allocation6_spill] sm:$0xff] %v7772_v62  ;;  %v268_v6 = vld [vmem:[%s12806_s2 + $0x228] sm:$0xff] }
  0x1f   : > { %3423 = vmatprep.subr.bf16.mxu0 %v7683_v36  ;;  %3675 = vmatprep.subr.bf16.mxu1 %v7686_v37  ;;  %v7774_v63 = vcombine.high %v255_v56, %v259_v57  ;;  %13306 = vst [vmem:[#allocation8_spill] sm:$0xff] %v7777_v0  ;;  %v263_v1 = vld [vmem:[%s12806_s2 + $0x200] sm:$0xff]  ;;  %v7793_v7 = vcombine.low %v255_v56, %v259_v57  ;;  %13308 = vst [vmem:[#allocation10_spill] sm:$0xff] %v7797_v11  ;;  %v272_v17 = vld [vmem:[%s12806_s2 + $0x248] sm:$0xff] }
  0x20   : > { %3447 = vmatprep.mubr.bf16.mxu0 %v7758_v58  ;;  %v267_v2 = vld [vmem:[%s12806_s2 + $0x220] sm:$0xff]  ;;  %3699 = vmatprep.mubr.bf16.mxu1 %v7758_v58  ;;  %v7802_v13 = vcombine.high %v264_v4, %v268_v6  ;;  %v276_v22 = vld [vmem:[%s12806_s2 + $0x268] sm:$0xff]  ;;  %v7821_v24 = vcombine.low %v264_v4, %v268_v6 }
  0x21   : > { %13305 = vst [vmem:[#allocation7_spill] sm:$0xff] %v7774_v63  ;;  %13307 = vst [vmem:[#allocation9_spill] sm:$0xff] %v7793_v7  ;;  %v7799_v12 = vcombine.high %v263_v1, %v267_v2  ;;  %v271_v15 = vld [vmem:[%s12806_s2 + $0x240] sm:$0xff]  ;;  %v7817_v23 = vcombine.low %v263_v1, %v267_v2  ;;  %v7826_v30 = vcombine.high %v272_v17, %v276_v22  ;;  %v280_v33 = vld [vmem:[%s12806_s2 + $0x288] sm:$0xff] }
  0x22   : > { %3424 = vmatpush1.bf16.msra.mxu0 %v7702_v42  ;;  %3676 = vmatpush1.bf16.msra.mxu1 %v7706_v43  ;;  %13310 = vst [vmem:[#allocation12_spill] sm:$0xff] %v7802_v13  ;;  %v275_v16 = vld [vmem:[%s12806_s2 + $0x260] sm:$0xff]  ;;  %13312 = vst [vmem:[#allocation14_spill] sm:$0xff] %v7821_v24  ;;  %v284_v38 = vld [vmem:[%s12806_s2 + $0x2a8] sm:$0xff]  ;;  %v7845_v40 = vcombine.low %v272_v17, %v276_v22 }
  0x23   : > { %3425 = vmatprep.subr.bf16.mxu0 %v7708_v44  ;;  %3677 = vmatprep.subr.bf16.mxu1 %v7711_v45  ;;  %13309 = vst [vmem:[#allocation11_spill] sm:$0xff] %v7799_v12  ;;  %13311 = vst [vmem:[#allocation13_spill] sm:$0xff] %v7817_v23  ;;  %v7823_v25 = vcombine.high %v271_v15, %v275_v16  ;;  %v279_v31 = vld [vmem:[%s12806_s2 + $0x280] sm:$0xff]  ;;  %v7841_v39 = vcombine.low %v271_v15, %v275_v16  ;;  %v288_v49 = vld [vmem:[%s12806_s2 + $0x2c8] sm:$0xff] }
  0x24   : > { %13314 = vst [vmem:[#allocation16_spill] sm:$0xff] %v7826_v30  ;;  %v283_v32 = vld [vmem:[%s12806_s2 + $0x2a0] sm:$0xff]  ;;  %13316 = vst [vmem:[#allocation18_spill] sm:$0xff] %v7845_v40  ;;  %v7850_v46 = vcombine.high %v280_v33, %v284_v38  ;;  %v292_v56 = vld [vmem:[%s12806_s2 + $0x2e8] sm:$0xff]  ;;  %v7869_v59 = vcombine.low %v280_v33, %v284_v38 }
  0x25   : > { %13313 = vst [vmem:[#allocation15_spill] sm:$0xff] %v7823_v25  ;;  %13315 = vst [vmem:[#allocation17_spill] sm:$0xff] %v7841_v39  ;;  %v7847_v41 = vcombine.high %v279_v31, %v283_v32  ;;  %v287_v47 = vld [vmem:[%s12806_s2 + $0x2c0] sm:$0xff]  ;;  %v7865_v57 = vcombine.low %v279_v31, %v283_v32  ;;  %v7874_v1 = vcombine.high %v288_v49, %v292_v56  ;;  %v296_v6 = vld [vmem:[%s12806_s2 + $0x308] sm:$0xff] }
  0x26   : > { %3426 = vmatpush1.bf16.msra.mxu0 %v7733_v50  ;;  %3678 = vmatpush1.bf16.msra.mxu1 %v7737_v51  ;;  %13318 = vst [vmem:[#allocation20_spill] sm:$0xff] %v7850_v46  ;;  %v291_v48 = vld [vmem:[%s12806_s2 + $0x2e0] sm:$0xff]  ;;  %13320 = vst [vmem:[#allocation22_spill] sm:$0xff] %v7869_v59  ;;  %v300_v15 = vld [vmem:[%s12806_s2 + $0x328] sm:$0xff]  ;;  %v7893_v17 = vcombine.low %v288_v49, %v292_v56 }
  0x27   : > { %3427 = vmatprep.subr.bf16.mxu0 %v7739_v52  ;;  %3679 = vmatprep.subr.bf16.mxu1 %v7748_v55  ;;  %13317 = vst [vmem:[#allocation19_spill] sm:$0xff] %v7847_v41  ;;  %13319 = vst [vmem:[#allocation21_spill] sm:$0xff] %v7865_v57  ;;  %v7871_v60 = vcombine.high %v287_v47, %v291_v48  ;;  %v295_v2 = vld [vmem:[%s12806_s2 + $0x300] sm:$0xff]  ;;  %v7889_v16 = vcombine.low %v287_v47, %v291_v48  ;;  %v304_v38 = vld [vmem:[%s12806_s2 + $0x348] sm:$0xff] }
  0x28   : > { %13322 = vst [vmem:[#allocation24_spill] sm:$0xff] %v7874_v1  ;;  %v299_v4 = vld [vmem:[%s12806_s2 + $0x320] sm:$0xff]  ;;  %13324 = vst [vmem:[#allocation26_spill] sm:$0xff] %v7893_v17  ;;  %v7898_v31 = vcombine.high %v296_v6, %v300_v15  ;;  %v308_v47 = vld [vmem:[%s12806_s2 + $0x368] sm:$0xff]  ;;  %v7917_v49 = vcombine.low %v296_v6, %v300_v15 }
  0x29   : > { %13321 = vst [vmem:[#allocation23_spill] sm:$0xff] %v7871_v60  ;;  %13323 = vst [vmem:[#allocation25_spill] sm:$0xff] %v7889_v16  ;;  %v7895_v22 = vcombine.high %v295_v2, %v299_v4  ;;  %v303_v32 = vld [vmem:[%s12806_s2 + $0x340] sm:$0xff]  ;;  %v7913_v48 = vcombine.low %v295_v2, %v299_v4  ;;  %v312_v4 = vld [vmem:[%s12806_s2 + $0x388] sm:$0xff] }
  0x2a   : > { %3428 = vmatpush1.bf16.msra.mxu0 %v7767_v61  ;;  %3680 = vmatpush1.bf16.msra.mxu1 %v7772_v62  ;;  %13326 = vst [vmem:[#allocation28_spill] sm:$0xff] %v7898_v31  ;;  %v307_v33 = vld [vmem:[%s12806_s2 + $0x360] sm:$0xff]  ;;  %13328 = vst [vmem:[#allocation30_spill] sm:$0xff] %v7917_v49  ;;  %v316_v6 = vld [vmem:[%s12806_s2 + $0x3a8] sm:$0xff] }
  0x2b   : > { %3429 = vmatprep.subr.bf16.mxu0 %v7774_v63  ;;  %3681 = vmatprep.subr.bf16.mxu1 %v7777_v0  ;;  %13325 = vst [vmem:[#allocation27_spill] sm:$0xff] %v7895_v22  ;;  %13327 = vst [vmem:[#allocation29_spill] sm:$0xff] %v7913_v48  ;;  %v7919_v56 = vcombine.high %v303_v32, %v307_v33  ;;  %v315_v2 = vld [vmem:[%s12806_s2 + $0x3a0] sm:$0xff]  ;;  %v7937_v15 = vcombine.low %v303_v32, %v307_v33  ;;  %v320_v33 = vld [vmem:[%s12806_s2 + $0x3c8] sm:$0xff] }
  0x2c   : > { %v323_v32 = vld [vmem:[%s12806_s2 + $0x3e0] sm:$0xff] }
  0x2d   : > { %13329 = vst [vmem:[#allocation31_spill] sm:$0xff] %v7919_v56  ;;  %13331 = vst [vmem:[#allocation33_spill] sm:$0xff] %v7937_v15  ;;  %v647_v61 = vld [vmem:[%s12806_s2 + $0xe00] sm:$0xff] }
  0x2e   : > { %3430 = vmatpush1.bf16.msra.mxu0 %v7793_v7  ;;  %3682 = vmatpush1.bf16.msra.mxu1 %v7797_v11 }
  0x2f   : > { %3431 = vmatprep.subr.bf16.mxu0 %v7799_v12  ;;  %3683 = vmatprep.subr.bf16.mxu1 %v7802_v13  ;;  %v519_v12 = vld [vmem:[%s12806_s2 + $0xa00] sm:$0xff] }
  0x32   : > { %3432 = vmatpush1.bf16.msra.mxu0 %v7817_v23  ;;  %3684 = vmatpush1.bf16.msra.mxu1 %v7821_v24 }
  0x33   : > { %3433 = vmatprep.subr.bf16.mxu0 %v7823_v25  ;;  %3685 = vmatprep.subr.bf16.mxu1 %v7826_v30 }
  0x36   : > { %3434 = vmatpush1.bf16.msra.mxu0 %v7841_v39  ;;  %3686 = vmatpush1.bf16.msra.mxu1 %v7845_v40  ;;  %v391_v39 = vld [vmem:[%s12806_s2 + $0x600] sm:$0xff] }
  0x37   : > { %3435 = vmatprep.subr.bf16.mxu0 %v7847_v41  ;;  %3687 = vmatprep.subr.bf16.mxu1 %v7850_v46 }
  0x3a   : > { %3436 = vmatpush1.bf16.msra.mxu0 %v7865_v57  ;;  %3688 = vmatpush1.bf16.msra.mxu1 %v7869_v59 }
  0x3b   : > { %3437 = vmatprep.subr.bf16.mxu0 %v7871_v60  ;;  %3689 = vmatprep.subr.bf16.mxu1 %v7874_v1  ;;  %v7922_v1 = vcombine.high %v304_v38, %v308_v47  ;;  %v311_v60 = vld [vmem:[%s12806_s2 + $0x380] sm:$0xff] }
  0x3d   : > { %13330 = vst [vmem:[#allocation32_spill] sm:$0xff] %v7922_v1 }
  0x3e   : > { %3438 = vmatpush1.bf16.msra.mxu0 %v7889_v16  ;;  %3690 = vmatpush1.bf16.msra.mxu1 %v7893_v17  ;;  %v7946_v17 = vcombine.high %v312_v4, %v316_v6  ;;  %v319_v16 = vld [vmem:[%s12806_s2 + $0x3c0] sm:$0xff] }
  0x3f   : > { %3439 = vmatprep.subr.bf16.mxu0 %v7895_v22  ;;  %3691 = vmatprep.subr.bf16.mxu1 %v7898_v31  ;;  %v7941_v31 = vcombine.low %v304_v38, %v308_v47  ;;  %v7943_v22 = vcombine.high %v311_v60, %v315_v2  ;;  %v324_v38 = vld [vmem:[%s12806_s2 + $0x3e8] sm:$0xff]  ;;  %v7961_v47 = vcombine.low %v311_v60, %v315_v2  ;;  %v331_v60 = vld [vmem:[%s12806_s2 + $0x420] sm:$0xff] }
  0x40   : > { %13334 = vst [vmem:[#allocation36_spill] sm:$0xff] %v7946_v17  ;;  %v328_v2 = vld [vmem:[%s12806_s2 + $0x408] sm:$0xff] }
  0x41   : > { %13332 = vst [vmem:[#allocation34_spill] sm:$0xff] %v7941_v31  ;;  %13333 = vst [vmem:[#allocation35_spill] sm:$0xff] %v7943_v22 }
  0x42   : > { %3440 = vmatpush1.bf16.msra.mxu0 %v7913_v48  ;;  %3692 = vmatpush1.bf16.msra.mxu1 %v7917_v49  ;;  %13335 = vst [vmem:[#allocation37_spill] sm:$0xff] %v7961_v47  ;;  %v7970_v49 = vcombine.high %v320_v33, %v324_v38  ;;  %v327_v48 = vld [vmem:[%s12806_s2 + $0x400] sm:$0xff] }
  0x43   : > { %3441 = vmatprep.subr.bf16.mxu0 %v7919_v56  ;;  %3693 = vmatprep.subr.bf16.mxu1 %v7922_v1  ;;  %v7965_v1 = vcombine.low %v312_v4, %v316_v6  ;;  %v7967_v56 = vcombine.high %v319_v16, %v323_v32  ;;  %v332_v4 = vld [vmem:[%s12806_s2 + $0x428] sm:$0xff]  ;;  %v7985_v6 = vcombine.low %v319_v16, %v323_v32  ;;  %v339_v16 = vld [vmem:[%s12806_s2 + $0x460] sm:$0xff] }
  0x44   : > { %13338 = vst [vmem:[#allocation40_spill] sm:$0xff] %v7970_v49  ;;  %v336_v32 = vld [vmem:[%s12806_s2 + $0x448] sm:$0xff] }
  0x45   : > { %13336 = vst [vmem:[#allocation38_spill] sm:$0xff] %v7965_v1  ;;  %13337 = vst [vmem:[#allocation39_spill] sm:$0xff] %v7967_v56 }
  0x46   : > { %3442 = vmatpush1.bf16.msra.mxu0 %v7937_v15  ;;  %3694 = vmatpush1.bf16.msra.mxu1 %v7941_v31  ;;  %13339 = vst [vmem:[#allocation41_spill] sm:$0xff] %v7985_v6  ;;  %v7994_v31 = vcombine.high %v328_v2, %v332_v4  ;;  %v335_v15 = vld [vmem:[%s12806_s2 + $0x440] sm:$0xff] }
  0x47   : > { %3443 = vmatprep.subr.bf16.mxu0 %v7943_v22  ;;  %3695 = vmatprep.subr.bf16.mxu1 %v7946_v17  ;;  %v7989_v17 = vcombine.low %v320_v33, %v324_v38  ;;  %v7991_v22 = vcombine.high %v327_v48, %v331_v60  ;;  %v8007_v33 = vcombine.low %v7742_v53, %v7745_v54  ;;  %v340_v38 = vld [vmem:[%s12806_s2 + $0x468] sm:$0xff]  ;;  %v343_v54 = vld [vmem:[%s12806_s2 + $0x480] sm:$0xff] }
  0x48   : > { %13342 = vst [vmem:[#allocation44_spill] sm:$0xff] %v7994_v31  ;;  %v8021_v59 = vcombine.high %v335_v15, %v339_v16  ;;  %v8024_v53 = vcombine.high %v336_v32, %v340_v38 }
  0x49   : > { %13340 = vst [vmem:[#allocation42_spill] sm:$0xff] %v7989_v17  ;;  %13341 = vst [vmem:[#allocation43_spill] sm:$0xff] %v7991_v22 }
  0x4a   : > { %3444 = vmatpush1.bf16.msra.mxu0 %v7961_v47  ;;  %3696 = vmatpush1.bf16.msra.mxu1 %v7965_v1  ;;  %v8015_v1 = vcombine.low %v327_v48, %v331_v60  ;;  %v8019_v47 = vcombine.low %v328_v2, %v332_v4  ;;  %13345 = vst [vmem:[#allocation47_spill] sm:$0xff] %v8021_v59  ;;  %13346 = vst [vmem:[#allocation48_spill] sm:$0xff] %v8024_v53  ;;  %v347_v48 = vld [vmem:[%s12806_s2 + $0x4a0] sm:$0xff]  ;;  %v344_v2 = vld [vmem:[%s12806_s2 + $0x488] sm:$0xff] }
  0x4b   : > { %3445 = vmatprep.subr.bf16.mxu0 %v7967_v56  ;;  %3697 = vmatprep.subr.bf16.mxu1 %v7970_v49  ;;  %v719_v49 = vld [vmem:[%s7724_s21 + $0x40] sm:$0xff]  ;;  %v348_v4 = vld [vmem:[%s12806_s2 + $0x4a8] sm:$0xff] }
  0x4c   : > { %v723_v56 = vld [vmem:[%s7724_s21 + $0x60] sm:$0xff]  ;;  %13343 = vst [vmem:[#allocation45_spill] sm:$0xff] %v8015_v1  ;;  %13344 = vst [vmem:[#allocation46_spill] sm:$0xff] %v8019_v47  ;;  %v8077_v57 = vcombine.low %v344_v2, %v348_v4 }
  0x4d   : > { %v8032_v60 = vcombine.high %v719_v49, %v723_v56 }
  0x4e   : > { %3446 = vmatpush1.bf16.msra.mxu0 %v7985_v6  ;;  %3698 = vmatpush1.bf16.msra.mxu1 %v7989_v17  ;;  %v8049_v17 = vcombine.high %v343_v54, %v347_v48  ;;  %v8052_v6 = vcombine.high %v344_v2, %v348_v4  ;;  %13352 = vst [vmem:[#allocation54_spill] sm:$0xff] %v8077_v57  ;;  %v364_v2 = vld [vmem:[%s12806_s2 + $0x528] sm:$0xff] }
  0x4f   : > { %3478 = vmatprep.subr.bf16.mxu0 %v7991_v22  ;;  %3730 = vmatprep.subr.bf16.mxu1 %v7994_v31  ;;  %v8043_v31 = vcombine.low %v335_v15, %v339_v16  ;;  %v8047_v22 = vcombine.low %v336_v32, %v340_v38  ;;  %v355_v15 = vld [vmem:[%s12806_s2 + $0x4e0] sm:$0xff]  ;;  %v352_v16 = vld [vmem:[%s12806_s2 + $0x4c8] sm:$0xff]  ;;  %v8068_v38 = vcombine.low %v719_v49, %v723_v56 }
  0x50   : > { %13349 = vst [vmem:[#allocation51_spill] sm:$0xff] %v8049_v17  ;;  %13350 = vst [vmem:[#allocation52_spill] sm:$0xff] %v8052_v6  ;;  %v356_v32 = vld [vmem:[%s12806_s2 + $0x4e8] sm:$0xff]  ;;  %v359_v49 = vld [vmem:[%s12806_s2 + $0x500] sm:$0xff] }
  0x51   : > { %3448 = vmatmul.mubr.bf16.vlgmr.msra.gmra.mrb[0].mxu0 %v8007_v33  ;;  %3700 = vmatmul.mubr.bf16.vlgmr.msra.gmra.mrb[0].mxu1 %v8007_v33  ;;  %13347 = vst [vmem:[#allocation49_spill] sm:$0xff] %v8043_v31  ;;  %13348 = vst [vmem:[#allocation50_spill] sm:$0xff] %v8047_v22  ;;  %v8082_v41 = vcombine.high %v352_v16, %v356_v32  ;;  %v363_v56 = vld [vmem:[%s12806_s2 + $0x520] sm:$0xff] }
  0x52   : > { %3479 = vmatpush1.bf16.msra.mxu0 %v8015_v1  ;;  %3731 = vmatpush1.bf16.msra.mxu1 %v8019_v47  ;;  %v351_v1 = vld [vmem:[%s12806_s2 + $0x4c0] sm:$0xff]  ;;  %v8073_v47 = vcombine.low %v343_v54, %v347_v48  ;;  %v360_v48 = vld [vmem:[%s12806_s2 + $0x508] sm:$0xff] }
  0x53   : > { %3480 = vmatprep.subr.bf16.mxu0 %v8021_v59  ;;  %3732 = vmatprep.subr.bf16.mxu1 %v8024_v53  ;;  %v727_v53 = vld [vmem:[%s7724_s21 + $0x80] sm:$0xff]  ;;  %v8079_v46 = vcombine.high %v351_v1, %v355_v15  ;;  %13354 = vst [vmem:[#allocation56_spill] sm:$0xff] %v8082_v41  ;;  %v8100_v4 = vcombine.low %v351_v1, %v355_v15 }
  0x54   : > { %3457 = vmatprep.mubr.bf16.mxu0 %v8032_v60  ;;  %3709 = vmatprep.mubr.bf16.mxu1 %v8032_v60  ;;  %v731_v59 = vld [vmem:[%s7724_s21 + $0xa0] sm:$0xff]  ;;  %13351 = vst [vmem:[#allocation53_spill] sm:$0xff] %v8073_v47 }
  0x55   : > { %13353 = vst [vmem:[#allocation55_spill] sm:$0xff] %v8079_v46  ;;  %v8090_v54 = vcombine.high %v727_v53, %v731_v59  ;;  %13355 = vst [vmem:[#allocation57_spill] sm:$0xff] %v8100_v4  ;;  %v367_v1 = vld [vmem:[%s12806_s2 + $0x540] sm:$0xff] }
  0x56   : > { %3481 = vmatpush1.bf16.msra.mxu0 %v8043_v31  ;;  %3733 = vmatpush1.bf16.msra.mxu1 %v8047_v22  ;;  %v8110_v22 = vcombine.high %v360_v48, %v364_v2  ;;  %v371_v15 = vld [vmem:[%s12806_s2 + $0x560] sm:$0xff]  ;;  %v8139_v31 = vcombine.low %v360_v48, %v364_v2  ;;  %v376_v48 = vld [vmem:[%s12806_s2 + $0x588] sm:$0xff] }
  0x57   : > { %3482 = vmatprep.subr.bf16.mxu0 %v8049_v17  ;;  %3734 = vmatprep.subr.bf16.mxu1 %v8052_v6  ;;  %v8105_v6 = vcombine.low %v352_v16, %v356_v32  ;;  %v8107_v17 = vcombine.high %v359_v49, %v363_v56  ;;  %v372_v16 = vld [vmem:[%s12806_s2 + $0x568] sm:$0xff]  ;;  %v8126_v32 = vcombine.low %v727_v53, %v731_v59  ;;  %v375_v53 = vld [vmem:[%s12806_s2 + $0x580] sm:$0xff] }
  0x58   : > { %13358 = vst [vmem:[#allocation60_spill] sm:$0xff] %v8110_v22  ;;  %13360 = vst [vmem:[#allocation62_spill] sm:$0xff] %v8139_v31  ;;  %v8141_v40 = vcombine.high %v367_v1, %v371_v15  ;;  %v380_v2 = vld [vmem:[%s12806_s2 + $0x5a8] sm:$0xff] }
  0x59   : > { %3458 = vmatmul.mubr.bf16.gmra.mrb[4].mxu0 %v8068_v38  ;;  %3710 = vmatmul.mubr.bf16.gmra.mrb[4].mxu1 %v8068_v38  ;;  %13356 = vst [vmem:[#allocation58_spill] sm:$0xff] %v8105_v6  ;;  %13357 = vst [vmem:[#allocation59_spill] sm:$0xff] %v8107_v17 }
  0x5a   : > { %3483 = vmatpush1.bf16.msra.mxu0 %v8073_v47  ;;  %3735 = vmatpush1.bf16.msra.mxu1 %v8077_v57  ;;  %v8132_v57 = vld [vmem:[%s7724_s21 + $0x28] sm:$0xff]  ;;  %v8135_v47 = vcombine.low %v359_v49, %v363_v56  ;;  %13361 = vst [vmem:[#allocation63_spill] sm:$0xff] %v8141_v40  ;;  %v379_v49 = vld [vmem:[%s12806_s2 + $0x5a0] sm:$0xff] }
  0x5b   : > { %3484 = vmatprep.subr.bf16.mxu0 %v8079_v46  ;;  %3736 = vmatprep.subr.bf16.mxu1 %v8082_v41  ;;  %v368_v46 = vld [vmem:[%s12806_s2 + $0x548] sm:$0xff] }
  0x5c   : > { %3467 = vmatprep.mubr.bf16.mxu0 %v8090_v54  ;;  %3719 = vmatprep.mubr.bf16.mxu1 %v8090_v54  ;;  %v8129_v41 = vld [vmem:[%s7724_s21 + $0x8] sm:$0xff]  ;;  %13359 = vst [vmem:[#allocation61_spill] sm:$0xff] %v8135_v47  ;;  %v8144_v59 = vcombine.high %v368_v46, %v372_v16 }
  0x5d   : > { %v8154_v56 = vcombine.high %v8129_v41, %v8132_v57 }
  0x5e   : > { %3485 = vmatpush1.bf16.msra.mxu0 %v8100_v4  ;;  %3737 = vmatpush1.bf16.msra.mxu1 %v8105_v6  ;;  %13362 = vst [vmem:[#allocation64_spill] sm:$0xff] %v8144_v59  ;;  %v8171_v6 = vcombine.high %v375_v53, %v379_v49  ;;  %v8174_v4 = vcombine.high %v376_v48, %v380_v2 }
  0x5f   : > { %3486 = vmatprep.subr.bf16.mxu0 %v8107_v17  ;;  %3738 = vmatprep.subr.bf16.mxu1 %v8110_v22  ;;  %v8164_v22 = vcombine.low %v367_v1, %v371_v15  ;;  %v8169_v17 = vcombine.low %v368_v46, %v372_v16  ;;  %v387_v1 = vld [vmem:[%s12806_s2 + $0x5e0] sm:$0xff]  ;;  %v384_v46 = vld [vmem:[%s12806_s2 + $0x5c8] sm:$0xff]  ;;  %v8191_v16 = vcombine.low %v375_v53, %v379_v49 }
  0x60   : > { %13365 = vst [vmem:[#allocation67_spill] sm:$0xff] %v8171_v6  ;;  %13366 = vst [vmem:[#allocation68_spill] sm:$0xff] %v8174_v4  ;;  %v388_v15 = vld [vmem:[%s12806_s2 + $0x5e8] sm:$0xff]  ;;  %v395_v53 = vld [vmem:[%s12806_s2 + $0x620] sm:$0xff] }
  0x61   : > { %3468 = vmatmul.mubr.bf16.gmra.mrb[8].mxu0 %v8126_v32  ;;  %13363 = vst [vmem:[#allocation65_spill] sm:$0xff] %v8164_v22  ;;  %3720 = vmatmul.mubr.bf16.gmra.mrb[8].mxu1 %v8126_v32  ;;  %13364 = vst [vmem:[#allocation66_spill] sm:$0xff] %v8169_v17  ;;  %v392_v49 = vld [vmem:[%s12806_s2 + $0x608] sm:$0xff] }
  0x62   : > { %3487 = vmatpush1.bf16.msra.mxu0 %v8135_v47  ;;  %3739 = vmatpush1.bf16.msra.mxu1 %v8139_v31  ;;  %v383_v47 = vld [vmem:[%s12806_s2 + $0x5c0] sm:$0xff]  ;;  %13367 = vst [vmem:[#allocation69_spill] sm:$0xff] %v8191_v16  ;;  %v8200_v31 = vcombine.high %v384_v46, %v388_v15 }
  0x63   : > { %3488 = vmatprep.subr.bf16.mxu0 %v8141_v40  ;;  %3740 = vmatprep.subr.bf16.mxu1 %v8144_v59  ;;  %v8195_v59 = vcombine.low %v376_v48, %v380_v2  ;;  %v8197_v40 = vcombine.high %v383_v47, %v387_v1  ;;  %v396_v48 = vld [vmem:[%s12806_s2 + $0x628] sm:$0xff]  ;;  %v8215_v2 = vcombine.low %v383_v47, %v387_v1  ;;  %v403_v47 = vld [vmem:[%s12806_s2 + $0x660] sm:$0xff] }
  0x64   : > { %3510 = vmatprep.mubr.bf16.mxu0 %v8154_v56  ;;  %3762 = vmatprep.mubr.bf16.mxu1 %v8154_v56  ;;  %13370 = vst [vmem:[#allocation72_spill] sm:$0xff] %v8200_v31  ;;  %v400_v1 = vld [vmem:[%s12806_s2 + $0x648] sm:$0xff] }
  0x65   : > { %13368 = vst [vmem:[#allocation70_spill] sm:$0xff] %v8195_v59  ;;  %13369 = vst [vmem:[#allocation71_spill] sm:$0xff] %v8197_v40 }
  0x66   : > { %3489 = vmatpush1.bf16.msra.mxu0 %v8164_v22  ;;  %3741 = vmatpush1.bf16.msra.mxu1 %v8169_v17  ;;  %13371 = vst [vmem:[#allocation73_spill] sm:$0xff] %v8215_v2  ;;  %v8224_v17 = vcombine.high %v392_v49, %v396_v48  ;;  %v399_v22 = vld [vmem:[%s12806_s2 + $0x640] sm:$0xff] }
  0x67   : > { %3490 = vmatprep.subr.bf16.mxu0 %v8171_v6  ;;  %3742 = vmatprep.subr.bf16.mxu1 %v8174_v4  ;;  %v8219_v4 = vcombine.low %v384_v46, %v388_v15  ;;  %v8221_v6 = vcombine.high %v391_v39, %v395_v53  ;;  %v404_v46 = vld [vmem:[%s12806_s2 + $0x668] sm:$0xff]  ;;  %v8239_v15 = vcombine.low %v391_v39, %v395_v53  ;;  %v411_v39 = vld [vmem:[%s12806_s2 + $0x6a0] sm:$0xff] }
  0x68   : > { %13374 = vst [vmem:[#allocation76_spill] sm:$0xff] %v8224_v17  ;;  %v408_v53 = vld [vmem:[%s12806_s2 + $0x688] sm:$0xff] }
  0x69   : > { %13372 = vst [vmem:[#allocation74_spill] sm:$0xff] %v8219_v4  ;;  %13373 = vst [vmem:[#allocation75_spill] sm:$0xff] %v8221_v6 }
  0x6a   : > { %3491 = vmatpush1.bf16.msra.mxu0 %v8191_v16  ;;  %3743 = vmatpush1.bf16.msra.mxu1 %v8195_v59  ;;  %13375 = vst [vmem:[#allocation77_spill] sm:$0xff] %v8239_v15  ;;  %v8248_v59 = vcombine.high %v400_v1, %v404_v46  ;;  %v407_v16 = vld [vmem:[%s12806_s2 + $0x680] sm:$0xff] }
  0x6b   : > { %3492 = vmatprep.subr.bf16.mxu0 %v8197_v40  ;;  %3744 = vmatprep.subr.bf16.mxu1 %v8200_v31  ;;  %v8243_v31 = vcombine.low %v392_v49, %v396_v48  ;;  %v8245_v40 = vcombine.high %v399_v22, %v403_v47  ;;  %v412_v49 = vld [vmem:[%s12806_s2 + $0x6a8] sm:$0xff]  ;;  %v8263_v48 = vcombine.low %v399_v22, %v403_v47  ;;  %v419_v22 = vld [vmem:[%s12806_s2 + $0x6e0] sm:$0xff] }
  0x6c   : > { %13378 = vst [vmem:[#allocation80_spill] sm:$0xff] %v8248_v59  ;;  %v416_v47 = vld [vmem:[%s12806_s2 + $0x6c8] sm:$0xff] }
  0x6d   : > { %13376 = vst [vmem:[#allocation78_spill] sm:$0xff] %v8243_v31  ;;  %13377 = vst [vmem:[#allocation79_spill] sm:$0xff] %v8245_v40 }
  0x6e   : > { %3493 = vmatpush1.bf16.msra.mxu0 %v8215_v2  ;;  %3745 = vmatpush1.bf16.msra.mxu1 %v8219_v4  ;;  %13379 = vst [vmem:[#allocation81_spill] sm:$0xff] %v8263_v48  ;;  %v8272_v4 = vcombine.high %v408_v53, %v412_v49  ;;  %v415_v2 = vld [vmem:[%s12806_s2 + $0x6c0] sm:$0xff] }
  0x6f   : > { %3494 = vmatprep.subr.bf16.mxu0 %v8221_v6  ;;  %3746 = vmatprep.subr.bf16.mxu1 %v8224_v17  ;;  %v8267_v17 = vcombine.low %v400_v1, %v404_v46  ;;  %v8269_v6 = vcombine.high %v407_v16, %v411_v39  ;;  %v420_v1 = vld [vmem:[%s12806_s2 + $0x6e8] sm:$0xff]  ;;  %v8287_v46 = vcombine.low %v407_v16, %v411_v39  ;;  %v427_v16 = vld [vmem:[%s12806_s2 + $0x720] sm:$0xff] }
  0x70   : > { %13382 = vst [vmem:[#allocation84_spill] sm:$0xff] %v8272_v4  ;;  %v424_v39 = vld [vmem:[%s12806_s2 + $0x708] sm:$0xff] }
  0x71   : > { %13380 = vst [vmem:[#allocation82_spill] sm:$0xff] %v8267_v17  ;;  %13381 = vst [vmem:[#allocation83_spill] sm:$0xff] %v8269_v6 }
  0x72   : > { %3495 = vmatpush1.bf16.msra.mxu0 %v8239_v15  ;;  %3747 = vmatpush1.bf16.msra.mxu1 %v8243_v31  ;;  %13383 = vst [vmem:[#allocation85_spill] sm:$0xff] %v8287_v46  ;;  %v8296_v31 = vcombine.high %v416_v47, %v420_v1  ;;  %v423_v15 = vld [vmem:[%s12806_s2 + $0x700] sm:$0xff] }
  0x73   : > { %3496 = vmatprep.subr.bf16.mxu0 %v8245_v40  ;;  %3748 = vmatprep.subr.bf16.mxu1 %v8248_v59  ;;  %v8291_v59 = vcombine.low %v408_v53, %v412_v49  ;;  %v8293_v40 = vcombine.high %v415_v2, %v419_v22  ;;  %v428_v53 = vld [vmem:[%s12806_s2 + $0x728] sm:$0xff]  ;;  %v8311_v49 = vcombine.low %v415_v2, %v419_v22  ;;  %v435_v2 = vld [vmem:[%s12806_s2 + $0x760] sm:$0xff] }
  0x74   : > { %13386 = vst [vmem:[#allocation88_spill] sm:$0xff] %v8296_v31  ;;  %v432_v22 = vld [vmem:[%s12806_s2 + $0x748] sm:$0xff] }
  0x75   : > { %13384 = vst [vmem:[#allocation86_spill] sm:$0xff] %v8291_v59  ;;  %13385 = vst [vmem:[#allocation87_spill] sm:$0xff] %v8293_v40 }
  0x76   : > { %3497 = vmatpush1.bf16.msra.mxu0 %v8263_v48  ;;  %3749 = vmatpush1.bf16.msra.mxu1 %v8267_v17  ;;  %13387 = vst [vmem:[#allocation89_spill] sm:$0xff] %v8311_v49  ;;  %v8320_v17 = vcombine.high %v424_v39, %v428_v53  ;;  %v431_v48 = vld [vmem:[%s12806_s2 + $0x740] sm:$0xff] }
  0x77   : > { %3498 = vmatprep.subr.bf16.mxu0 %v8269_v6  ;;  %3750 = vmatprep.subr.bf16.mxu1 %v8272_v4  ;;  %v8315_v4 = vcombine.low %v416_v47, %v420_v1  ;;  %v8317_v6 = vcombine.high %v423_v15, %v427_v16  ;;  %v436_v47 = vld [vmem:[%s12806_s2 + $0x768] sm:$0xff]  ;;  %v8335_v1 = vcombine.low %v423_v15, %v427_v16  ;;  %v443_v15 = vld [vmem:[%s12806_s2 + $0x7a0] sm:$0xff] }
  0x78   : > { %13390 = vst [vmem:[#allocation92_spill] sm:$0xff] %v8320_v17  ;;  %v440_v16 = vld [vmem:[%s12806_s2 + $0x788] sm:$0xff] }
  0x79   : > { %13388 = vst [vmem:[#allocation90_spill] sm:$0xff] %v8315_v4  ;;  %13389 = vst [vmem:[#allocation91_spill] sm:$0xff] %v8317_v6 }
  0x7a   : > { %3499 = vmatpush1.bf16.msra.mxu0 %v8287_v46  ;;  %3751 = vmatpush1.bf16.msra.mxu1 %v8291_v59  ;;  %13391 = vst [vmem:[#allocation93_spill] sm:$0xff] %v8335_v1  ;;  %v8344_v59 = vcombine.high %v432_v22, %v436_v47  ;;  %v439_v46 = vld [vmem:[%s12806_s2 + $0x780] sm:$0xff] }
  0x7b   : > { %3500 = vmatprep.subr.bf16.mxu0 %v8293_v40  ;;  %3752 = vmatprep.subr.bf16.mxu1 %v8296_v31  ;;  %v8339_v31 = vcombine.low %v424_v39, %v428_v53  ;;  %v8341_v40 = vcombine.high %v431_v48, %v435_v2  ;;  %v444_v39 = vld [vmem:[%s12806_s2 + $0x7a8] sm:$0xff]  ;;  %v8359_v53 = vcombine.low %v431_v48, %v435_v2  ;;  %v451_v48 = vld [vmem:[%s12806_s2 + $0x7e0] sm:$0xff] }
  0x7c   : > { %13394 = vst [vmem:[#allocation96_spill] sm:$0xff] %v8344_v59  ;;  %v448_v2 = vld [vmem:[%s12806_s2 + $0x7c8] sm:$0xff] }
  0x7d   : > { %13392 = vst [vmem:[#allocation94_spill] sm:$0xff] %v8339_v31  ;;  %13393 = vst [vmem:[#allocation95_spill] sm:$0xff] %v8341_v40 }
  0x7e   : > { %3501 = vmatpush1.bf16.msra.mxu0 %v8311_v49  ;;  %3753 = vmatpush1.bf16.msra.mxu1 %v8315_v4  ;;  %13395 = vst [vmem:[#allocation97_spill] sm:$0xff] %v8359_v53  ;;  %v8368_v4 = vcombine.high %v440_v16, %v444_v39  ;;  %v447_v49 = vld [vmem:[%s12806_s2 + $0x7c0] sm:$0xff] }
  0x7f   : > { %3502 = vmatprep.subr.bf16.mxu0 %v8317_v6  ;;  %3754 = vmatprep.subr.bf16.mxu1 %v8320_v17  ;;  %v8363_v17 = vcombine.low %v432_v22, %v436_v47  ;;  %v8365_v6 = vcombine.high %v439_v46, %v443_v15  ;;  %v452_v22 = vld [vmem:[%s12806_s2 + $0x7e8] sm:$0xff]  ;;  %v8383_v47 = vcombine.low %v439_v46, %v443_v15  ;;  %v459_v46 = vld [vmem:[%s12806_s2 + $0x820] sm:$0xff] }
  0x80   : > { %13398 = vst [vmem:[#allocation100_spill] sm:$0xff] %v8368_v4  ;;  %v456_v15 = vld [vmem:[%s12806_s2 + $0x808] sm:$0xff] }
  0x81   : > { %13396 = vst [vmem:[#allocation98_spill] sm:$0xff] %v8363_v17  ;;  %13397 = vst [vmem:[#allocation99_spill] sm:$0xff] %v8365_v6 }
  0x82   : > { %3503 = vmatpush1.bf16.msra.mxu0 %v8335_v1  ;;  %3755 = vmatpush1.bf16.msra.mxu1 %v8339_v31  ;;  %13399 = vst [vmem:[#allocation101_spill] sm:$0xff] %v8383_v47  ;;  %v8392_v31 = vcombine.high %v448_v2, %v452_v22  ;;  %v455_v1 = vld [vmem:[%s12806_s2 + $0x800] sm:$0xff] }
  0x83   : > { %3504 = vmatprep.subr.bf16.mxu0 %v8341_v40  ;;  %3756 = vmatprep.subr.bf16.mxu1 %v8344_v59  ;;  %v8387_v59 = vcombine.low %v440_v16, %v444_v39  ;;  %v8389_v40 = vcombine.high %v447_v49, %v451_v48  ;;  %v460_v16 = vld [vmem:[%s12806_s2 + $0x828] sm:$0xff]  ;;  %v8407_v39 = vcombine.low %v447_v49, %v451_v48  ;;  %v467_v49 = vld [vmem:[%s12806_s2 + $0x860] sm:$0xff] }
  0x84   : > { %13402 = vst [vmem:[#allocation104_spill] sm:$0xff] %v8392_v31  ;;  %v464_v48 = vld [vmem:[%s12806_s2 + $0x848] sm:$0xff] }
  0x85   : > { %13400 = vst [vmem:[#allocation102_spill] sm:$0xff] %v8387_v59  ;;  %13401 = vst [vmem:[#allocation103_spill] sm:$0xff] %v8389_v40 }
  0x86   : > { %3505 = vmatpush1.bf16.msra.mxu0 %v8359_v53  ;;  %3757 = vmatpush1.bf16.msra.mxu1 %v8363_v17  ;;  %13403 = vst [vmem:[#allocation105_spill] sm:$0xff] %v8407_v39  ;;  %v8416_v17 = vcombine.high %v456_v15, %v460_v16  ;;  %v463_v53 = vld [vmem:[%s12806_s2 + $0x840] sm:$0xff] }
  0x87   : > { %3506 = vmatprep.subr.bf16.mxu0 %v8365_v6  ;;  %3758 = vmatprep.subr.bf16.mxu1 %v8368_v4  ;;  %v8411_v4 = vcombine.low %v448_v2, %v452_v22  ;;  %v8413_v6 = vcombine.high %v455_v1, %v459_v46  ;;  %v8429_v2 = vcombine.low %v8129_v41, %v8132_v57  ;;  %v468_v22 = vld [vmem:[%s12806_s2 + $0x868] sm:$0xff]  ;;  %v471_v57 = vld [vmem:[%s12806_s2 + $0x880] sm:$0xff] }
  0x88   : > { %13406 = vst [vmem:[#allocation108_spill] sm:$0xff] %v8416_v17  ;;  %v8443_v30 = vcombine.high %v463_v53, %v467_v49  ;;  %v8446_v41 = vcombine.high %v464_v48, %v468_v22 }
  0x89   : > { %13404 = vst [vmem:[#allocation106_spill] sm:$0xff] %v8411_v4  ;;  %13405 = vst [vmem:[#allocation107_spill] sm:$0xff] %v8413_v6 }
  0x8a   : > { %3507 = vmatpush1.bf16.msra.mxu0 %v8383_v47  ;;  %3759 = vmatpush1.bf16.msra.mxu1 %v8387_v59  ;;  %v8437_v59 = vcombine.low %v455_v1, %v459_v46  ;;  %v8441_v47 = vcombine.low %v456_v15, %v460_v16  ;;  %13409 = vst [vmem:[#allocation111_spill] sm:$0xff] %v8443_v30  ;;  %13410 = vst [vmem:[#allocation112_spill] sm:$0xff] %v8446_v41  ;;  %v475_v1 = vld [vmem:[%s12806_s2 + $0x8a0] sm:$0xff]  ;;  %v472_v15 = vld [vmem:[%s12806_s2 + $0x888] sm:$0xff] }
  0x8b   : > { %3508 = vmatprep.subr.bf16.mxu0 %v8389_v40  ;;  %3760 = vmatprep.subr.bf16.mxu1 %v8392_v31  ;;  %v720_v31 = vld [vmem:[%s7724_s21 + $0x48] sm:$0xff] }
  0x8c   : > { %v724_v40 = vld [vmem:[%s7724_s21 + $0x68] sm:$0xff]  ;;  %13407 = vst [vmem:[#allocation109_spill] sm:$0xff] %v8437_v59  ;;  %13408 = vst [vmem:[#allocation110_spill] sm:$0xff] %v8441_v47 }
  0x8d   : > { %v8454_v46 = vcombine.high %v720_v31, %v724_v40  ;;  %v476_v16 = vld [vmem:[%s12806_s2 + $0x8a8] sm:$0xff] }
  0x8e   : > { %3509 = vmatpush1.bf16.msra.mxu0 %v8407_v39  ;;  %3761 = vmatpush1.bf16.msra.mxu1 %v8411_v4  ;;  %v8471_v4 = vcombine.high %v471_v57, %v475_v1  ;;  %v8474_v39 = vcombine.high %v472_v15, %v476_v16  ;;  %v8499_v25 = vcombine.low %v472_v15, %v476_v16  ;;  %v492_v15 = vld [vmem:[%s12806_s2 + $0x928] sm:$0xff] }
  0x8f   : > { %3541 = vmatprep.subr.bf16.mxu0 %v8413_v6  ;;  %3793 = vmatprep.subr.bf16.mxu1 %v8416_v17  ;;  %v8465_v17 = vcombine.low %v463_v53, %v467_v49  ;;  %v8469_v6 = vcombine.low %v464_v48, %v468_v22  ;;  %v483_v53 = vld [vmem:[%s12806_s2 + $0x8e0] sm:$0xff]  ;;  %v480_v49 = vld [vmem:[%s12806_s2 + $0x8c8] sm:$0xff]  ;;  %v8490_v22 = vcombine.low %v720_v31, %v724_v40 }
  0x90   : > { %13413 = vst [vmem:[#allocation115_spill] sm:$0xff] %v8471_v4  ;;  %13414 = vst [vmem:[#allocation116_spill] sm:$0xff] %v8474_v39  ;;  %v484_v48 = vld [vmem:[%s12806_s2 + $0x8e8] sm:$0xff]  ;;  %v487_v40 = vld [vmem:[%s12806_s2 + $0x900] sm:$0xff] }
  0x91   : > { %3511 = vmatmul.mubr.bf16.vlgmr.msra.gmra.mrb[0].mxu0 %v8429_v2  ;;  %3763 = vmatmul.mubr.bf16.vlgmr.msra.gmra.mrb[0].mxu1 %v8429_v2  ;;  %13411 = vst [vmem:[#allocation113_spill] sm:$0xff] %v8465_v17  ;;  %13412 = vst [vmem:[#allocation114_spill] sm:$0xff] %v8469_v6  ;;  %v8504_v23 = vcombine.high %v480_v49, %v484_v48  ;;  %v491_v31 = vld [vmem:[%s12806_s2 + $0x920] sm:$0xff] }
  0x92   : > { %3542 = vmatpush1.bf16.msra.mxu0 %v8437_v59  ;;  %3794 = vmatpush1.bf16.msra.mxu1 %v8441_v47  ;;  %v479_v59 = vld [vmem:[%s12806_s2 + $0x8c0] sm:$0xff]  ;;  %v8495_v47 = vcombine.low %v471_v57, %v475_v1  ;;  %13416 = vst [vmem:[#allocation118_spill] sm:$0xff] %v8499_v25  ;;  %v488_v1 = vld [vmem:[%s12806_s2 + $0x908] sm:$0xff] }
  0x93   : > { %3543 = vmatprep.subr.bf16.mxu0 %v8443_v30  ;;  %3795 = vmatprep.subr.bf16.mxu1 %v8446_v41  ;;  %v728_v41 = vld [vmem:[%s7724_s21 + $0x88] sm:$0xff]  ;;  %v8501_v24 = vcombine.high %v479_v59, %v483_v53  ;;  %13418 = vst [vmem:[#allocation120_spill] sm:$0xff] %v8504_v23  ;;  %v8522_v16 = vcombine.low %v479_v59, %v483_v53  ;;  %v495_v59 = vld [vmem:[%s12806_s2 + $0x940] sm:$0xff] }
  0x94   : > { %3520 = vmatprep.mubr.bf16.mxu0 %v8454_v46  ;;  %3772 = vmatprep.mubr.bf16.mxu1 %v8454_v46  ;;  %v732_v30 = vld [vmem:[%s7724_s21 + $0xa8] sm:$0xff]  ;;  %13415 = vst [vmem:[#allocation117_spill] sm:$0xff] %v8495_v47  ;;  %v499_v53 = vld [vmem:[%s12806_s2 + $0x960] sm:$0xff] }
  0x95   : > { %13417 = vst [vmem:[#allocation119_spill] sm:$0xff] %v8501_v24  ;;  %v8512_v57 = vcombine.high %v728_v41, %v732_v30  ;;  %13419 = vst [vmem:[#allocation121_spill] sm:$0xff] %v8522_v16  ;;  %v8563_v13 = vcombine.high %v495_v59, %v499_v53 }
  0x96   : > { %3544 = vmatpush1.bf16.msra.mxu0 %v8465_v17  ;;  %3796 = vmatpush1.bf16.msra.mxu1 %v8469_v6  ;;  %v8532_v6 = vcombine.high %v488_v1, %v492_v15  ;;  %v8561_v17 = vcombine.low %v488_v1, %v492_v15  ;;  %v504_v1 = vld [vmem:[%s12806_s2 + $0x988] sm:$0xff] }
  0x97   : > { %3545 = vmatprep.subr.bf16.mxu0 %v8471_v4  ;;  %3797 = vmatprep.subr.bf16.mxu1 %v8474_v39  ;;  %v8527_v39 = vcombine.low %v480_v49, %v484_v48  ;;  %v8529_v4 = vcombine.high %v487_v40, %v491_v31  ;;  %v500_v49 = vld [vmem:[%s12806_s2 + $0x968] sm:$0xff]  ;;  %v8548_v48 = vcombine.low %v728_v41, %v732_v30  ;;  %v503_v41 = vld [vmem:[%s12806_s2 + $0x980] sm:$0xff] }
  0x98   : > { %13422 = vst [vmem:[#allocation124_spill] sm:$0xff] %v8532_v6  ;;  %13424 = vst [vmem:[#allocation126_spill] sm:$0xff] %v8561_v17  ;;  %v508_v15 = vld [vmem:[%s12806_s2 + $0x9a8] sm:$0xff] }
  0x99   : > { %3521 = vmatmul.mubr.bf16.gmra.mrb[4].mxu0 %v8490_v22  ;;  %3773 = vmatmul.mubr.bf16.gmra.mrb[4].mxu1 %v8490_v22  ;;  %13420 = vst [vmem:[#allocation122_spill] sm:$0xff] %v8527_v39  ;;  %13421 = vst [vmem:[#allocation123_spill] sm:$0xff] %v8529_v4 }
  0x9a   : > { %3546 = vmatpush1.bf16.msra.mxu0 %v8495_v47  ;;  %3798 = vmatpush1.bf16.msra.mxu1 %v8499_v25  ;;  %v8554_v25 = vld [vmem:[%s7724_s21 + $0x30] sm:$0xff]  ;;  %v8557_v47 = vcombine.low %v487_v40, %v491_v31  ;;  %13425 = vst [vmem:[#allocation127_spill] sm:$0xff] %v8563_v13  ;;  %v507_v40 = vld [vmem:[%s12806_s2 + $0x9a0] sm:$0xff] }
  0x9b   : > { %3547 = vmatprep.subr.bf16.mxu0 %v8501_v24  ;;  %3799 = vmatprep.subr.bf16.mxu1 %v8504_v23  ;;  %v496_v24 = vld [vmem:[%s12806_s2 + $0x948] sm:$0xff]  ;;  %v8551_v23 = vld [vmem:[%s7724_s21 + $0x10] sm:$0xff] }
  0x9c   : > { %3530 = vmatprep.mubr.bf16.mxu0 %v8512_v57  ;;  %3782 = vmatprep.mubr.bf16.mxu1 %v8512_v57  ;;  %13423 = vst [vmem:[#allocation125_spill] sm:$0xff] %v8557_v47  ;;  %v8566_v30 = vcombine.high %v496_v24, %v500_v49  ;;  %v8576_v31 = vcombine.high %v8551_v23, %v8554_v25 }
  0x9e   : > { %3548 = vmatpush1.bf16.msra.mxu0 %v8522_v16  ;;  %3800 = vmatpush1.bf16.msra.mxu1 %v8527_v39  ;;  %13426 = vst [vmem:[#allocation128_spill] sm:$0xff] %v8566_v30  ;;  %v8593_v39 = vcombine.high %v503_v41, %v507_v40  ;;  %v8596_v16 = vcombine.high %v504_v1, %v508_v15 }
  0x9f   : > { %3549 = vmatprep.subr.bf16.mxu0 %v8529_v4  ;;  %3801 = vmatprep.subr.bf16.mxu1 %v8532_v6  ;;  %v8586_v6 = vcombine.low %v495_v59, %v499_v53  ;;  %v8591_v4 = vcombine.low %v496_v24, %v500_v49  ;;  %v515_v59 = vld [vmem:[%s12806_s2 + $0x9e0] sm:$0xff]  ;;  %v512_v24 = vld [vmem:[%s12806_s2 + $0x9c8] sm:$0xff]  ;;  %v8613_v49 = vcombine.low %v503_v41, %v507_v40 }
  0xa0   : > { %13429 = vst [vmem:[#allocation131_spill] sm:$0xff] %v8593_v39  ;;  %13430 = vst [vmem:[#allocation132_spill] sm:$0xff] %v8596_v16  ;;  %v516_v53 = vld [vmem:[%s12806_s2 + $0x9e8] sm:$0xff]  ;;  %v523_v41 = vld [vmem:[%s12806_s2 + $0xa20] sm:$0xff] }
  0xa1   : > { %3531 = vmatmul.mubr.bf16.gmra.mrb[8].mxu0 %v8548_v48  ;;  %13427 = vst [vmem:[#allocation129_spill] sm:$0xff] %v8586_v6  ;;  %3783 = vmatmul.mubr.bf16.gmra.mrb[8].mxu1 %v8548_v48  ;;  %13428 = vst [vmem:[#allocation130_spill] sm:$0xff] %v8591_v4  ;;  %v520_v40 = vld [vmem:[%s12806_s2 + $0xa08] sm:$0xff] }
  0xa2   : > { %3550 = vmatpush1.bf16.msra.mxu0 %v8557_v47  ;;  %3802 = vmatpush1.bf16.msra.mxu1 %v8561_v17  ;;  %v511_v47 = vld [vmem:[%s12806_s2 + $0x9c0] sm:$0xff]  ;;  %13431 = vst [vmem:[#allocation133_spill] sm:$0xff] %v8613_v49  ;;  %v8622_v17 = vcombine.high %v512_v24, %v516_v53 }
  0xa3   : > { %3551 = vmatprep.subr.bf16.mxu0 %v8563_v13  ;;  %3803 = vmatprep.subr.bf16.mxu1 %v8566_v30  ;;  %v8617_v30 = vcombine.low %v504_v1, %v508_v15  ;;  %v8619_v13 = vcombine.high %v511_v47, %v515_v59  ;;  %v524_v1 = vld [vmem:[%s12806_s2 + $0xa28] sm:$0xff]  ;;  %v8637_v15 = vcombine.low %v511_v47, %v515_v59  ;;  %v531_v47 = vld [vmem:[%s12806_s2 + $0xa60] sm:$0xff] }
  0xa4   : > { %3573 = vmatprep.mubr.bf16.mxu0 %v8576_v31  ;;  %3825 = vmatprep.mubr.bf16.mxu1 %v8576_v31  ;;  %13434 = vst [vmem:[#allocation136_spill] sm:$0xff] %v8622_v17  ;;  %v528_v59 = vld [vmem:[%s12806_s2 + $0xa48] sm:$0xff] }
  0xa5   : > { %13432 = vst [vmem:[#allocation134_spill] sm:$0xff] %v8617_v30  ;;  %13433 = vst [vmem:[#allocation135_spill] sm:$0xff] %v8619_v13 }
  0xa6   : > { %3552 = vmatpush1.bf16.msra.mxu0 %v8586_v6  ;;  %3804 = vmatpush1.bf16.msra.mxu1 %v8591_v4  ;;  %13435 = vst [vmem:[#allocation137_spill] sm:$0xff] %v8637_v15  ;;  %v8646_v4 = vcombine.high %v520_v40, %v524_v1  ;;  %v527_v6 = vld [vmem:[%s12806_s2 + $0xa40] sm:$0xff] }
  0xa7   : > { %3553 = vmatprep.subr.bf16.mxu0 %v8593_v39  ;;  %3805 = vmatprep.subr.bf16.mxu1 %v8596_v16  ;;  %v8641_v16 = vcombine.low %v512_v24, %v516_v53  ;;  %v8643_v39 = vcombine.high %v519_v12, %v523_v41  ;;  %v532_v24 = vld [vmem:[%s12806_s2 + $0xa68] sm:$0xff]  ;;  %v8661_v53 = vcombine.low %v519_v12, %v523_v41  ;;  %v539_v12 = vld [vmem:[%s12806_s2 + $0xaa0] sm:$0xff] }
  0xa8   : > { %13438 = vst [vmem:[#allocation140_spill] sm:$0xff] %v8646_v4  ;;  %v536_v41 = vld [vmem:[%s12806_s2 + $0xa88] sm:$0xff] }
  0xa9   : > { %13436 = vst [vmem:[#allocation138_spill] sm:$0xff] %v8641_v16  ;;  %13437 = vst [vmem:[#allocation139_spill] sm:$0xff] %v8643_v39 }
  0xaa   : > { %3554 = vmatpush1.bf16.msra.mxu0 %v8613_v49  ;;  %3806 = vmatpush1.bf16.msra.mxu1 %v8617_v30  ;;  %13439 = vst [vmem:[#allocation141_spill] sm:$0xff] %v8661_v53  ;;  %v8670_v30 = vcombine.high %v528_v59, %v532_v24  ;;  %v535_v49 = vld [vmem:[%s12806_s2 + $0xa80] sm:$0xff] }
  0xab   : > { %3555 = vmatprep.subr.bf16.mxu0 %v8619_v13  ;;  %3807 = vmatprep.subr.bf16.mxu1 %v8622_v17  ;;  %v8665_v17 = vcombine.low %v520_v40, %v524_v1  ;;  %v8667_v13 = vcombine.high %v527_v6, %v531_v47  ;;  %v540_v40 = vld [vmem:[%s12806_s2 + $0xaa8] sm:$0xff]  ;;  %v8685_v1 = vcombine.low %v527_v6, %v531_v47  ;;  %v547_v6 = vld [vmem:[%s12806_s2 + $0xae0] sm:$0xff] }
  0xac   : > { %13442 = vst [vmem:[#allocation144_spill] sm:$0xff] %v8670_v30  ;;  %v544_v47 = vld [vmem:[%s12806_s2 + $0xac8] sm:$0xff] }
  0xad   : > { %13440 = vst [vmem:[#allocation142_spill] sm:$0xff] %v8665_v17  ;;  %13441 = vst [vmem:[#allocation143_spill] sm:$0xff] %v8667_v13 }
  0xae   : > { %3556 = vmatpush1.bf16.msra.mxu0 %v8637_v15  ;;  %3808 = vmatpush1.bf16.msra.mxu1 %v8641_v16  ;;  %13443 = vst [vmem:[#allocation145_spill] sm:$0xff] %v8685_v1  ;;  %v8694_v16 = vcombine.high %v536_v41, %v540_v40  ;;  %v543_v15 = vld [vmem:[%s12806_s2 + $0xac0] sm:$0xff] }
  0xaf   : > { %3557 = vmatprep.subr.bf16.mxu0 %v8643_v39  ;;  %3809 = vmatprep.subr.bf16.mxu1 %v8646_v4  ;;  %v8689_v4 = vcombine.low %v528_v59, %v532_v24  ;;  %v8691_v39 = vcombine.high %v535_v49, %v539_v12  ;;  %v548_v59 = vld [vmem:[%s12806_s2 + $0xae8] sm:$0xff]  ;;  %v8709_v24 = vcombine.low %v535_v49, %v539_v12  ;;  %v555_v49 = vld [vmem:[%s12806_s2 + $0xb20] sm:$0xff] }
  0xb0   : > { %13446 = vst [vmem:[#allocation148_spill] sm:$0xff] %v8694_v16  ;;  %v552_v12 = vld [vmem:[%s12806_s2 + $0xb08] sm:$0xff] }
  0xb1   : > { %13444 = vst [vmem:[#allocation146_spill] sm:$0xff] %v8689_v4  ;;  %13445 = vst [vmem:[#allocation147_spill] sm:$0xff] %v8691_v39 }
  0xb2   : > { %3558 = vmatpush1.bf16.msra.mxu0 %v8661_v53  ;;  %3810 = vmatpush1.bf16.msra.mxu1 %v8665_v17  ;;  %13447 = vst [vmem:[#allocation149_spill] sm:$0xff] %v8709_v24  ;;  %v8718_v17 = vcombine.high %v544_v47, %v548_v59  ;;  %v551_v53 = vld [vmem:[%s12806_s2 + $0xb00] sm:$0xff] }
  0xb3   : > { %3559 = vmatprep.subr.bf16.mxu0 %v8667_v13  ;;  %3811 = vmatprep.subr.bf16.mxu1 %v8670_v30  ;;  %v8713_v30 = vcombine.low %v536_v41, %v540_v40  ;;  %v8715_v13 = vcombine.high %v543_v15, %v547_v6  ;;  %v556_v41 = vld [vmem:[%s12806_s2 + $0xb28] sm:$0xff]  ;;  %v8733_v40 = vcombine.low %v543_v15, %v547_v6  ;;  %v563_v15 = vld [vmem:[%s12806_s2 + $0xb60] sm:$0xff] }
  0xb4   : > { %13450 = vst [vmem:[#allocation152_spill] sm:$0xff] %v8718_v17  ;;  %v560_v6 = vld [vmem:[%s12806_s2 + $0xb48] sm:$0xff] }
  0xb5   : > { %13448 = vst [vmem:[#allocation150_spill] sm:$0xff] %v8713_v30  ;;  %13449 = vst [vmem:[#allocation151_spill] sm:$0xff] %v8715_v13 }
  0xb6   : > { %3560 = vmatpush1.bf16.msra.mxu0 %v8685_v1  ;;  %3812 = vmatpush1.bf16.msra.mxu1 %v8689_v4  ;;  %13451 = vst [vmem:[#allocation153_spill] sm:$0xff] %v8733_v40  ;;  %v8742_v4 = vcombine.high %v552_v12, %v556_v41  ;;  %v559_v1 = vld [vmem:[%s12806_s2 + $0xb40] sm:$0xff] }
  0xb7   : > { %3561 = vmatprep.subr.bf16.mxu0 %v8691_v39  ;;  %3813 = vmatprep.subr.bf16.mxu1 %v8694_v16  ;;  %v8737_v16 = vcombine.low %v544_v47, %v548_v59  ;;  %v8739_v39 = vcombine.high %v551_v53, %v555_v49  ;;  %v564_v47 = vld [vmem:[%s12806_s2 + $0xb68] sm:$0xff]  ;;  %v8757_v59 = vcombine.low %v551_v53, %v555_v49  ;;  %v571_v53 = vld [vmem:[%s12806_s2 + $0xba0] sm:$0xff] }
  0xb8   : > { %13454 = vst [vmem:[#allocation156_spill] sm:$0xff] %v8742_v4  ;;  %v568_v49 = vld [vmem:[%s12806_s2 + $0xb88] sm:$0xff] }
  0xb9   : > { %13452 = vst [vmem:[#allocation154_spill] sm:$0xff] %v8737_v16  ;;  %13453 = vst [vmem:[#allocation155_spill] sm:$0xff] %v8739_v39 }
  0xba   : > { %3562 = vmatpush1.bf16.msra.mxu0 %v8709_v24  ;;  %3814 = vmatpush1.bf16.msra.mxu1 %v8713_v30  ;;  %13455 = vst [vmem:[#allocation157_spill] sm:$0xff] %v8757_v59  ;;  %v8766_v30 = vcombine.high %v560_v6, %v564_v47  ;;  %v567_v24 = vld [vmem:[%s12806_s2 + $0xb80] sm:$0xff] }
  0xbb   : > { %3563 = vmatprep.subr.bf16.mxu0 %v8715_v13  ;;  %3815 = vmatprep.subr.bf16.mxu1 %v8718_v17  ;;  %v8761_v17 = vcombine.low %v552_v12, %v556_v41  ;;  %v8763_v13 = vcombine.high %v559_v1, %v563_v15  ;;  %v572_v12 = vld [vmem:[%s12806_s2 + $0xba8] sm:$0xff]  ;;  %v8781_v41 = vcombine.low %v559_v1, %v563_v15  ;;  %v579_v1 = vld [vmem:[%s12806_s2 + $0xbe0] sm:$0xff] }
  0xbc   : > { %13458 = vst [vmem:[#allocation160_spill] sm:$0xff] %v8766_v30  ;;  %v576_v15 = vld [vmem:[%s12806_s2 + $0xbc8] sm:$0xff] }
  0xbd   : > { %13456 = vst [vmem:[#allocation158_spill] sm:$0xff] %v8761_v17  ;;  %13457 = vst [vmem:[#allocation159_spill] sm:$0xff] %v8763_v13 }
  0xbe   : > { %3564 = vmatpush1.bf16.msra.mxu0 %v8733_v40  ;;  %3816 = vmatpush1.bf16.msra.mxu1 %v8737_v16  ;;  %13459 = vst [vmem:[#allocation161_spill] sm:$0xff] %v8781_v41  ;;  %v8790_v16 = vcombine.high %v568_v49, %v572_v12  ;;  %v575_v40 = vld [vmem:[%s12806_s2 + $0xbc0] sm:$0xff] }
  0xbf   : > { %3565 = vmatprep.subr.bf16.mxu0 %v8739_v39  ;;  %3817 = vmatprep.subr.bf16.mxu1 %v8742_v4  ;;  %v8785_v4 = vcombine.low %v560_v6, %v564_v47  ;;  %v8787_v39 = vcombine.high %v567_v24, %v571_v53  ;;  %v580_v6 = vld [vmem:[%s12806_s2 + $0xbe8] sm:$0xff]  ;;  %v8805_v47 = vcombine.low %v567_v24, %v571_v53  ;;  %v587_v24 = vld [vmem:[%s12806_s2 + $0xc20] sm:$0xff] }
  0xc0   : > { %13462 = vst [vmem:[#allocation164_spill] sm:$0xff] %v8790_v16  ;;  %v584_v53 = vld [vmem:[%s12806_s2 + $0xc08] sm:$0xff] }
  0xc1   : > { %13460 = vst [vmem:[#allocation162_spill] sm:$0xff] %v8785_v4  ;;  %13461 = vst [vmem:[#allocation163_spill] sm:$0xff] %v8787_v39 }
  0xc2   : > { %3566 = vmatpush1.bf16.msra.mxu0 %v8757_v59  ;;  %3818 = vmatpush1.bf16.msra.mxu1 %v8761_v17  ;;  %13463 = vst [vmem:[#allocation165_spill] sm:$0xff] %v8805_v47  ;;  %v8814_v17 = vcombine.high %v576_v15, %v580_v6  ;;  %v583_v59 = vld [vmem:[%s12806_s2 + $0xc00] sm:$0xff] }
  0xc3   : > { %3567 = vmatprep.subr.bf16.mxu0 %v8763_v13  ;;  %3819 = vmatprep.subr.bf16.mxu1 %v8766_v30  ;;  %v8809_v30 = vcombine.low %v568_v49, %v572_v12  ;;  %v8811_v13 = vcombine.high %v575_v40, %v579_v1  ;;  %v588_v49 = vld [vmem:[%s12806_s2 + $0xc28] sm:$0xff]  ;;  %v8829_v12 = vcombine.low %v575_v40, %v579_v1  ;;  %v595_v40 = vld [vmem:[%s12806_s2 + $0xc60] sm:$0xff] }
  0xc4   : > { %13466 = vst [vmem:[#allocation168_spill] sm:$0xff] %v8814_v17  ;;  %v592_v1 = vld [vmem:[%s12806_s2 + $0xc48] sm:$0xff] }
  0xc5   : > { %13464 = vst [vmem:[#allocation166_spill] sm:$0xff] %v8809_v30  ;;  %13465 = vst [vmem:[#allocation167_spill] sm:$0xff] %v8811_v13 }
  0xc6   : > { %3568 = vmatpush1.bf16.msra.mxu0 %v8781_v41  ;;  %3820 = vmatpush1.bf16.msra.mxu1 %v8785_v4  ;;  %13467 = vst [vmem:[#allocation169_spill] sm:$0xff] %v8829_v12  ;;  %v8838_v4 = vcombine.high %v584_v53, %v588_v49  ;;  %v591_v41 = vld [vmem:[%s12806_s2 + $0xc40] sm:$0xff] }
  0xc7   : > { %3569 = vmatprep.subr.bf16.mxu0 %v8787_v39  ;;  %3821 = vmatprep.subr.bf16.mxu1 %v8790_v16  ;;  %v8833_v16 = vcombine.low %v576_v15, %v580_v6  ;;  %v8835_v39 = vcombine.high %v583_v59, %v587_v24  ;;  %v8851_v15 = vcombine.low %v8551_v23, %v8554_v25  ;;  %v596_v6 = vld [vmem:[%s12806_s2 + $0xc68] sm:$0xff]  ;;  %v599_v25 = vld [vmem:[%s12806_s2 + $0xc80] sm:$0xff] }
  0xc8   : > { %13470 = vst [vmem:[#allocation172_spill] sm:$0xff] %v8838_v4  ;;  %v8865_v11 = vcombine.high %v591_v41, %v595_v40  ;;  %v8868_v23 = vcombine.high %v592_v1, %v596_v6 }
  0xc9   : > { %13468 = vst [vmem:[#allocation170_spill] sm:$0xff] %v8833_v16  ;;  %13469 = vst [vmem:[#allocation171_spill] sm:$0xff] %v8835_v39 }
  0xca   : > { %3570 = vmatpush1.bf16.msra.mxu0 %v8805_v47  ;;  %3822 = vmatpush1.bf16.msra.mxu1 %v8809_v30  ;;  %v8859_v30 = vcombine.low %v583_v59, %v587_v24  ;;  %v8863_v47 = vcombine.low %v584_v53, %v588_v49  ;;  %13473 = vst [vmem:[#allocation175_spill] sm:$0xff] %v8865_v11  ;;  %13474 = vst [vmem:[#allocation176_spill] sm:$0xff] %v8868_v23  ;;  %v603_v59 = vld [vmem:[%s12806_s2 + $0xca0] sm:$0xff]  ;;  %v600_v53 = vld [vmem:[%s12806_s2 + $0xc88] sm:$0xff] }
  0xcb   : > { %3571 = vmatprep.subr.bf16.mxu0 %v8811_v13  ;;  %3823 = vmatprep.subr.bf16.mxu1 %v8814_v17  ;;  %v721_v17 = vld [vmem:[%s7724_s21 + $0x50] sm:$0xff]  ;;  %v604_v49 = vld [vmem:[%s12806_s2 + $0xca8] sm:$0xff] }
  0xcc   : > { %v725_v13 = vld [vmem:[%s7724_s21 + $0x70] sm:$0xff]  ;;  %13471 = vst [vmem:[#allocation173_spill] sm:$0xff] %v8859_v30  ;;  %13472 = vst [vmem:[#allocation174_spill] sm:$0xff] %v8863_v47  ;;  %v8921_v7 = vcombine.low %v600_v53, %v604_v49 }
  0xcd   : > { %v8876_v24 = vcombine.high %v721_v17, %v725_v13 }
  0xce   : > { %3572 = vmatpush1.bf16.msra.mxu0 %v8829_v12  ;;  %3824 = vmatpush1.bf16.msra.mxu1 %v8833_v16  ;;  %v8893_v16 = vcombine.high %v599_v25, %v603_v59  ;;  %v8896_v12 = vcombine.high %v600_v53, %v604_v49  ;;  %13480 = vst [vmem:[#allocation182_spill] sm:$0xff] %v8921_v7  ;;  %v620_v53 = vld [vmem:[%s12806_s2 + $0xd28] sm:$0xff] }
  0xcf   : > { %3604 = vmatprep.subr.bf16.mxu0 %v8835_v39  ;;  %3856 = vmatprep.subr.bf16.mxu1 %v8838_v4  ;;  %v8887_v4 = vcombine.low %v591_v41, %v595_v40  ;;  %v8891_v39 = vcombine.low %v592_v1, %v596_v6  ;;  %v611_v41 = vld [vmem:[%s12806_s2 + $0xce0] sm:$0xff]  ;;  %v608_v40 = vld [vmem:[%s12806_s2 + $0xcc8] sm:$0xff]  ;;  %v8912_v6 = vcombine.low %v721_v17, %v725_v13 }
  0xd0   : > { %13477 = vst [vmem:[#allocation179_spill] sm:$0xff] %v8893_v16  ;;  %13478 = vst [vmem:[#allocation180_spill] sm:$0xff] %v8896_v12  ;;  %v612_v1 = vld [vmem:[%s12806_s2 + $0xce8] sm:$0xff]  ;;  %v615_v13 = vld [vmem:[%s12806_s2 + $0xd00] sm:$0xff] }
  0xd1   : > { %3574 = vmatmul.mubr.bf16.vlgmr.msra.gmra.mrb[0].mxu0 %v8851_v15  ;;  %3826 = vmatmul.mubr.bf16.vlgmr.msra.gmra.mrb[0].mxu1 %v8851_v15  ;;  %13475 = vst [vmem:[#allocation177_spill] sm:$0xff] %v8887_v4  ;;  %13476 = vst [vmem:[#allocation178_spill] sm:$0xff] %v8891_v39  ;;  %v8926_v63 = vcombine.high %v608_v40, %v612_v1  ;;  %v619_v17 = vld [vmem:[%s12806_s2 + $0xd20] sm:$0xff] }
  0xd2   : > { %3605 = vmatpush1.bf16.msra.mxu0 %v8859_v30  ;;  %3857 = vmatpush1.bf16.msra.mxu1 %v8863_v47  ;;  %v607_v30 = vld [vmem:[%s12806_s2 + $0xcc0] sm:$0xff]  ;;  %v8917_v47 = vcombine.low %v599_v25, %v603_v59  ;;  %v616_v59 = vld [vmem:[%s12806_s2 + $0xd08] sm:$0xff] }
  0xd3   : > { %3606 = vmatprep.subr.bf16.mxu0 %v8865_v11  ;;  %3858 = vmatprep.subr.bf16.mxu1 %v8868_v23  ;;  %v729_v23 = vld [vmem:[%s7724_s21 + $0x90] sm:$0xff]  ;;  %v8923_v0 = vcombine.high %v607_v30, %v611_v41  ;;  %13482 = vst [vmem:[#allocation184_spill] sm:$0xff] %v8926_v63  ;;  %v8944_v49 = vcombine.low %v607_v30, %v611_v41  ;;  %v623_v30 = vld [vmem:[%s12806_s2 + $0xd40] sm:$0xff] }
  0xd4   : > { %3583 = vmatprep.mubr.bf16.mxu0 %v8876_v24  ;;  %3835 = vmatprep.mubr.bf16.mxu1 %v8876_v24  ;;  %v733_v11 = vld [vmem:[%s7724_s21 + $0xb0] sm:$0xff]  ;;  %13479 = vst [vmem:[#allocation181_spill] sm:$0xff] %v8917_v47  ;;  %v627_v41 = vld [vmem:[%s12806_s2 + $0xd60] sm:$0xff] }
  0xd5   : > { %13481 = vst [vmem:[#allocation183_spill] sm:$0xff] %v8923_v0  ;;  %v8934_v25 = vcombine.high %v729_v23, %v733_v11  ;;  %13483 = vst [vmem:[#allocation185_spill] sm:$0xff] %v8944_v49  ;;  %v8985_v62 = vcombine.high %v623_v30, %v627_v41 }
  0xd6   : > { %3607 = vmatpush1.bf16.msra.mxu0 %v8887_v4  ;;  %3859 = vmatpush1.bf16.msra.mxu1 %v8891_v39  ;;  %v8954_v39 = vcombine.high %v616_v59, %v620_v53  ;;  %v8983_v4 = vcombine.low %v616_v59, %v620_v53  ;;  %v632_v59 = vld [vmem:[%s12806_s2 + $0xd88] sm:$0xff] }
  0xd7   : > { %3608 = vmatprep.subr.bf16.mxu0 %v8893_v16  ;;  %3860 = vmatprep.subr.bf16.mxu1 %v8896_v12  ;;  %v8949_v12 = vcombine.low %v608_v40, %v612_v1  ;;  %v8951_v16 = vcombine.high %v615_v13, %v619_v17  ;;  %v628_v40 = vld [vmem:[%s12806_s2 + $0xd68] sm:$0xff]  ;;  %v8970_v1 = vcombine.low %v729_v23, %v733_v11  ;;  %v631_v23 = vld [vmem:[%s12806_s2 + $0xd80] sm:$0xff] }
  0xd8   : > { %13486 = vst [vmem:[#allocation188_spill] sm:$0xff] %v8954_v39  ;;  %13488 = vst [vmem:[#allocation190_spill] sm:$0xff] %v8983_v4  ;;  %v636_v53 = vld [vmem:[%s12806_s2 + $0xda8] sm:$0xff] }
  0xd9   : > { %3584 = vmatmul.mubr.bf16.gmra.mrb[4].mxu0 %v8912_v6  ;;  %3836 = vmatmul.mubr.bf16.gmra.mrb[4].mxu1 %v8912_v6  ;;  %13484 = vst [vmem:[#allocation186_spill] sm:$0xff] %v8949_v12  ;;  %13485 = vst [vmem:[#allocation187_spill] sm:$0xff] %v8951_v16 }
  0xda   : > { %3609 = vmatpush1.bf16.msra.mxu0 %v8917_v47  ;;  %3861 = vmatpush1.bf16.msra.mxu1 %v8921_v7  ;;  %v8976_v7 = vld [vmem:[%s7724_s21 + $0x38] sm:$0xff]  ;;  %v8979_v47 = vcombine.low %v615_v13, %v619_v17  ;;  %13489 = vst [vmem:[#allocation191_spill] sm:$0xff] %v8985_v62  ;;  %v635_v13 = vld [vmem:[%s12806_s2 + $0xda0] sm:$0xff] }
  0xdb   : > { %3610 = vmatprep.subr.bf16.mxu0 %v8923_v0  ;;  %3862 = vmatprep.subr.bf16.mxu1 %v8926_v63  ;;  %v624_v0 = vld [vmem:[%s12806_s2 + $0xd48] sm:$0xff]  ;;  %v8973_v63 = vld [vmem:[%s7724_s21 + $0x18] sm:$0xff] }
  0xdc   : > { %3593 = vmatprep.mubr.bf16.mxu0 %v8934_v25  ;;  %3845 = vmatprep.mubr.bf16.mxu1 %v8934_v25  ;;  %13487 = vst [vmem:[#allocation189_spill] sm:$0xff] %v8979_v47  ;;  %v8988_v11 = vcombine.high %v624_v0, %v628_v40  ;;  %v8998_v17 = vcombine.high %v8973_v63, %v8976_v7 }
  0xde   : > { %3611 = vmatpush1.bf16.msra.mxu0 %v8944_v49  ;;  %3863 = vmatpush1.bf16.msra.mxu1 %v8949_v12  ;;  %13490 = vst [vmem:[#allocation192_spill] sm:$0xff] %v8988_v11  ;;  %v9015_v12 = vcombine.high %v631_v23, %v635_v13  ;;  %v9018_v49 = vcombine.high %v632_v59, %v636_v53 }
  0xdf   : > { %3612 = vmatprep.subr.bf16.mxu0 %v8951_v16  ;;  %3864 = vmatprep.subr.bf16.mxu1 %v8954_v39  ;;  %v9008_v39 = vcombine.low %v623_v30, %v627_v41  ;;  %v9013_v16 = vcombine.low %v624_v0, %v628_v40  ;;  %v643_v30 = vld [vmem:[%s12806_s2 + $0xde0] sm:$0xff]  ;;  %v640_v0 = vld [vmem:[%s12806_s2 + $0xdc8] sm:$0xff]  ;;  %v9035_v40 = vcombine.low %v631_v23, %v635_v13 }
  0xe0   : > { %13493 = vst [vmem:[#allocation195_spill] sm:$0xff] %v9015_v12  ;;  %13494 = vst [vmem:[#allocation196_spill] sm:$0xff] %v9018_v49  ;;  %v644_v41 = vld [vmem:[%s12806_s2 + $0xde8] sm:$0xff]  ;;  %v651_v23 = vld [vmem:[%s12806_s2 + $0xe20] sm:$0xff] }
  0xe1   : > { %3594 = vmatmul.mubr.bf16.gmra.mrb[8].mxu0 %v8970_v1  ;;  %13491 = vst [vmem:[#allocation193_spill] sm:$0xff] %v9008_v39  ;;  %3846 = vmatmul.mubr.bf16.gmra.mrb[8].mxu1 %v8970_v1  ;;  %13492 = vst [vmem:[#allocation194_spill] sm:$0xff] %v9013_v16  ;;  %v648_v13 = vld [vmem:[%s12806_s2 + $0xe08] sm:$0xff] }
  0xe2   : > { %3613 = vmatpush1.bf16.msra.mxu0 %v8979_v47  ;;  %3865 = vmatpush1.bf16.msra.mxu1 %v8983_v4  ;;  %v639_v47 = vld [vmem:[%s12806_s2 + $0xdc0] sm:$0xff]  ;;  %13495 = vst [vmem:[#allocation197_spill] sm:$0xff] %v9035_v40  ;;  %v9044_v4 = vcombine.high %v640_v0, %v644_v41 }
  0xe3   : > { %3614 = vmatprep.subr.bf16.mxu0 %v8985_v62  ;;  %3866 = vmatprep.subr.bf16.mxu1 %v8988_v11  ;;  %v9039_v11 = vcombine.low %v632_v59, %v636_v53  ;;  %v9041_v62 = vcombine.high %v639_v47, %v643_v30  ;;  %v652_v59 = vld [vmem:[%s12806_s2 + $0xe28] sm:$0xff]  ;;  %v9059_v53 = vcombine.low %v639_v47, %v643_v30  ;;  %v659_v47 = vld [vmem:[%s12806_s2 + $0xe60] sm:$0xff] }
  0xe4   : > { %3636 = vmatprep.mubr.bf16.mxu0 %v8998_v17  ;;  %3888 = vmatprep.mubr.bf16.mxu1 %v8998_v17  ;;  %13498 = vst [vmem:[#allocation200_spill] sm:$0xff] %v9044_v4  ;;  %v656_v30 = vld [vmem:[%s12806_s2 + $0xe48] sm:$0xff] }
  0xe5   : > { %13496 = vst [vmem:[#allocation198_spill] sm:$0xff] %v9039_v11  ;;  %13497 = vst [vmem:[#allocation199_spill] sm:$0xff] %v9041_v62 }
  0xe6   : > { %3615 = vmatpush1.bf16.msra.mxu0 %v9008_v39  ;;  %3867 = vmatpush1.bf16.msra.mxu1 %v9013_v16  ;;  %13499 = vst [vmem:[#allocation201_spill] sm:$0xff] %v9059_v53  ;;  %v9068_v16 = vcombine.high %v648_v13, %v652_v59  ;;  %v655_v39 = vld [vmem:[%s12806_s2 + $0xe40] sm:$0xff] }
  0xe7   : > { %3616 = vmatprep.subr.bf16.mxu0 %v9015_v12  ;;  %3868 = vmatprep.subr.bf16.mxu1 %v9018_v49  ;;  %v9063_v49 = vcombine.low %v640_v0, %v644_v41  ;;  %v9065_v12 = vcombine.high %v647_v61, %v651_v23  ;;  %v660_v0 = vld [vmem:[%s12806_s2 + $0xe68] sm:$0xff]  ;;  %v9083_v41 = vcombine.low %v647_v61, %v651_v23  ;;  %v667_v61 = vld [vmem:[%s12806_s2 + $0xea0] sm:$0xff] }
  0xe8   : > { %13502 = vst [vmem:[#allocation204_spill] sm:$0xff] %v9068_v16  ;;  %v664_v23 = vld [vmem:[%s12806_s2 + $0xe88] sm:$0xff] }
  0xe9   : > { %13500 = vst [vmem:[#allocation202_spill] sm:$0xff] %v9063_v49  ;;  %13501 = vst [vmem:[#allocation203_spill] sm:$0xff] %v9065_v12 }
  0xea   : > { %3617 = vmatpush1.bf16.msra.mxu0 %v9035_v40  ;;  %3869 = vmatpush1.bf16.msra.mxu1 %v9039_v11  ;;  %13503 = vst [vmem:[#allocation205_spill] sm:$0xff] %v9083_v41  ;;  %v9092_v11 = vcombine.high %v656_v30, %v660_v0  ;;  %v663_v40 = vld [vmem:[%s12806_s2 + $0xe80] sm:$0xff] }
  0xeb   : > { %3618 = vmatprep.subr.bf16.mxu0 %v9041_v62  ;;  %3870 = vmatprep.subr.bf16.mxu1 %v9044_v4  ;;  %v9087_v4 = vcombine.low %v648_v13, %v652_v59  ;;  %v9089_v62 = vcombine.high %v655_v39, %v659_v47  ;;  %v668_v13 = vld [vmem:[%s12806_s2 + $0xea8] sm:$0xff]  ;;  %v9107_v59 = vcombine.low %v655_v39, %v659_v47  ;;  %v675_v39 = vld [vmem:[%s12806_s2 + $0xee0] sm:$0xff] }
  0xec   : > { %13506 = vst [vmem:[#allocation208_spill] sm:$0xff] %v9092_v11  ;;  %v672_v47 = vld [vmem:[%s12806_s2 + $0xec8] sm:$0xff] }
  0xed   : > { %13504 = vst [vmem:[#allocation206_spill] sm:$0xff] %v9087_v4  ;;  %13505 = vst [vmem:[#allocation207_spill] sm:$0xff] %v9089_v62 }
  0xee   : > { %3619 = vmatpush1.bf16.msra.mxu0 %v9059_v53  ;;  %3871 = vmatpush1.bf16.msra.mxu1 %v9063_v49  ;;  %13507 = vst [vmem:[#allocation209_spill] sm:$0xff] %v9107_v59  ;;  %v9116_v49 = vcombine.high %v664_v23, %v668_v13  ;;  %v671_v53 = vld [vmem:[%s12806_s2 + $0xec0] sm:$0xff] }
  0xef   : > { %3620 = vmatprep.subr.bf16.mxu0 %v9065_v12  ;;  %3872 = vmatprep.subr.bf16.mxu1 %v9068_v16  ;;  %v9111_v16 = vcombine.low %v656_v30, %v660_v0  ;;  %v9113_v12 = vcombine.high %v663_v40, %v667_v61  ;;  %v676_v30 = vld [vmem:[%s12806_s2 + $0xee8] sm:$0xff]  ;;  %v9131_v0 = vcombine.low %v663_v40, %v667_v61  ;;  %v683_v40 = vld [vmem:[%s12806_s2 + $0xf20] sm:$0xff] }
  0xf0   : > { %13510 = vst [vmem:[#allocation212_spill] sm:$0xff] %v9116_v49  ;;  %v680_v61 = vld [vmem:[%s12806_s2 + $0xf08] sm:$0xff] }
  0xf1   : > { %13508 = vst [vmem:[#allocation210_spill] sm:$0xff] %v9111_v16  ;;  %13509 = vst [vmem:[#allocation211_spill] sm:$0xff] %v9113_v12 }
  0xf2   : > { %3621 = vmatpush1.bf16.msra.mxu0 %v9083_v41  ;;  %3873 = vmatpush1.bf16.msra.mxu1 %v9087_v4  ;;  %13511 = vst [vmem:[#allocation213_spill] sm:$0xff] %v9131_v0  ;;  %v9140_v4 = vcombine.high %v672_v47, %v676_v30  ;;  %v679_v41 = vld [vmem:[%s12806_s2 + $0xf00] sm:$0xff] }
  0xf3   : > { %3622 = vmatprep.subr.bf16.mxu0 %v9089_v62  ;;  %3874 = vmatprep.subr.bf16.mxu1 %v9092_v11  ;;  %v9135_v11 = vcombine.low %v664_v23, %v668_v13  ;;  %v9137_v62 = vcombine.high %v671_v53, %v675_v39  ;;  %v684_v23 = vld [vmem:[%s12806_s2 + $0xf28] sm:$0xff]  ;;  %v9155_v13 = vcombine.low %v671_v53, %v675_v39  ;;  %v691_v53 = vld [vmem:[%s12806_s2 + $0xf60] sm:$0xff] }
  0xf4   : > { %13514 = vst [vmem:[#allocation216_spill] sm:$0xff] %v9140_v4  ;;  %v688_v39 = vld [vmem:[%s12806_s2 + $0xf48] sm:$0xff] }
  0xf5   : > { %13512 = vst [vmem:[#allocation214_spill] sm:$0xff] %v9135_v11  ;;  %13513 = vst [vmem:[#allocation215_spill] sm:$0xff] %v9137_v62 }
  0xf6   : > { %3623 = vmatpush1.bf16.msra.mxu0 %v9107_v59  ;;  %3875 = vmatpush1.bf16.msra.mxu1 %v9111_v16  ;;  %13515 = vst [vmem:[#allocation217_spill] sm:$0xff] %v9155_v13  ;;  %v9164_v16 = vcombine.high %v680_v61, %v684_v23  ;;  %v687_v59 = vld [vmem:[%s12806_s2 + $0xf40] sm:$0xff] }
  0xf7   : > { %3624 = vmatprep.subr.bf16.mxu0 %v9113_v12  ;;  %3876 = vmatprep.subr.bf16.mxu1 %v9116_v49  ;;  %v9159_v49 = vcombine.low %v672_v47, %v676_v30  ;;  %v9161_v12 = vcombine.high %v679_v41, %v683_v40  ;;  %v692_v47 = vld [vmem:[%s12806_s2 + $0xf68] sm:$0xff]  ;;  %v9179_v30 = vcombine.low %v679_v41, %v683_v40  ;;  %v699_v41 = vld [vmem:[%s12806_s2 + $0xfa0] sm:$0xff] }
  0xf8   : > { %13518 = vst [vmem:[#allocation220_spill] sm:$0xff] %v9164_v16  ;;  %v696_v40 = vld [vmem:[%s12806_s2 + $0xf88] sm:$0xff] }
  0xf9   : > { %13516 = vst [vmem:[#allocation218_spill] sm:$0xff] %v9159_v49  ;;  %13517 = vst [vmem:[#allocation219_spill] sm:$0xff] %v9161_v12 }
  0xfa   : > { %3625 = vmatpush1.bf16.msra.mxu0 %v9131_v0  ;;  %3877 = vmatpush1.bf16.msra.mxu1 %v9135_v11  ;;  %13519 = vst [vmem:[#allocation221_spill] sm:$0xff] %v9179_v30  ;;  %v9188_v11 = vcombine.high %v688_v39, %v692_v47  ;;  %v695_v0 = vld [vmem:[%s12806_s2 + $0xf80] sm:$0xff] }
  0xfb   : > { %3626 = vmatprep.subr.bf16.mxu0 %v9137_v62  ;;  %3878 = vmatprep.subr.bf16.mxu1 %v9140_v4  ;;  %v9183_v4 = vcombine.low %v680_v61, %v684_v23  ;;  %v9185_v62 = vcombine.high %v687_v59, %v691_v53  ;;  %v700_v61 = vld [vmem:[%s12806_s2 + $0xfa8] sm:$0xff]  ;;  %v9203_v23 = vcombine.low %v687_v59, %v691_v53  ;;  %v707_v59 = vld [vmem:[%s12806_s2 + $0xfe0] sm:$0xff] }
  0xfc   : > { %13522 = vst [vmem:[#allocation224_spill] sm:$0xff] %v9188_v11  ;;  %v704_v53 = vld [vmem:[%s12806_s2 + $0xfc8] sm:$0xff] }
  0xfd   : > { %13520 = vst [vmem:[#allocation222_spill] sm:$0xff] %v9183_v4  ;;  %13521 = vst [vmem:[#allocation223_spill] sm:$0xff] %v9185_v62 }
  0xfe   : > { %3627 = vmatpush1.bf16.msra.mxu0 %v9155_v13  ;;  %3879 = vmatpush1.bf16.msra.mxu1 %v9159_v49  ;;  %13523 = vst [vmem:[#allocation225_spill] sm:$0xff] %v9203_v23  ;;  %v9212_v49 = vcombine.high %v696_v40, %v700_v61  ;;  %v703_v13 = vld [vmem:[%s12806_s2 + $0xfc0] sm:$0xff] }
  0xff   : > { %3628 = vmatprep.subr.bf16.mxu0 %v9161_v12  ;;  %3880 = vmatprep.subr.bf16.mxu1 %v9164_v16  ;;  %v9207_v16 = vcombine.low %v688_v39, %v692_v47  ;;  %v9209_v12 = vcombine.high %v695_v0, %v699_v41  ;;  %v708_v39 = vld [vmem:[%s12806_s2 + $0xfe8] sm:$0xff]  ;;  %v9227_v47 = vcombine.low %v695_v0, %v699_v41  ;;  %v205_v0 = vld [vmem:[%s12806_s2 + $0x30] sm:$0xff]  ;;  %v202_v41 = vld [vmem:[%s12806_s2 + $0x18] sm:$0xff] }
 0x100   : > { %13526 = vst [vmem:[#allocation228_spill] sm:$0xff] %v9212_v49 }
 0x101   : > { %13524 = vst [vmem:[#allocation226_spill] sm:$0xff] %v9207_v16  ;;  %13525 = vst [vmem:[#allocation227_spill] sm:$0xff] %v9209_v12 }
 0x102   : > { %3629 = vmatpush1.bf16.msra.mxu0 %v9179_v30  ;;  %3881 = vmatpush1.bf16.msra.mxu1 %v9183_v4  ;;  %13527 = vst [vmem:[#allocation229_spill] sm:$0xff] %v9227_v47  ;;  %v9236_v4 = vcombine.high %v704_v53, %v708_v39  ;;  %v201_v30 = vld [vmem:[%s12806_s2 + $0x10] sm:$0xff] }
 0x103   : > { %3630 = vmatprep.subr.bf16.mxu0 %v9185_v62  ;;  %3882 = vmatprep.subr.bf16.mxu1 %v9188_v11  ;;  %v9231_v11 = vcombine.low %v696_v40, %v700_v61  ;;  %v9233_v62 = vcombine.high %v703_v13, %v707_v59  ;;  %v206_v40 = vld [vmem:[%s12806_s2 + $0x38] sm:$0xff]  ;;  %v9251_v61 = vcombine.low %v703_v13, %v707_v59  ;;  %v213_v13 = vld [vmem:[%s12806_s2 + $0x70] sm:$0xff] }
 0x104   : > { %13530 = vst [vmem:[#allocation232_spill] sm:$0xff] %v9236_v4  ;;  %v210_v59 = vld [vmem:[%s12806_s2 + $0x58] sm:$0xff] }
 0x105   : > { %13528 = vst [vmem:[#allocation230_spill] sm:$0xff] %v9231_v11  ;;  %13529 = vst [vmem:[#allocation231_spill] sm:$0xff] %v9233_v62 }
 0x106   : > { %3631 = vmatpush1.bf16.msra.mxu0 %v9203_v23  ;;  %3883 = vmatpush1.bf16.msra.mxu1 %v9207_v16  ;;  %13531 = vst [vmem:[#allocation233_spill] sm:$0xff] %v9251_v61  ;;  %v9260_v16 = vcombine.high %v202_v41, %v206_v40  ;;  %v209_v23 = vld [vmem:[%s12806_s2 + $0x50] sm:$0xff] }
 0x107   : > { %3632 = vmatprep.subr.bf16.mxu0 %v9209_v12  ;;  %3884 = vmatprep.subr.bf16.mxu1 %v9212_v49  ;;  %v9255_v49 = vcombine.low %v704_v53, %v708_v39  ;;  %v9257_v12 = vcombine.high %v201_v30, %v205_v0  ;;  %v9273_v53 = vcombine.low %v8973_v63, %v8976_v7  ;;  %v214_v39 = vld [vmem:[%s12806_s2 + $0x78] sm:$0xff] }
 0x108   : > { %13534 = vst [vmem:[#allocation236_spill] sm:$0xff] %v9260_v16  ;;  %v9287_v55 = vcombine.high %v209_v23, %v213_v13  ;;  %v9290_v63 = vcombine.high %v210_v59, %v214_v39 }
 0x109   : > { %13532 = vst [vmem:[#allocation234_spill] sm:$0xff] %v9255_v49  ;;  %13533 = vst [vmem:[#allocation235_spill] sm:$0xff] %v9257_v12 }
 0x10a   : > { %3633 = vmatpush1.bf16.msra.mxu0 %v9227_v47  ;;  %3885 = vmatpush1.bf16.msra.mxu1 %v9231_v11  ;;  %v9281_v11 = vcombine.low %v201_v30, %v205_v0  ;;  %v9285_v47 = vcombine.low %v202_v41, %v206_v40  ;;  %13537 = vst [vmem:[#allocation239_spill] sm:$0xff] %v9287_v55  ;;  %13538 = vst [vmem:[#allocation240_spill] sm:$0xff] %v9290_v63  ;;  %v221_v30 = vld [vmem:[%s12806_s2 + $0xb0] sm:$0xff]  ;;  %v218_v0 = vld [vmem:[%s12806_s2 + $0x98] sm:$0xff] }
 0x10b   : > { %3634 = vmatprep.subr.bf16.mxu0 %v9233_v62  ;;  %3886 = vmatprep.subr.bf16.mxu1 %v9236_v4  ;;  %v722_v4 = vld [vmem:[%s7724_s21 + $0x58] sm:$0xff]  ;;  %v9309_v40 = vcombine.low %v209_v23, %v213_v13  ;;  %v229_v23 = vld [vmem:[%s12806_s2 + $0xf0] sm:$0xff] }
 0x10c   : > { %v726_v62 = vld [vmem:[%s7724_s21 + $0x78] sm:$0xff]  ;;  %13535 = vst [vmem:[#allocation237_spill] sm:$0xff] %v9281_v11  ;;  %13536 = vst [vmem:[#allocation238_spill] sm:$0xff] %v9285_v47 }
 0x10d   : > { %v9292_v7 = vcombine.high %v722_v4, %v726_v62  ;;  %v222_v41 = vld [vmem:[%s12806_s2 + $0xb8] sm:$0xff]  ;;  %13539 = vst [vmem:[#allocation241_spill] sm:$0xff] %v9309_v40 }
 0x10e   : > { %3635 = vmatpush1.bf16.msra.mxu0 %v9251_v61  ;;  %3887 = vmatpush1.bf16.msra.mxu1 %v9255_v49  ;;  %v217_v61 = vld [vmem:[%s12806_s2 + $0x90] sm:$0xff]  ;;  %v9319_v49 = vcombine.high %v218_v0, %v222_v41  ;;  %v226_v13 = vld [vmem:[%s12806_s2 + $0xd8] sm:$0xff]  ;;  %v9343_v52 = vcombine.low %v218_v0, %v222_v41 }
 0x10f   : > { %3919 = vmatprep.subr.bf16.mxu0 %v9257_v12  ;;  %4171 = vmatprep.subr.bf16.mxu1 %v9260_v16  ;;  %v9313_v16 = vcombine.low %v210_v59, %v214_v39  ;;  %v9315_v12 = vcombine.high %v217_v61, %v221_v30  ;;  %v9331_v59 = vcombine.low %v722_v4, %v726_v62  ;;  %v230_v39 = vld [vmem:[%s12806_s2 + $0xf8] sm:$0xff] }
 0x110   : > { %13542 = vst [vmem:[#allocation244_spill] sm:$0xff] %v9319_v49  ;;  %13544 = vst [vmem:[#allocation246_spill] sm:$0xff] %v9343_v52  ;;  %v9348_v62 = vcombine.high %v226_v13, %v230_v39  ;;  %v238_v0 = vld [vmem:[%s12806_s2 + $0x138] sm:$0xff] }
 0x111   : > { %3637 = vmatmul.mubr.bf16.vlgmr.msra.gmra.mrb[0].mxu0 %v9273_v53  ;;  %3889 = vmatmul.mubr.bf16.vlgmr.msra.gmra.mrb[0].mxu1 %v9273_v53  ;;  %13540 = vst [vmem:[#allocation242_spill] sm:$0xff] %v9313_v16  ;;  %13541 = vst [vmem:[#allocation243_spill] sm:$0xff] %v9315_v12 }
 0x112   : > { %3920 = vmatpush1.bf16.msra.mxu0 %v9281_v11  ;;  %4172 = vmatpush1.bf16.msra.mxu1 %v9285_v47  ;;  %v225_v11 = vld [vmem:[%s12806_s2 + $0xd0] sm:$0xff]  ;;  %v9339_v47 = vcombine.low %v217_v61, %v221_v30  ;;  %13546 = vst [vmem:[#allocation248_spill] sm:$0xff] %v9348_v62  ;;  %v234_v30 = vld [vmem:[%s12806_s2 + $0x118] sm:$0xff] }
 0x113   : > { %3921 = vmatprep.subr.bf16.mxu0 %v9287_v55  ;;  %4173 = vmatprep.subr.bf16.mxu1 %v9290_v63  ;;  %v730_v63 = vld [vmem:[%s7724_s21 + $0x98] sm:$0xff]  ;;  %v9345_v51 = vcombine.high %v225_v11, %v229_v23  ;;  %v237_v61 = vld [vmem:[%s12806_s2 + $0x130] sm:$0xff]  ;;  %v9367_v41 = vcombine.low %v225_v11, %v229_v23 }
 0x114   : > { %3646 = vmatprep.mubr.bf16.mxu0 %v9292_v7  ;;  %3898 = vmatprep.mubr.bf16.mxu1 %v9292_v7  ;;  %v734_v55 = vld [vmem:[%s7724_s21 + $0xb8] sm:$0xff]  ;;  %13543 = vst [vmem:[#allocation245_spill] sm:$0xff] %v9339_v47  ;;  %v245_v11 = vld [vmem:[%s12806_s2 + $0x170] sm:$0xff]  ;;  %s6478_s21 = sshll.u32 %s14409_s13, 3 }
 0x115   : > { %13545 = vst [vmem:[#allocation247_spill] sm:$0xff] %v9345_v51  ;;  %v9350_v4 = vcombine.high %v730_v63, %v734_v55  ;;  %13547 = vst [vmem:[#allocation249_spill] sm:$0xff] %v9367_v41  ;;  %v9386_v23 = vcombine.low %v730_v63, %v734_v55  ;;  %s198_s7 = scalar_lea.vmem %s12807_s3, %s6478_s21 }
 0x116   : > { %3922 = vmatpush1.bf16.msra.mxu0 %v9309_v40  ;;  %4174 = vmatpush1.bf16.msra.mxu1 %v9313_v16  ;;  %v233_v40 = vld [vmem:[%s12806_s2 + $0x110] sm:$0xff]  ;;  %v9377_v16 = vcombine.high %v234_v30, %v238_v0 }
 0x117   : > { %3923 = vmatprep.subr.bf16.mxu0 %v9315_v12  ;;  %4175 = vmatprep.subr.bf16.mxu1 %v9319_v49  ;;  %v9371_v49 = vcombine.low %v226_v13, %v230_v39  ;;  %v9373_v12 = vcombine.high %v233_v40, %v237_v61  ;;  %v242_v13 = vld [vmem:[%s12806_s2 + $0x158] sm:$0xff] }
 0x118   : > { %13550 = vst [vmem:[#allocation252_spill] sm:$0xff] %v9377_v16  ;;  %v246_v39 = vld [vmem:[%s12806_s2 + $0x178] sm:$0xff] }
 0x119   : > { %3647 = vmatmul.mubr.bf16.gmra.mrb[4].mxu0 %v9331_v59  ;;  %3899 = vmatmul.mubr.bf16.gmra.mrb[4].mxu1 %v9331_v59  ;;  %13548 = vst [vmem:[#allocation250_spill] sm:$0xff] %v9371_v49  ;;  %13549 = vst [vmem:[#allocation251_spill] sm:$0xff] %v9373_v12  ;;  %v9404_v63 = vcombine.high %v242_v13, %v246_v39 }
 0x11a   : > { %3924 = vmatpush1.bf16.msra.mxu0 %v9339_v47  ;;  %4176 = vmatpush1.bf16.msra.mxu1 %v9343_v52  ;;  %v241_v47 = vld [vmem:[%s12806_s2 + $0x150] sm:$0xff] }
 0x11b   : > { %3925 = vmatprep.subr.bf16.mxu0 %v9345_v51  ;;  %4177 = vmatprep.subr.bf16.mxu1 %v9348_v62  ;;  %v9395_v62 = vcombine.low %v233_v40, %v237_v61  ;;  %v9399_v51 = vcombine.low %v234_v30, %v238_v0  ;;  %v9401_v55 = vcombine.high %v241_v47, %v245_v11  ;;  %v249_v52 = vld [vmem:[%s12806_s2 + $0x190] sm:$0xff]  ;;  %v250_v61 = vld [vmem:[%s12806_s2 + $0x198] sm:$0xff] }
 0x11c   : > { %3656 = vmatprep.mubr.bf16.mxu0 %v9350_v4  ;;  %3908 = vmatprep.mubr.bf16.mxu1 %v9350_v4  ;;  %13554 = vst [vmem:[#allocation256_spill] sm:$0xff] %v9404_v63  ;;  %v253_v40 = vld [vmem:[%s12806_s2 + $0x1b0] sm:$0xff]  ;;  %v254_v30 = vld [vmem:[%s12806_s2 + $0x1b8] sm:$0xff]  ;;  %v9421_v0 = vcombine.low %v241_v47, %v245_v11 }
 0x11d   : > { %13551 = vst [vmem:[#allocation253_spill] sm:$0xff] %v9395_v62  ;;  %13552 = vst [vmem:[#allocation254_spill] sm:$0xff] %v9399_v51  ;;  %v261_v47 = vld [vmem:[%s12806_s2 + $0x1f0] sm:$0xff]  ;;  %v258_v11 = vld [vmem:[%s12806_s2 + $0x1d8] sm:$0xff] }
 0x11e   : > { %3926 = vmatpush1.bf16.msra.mxu0 %v9367_v41  ;;  %4178 = vmatpush1.bf16.msra.mxu1 %v9371_v49  ;;  %13553 = vst [vmem:[#allocation255_spill] sm:$0xff] %v9401_v55  ;;  %13555 = vst [vmem:[#allocation257_spill] sm:$0xff] %v9421_v0  ;;  %v9430_v49 = vcombine.high %v250_v61, %v254_v30  ;;  %v257_v41 = vld [vmem:[%s12806_s2 + $0x1d0] sm:$0xff] }
 0x11f   : > { %3927 = vmatprep.subr.bf16.mxu0 %v9373_v12  ;;  %4179 = vmatprep.subr.bf16.mxu1 %v9377_v16  ;;  %v9425_v16 = vcombine.low %v242_v13, %v246_v39  ;;  %v9427_v12 = vcombine.high %v249_v52, %v253_v40  ;;  %v262_v13 = vld [vmem:[%s12806_s2 + $0x1f8] sm:$0xff]  ;;  %v9447_v39 = vcombine.low %v249_v52, %v253_v40  ;;  %v269_v52 = vld [vmem:[%s12806_s2 + $0x230] sm:$0xff] }
 0x120   : > { %13558 = vst [vmem:[#allocation260_spill] sm:$0xff] %v9430_v49  ;;  %v266_v40 = vld [vmem:[%s12806_s2 + $0x218] sm:$0xff] }
 0x121   : > { %3657 = vmatmul.mubr.bf16.gmra.mrb[8].mxu0 %v9386_v23  ;;  %3909 = vmatmul.mubr.bf16.gmra.mrb[8].mxu1 %v9386_v23  ;;  %13556 = vst [vmem:[#allocation258_spill] sm:$0xff] %v9425_v16  ;;  %13557 = vst [vmem:[#allocation259_spill] sm:$0xff] %v9427_v12 }
 0x122   : > { %3928 = vmatpush1.bf16.msra.mxu0 %v9395_v62  ;;  %4180 = vmatpush1.bf16.msra.mxu1 %v9399_v51  ;;  %13559 = vst [vmem:[#allocation261_spill] sm:$0xff] %v9447_v39  ;;  %v9456_v51 = vcombine.high %v258_v11, %v262_v13 }
 0x123   : > { %3929 = vmatprep.subr.bf16.mxu0 %v9401_v55  ;;  %4181 = vmatprep.subr.bf16.mxu1 %v9404_v63  ;;  %v9451_v63 = vcombine.low %v250_v61, %v254_v30  ;;  %v9453_v55 = vcombine.high %v257_v41, %v261_v47  ;;  %v270_v61 = vld [vmem:[%s12806_s2 + $0x238] sm:$0xff]  ;;  %v9471_v30 = vcombine.low %v257_v41, %v261_v47  ;;  %v277_v41 = vld [vmem:[%s12806_s2 + $0x270] sm:$0xff] }
 0x124   : > { %3951 = vmatprep.mubr.bf16.mxu0 %v7758_v58  ;;  %4203 = vmatprep.mubr.bf16.mxu1 %v7758_v58  ;;  %13562 = vst [vmem:[#allocation264_spill] sm:$0xff] %v9456_v51  ;;  %v265_v58 = vld [vmem:[%s12806_s2 + $0x210] sm:$0xff]  ;;  %v274_v47 = vld [vmem:[%s12806_s2 + $0x258] sm:$0xff] }
 0x125   : > { %13560 = vst [vmem:[#allocation262_spill] sm:$0xff] %v9451_v63  ;;  %13561 = vst [vmem:[#allocation263_spill] sm:$0xff] %v9453_v55 }
 0x126   : > { %3930 = vmatpush1.bf16.msra.mxu0 %v9421_v0  ;;  %4182 = vmatpush1.bf16.msra.mxu1 %v9425_v16  ;;  %13563 = vst [vmem:[#allocation265_spill] sm:$0xff] %v9471_v30  ;;  %v9480_v16 = vcombine.high %v266_v40, %v270_v61  ;;  %v273_v0 = vld [vmem:[%s12806_s2 + $0x250] sm:$0xff] }
 0x127   : > { %3931 = vmatprep.subr.bf16.mxu0 %v9427_v12  ;;  %4183 = vmatprep.subr.bf16.mxu1 %v9430_v49  ;;  %v9475_v49 = vcombine.low %v258_v11, %v262_v13  ;;  %v9477_v12 = vcombine.high %v265_v58, %v269_v52  ;;  %v278_v11 = vld [vmem:[%s12806_s2 + $0x278] sm:$0xff]  ;;  %v9495_v13 = vcombine.low %v265_v58, %v269_v52  ;;  %v285_v58 = vld [vmem:[%s12806_s2 + $0x2b0] sm:$0xff] }
 0x128   : > { %13566 = vst [vmem:[#allocation268_spill] sm:$0xff] %v9480_v16  ;;  %v282_v52 = vld [vmem:[%s12806_s2 + $0x298] sm:$0xff] }
 0x129   : > { %13564 = vst [vmem:[#allocation266_spill] sm:$0xff] %v9475_v49  ;;  %13565 = vst [vmem:[#allocation267_spill] sm:$0xff] %v9477_v12 }
 0x12a   : > { %3932 = vmatpush1.bf16.msra.mxu0 %v9447_v39  ;;  %4184 = vmatpush1.bf16.msra.mxu1 %v9451_v63  ;;  %13567 = vst [vmem:[#allocation269_spill] sm:$0xff] %v9495_v13  ;;  %v9504_v63 = vcombine.high %v274_v47, %v278_v11  ;;  %v281_v39 = vld [vmem:[%s12806_s2 + $0x290] sm:$0xff] }
 0x12b   : > { %3933 = vmatprep.subr.bf16.mxu0 %v9453_v55  ;;  %4185 = vmatprep.subr.bf16.mxu1 %v9456_v51  ;;  %v9499_v51 = vcombine.low %v266_v40, %v270_v61  ;;  %v9501_v55 = vcombine.high %v273_v0, %v277_v41  ;;  %v286_v40 = vld [vmem:[%s12806_s2 + $0x2b8] sm:$0xff]  ;;  %v9519_v61 = vcombine.low %v273_v0, %v277_v41  ;;  %v293_v0 = vld [vmem:[%s12806_s2 + $0x2f0] sm:$0xff] }
 0x12c   : > { %13570 = vst [vmem:[#allocation272_spill] sm:$0xff] %v9504_v63  ;;  %v290_v41 = vld [vmem:[%s12806_s2 + $0x2d8] sm:$0xff] }
 0x12d   : > { %13568 = vst [vmem:[#allocation270_spill] sm:$0xff] %v9499_v51  ;;  %13569 = vst [vmem:[#allocation271_spill] sm:$0xff] %v9501_v55 }
 0x12e   : > { %3934 = vmatpush1.bf16.msra.mxu0 %v9471_v30  ;;  %4186 = vmatpush1.bf16.msra.mxu1 %v9475_v49  ;;  %13571 = vst [vmem:[#allocation273_spill] sm:$0xff] %v9519_v61  ;;  %v9528_v49 = vcombine.high %v282_v52, %v286_v40  ;;  %v289_v30 = vld [vmem:[%s12806_s2 + $0x2d0] sm:$0xff] }
 0x12f   : > { %3935 = vmatprep.subr.bf16.mxu0 %v9477_v12  ;;  %4187 = vmatprep.subr.bf16.mxu1 %v9480_v16  ;;  %v9523_v16 = vcombine.low %v274_v47, %v278_v11  ;;  %v9525_v12 = vcombine.high %v281_v39, %v285_v58  ;;  %v294_v47 = vld [vmem:[%s12806_s2 + $0x2f8] sm:$0xff]  ;;  %v9543_v11 = vcombine.low %v281_v39, %v285_v58  ;;  %v301_v39 = vld [vmem:[%s12806_s2 + $0x330] sm:$0xff] }
 0x130   : > { %13574 = vst [vmem:[#allocation276_spill] sm:$0xff] %v9528_v49  ;;  %v298_v58 = vld [vmem:[%s12806_s2 + $0x318] sm:$0xff] }
 0x131   : > { %13572 = vst [vmem:[#allocation274_spill] sm:$0xff] %v9523_v16  ;;  %13573 = vst [vmem:[#allocation275_spill] sm:$0xff] %v9525_v12 }
 0x132   : > { %3936 = vmatpush1.bf16.msra.mxu0 %v9495_v13  ;;  %4188 = vmatpush1.bf16.msra.mxu1 %v9499_v51  ;;  %13575 = vst [vmem:[#allocation277_spill] sm:$0xff] %v9543_v11  ;;  %v9552_v51 = vcombine.high %v290_v41, %v294_v47  ;;  %v297_v13 = vld [vmem:[%s12806_s2 + $0x310] sm:$0xff] }
 0x133   : > { %3937 = vmatprep.subr.bf16.mxu0 %v9501_v55  ;;  %4189 = vmatprep.subr.bf16.mxu1 %v9504_v63  ;;  %v9547_v63 = vcombine.low %v282_v52, %v286_v40  ;;  %v9549_v55 = vcombine.high %v289_v30, %v293_v0  ;;  %v302_v52 = vld [vmem:[%s12806_s2 + $0x338] sm:$0xff]  ;;  %v9567_v40 = vcombine.low %v289_v30, %v293_v0  ;;  %v309_v30 = vld [vmem:[%s12806_s2 + $0x370] sm:$0xff] }
 0x134   : > { %13578 = vst [vmem:[#allocation280_spill] sm:$0xff] %v9552_v51  ;;  %v306_v0 = vld [vmem:[%s12806_s2 + $0x358] sm:$0xff] }
 0x135   : > { %13576 = vst [vmem:[#allocation278_spill] sm:$0xff] %v9547_v63  ;;  %13577 = vst [vmem:[#allocation279_spill] sm:$0xff] %v9549_v55 }
 0x136   : > { %3938 = vmatpush1.bf16.msra.mxu0 %v9519_v61  ;;  %4190 = vmatpush1.bf16.msra.mxu1 %v9523_v16  ;;  %13579 = vst [vmem:[#allocation281_spill] sm:$0xff] %v9567_v40  ;;  %v9576_v16 = vcombine.high %v298_v58, %v302_v52  ;;  %v305_v61 = vld [vmem:[%s12806_s2 + $0x350] sm:$0xff] }
 0x137   : > { %3939 = vmatprep.subr.bf16.mxu0 %v9525_v12  ;;  %4191 = vmatprep.subr.bf16.mxu1 %v9528_v49  ;;  %v9571_v49 = vcombine.low %v290_v41, %v294_v47  ;;  %v9573_v12 = vcombine.high %v297_v13, %v301_v39  ;;  %v310_v41 = vld [vmem:[%s12806_s2 + $0x378] sm:$0xff]  ;;  %v9591_v47 = vcombine.low %v297_v13, %v301_v39  ;;  %v317_v13 = vld [vmem:[%s12806_s2 + $0x3b0] sm:$0xff] }
 0x138   : > { %13582 = vst [vmem:[#allocation284_spill] sm:$0xff] %v9576_v16  ;;  %v314_v39 = vld [vmem:[%s12806_s2 + $0x398] sm:$0xff] }
 0x139   : > { %13580 = vst [vmem:[#allocation282_spill] sm:$0xff] %v9571_v49  ;;  %13581 = vst [vmem:[#allocation283_spill] sm:$0xff] %v9573_v12 }
 0x13a   : > { %3940 = vmatpush1.bf16.msra.mxu0 %v9543_v11  ;;  %4192 = vmatpush1.bf16.msra.mxu1 %v9547_v63  ;;  %13583 = vst [vmem:[#allocation285_spill] sm:$0xff] %v9591_v47  ;;  %v9600_v63 = vcombine.high %v306_v0, %v310_v41  ;;  %v313_v11 = vld [vmem:[%s12806_s2 + $0x390] sm:$0xff] }
 0x13b   : > { %3941 = vmatprep.subr.bf16.mxu0 %v9549_v55  ;;  %4193 = vmatprep.subr.bf16.mxu1 %v9552_v51  ;;  %v9595_v51 = vcombine.low %v298_v58, %v302_v52  ;;  %v9597_v55 = vcombine.high %v305_v61, %v309_v30  ;;  %v318_v58 = vld [vmem:[%s12806_s2 + $0x3b8] sm:$0xff]  ;;  %v9615_v52 = vcombine.low %v305_v61, %v309_v30  ;;  %v325_v61 = vld [vmem:[%s12806_s2 + $0x3f0] sm:$0xff] }
 0x13c   : > { %13586 = vst [vmem:[#allocation288_spill] sm:$0xff] %v9600_v63  ;;  %v322_v30 = vld [vmem:[%s12806_s2 + $0x3d8] sm:$0xff] }
 0x13d   : > { %13584 = vst [vmem:[#allocation286_spill] sm:$0xff] %v9595_v51  ;;  %13585 = vst [vmem:[#allocation287_spill] sm:$0xff] %v9597_v55 }
 0x13e   : > { %3942 = vmatpush1.bf16.msra.mxu0 %v9567_v40  ;;  %4194 = vmatpush1.bf16.msra.mxu1 %v9571_v49  ;;  %13587 = vst [vmem:[#allocation289_spill] sm:$0xff] %v9615_v52  ;;  %v9624_v49 = vcombine.high %v314_v39, %v318_v58  ;;  %v321_v40 = vld [vmem:[%s12806_s2 + $0x3d0] sm:$0xff] }
 0x13f   : > { %3943 = vmatprep.subr.bf16.mxu0 %v9573_v12  ;;  %4195 = vmatprep.subr.bf16.mxu1 %v9576_v16  ;;  %v9619_v16 = vcombine.low %v306_v0, %v310_v41  ;;  %v9621_v12 = vcombine.high %v313_v11, %v317_v13  ;;  %v326_v0 = vld [vmem:[%s12806_s2 + $0x3f8] sm:$0xff]  ;;  %v9639_v41 = vcombine.low %v313_v11, %v317_v13  ;;  %v333_v11 = vld [vmem:[%s12806_s2 + $0x430] sm:$0xff] }
 0x140   : > { %13590 = vst [vmem:[#allocation292_spill] sm:$0xff] %v9624_v49  ;;  %v330_v13 = vld [vmem:[%s12806_s2 + $0x418] sm:$0xff] }
 0x141   : > { %13588 = vst [vmem:[#allocation290_spill] sm:$0xff] %v9619_v16  ;;  %13589 = vst [vmem:[#allocation291_spill] sm:$0xff] %v9621_v12 }
 0x142   : > { %3944 = vmatpush1.bf16.msra.mxu0 %v9591_v47  ;;  %4196 = vmatpush1.bf16.msra.mxu1 %v9595_v51  ;;  %13591 = vst [vmem:[#allocation293_spill] sm:$0xff] %v9639_v41  ;;  %v9648_v51 = vcombine.high %v322_v30, %v326_v0  ;;  %v329_v47 = vld [vmem:[%s12806_s2 + $0x410] sm:$0xff] }
 0x143   : > { %3945 = vmatprep.subr.bf16.mxu0 %v9597_v55  ;;  %4197 = vmatprep.subr.bf16.mxu1 %v9600_v63  ;;  %v9643_v63 = vcombine.low %v314_v39, %v318_v58  ;;  %v9645_v55 = vcombine.high %v321_v40, %v325_v61  ;;  %v334_v39 = vld [vmem:[%s12806_s2 + $0x438] sm:$0xff]  ;;  %v9663_v58 = vcombine.low %v321_v40, %v325_v61  ;;  %v341_v40 = vld [vmem:[%s12806_s2 + $0x470] sm:$0xff] }
 0x144   : > { %13594 = vst [vmem:[#allocation296_spill] sm:$0xff] %v9648_v51  ;;  %v338_v61 = vld [vmem:[%s12806_s2 + $0x458] sm:$0xff] }
 0x145   : > { %13592 = vst [vmem:[#allocation294_spill] sm:$0xff] %v9643_v63  ;;  %13593 = vst [vmem:[#allocation295_spill] sm:$0xff] %v9645_v55 }
 0x146   : > { %3946 = vmatpush1.bf16.msra.mxu0 %v9615_v52  ;;  %4198 = vmatpush1.bf16.msra.mxu1 %v9619_v16  ;;  %13595 = vst [vmem:[#allocation297_spill] sm:$0xff] %v9663_v58  ;;  %v9672_v16 = vcombine.high %v330_v13, %v334_v39  ;;  %v337_v52 = vld [vmem:[%s12806_s2 + $0x450] sm:$0xff] }
 0x147   : > { %3947 = vmatprep.subr.bf16.mxu0 %v9621_v12  ;;  %4199 = vmatprep.subr.bf16.mxu1 %v9624_v49  ;;  %v9667_v49 = vcombine.low %v322_v30, %v326_v0  ;;  %v9669_v12 = vcombine.high %v329_v47, %v333_v11  ;;  %v342_v30 = vld [vmem:[%s12806_s2 + $0x478] sm:$0xff]  ;;  %v9687_v0 = vcombine.low %v329_v47, %v333_v11  ;;  %v349_v47 = vld [vmem:[%s12806_s2 + $0x4b0] sm:$0xff] }
 0x148   : > { %13598 = vst [vmem:[#allocation300_spill] sm:$0xff] %v9672_v16  ;;  %v346_v11 = vld [vmem:[%s12806_s2 + $0x498] sm:$0xff] }
 0x149   : > { %13596 = vst [vmem:[#allocation298_spill] sm:$0xff] %v9667_v49  ;;  %13597 = vst [vmem:[#allocation299_spill] sm:$0xff] %v9669_v12 }
 0x14a   : > { %3948 = vmatpush1.bf16.msra.mxu0 %v9639_v41  ;;  %4200 = vmatpush1.bf16.msra.mxu1 %v9643_v63  ;;  %13599 = vst [vmem:[#allocation301_spill] sm:$0xff] %v9687_v0  ;;  %v9696_v63 = vcombine.high %v338_v61, %v342_v30  ;;  %v345_v41 = vld [vmem:[%s12806_s2 + $0x490] sm:$0xff] }
 0x14b   : > { %3949 = vmatprep.subr.bf16.mxu0 %v9645_v55  ;;  %4201 = vmatprep.subr.bf16.mxu1 %v9648_v51  ;;  %v9691_v51 = vcombine.low %v330_v13, %v334_v39  ;;  %v9693_v55 = vcombine.high %v337_v52, %v341_v40  ;;  %v350_v13 = vld [vmem:[%s12806_s2 + $0x4b8] sm:$0xff]  ;;  %v9713_v39 = vcombine.low %v337_v52, %v341_v40 }
 0x14c   : > { %13602 = vst [vmem:[#allocation304_spill] sm:$0xff] %v9696_v63  ;;  %v354_v52 = vld [vmem:[%s12806_s2 + $0x4d8] sm:$0xff] }
 0x14d   : > { %13600 = vst [vmem:[#allocation302_spill] sm:$0xff] %v9691_v51  ;;  %13601 = vst [vmem:[#allocation303_spill] sm:$0xff] %v9693_v55  ;;  %v358_v40 = vld [vmem:[%s12806_s2 + $0x4f8] sm:$0xff] }
 0x14e   : > { %3950 = vmatpush1.bf16.msra.mxu0 %v9663_v58  ;;  %4202 = vmatpush1.bf16.msra.mxu1 %v9667_v49  ;;  %13603 = vst [vmem:[#allocation305_spill] sm:$0xff] %v9713_v39  ;;  %v9722_v49 = vcombine.high %v346_v11, %v350_v13 }
 0x14f   : > { %3982 = vmatprep.subr.bf16.mxu0 %v9669_v12  ;;  %4234 = vmatprep.subr.bf16.mxu1 %v9672_v16  ;;  %v9717_v16 = vcombine.low %v338_v61, %v342_v30  ;;  %v9719_v12 = vcombine.high %v345_v41, %v349_v47  ;;  %v9739_v61 = vcombine.low %v345_v41, %v349_v47  ;;  %v365_v41 = vld [vmem:[%s12806_s2 + $0x530] sm:$0xff]  ;;  %v362_v47 = vld [vmem:[%s12806_s2 + $0x518] sm:$0xff] }
 0x150   : > { %13606 = vst [vmem:[#allocation308_spill] sm:$0xff] %v9722_v49  ;;  %v9743_v30 = vcombine.low %v346_v11, %v350_v13  ;;  %v366_v11 = vld [vmem:[%s12806_s2 + $0x538] sm:$0xff] }
 0x151   : > { %3952 = vmatmul.mubr.bf16.vlgmr.msra.gmra.mrb[12].mxu0 %v8007_v33  ;;  %4204 = vmatmul.mubr.bf16.vlgmr.msra.gmra.mrb[12].mxu1 %v8007_v33  ;;  %13604 = vst [vmem:[#allocation306_spill] sm:$0xff] %v9717_v16  ;;  %13605 = vst [vmem:[#allocation307_spill] sm:$0xff] %v9719_v12  ;;  %v357_v33 = vld [vmem:[%s12806_s2 + $0x4f0] sm:$0xff] }
 0x152   : > { %3983 = vmatpush1.bf16.msra.mxu0 %v9687_v0  ;;  %4235 = vmatpush1.bf16.msra.mxu1 %v9691_v51  ;;  %v353_v0 = vld [vmem:[%s12806_s2 + $0x4d0] sm:$0xff]  ;;  %13607 = vst [vmem:[#allocation309_spill] sm:$0xff] %v9739_v61  ;;  %13608 = vst [vmem:[#allocation310_spill] sm:$0xff] %v9743_v30 }
 0x153   : > { %3984 = vmatprep.subr.bf16.mxu0 %v9693_v55  ;;  %4236 = vmatprep.subr.bf16.mxu1 %v9696_v63  ;;  %v9745_v63 = vcombine.high %v353_v0, %v357_v33  ;;  %v9748_v55 = vcombine.high %v354_v52, %v358_v40  ;;  %v9764_v13 = vcombine.low %v353_v0, %v357_v33  ;;  %v370_v0 = vld [vmem:[%s12806_s2 + $0x558] sm:$0xff] }
 0x154   : > { %3961 = vmatprep.mubr.bf16.mxu0 %v8032_v60  ;;  %4213 = vmatprep.mubr.bf16.mxu1 %v8032_v60  ;;  %v361_v60 = vld [vmem:[%s12806_s2 + $0x510] sm:$0xff]  ;;  %v374_v33 = vld [vmem:[%s12806_s2 + $0x578] sm:$0xff] }
 0x155   : > { %13609 = vst [vmem:[#allocation311_spill] sm:$0xff] %v9745_v63  ;;  %13610 = vst [vmem:[#allocation312_spill] sm:$0xff] %v9748_v55 }
 0x156   : > { %3985 = vmatpush1.bf16.msra.mxu0 %v9713_v39  ;;  %4237 = vmatpush1.bf16.msra.mxu1 %v9717_v16  ;;  %13611 = vst [vmem:[#allocation313_spill] sm:$0xff] %v9764_v13  ;;  %v9774_v16 = vcombine.high %v362_v47, %v366_v11 }
 0x157   : > { %3986 = vmatprep.subr.bf16.mxu0 %v9719_v12  ;;  %4238 = vmatprep.subr.bf16.mxu1 %v9722_v49  ;;  %v9769_v49 = vcombine.low %v354_v52, %v358_v40  ;;  %v9771_v12 = vcombine.high %v361_v60, %v365_v41  ;;  %v9791_v52 = vcombine.low %v361_v60, %v365_v41  ;;  %v381_v60 = vld [vmem:[%s12806_s2 + $0x5b0] sm:$0xff]  ;;  %v378_v41 = vld [vmem:[%s12806_s2 + $0x598] sm:$0xff] }
 0x158   : > { %13614 = vst [vmem:[#allocation316_spill] sm:$0xff] %v9774_v16  ;;  %v9795_v40 = vcombine.low %v362_v47, %v366_v11  ;;  %v382_v47 = vld [vmem:[%s12806_s2 + $0x5b8] sm:$0xff] }
 0x159   : > { %3962 = vmatmul.mubr.bf16.gmra.mrb[16].mxu0 %v8068_v38  ;;  %4214 = vmatmul.mubr.bf16.gmra.mrb[16].mxu1 %v8068_v38  ;;  %13612 = vst [vmem:[#allocation314_spill] sm:$0xff] %v9769_v49  ;;  %13613 = vst [vmem:[#allocation315_spill] sm:$0xff] %v9771_v12  ;;  %v373_v38 = vld [vmem:[%s12806_s2 + $0x570] sm:$0xff] }
 0x15a   : > { %3987 = vmatpush1.bf16.msra.mxu0 %v9739_v61  ;;  %4239 = vmatpush1.bf16.msra.mxu1 %v9743_v30  ;;  %v369_v61 = vld [vmem:[%s12806_s2 + $0x550] sm:$0xff]  ;;  %13615 = vst [vmem:[#allocation317_spill] sm:$0xff] %v9791_v52  ;;  %13616 = vst [vmem:[#allocation318_spill] sm:$0xff] %v9795_v40 }
 0x15b   : > { %3988 = vmatprep.subr.bf16.mxu0 %v9745_v63  ;;  %4240 = vmatprep.subr.bf16.mxu1 %v9748_v55  ;;  %v9797_v55 = vcombine.high %v369_v61, %v373_v38  ;;  %v9800_v63 = vcombine.high %v370_v0, %v374_v33  ;;  %v9816_v11 = vcombine.low %v369_v61, %v373_v38  ;;  %v386_v61 = vld [vmem:[%s12806_s2 + $0x5d8] sm:$0xff] }
 0x15c   : > { %3971 = vmatprep.mubr.bf16.mxu0 %v8090_v54  ;;  %4223 = vmatprep.mubr.bf16.mxu1 %v8090_v54  ;;  %v377_v54 = vld [vmem:[%s12806_s2 + $0x590] sm:$0xff]  ;;  %v390_v38 = vld [vmem:[%s12806_s2 + $0x5f8] sm:$0xff] }
 0x15d   : > { %13617 = vst [vmem:[#allocation319_spill] sm:$0xff] %v9797_v55  ;;  %13618 = vst [vmem:[#allocation320_spill] sm:$0xff] %v9800_v63 }
 0x15e   : > { %3989 = vmatpush1.bf16.msra.mxu0 %v9764_v13  ;;  %4241 = vmatpush1.bf16.msra.mxu1 %v9769_v49  ;;  %13619 = vst [vmem:[#allocation321_spill] sm:$0xff] %v9816_v11  ;;  %v9826_v49 = vcombine.high %v378_v41, %v382_v47 }
 0x15f   : > { %3990 = vmatprep.subr.bf16.mxu0 %v9771_v12  ;;  %4242 = vmatprep.subr.bf16.mxu1 %v9774_v16  ;;  %v9821_v16 = vcombine.low %v370_v0, %v374_v33  ;;  %v9823_v12 = vcombine.high %v377_v54, %v381_v60  ;;  %v9843_v0 = vcombine.low %v377_v54, %v381_v60  ;;  %v397_v54 = vld [vmem:[%s12806_s2 + $0x630] sm:$0xff]  ;;  %v394_v60 = vld [vmem:[%s12806_s2 + $0x618] sm:$0xff] }
 0x160   : > { %13622 = vst [vmem:[#allocation324_spill] sm:$0xff] %v9826_v49  ;;  %v9847_v33 = vcombine.low %v378_v41, %v382_v47  ;;  %v398_v41 = vld [vmem:[%s12806_s2 + $0x638] sm:$0xff] }
 0x161   : > { %3972 = vmatmul.mubr.bf16.gmra.mrb[20].mxu0 %v8126_v32  ;;  %4224 = vmatmul.mubr.bf16.gmra.mrb[20].mxu1 %v8126_v32  ;;  %13620 = vst [vmem:[#allocation322_spill] sm:$0xff] %v9821_v16  ;;  %13621 = vst [vmem:[#allocation323_spill] sm:$0xff] %v9823_v12  ;;  %v389_v32 = vld [vmem:[%s12806_s2 + $0x5f0] sm:$0xff] }
 0x162   : > { %3991 = vmatpush1.bf16.msra.mxu0 %v9791_v52  ;;  %4243 = vmatpush1.bf16.msra.mxu1 %v9795_v40  ;;  %v385_v52 = vld [vmem:[%s12806_s2 + $0x5d0] sm:$0xff]  ;;  %13623 = vst [vmem:[#allocation325_spill] sm:$0xff] %v9843_v0  ;;  %13624 = vst [vmem:[#allocation326_spill] sm:$0xff] %v9847_v33 }
 0x163   : > { %3992 = vmatprep.subr.bf16.mxu0 %v9797_v55  ;;  %4244 = vmatprep.subr.bf16.mxu1 %v9800_v63  ;;  %v9849_v63 = vcombine.high %v385_v52, %v389_v32  ;;  %v9852_v55 = vcombine.high %v386_v61, %v390_v38  ;;  %v9867_v47 = vcombine.low %v385_v52, %v389_v32  ;;  %v405_v52 = vld [vmem:[%s12806_s2 + $0x670] sm:$0xff]  ;;  %v402_v32 = vld [vmem:[%s12806_s2 + $0x658] sm:$0xff] }
 0x164   : > { %4014 = vmatprep.mubr.bf16.mxu0 %v8154_v56  ;;  %4266 = vmatprep.mubr.bf16.mxu1 %v8154_v56  ;;  %v393_v56 = vld [vmem:[%s12806_s2 + $0x610] sm:$0xff] }
 0x165   : > { %13625 = vst [vmem:[#allocation327_spill] sm:$0xff] %v9849_v63  ;;  %13626 = vst [vmem:[#allocation328_spill] sm:$0xff] %v9852_v55 }
 0x166   : > { %3993 = vmatpush1.bf16.msra.mxu0 %v9816_v11  ;;  %4245 = vmatpush1.bf16.msra.mxu1 %v9821_v16  ;;  %13627 = vst [vmem:[#allocation329_spill] sm:$0xff] %v9867_v47  ;;  %v9876_v16 = vcombine.high %v394_v60, %v398_v41  ;;  %v401_v11 = vld [vmem:[%s12806_s2 + $0x650] sm:$0xff] }
 0x167   : > { %3994 = vmatprep.subr.bf16.mxu0 %v9823_v12  ;;  %4246 = vmatprep.subr.bf16.mxu1 %v9826_v49  ;;  %v9871_v49 = vcombine.low %v386_v61, %v390_v38  ;;  %v9873_v12 = vcombine.high %v393_v56, %v397_v54  ;;  %v406_v61 = vld [vmem:[%s12806_s2 + $0x678] sm:$0xff]  ;;  %v9891_v38 = vcombine.low %v393_v56, %v397_v54  ;;  %v413_v56 = vld [vmem:[%s12806_s2 + $0x6b0] sm:$0xff] }
 0x168   : > { %13630 = vst [vmem:[#allocation332_spill] sm:$0xff] %v9876_v16  ;;  %v410_v54 = vld [vmem:[%s12806_s2 + $0x698] sm:$0xff] }
 0x169   : > { %13628 = vst [vmem:[#allocation330_spill] sm:$0xff] %v9871_v49  ;;  %13629 = vst [vmem:[#allocation331_spill] sm:$0xff] %v9873_v12 }
 0x16a   : > { %3995 = vmatpush1.bf16.msra.mxu0 %v9843_v0  ;;  %4247 = vmatpush1.bf16.msra.mxu1 %v9847_v33  ;;  %13631 = vst [vmem:[#allocation333_spill] sm:$0xff] %v9891_v38  ;;  %v9900_v33 = vcombine.high %v402_v32, %v406_v61  ;;  %v409_v0 = vld [vmem:[%s12806_s2 + $0x690] sm:$0xff] }
 0x16b   : > { %3996 = vmatprep.subr.bf16.mxu0 %v9849_v63  ;;  %4248 = vmatprep.subr.bf16.mxu1 %v9852_v55  ;;  %v9895_v55 = vcombine.low %v394_v60, %v398_v41  ;;  %v9897_v63 = vcombine.high %v401_v11, %v405_v52  ;;  %v414_v60 = vld [vmem:[%s12806_s2 + $0x6b8] sm:$0xff]  ;;  %v9915_v41 = vcombine.low %v401_v11, %v405_v52  ;;  %v421_v11 = vld [vmem:[%s12806_s2 + $0x6f0] sm:$0xff] }
 0x16c   : > { %13634 = vst [vmem:[#allocation336_spill] sm:$0xff] %v9900_v33  ;;  %v418_v52 = vld [vmem:[%s12806_s2 + $0x6d8] sm:$0xff] }
 0x16d   : > { %13632 = vst [vmem:[#allocation334_spill] sm:$0xff] %v9895_v55  ;;  %13633 = vst [vmem:[#allocation335_spill] sm:$0xff] %v9897_v63 }
 0x16e   : > { %3997 = vmatpush1.bf16.msra.mxu0 %v9867_v47  ;;  %4249 = vmatpush1.bf16.msra.mxu1 %v9871_v49  ;;  %13635 = vst [vmem:[#allocation337_spill] sm:$0xff] %v9915_v41  ;;  %v9924_v49 = vcombine.high %v410_v54, %v414_v60  ;;  %v417_v47 = vld [vmem:[%s12806_s2 + $0x6d0] sm:$0xff] }
 0x16f   : > { %3998 = vmatprep.subr.bf16.mxu0 %v9873_v12  ;;  %4250 = vmatprep.subr.bf16.mxu1 %v9876_v16  ;;  %v9919_v16 = vcombine.low %v402_v32, %v406_v61  ;;  %v9921_v12 = vcombine.high %v409_v0, %v413_v56  ;;  %v422_v32 = vld [vmem:[%s12806_s2 + $0x6f8] sm:$0xff]  ;;  %v9939_v61 = vcombine.low %v409_v0, %v413_v56  ;;  %v429_v0 = vld [vmem:[%s12806_s2 + $0x730] sm:$0xff] }
 0x170   : > { %13638 = vst [vmem:[#allocation340_spill] sm:$0xff] %v9924_v49  ;;  %v426_v56 = vld [vmem:[%s12806_s2 + $0x718] sm:$0xff] }
 0x171   : > { %13636 = vst [vmem:[#allocation338_spill] sm:$0xff] %v9919_v16  ;;  %13637 = vst [vmem:[#allocation339_spill] sm:$0xff] %v9921_v12 }
 0x172   : > { %3999 = vmatpush1.bf16.msra.mxu0 %v9891_v38  ;;  %4251 = vmatpush1.bf16.msra.mxu1 %v9895_v55  ;;  %13639 = vst [vmem:[#allocation341_spill] sm:$0xff] %v9939_v61  ;;  %v9948_v55 = vcombine.high %v418_v52, %v422_v32  ;;  %v425_v38 = vld [vmem:[%s12806_s2 + $0x710] sm:$0xff] }
 0x173   : > { %4000 = vmatprep.subr.bf16.mxu0 %v9897_v63  ;;  %4252 = vmatprep.subr.bf16.mxu1 %v9900_v33  ;;  %v9943_v33 = vcombine.low %v410_v54, %v414_v60  ;;  %v9945_v63 = vcombine.high %v417_v47, %v421_v11  ;;  %v430_v54 = vld [vmem:[%s12806_s2 + $0x738] sm:$0xff]  ;;  %v9963_v60 = vcombine.low %v417_v47, %v421_v11  ;;  %v437_v47 = vld [vmem:[%s12806_s2 + $0x770] sm:$0xff] }
 0x174   : > { %13642 = vst [vmem:[#allocation344_spill] sm:$0xff] %v9948_v55  ;;  %v434_v11 = vld [vmem:[%s12806_s2 + $0x758] sm:$0xff] }
 0x175   : > { %13640 = vst [vmem:[#allocation342_spill] sm:$0xff] %v9943_v33  ;;  %13641 = vst [vmem:[#allocation343_spill] sm:$0xff] %v9945_v63 }
 0x176   : > { %4001 = vmatpush1.bf16.msra.mxu0 %v9915_v41  ;;  %4253 = vmatpush1.bf16.msra.mxu1 %v9919_v16  ;;  %13643 = vst [vmem:[#allocation345_spill] sm:$0xff] %v9963_v60  ;;  %v9972_v16 = vcombine.high %v426_v56, %v430_v54  ;;  %v433_v41 = vld [vmem:[%s12806_s2 + $0x750] sm:$0xff] }
 0x177   : > { %4002 = vmatprep.subr.bf16.mxu0 %v9921_v12  ;;  %4254 = vmatprep.subr.bf16.mxu1 %v9924_v49  ;;  %v9967_v49 = vcombine.low %v418_v52, %v422_v32  ;;  %v9969_v12 = vcombine.high %v425_v38, %v429_v0  ;;  %v438_v52 = vld [vmem:[%s12806_s2 + $0x778] sm:$0xff]  ;;  %v9987_v32 = vcombine.low %v425_v38, %v429_v0  ;;  %v445_v38 = vld [vmem:[%s12806_s2 + $0x7b0] sm:$0xff] }
 0x178   : > { %13646 = vst [vmem:[#allocation348_spill] sm:$0xff] %v9972_v16  ;;  %v442_v0 = vld [vmem:[%s12806_s2 + $0x798] sm:$0xff] }
 0x179   : > { %13644 = vst [vmem:[#allocation346_spill] sm:$0xff] %v9967_v49  ;;  %13645 = vst [vmem:[#allocation347_spill] sm:$0xff] %v9969_v12 }
 0x17a   : > { %4003 = vmatpush1.bf16.msra.mxu0 %v9939_v61  ;;  %4255 = vmatpush1.bf16.msra.mxu1 %v9943_v33  ;;  %13647 = vst [vmem:[#allocation349_spill] sm:$0xff] %v9987_v32  ;;  %v9996_v33 = vcombine.high %v434_v11, %v438_v52  ;;  %v441_v61 = vld [vmem:[%s12806_s2 + $0x790] sm:$0xff] }
 0x17b   : > { %4004 = vmatprep.subr.bf16.mxu0 %v9945_v63  ;;  %4256 = vmatprep.subr.bf16.mxu1 %v9948_v55  ;;  %v9991_v55 = vcombine.low %v426_v56, %v430_v54  ;;  %v9993_v63 = vcombine.high %v433_v41, %v437_v47  ;;  %v446_v56 = vld [vmem:[%s12806_s2 + $0x7b8] sm:$0xff]  ;;  %v10011_v54 = vcombine.low %v433_v41, %v437_v47  ;;  %v453_v41 = vld [vmem:[%s12806_s2 + $0x7f0] sm:$0xff] }
 0x17c   : > { %13650 = vst [vmem:[#allocation352_spill] sm:$0xff] %v9996_v33  ;;  %v450_v47 = vld [vmem:[%s12806_s2 + $0x7d8] sm:$0xff] }
 0x17d   : > { %13648 = vst [vmem:[#allocation350_spill] sm:$0xff] %v9991_v55  ;;  %13649 = vst [vmem:[#allocation351_spill] sm:$0xff] %v9993_v63 }
 0x17e   : > { %4005 = vmatpush1.bf16.msra.mxu0 %v9963_v60  ;;  %4257 = vmatpush1.bf16.msra.mxu1 %v9967_v49  ;;  %13651 = vst [vmem:[#allocation353_spill] sm:$0xff] %v10011_v54  ;;  %v10020_v49 = vcombine.high %v442_v0, %v446_v56  ;;  %v449_v60 = vld [vmem:[%s12806_s2 + $0x7d0] sm:$0xff] }
 0x17f   : > { %4006 = vmatprep.subr.bf16.mxu0 %v9969_v12  ;;  %4258 = vmatprep.subr.bf16.mxu1 %v9972_v16  ;;  %v10015_v16 = vcombine.low %v434_v11, %v438_v52  ;;  %v10017_v12 = vcombine.high %v441_v61, %v445_v38  ;;  %v454_v11 = vld [vmem:[%s12806_s2 + $0x7f8] sm:$0xff]  ;;  %v10035_v52 = vcombine.low %v441_v61, %v445_v38  ;;  %v461_v61 = vld [vmem:[%s12806_s2 + $0x830] sm:$0xff] }
 0x180   : > { %13654 = vst [vmem:[#allocation356_spill] sm:$0xff] %v10020_v49  ;;  %v458_v38 = vld [vmem:[%s12806_s2 + $0x818] sm:$0xff] }
 0x181   : > { %13652 = vst [vmem:[#allocation354_spill] sm:$0xff] %v10015_v16  ;;  %13653 = vst [vmem:[#allocation355_spill] sm:$0xff] %v10017_v12 }
 0x182   : > { %4007 = vmatpush1.bf16.msra.mxu0 %v9987_v32  ;;  %4259 = vmatpush1.bf16.msra.mxu1 %v9991_v55  ;;  %13655 = vst [vmem:[#allocation357_spill] sm:$0xff] %v10035_v52  ;;  %v10044_v55 = vcombine.high %v450_v47, %v454_v11  ;;  %v457_v32 = vld [vmem:[%s12806_s2 + $0x810] sm:$0xff] }
 0x183   : > { %4008 = vmatprep.subr.bf16.mxu0 %v9993_v63  ;;  %4260 = vmatprep.subr.bf16.mxu1 %v9996_v33  ;;  %v10039_v33 = vcombine.low %v442_v0, %v446_v56  ;;  %v10041_v63 = vcombine.high %v449_v60, %v453_v41  ;;  %v462_v0 = vld [vmem:[%s12806_s2 + $0x838] sm:$0xff]  ;;  %v10059_v56 = vcombine.low %v449_v60, %v453_v41  ;;  %v469_v60 = vld [vmem:[%s12806_s2 + $0x870] sm:$0xff] }
 0x184   : > { %13658 = vst [vmem:[#allocation360_spill] sm:$0xff] %v10044_v55  ;;  %v466_v41 = vld [vmem:[%s12806_s2 + $0x858] sm:$0xff] }
 0x185   : > { %13656 = vst [vmem:[#allocation358_spill] sm:$0xff] %v10039_v33  ;;  %13657 = vst [vmem:[#allocation359_spill] sm:$0xff] %v10041_v63 }
 0x186   : > { %4009 = vmatpush1.bf16.msra.mxu0 %v10011_v54  ;;  %4261 = vmatpush1.bf16.msra.mxu1 %v10015_v16  ;;  %13659 = vst [vmem:[#allocation361_spill] sm:$0xff] %v10059_v56  ;;  %v10068_v16 = vcombine.high %v458_v38, %v462_v0  ;;  %v465_v54 = vld [vmem:[%s12806_s2 + $0x850] sm:$0xff] }
 0x187   : > { %4010 = vmatprep.subr.bf16.mxu0 %v10017_v12  ;;  %4262 = vmatprep.subr.bf16.mxu1 %v10020_v49  ;;  %v10063_v49 = vcombine.low %v450_v47, %v454_v11  ;;  %v10065_v12 = vcombine.high %v457_v32, %v461_v61  ;;  %v470_v47 = vld [vmem:[%s12806_s2 + $0x878] sm:$0xff]  ;;  %v10083_v11 = vcombine.low %v457_v32, %v461_v61  ;;  %v477_v32 = vld [vmem:[%s12806_s2 + $0x8b0] sm:$0xff] }
 0x188   : > { %13662 = vst [vmem:[#allocation364_spill] sm:$0xff] %v10068_v16  ;;  %v474_v61 = vld [vmem:[%s12806_s2 + $0x898] sm:$0xff] }
 0x189   : > { %13660 = vst [vmem:[#allocation362_spill] sm:$0xff] %v10063_v49  ;;  %13661 = vst [vmem:[#allocation363_spill] sm:$0xff] %v10065_v12 }
 0x18a   : > { %4011 = vmatpush1.bf16.msra.mxu0 %v10035_v52  ;;  %4263 = vmatpush1.bf16.msra.mxu1 %v10039_v33  ;;  %13663 = vst [vmem:[#allocation365_spill] sm:$0xff] %v10083_v11  ;;  %v10092_v33 = vcombine.high %v466_v41, %v470_v47  ;;  %v473_v52 = vld [vmem:[%s12806_s2 + $0x890] sm:$0xff] }
 0x18b   : > { %4012 = vmatprep.subr.bf16.mxu0 %v10041_v63  ;;  %4264 = vmatprep.subr.bf16.mxu1 %v10044_v55  ;;  %v10087_v55 = vcombine.low %v458_v38, %v462_v0  ;;  %v10089_v63 = vcombine.high %v465_v54, %v469_v60  ;;  %v478_v38 = vld [vmem:[%s12806_s2 + $0x8b8] sm:$0xff]  ;;  %v10109_v0 = vcombine.low %v465_v54, %v469_v60 }
 0x18c   : > { %13666 = vst [vmem:[#allocation368_spill] sm:$0xff] %v10092_v33  ;;  %v482_v54 = vld [vmem:[%s12806_s2 + $0x8d8] sm:$0xff] }
 0x18d   : > { %13664 = vst [vmem:[#allocation366_spill] sm:$0xff] %v10087_v55  ;;  %13665 = vst [vmem:[#allocation367_spill] sm:$0xff] %v10089_v63  ;;  %v486_v60 = vld [vmem:[%s12806_s2 + $0x8f8] sm:$0xff] }
 0x18e   : > { %4013 = vmatpush1.bf16.msra.mxu0 %v10059_v56  ;;  %4265 = vmatpush1.bf16.msra.mxu1 %v10063_v49  ;;  %13667 = vst [vmem:[#allocation369_spill] sm:$0xff] %v10109_v0  ;;  %v10118_v49 = vcombine.high %v474_v61, %v478_v38 }
 0x18f   : > { %4045 = vmatprep.subr.bf16.mxu0 %v10065_v12  ;;  %4297 = vmatprep.subr.bf16.mxu1 %v10068_v16  ;;  %v10113_v16 = vcombine.low %v466_v41, %v470_v47  ;;  %v10115_v12 = vcombine.high %v473_v52, %v477_v32  ;;  %v10135_v41 = vcombine.low %v473_v52, %v477_v32  ;;  %v493_v52 = vld [vmem:[%s12806_s2 + $0x930] sm:$0xff]  ;;  %v490_v32 = vld [vmem:[%s12806_s2 + $0x918] sm:$0xff] }
 0x190   : > { %13670 = vst [vmem:[#allocation372_spill] sm:$0xff] %v10118_v49  ;;  %v10139_v47 = vcombine.low %v474_v61, %v478_v38  ;;  %v494_v61 = vld [vmem:[%s12806_s2 + $0x938] sm:$0xff] }
 0x191   : > { %4015 = vmatmul.mubr.bf16.vlgmr.msra.gmra.mrb[12].mxu0 %v8429_v2  ;;  %4267 = vmatmul.mubr.bf16.vlgmr.msra.gmra.mrb[12].mxu1 %v8429_v2  ;;  %13668 = vst [vmem:[#allocation370_spill] sm:$0xff] %v10113_v16  ;;  %13669 = vst [vmem:[#allocation371_spill] sm:$0xff] %v10115_v12  ;;  %v485_v2 = vld [vmem:[%s12806_s2 + $0x8f0] sm:$0xff] }
 0x192   : > { %4046 = vmatpush1.bf16.msra.mxu0 %v10083_v11  ;;  %4298 = vmatpush1.bf16.msra.mxu1 %v10087_v55  ;;  %v481_v11 = vld [vmem:[%s12806_s2 + $0x8d0] sm:$0xff]  ;;  %13671 = vst [vmem:[#allocation373_spill] sm:$0xff] %v10135_v41  ;;  %13672 = vst [vmem:[#allocation374_spill] sm:$0xff] %v10139_v47 }
 0x193   : > { %4047 = vmatprep.subr.bf16.mxu0 %v10089_v63  ;;  %4299 = vmatprep.subr.bf16.mxu1 %v10092_v33  ;;  %v10141_v33 = vcombine.high %v481_v11, %v485_v2  ;;  %v10144_v63 = vcombine.high %v482_v54, %v486_v60  ;;  %v10160_v38 = vcombine.low %v481_v11, %v485_v2  ;;  %v498_v11 = vld [vmem:[%s12806_s2 + $0x958] sm:$0xff] }
 0x194   : > { %4024 = vmatprep.mubr.bf16.mxu0 %v8454_v46  ;;  %4276 = vmatprep.mubr.bf16.mxu1 %v8454_v46  ;;  %v489_v46 = vld [vmem:[%s12806_s2 + $0x910] sm:$0xff]  ;;  %v502_v2 = vld [vmem:[%s12806_s2 + $0x978] sm:$0xff] }
 0x195   : > { %13673 = vst [vmem:[#allocation375_spill] sm:$0xff] %v10141_v33  ;;  %13674 = vst [vmem:[#allocation376_spill] sm:$0xff] %v10144_v63 }
 0x196   : > { %4048 = vmatpush1.bf16.msra.mxu0 %v10109_v0  ;;  %4300 = vmatpush1.bf16.msra.mxu1 %v10113_v16  ;;  %13675 = vst [vmem:[#allocation377_spill] sm:$0xff] %v10160_v38  ;;  %v10170_v16 = vcombine.high %v490_v32, %v494_v61 }
 0x197   : > { %4049 = vmatprep.subr.bf16.mxu0 %v10115_v12  ;;  %4301 = vmatprep.subr.bf16.mxu1 %v10118_v49  ;;  %v10165_v49 = vcombine.low %v482_v54, %v486_v60  ;;  %v10167_v12 = vcombine.high %v489_v46, %v493_v52  ;;  %v10187_v54 = vcombine.low %v489_v46, %v493_v52  ;;  %v509_v46 = vld [vmem:[%s12806_s2 + $0x9b0] sm:$0xff]  ;;  %v506_v52 = vld [vmem:[%s12806_s2 + $0x998] sm:$0xff] }
 0x198   : > { %13678 = vst [vmem:[#allocation380_spill] sm:$0xff] %v10170_v16  ;;  %v10191_v60 = vcombine.low %v490_v32, %v494_v61  ;;  %v510_v32 = vld [vmem:[%s12806_s2 + $0x9b8] sm:$0xff] }
 0x199   : > { %4025 = vmatmul.mubr.bf16.gmra.mrb[16].mxu0 %v8490_v22  ;;  %4277 = vmatmul.mubr.bf16.gmra.mrb[16].mxu1 %v8490_v22  ;;  %13676 = vst [vmem:[#allocation378_spill] sm:$0xff] %v10165_v49  ;;  %13677 = vst [vmem:[#allocation379_spill] sm:$0xff] %v10167_v12  ;;  %v501_v22 = vld [vmem:[%s12806_s2 + $0x970] sm:$0xff] }
 0x19a   : > { %4050 = vmatpush1.bf16.msra.mxu0 %v10135_v41  ;;  %4302 = vmatpush1.bf16.msra.mxu1 %v10139_v47  ;;  %v497_v41 = vld [vmem:[%s12806_s2 + $0x950] sm:$0xff]  ;;  %13679 = vst [vmem:[#allocation381_spill] sm:$0xff] %v10187_v54  ;;  %13680 = vst [vmem:[#allocation382_spill] sm:$0xff] %v10191_v60 }
 0x19b   : > { %4051 = vmatprep.subr.bf16.mxu0 %v10141_v33  ;;  %4303 = vmatprep.subr.bf16.mxu1 %v10144_v63  ;;  %v10193_v63 = vcombine.high %v497_v41, %v501_v22  ;;  %v10196_v33 = vcombine.high %v498_v11, %v502_v2  ;;  %v10212_v61 = vcombine.low %v497_v41, %v501_v22  ;;  %v514_v41 = vld [vmem:[%s12806_s2 + $0x9d8] sm:$0xff] }
 0x19c   : > { %4034 = vmatprep.mubr.bf16.mxu0 %v8512_v57  ;;  %4286 = vmatprep.mubr.bf16.mxu1 %v8512_v57  ;;  %v505_v57 = vld [vmem:[%s12806_s2 + $0x990] sm:$0xff]  ;;  %v518_v22 = vld [vmem:[%s12806_s2 + $0x9f8] sm:$0xff] }
 0x19d   : > { %13681 = vst [vmem:[#allocation383_spill] sm:$0xff] %v10193_v63  ;;  %13682 = vst [vmem:[#allocation384_spill] sm:$0xff] %v10196_v33 }
 0x19e   : > { %4052 = vmatpush1.bf16.msra.mxu0 %v10160_v38  ;;  %4304 = vmatpush1.bf16.msra.mxu1 %v10165_v49  ;;  %13683 = vst [vmem:[#allocation385_spill] sm:$0xff] %v10212_v61  ;;  %v10222_v49 = vcombine.high %v506_v52, %v510_v32 }
 0x19f   : > { %4053 = vmatprep.subr.bf16.mxu0 %v10167_v12  ;;  %4305 = vmatprep.subr.bf16.mxu1 %v10170_v16  ;;  %v10217_v16 = vcombine.low %v498_v11, %v502_v2  ;;  %v10219_v12 = vcombine.high %v505_v57, %v509_v46  ;;  %v10239_v11 = vcombine.low %v505_v57, %v509_v46  ;;  %v525_v57 = vld [vmem:[%s12806_s2 + $0xa30] sm:$0xff]  ;;  %v522_v46 = vld [vmem:[%s12806_s2 + $0xa18] sm:$0xff] }
 0x1a0   : > { %13686 = vst [vmem:[#allocation388_spill] sm:$0xff] %v10222_v49  ;;  %v10243_v2 = vcombine.low %v506_v52, %v510_v32  ;;  %v526_v52 = vld [vmem:[%s12806_s2 + $0xa38] sm:$0xff] }
 0x1a1   : > { %4035 = vmatmul.mubr.bf16.gmra.mrb[20].mxu0 %v8548_v48  ;;  %4287 = vmatmul.mubr.bf16.gmra.mrb[20].mxu1 %v8548_v48  ;;  %13684 = vst [vmem:[#allocation386_spill] sm:$0xff] %v10217_v16  ;;  %13685 = vst [vmem:[#allocation387_spill] sm:$0xff] %v10219_v12  ;;  %v517_v48 = vld [vmem:[%s12806_s2 + $0x9f0] sm:$0xff] }
 0x1a2   : > { %4054 = vmatpush1.bf16.msra.mxu0 %v10187_v54  ;;  %4306 = vmatpush1.bf16.msra.mxu1 %v10191_v60  ;;  %v513_v54 = vld [vmem:[%s12806_s2 + $0x9d0] sm:$0xff]  ;;  %13687 = vst [vmem:[#allocation389_spill] sm:$0xff] %v10239_v11  ;;  %13688 = vst [vmem:[#allocation390_spill] sm:$0xff] %v10243_v2 }
 0x1a3   : > { %4055 = vmatprep.subr.bf16.mxu0 %v10193_v63  ;;  %4307 = vmatprep.subr.bf16.mxu1 %v10196_v33  ;;  %v10245_v33 = vcombine.high %v513_v54, %v517_v48  ;;  %v10248_v63 = vcombine.high %v514_v41, %v518_v22  ;;  %v10263_v32 = vcombine.low %v513_v54, %v517_v48  ;;  %v533_v54 = vld [vmem:[%s12806_s2 + $0xa70] sm:$0xff]  ;;  %v530_v48 = vld [vmem:[%s12806_s2 + $0xa58] sm:$0xff] }
 0x1a4   : > { %4077 = vmatprep.mubr.bf16.mxu0 %v8576_v31  ;;  %4329 = vmatprep.mubr.bf16.mxu1 %v8576_v31  ;;  %v521_v31 = vld [vmem:[%s12806_s2 + $0xa10] sm:$0xff] }
 0x1a5   : > { %13689 = vst [vmem:[#allocation391_spill] sm:$0xff] %v10245_v33  ;;  %13690 = vst [vmem:[#allocation392_spill] sm:$0xff] %v10248_v63 }
 0x1a6   : > { %4056 = vmatpush1.bf16.msra.mxu0 %v10212_v61  ;;  %4308 = vmatpush1.bf16.msra.mxu1 %v10217_v16  ;;  %13691 = vst [vmem:[#allocation393_spill] sm:$0xff] %v10263_v32  ;;  %v10272_v16 = vcombine.high %v522_v46, %v526_v52  ;;  %v529_v61 = vld [vmem:[%s12806_s2 + $0xa50] sm:$0xff] }
 0x1a7   : > { %4057 = vmatprep.subr.bf16.mxu0 %v10219_v12  ;;  %4309 = vmatprep.subr.bf16.mxu1 %v10222_v49  ;;  %v10267_v49 = vcombine.low %v514_v41, %v518_v22  ;;  %v10269_v12 = vcombine.high %v521_v31, %v525_v57  ;;  %v534_v41 = vld [vmem:[%s12806_s2 + $0xa78] sm:$0xff]  ;;  %v10287_v22 = vcombine.low %v521_v31, %v525_v57  ;;  %v541_v31 = vld [vmem:[%s12806_s2 + $0xab0] sm:$0xff] }
 0x1a8   : > { %13694 = vst [vmem:[#allocation396_spill] sm:$0xff] %v10272_v16  ;;  %v538_v57 = vld [vmem:[%s12806_s2 + $0xa98] sm:$0xff] }
 0x1a9   : > { %13692 = vst [vmem:[#allocation394_spill] sm:$0xff] %v10267_v49  ;;  %13693 = vst [vmem:[#allocation395_spill] sm:$0xff] %v10269_v12 }
 0x1aa   : > { %4058 = vmatpush1.bf16.msra.mxu0 %v10239_v11  ;;  %4310 = vmatpush1.bf16.msra.mxu1 %v10243_v2  ;;  %13695 = vst [vmem:[#allocation397_spill] sm:$0xff] %v10287_v22  ;;  %v10296_v2 = vcombine.high %v530_v48, %v534_v41  ;;  %v537_v11 = vld [vmem:[%s12806_s2 + $0xa90] sm:$0xff] }
 0x1ab   : > { %4059 = vmatprep.subr.bf16.mxu0 %v10245_v33  ;;  %4311 = vmatprep.subr.bf16.mxu1 %v10248_v63  ;;  %v10291_v63 = vcombine.low %v522_v46, %v526_v52  ;;  %v10293_v33 = vcombine.high %v529_v61, %v533_v54  ;;  %v542_v46 = vld [vmem:[%s12806_s2 + $0xab8] sm:$0xff]  ;;  %v10311_v52 = vcombine.low %v529_v61, %v533_v54  ;;  %v549_v61 = vld [vmem:[%s12806_s2 + $0xaf0] sm:$0xff] }
 0x1ac   : > { %13698 = vst [vmem:[#allocation400_spill] sm:$0xff] %v10296_v2  ;;  %v546_v54 = vld [vmem:[%s12806_s2 + $0xad8] sm:$0xff] }
 0x1ad   : > { %13696 = vst [vmem:[#allocation398_spill] sm:$0xff] %v10291_v63  ;;  %13697 = vst [vmem:[#allocation399_spill] sm:$0xff] %v10293_v33 }
 0x1ae   : > { %4060 = vmatpush1.bf16.msra.mxu0 %v10263_v32  ;;  %4312 = vmatpush1.bf16.msra.mxu1 %v10267_v49  ;;  %13699 = vst [vmem:[#allocation401_spill] sm:$0xff] %v10311_v52  ;;  %v10320_v49 = vcombine.high %v538_v57, %v542_v46  ;;  %v545_v32 = vld [vmem:[%s12806_s2 + $0xad0] sm:$0xff] }
 0x1af   : > { %4061 = vmatprep.subr.bf16.mxu0 %v10269_v12  ;;  %4313 = vmatprep.subr.bf16.mxu1 %v10272_v16  ;;  %v10315_v16 = vcombine.low %v530_v48, %v534_v41  ;;  %v10317_v12 = vcombine.high %v537_v11, %v541_v31  ;;  %v550_v48 = vld [vmem:[%s12806_s2 + $0xaf8] sm:$0xff]  ;;  %v10335_v41 = vcombine.low %v537_v11, %v541_v31  ;;  %v557_v11 = vld [vmem:[%s12806_s2 + $0xb30] sm:$0xff] }
 0x1b0   : > { %13702 = vst [vmem:[#allocation404_spill] sm:$0xff] %v10320_v49  ;;  %v554_v31 = vld [vmem:[%s12806_s2 + $0xb18] sm:$0xff] }
 0x1b1   : > { %13700 = vst [vmem:[#allocation402_spill] sm:$0xff] %v10315_v16  ;;  %13701 = vst [vmem:[#allocation403_spill] sm:$0xff] %v10317_v12 }
 0x1b2   : > { %4062 = vmatpush1.bf16.msra.mxu0 %v10287_v22  ;;  %4314 = vmatpush1.bf16.msra.mxu1 %v10291_v63  ;;  %13703 = vst [vmem:[#allocation405_spill] sm:$0xff] %v10335_v41  ;;  %v10344_v63 = vcombine.high %v546_v54, %v550_v48  ;;  %v553_v22 = vld [vmem:[%s12806_s2 + $0xb10] sm:$0xff] }
 0x1b3   : > { %4063 = vmatprep.subr.bf16.mxu0 %v10293_v33  ;;  %4315 = vmatprep.subr.bf16.mxu1 %v10296_v2  ;;  %v10339_v2 = vcombine.low %v538_v57, %v542_v46  ;;  %v10341_v33 = vcombine.high %v545_v32, %v549_v61  ;;  %v558_v57 = vld [vmem:[%s12806_s2 + $0xb38] sm:$0xff]  ;;  %v10359_v46 = vcombine.low %v545_v32, %v549_v61  ;;  %v565_v32 = vld [vmem:[%s12806_s2 + $0xb70] sm:$0xff] }
 0x1b4   : > { %13706 = vst [vmem:[#allocation408_spill] sm:$0xff] %v10344_v63  ;;  %v562_v61 = vld [vmem:[%s12806_s2 + $0xb58] sm:$0xff] }
 0x1b5   : > { %13704 = vst [vmem:[#allocation406_spill] sm:$0xff] %v10339_v2  ;;  %13705 = vst [vmem:[#allocation407_spill] sm:$0xff] %v10341_v33 }
 0x1b6   : > { %4064 = vmatpush1.bf16.msra.mxu0 %v10311_v52  ;;  %4316 = vmatpush1.bf16.msra.mxu1 %v10315_v16  ;;  %13707 = vst [vmem:[#allocation409_spill] sm:$0xff] %v10359_v46  ;;  %v10368_v16 = vcombine.high %v554_v31, %v558_v57  ;;  %v561_v52 = vld [vmem:[%s12806_s2 + $0xb50] sm:$0xff] }
 0x1b7   : > { %4065 = vmatprep.subr.bf16.mxu0 %v10317_v12  ;;  %4317 = vmatprep.subr.bf16.mxu1 %v10320_v49  ;;  %v10363_v49 = vcombine.low %v546_v54, %v550_v48  ;;  %v10365_v12 = vcombine.high %v553_v22, %v557_v11  ;;  %v566_v54 = vld [vmem:[%s12806_s2 + $0xb78] sm:$0xff]  ;;  %v10383_v48 = vcombine.low %v553_v22, %v557_v11  ;;  %v573_v22 = vld [vmem:[%s12806_s2 + $0xbb0] sm:$0xff] }
 0x1b8   : > { %13710 = vst [vmem:[#allocation412_spill] sm:$0xff] %v10368_v16  ;;  %v570_v11 = vld [vmem:[%s12806_s2 + $0xb98] sm:$0xff] }
 0x1b9   : > { %13708 = vst [vmem:[#allocation410_spill] sm:$0xff] %v10363_v49  ;;  %13709 = vst [vmem:[#allocation411_spill] sm:$0xff] %v10365_v12 }
 0x1ba   : > { %4066 = vmatpush1.bf16.msra.mxu0 %v10335_v41  ;;  %4318 = vmatpush1.bf16.msra.mxu1 %v10339_v2  ;;  %13711 = vst [vmem:[#allocation413_spill] sm:$0xff] %v10383_v48  ;;  %v10392_v2 = vcombine.high %v562_v61, %v566_v54  ;;  %v569_v41 = vld [vmem:[%s12806_s2 + $0xb90] sm:$0xff] }
 0x1bb   : > { %4067 = vmatprep.subr.bf16.mxu0 %v10341_v33  ;;  %4319 = vmatprep.subr.bf16.mxu1 %v10344_v63  ;;  %v10387_v63 = vcombine.low %v554_v31, %v558_v57  ;;  %v10389_v33 = vcombine.high %v561_v52, %v565_v32  ;;  %v574_v31 = vld [vmem:[%s12806_s2 + $0xbb8] sm:$0xff]  ;;  %v10407_v57 = vcombine.low %v561_v52, %v565_v32  ;;  %v581_v52 = vld [vmem:[%s12806_s2 + $0xbf0] sm:$0xff] }
 0x1bc   : > { %13714 = vst [vmem:[#allocation416_spill] sm:$0xff] %v10392_v2  ;;  %v578_v32 = vld [vmem:[%s12806_s2 + $0xbd8] sm:$0xff] }
 0x1bd   : > { %13712 = vst [vmem:[#allocation414_spill] sm:$0xff] %v10387_v63  ;;  %13713 = vst [vmem:[#allocation415_spill] sm:$0xff] %v10389_v33 }
 0x1be   : > { %4068 = vmatpush1.bf16.msra.mxu0 %v10359_v46  ;;  %4320 = vmatpush1.bf16.msra.mxu1 %v10363_v49  ;;  %13715 = vst [vmem:[#allocation417_spill] sm:$0xff] %v10407_v57  ;;  %v10416_v49 = vcombine.high %v570_v11, %v574_v31  ;;  %v577_v46 = vld [vmem:[%s12806_s2 + $0xbd0] sm:$0xff] }
 0x1bf   : > { %4069 = vmatprep.subr.bf16.mxu0 %v10365_v12  ;;  %4321 = vmatprep.subr.bf16.mxu1 %v10368_v16  ;;  %v10411_v16 = vcombine.low %v562_v61, %v566_v54  ;;  %v10413_v12 = vcombine.high %v569_v41, %v573_v22  ;;  %v582_v61 = vld [vmem:[%s12806_s2 + $0xbf8] sm:$0xff]  ;;  %v10431_v54 = vcombine.low %v569_v41, %v573_v22  ;;  %v589_v41 = vld [vmem:[%s12806_s2 + $0xc30] sm:$0xff] }
 0x1c0   : > { %13718 = vst [vmem:[#allocation420_spill] sm:$0xff] %v10416_v49  ;;  %v586_v22 = vld [vmem:[%s12806_s2 + $0xc18] sm:$0xff] }
 0x1c1   : > { %13716 = vst [vmem:[#allocation418_spill] sm:$0xff] %v10411_v16  ;;  %13717 = vst [vmem:[#allocation419_spill] sm:$0xff] %v10413_v12 }
 0x1c2   : > { %4070 = vmatpush1.bf16.msra.mxu0 %v10383_v48  ;;  %4322 = vmatpush1.bf16.msra.mxu1 %v10387_v63  ;;  %13719 = vst [vmem:[#allocation421_spill] sm:$0xff] %v10431_v54  ;;  %v10440_v63 = vcombine.high %v578_v32, %v582_v61  ;;  %v585_v48 = vld [vmem:[%s12806_s2 + $0xc10] sm:$0xff] }
 0x1c3   : > { %4071 = vmatprep.subr.bf16.mxu0 %v10389_v33  ;;  %4323 = vmatprep.subr.bf16.mxu1 %v10392_v2  ;;  %v10435_v2 = vcombine.low %v570_v11, %v574_v31  ;;  %v10437_v33 = vcombine.high %v577_v46, %v581_v52  ;;  %v590_v11 = vld [vmem:[%s12806_s2 + $0xc38] sm:$0xff]  ;;  %v10455_v31 = vcombine.low %v577_v46, %v581_v52  ;;  %v597_v46 = vld [vmem:[%s12806_s2 + $0xc70] sm:$0xff] }
 0x1c4   : > { %13722 = vst [vmem:[#allocation424_spill] sm:$0xff] %v10440_v63  ;;  %v594_v52 = vld [vmem:[%s12806_s2 + $0xc58] sm:$0xff] }
 0x1c5   : > { %13720 = vst [vmem:[#allocation422_spill] sm:$0xff] %v10435_v2  ;;  %13721 = vst [vmem:[#allocation423_spill] sm:$0xff] %v10437_v33 }
 0x1c6   : > { %4072 = vmatpush1.bf16.msra.mxu0 %v10407_v57  ;;  %4324 = vmatpush1.bf16.msra.mxu1 %v10411_v16  ;;  %13723 = vst [vmem:[#allocation425_spill] sm:$0xff] %v10455_v31  ;;  %v10464_v16 = vcombine.high %v586_v22, %v590_v11  ;;  %v593_v57 = vld [vmem:[%s12806_s2 + $0xc50] sm:$0xff] }
 0x1c7   : > { %4073 = vmatprep.subr.bf16.mxu0 %v10413_v12  ;;  %4325 = vmatprep.subr.bf16.mxu1 %v10416_v49  ;;  %v10459_v49 = vcombine.low %v578_v32, %v582_v61  ;;  %v10461_v12 = vcombine.high %v585_v48, %v589_v41  ;;  %v598_v32 = vld [vmem:[%s12806_s2 + $0xc78] sm:$0xff]  ;;  %v10479_v61 = vcombine.low %v585_v48, %v589_v41  ;;  %v605_v48 = vld [vmem:[%s12806_s2 + $0xcb0] sm:$0xff] }
 0x1c8   : > { %13726 = vst [vmem:[#allocation428_spill] sm:$0xff] %v10464_v16  ;;  %v602_v41 = vld [vmem:[%s12806_s2 + $0xc98] sm:$0xff] }
 0x1c9   : > { %13724 = vst [vmem:[#allocation426_spill] sm:$0xff] %v10459_v49  ;;  %13725 = vst [vmem:[#allocation427_spill] sm:$0xff] %v10461_v12 }
 0x1ca   : > { %4074 = vmatpush1.bf16.msra.mxu0 %v10431_v54  ;;  %4326 = vmatpush1.bf16.msra.mxu1 %v10435_v2  ;;  %13727 = vst [vmem:[#allocation429_spill] sm:$0xff] %v10479_v61  ;;  %v10488_v2 = vcombine.high %v594_v52, %v598_v32  ;;  %v601_v54 = vld [vmem:[%s12806_s2 + $0xc90] sm:$0xff] }
 0x1cb   : > { %4075 = vmatprep.subr.bf16.mxu0 %v10437_v33  ;;  %4327 = vmatprep.subr.bf16.mxu1 %v10440_v63  ;;  %v10483_v63 = vcombine.low %v586_v22, %v590_v11  ;;  %v10485_v33 = vcombine.high %v593_v57, %v597_v46  ;;  %v606_v22 = vld [vmem:[%s12806_s2 + $0xcb8] sm:$0xff]  ;;  %v10505_v11 = vcombine.low %v593_v57, %v597_v46 }
 0x1cc   : > { %13730 = vst [vmem:[#allocation432_spill] sm:$0xff] %v10488_v2  ;;  %v610_v57 = vld [vmem:[%s12806_s2 + $0xcd8] sm:$0xff] }
 0x1cd   : > { %13728 = vst [vmem:[#allocation430_spill] sm:$0xff] %v10483_v63  ;;  %13729 = vst [vmem:[#allocation431_spill] sm:$0xff] %v10485_v33  ;;  %v614_v46 = vld [vmem:[%s12806_s2 + $0xcf8] sm:$0xff] }
 0x1ce   : > { %4076 = vmatpush1.bf16.msra.mxu0 %v10455_v31  ;;  %4328 = vmatpush1.bf16.msra.mxu1 %v10459_v49  ;;  %13731 = vst [vmem:[#allocation433_spill] sm:$0xff] %v10505_v11  ;;  %v10514_v49 = vcombine.high %v602_v41, %v606_v22 }
 0x1cf   : > { %4108 = vmatprep.subr.bf16.mxu0 %v10461_v12  ;;  %4360 = vmatprep.subr.bf16.mxu1 %v10464_v16  ;;  %v10509_v16 = vcombine.low %v594_v52, %v598_v32  ;;  %v10511_v12 = vcombine.high %v601_v54, %v605_v48  ;;  %v10531_v52 = vcombine.low %v601_v54, %v605_v48  ;;  %v621_v54 = vld [vmem:[%s12806_s2 + $0xd30] sm:$0xff]  ;;  %v618_v48 = vld [vmem:[%s12806_s2 + $0xd18] sm:$0xff] }
 0x1d0   : > { %13734 = vst [vmem:[#allocation436_spill] sm:$0xff] %v10514_v49  ;;  %v10535_v32 = vcombine.low %v602_v41, %v606_v22  ;;  %v622_v41 = vld [vmem:[%s12806_s2 + $0xd38] sm:$0xff] }
 0x1d1   : > { %4078 = vmatmul.mubr.bf16.vlgmr.msra.gmra.mrb[12].mxu0 %v8851_v15  ;;  %4330 = vmatmul.mubr.bf16.vlgmr.msra.gmra.mrb[12].mxu1 %v8851_v15  ;;  %13732 = vst [vmem:[#allocation434_spill] sm:$0xff] %v10509_v16  ;;  %13733 = vst [vmem:[#allocation435_spill] sm:$0xff] %v10511_v12  ;;  %v613_v15 = vld [vmem:[%s12806_s2 + $0xcf0] sm:$0xff] }
 0x1d2   : > { %4109 = vmatpush1.bf16.msra.mxu0 %v10479_v61  ;;  %4361 = vmatpush1.bf16.msra.mxu1 %v10483_v63  ;;  %v609_v61 = vld [vmem:[%s12806_s2 + $0xcd0] sm:$0xff]  ;;  %13735 = vst [vmem:[#allocation437_spill] sm:$0xff] %v10531_v52  ;;  %13736 = vst [vmem:[#allocation438_spill] sm:$0xff] %v10535_v32 }
 0x1d3   : > { %4110 = vmatprep.subr.bf16.mxu0 %v10485_v33  ;;  %4362 = vmatprep.subr.bf16.mxu1 %v10488_v2  ;;  %v10537_v2 = vcombine.high %v609_v61, %v613_v15  ;;  %v10540_v33 = vcombine.high %v610_v57, %v614_v46  ;;  %v10556_v22 = vcombine.low %v609_v61, %v613_v15  ;;  %v626_v61 = vld [vmem:[%s12806_s2 + $0xd58] sm:$0xff] }
 0x1d4   : > { %4087 = vmatprep.mubr.bf16.mxu0 %v8876_v24  ;;  %4339 = vmatprep.mubr.bf16.mxu1 %v8876_v24  ;;  %v617_v24 = vld [vmem:[%s12806_s2 + $0xd10] sm:$0xff]  ;;  %v630_v15 = vld [vmem:[%s12806_s2 + $0xd78] sm:$0xff] }
 0x1d5   : > { %13737 = vst [vmem:[#allocation439_spill] sm:$0xff] %v10537_v2  ;;  %13738 = vst [vmem:[#allocation440_spill] sm:$0xff] %v10540_v33 }
 0x1d6   : > { %4111 = vmatpush1.bf16.msra.mxu0 %v10505_v11  ;;  %4363 = vmatpush1.bf16.msra.mxu1 %v10509_v16  ;;  %13739 = vst [vmem:[#allocation441_spill] sm:$0xff] %v10556_v22  ;;  %v10566_v16 = vcombine.high %v618_v48, %v622_v41 }
 0x1d7   : > { %4112 = vmatprep.subr.bf16.mxu0 %v10511_v12  ;;  %4364 = vmatprep.subr.bf16.mxu1 %v10514_v49  ;;  %v10561_v49 = vcombine.low %v610_v57, %v614_v46  ;;  %v10563_v12 = vcombine.high %v617_v24, %v621_v54  ;;  %v10583_v57 = vcombine.low %v617_v24, %v621_v54  ;;  %v637_v24 = vld [vmem:[%s12806_s2 + $0xdb0] sm:$0xff]  ;;  %v634_v54 = vld [vmem:[%s12806_s2 + $0xd98] sm:$0xff] }
 0x1d8   : > { %13742 = vst [vmem:[#allocation444_spill] sm:$0xff] %v10566_v16  ;;  %v10587_v46 = vcombine.low %v618_v48, %v622_v41  ;;  %v638_v48 = vld [vmem:[%s12806_s2 + $0xdb8] sm:$0xff] }
 0x1d9   : > { %4088 = vmatmul.mubr.bf16.gmra.mrb[16].mxu0 %v8912_v6  ;;  %4340 = vmatmul.mubr.bf16.gmra.mrb[16].mxu1 %v8912_v6  ;;  %13740 = vst [vmem:[#allocation442_spill] sm:$0xff] %v10561_v49  ;;  %13741 = vst [vmem:[#allocation443_spill] sm:$0xff] %v10563_v12  ;;  %v629_v6 = vld [vmem:[%s12806_s2 + $0xd70] sm:$0xff]  ;;  %v10653_v63 = vcombine.low %v634_v54, %v638_v48 }
 0x1da   : > { %4113 = vmatpush1.bf16.msra.mxu0 %v10531_v52  ;;  %4365 = vmatpush1.bf16.msra.mxu1 %v10535_v32  ;;  %v625_v52 = vld [vmem:[%s12806_s2 + $0xd50] sm:$0xff]  ;;  %13743 = vst [vmem:[#allocation445_spill] sm:$0xff] %v10583_v57  ;;  %13744 = vst [vmem:[#allocation446_spill] sm:$0xff] %v10587_v46 }
 0x1db   : > { %4114 = vmatprep.subr.bf16.mxu0 %v10537_v2  ;;  %4366 = vmatprep.subr.bf16.mxu1 %v10540_v33  ;;  %v10589_v33 = vcombine.high %v625_v52, %v629_v6  ;;  %v10592_v2 = vcombine.high %v626_v61, %v630_v15  ;;  %v10608_v41 = vcombine.low %v625_v52, %v629_v6  ;;  %v641_v52 = vld [vmem:[%s12806_s2 + $0xdd0] sm:$0xff] }
 0x1dc   : > { %4097 = vmatprep.mubr.bf16.mxu0 %v8934_v25  ;;  %4349 = vmatprep.mubr.bf16.mxu1 %v8934_v25  ;;  %v633_v25 = vld [vmem:[%s12806_s2 + $0xd90] sm:$0xff]  ;;  %13752 = vst [vmem:[#allocation454_spill] sm:$0xff] %v10653_v63 }
 0x1dd   : > { %13745 = vst [vmem:[#allocation447_spill] sm:$0xff] %v10589_v33  ;;  %13746 = vst [vmem:[#allocation448_spill] sm:$0xff] %v10592_v2 }
 0x1de   : > { %4115 = vmatpush1.bf16.msra.mxu0 %v10556_v22  ;;  %4367 = vmatpush1.bf16.msra.mxu1 %v10561_v49  ;;  %13747 = vst [vmem:[#allocation449_spill] sm:$0xff] %v10608_v41  ;;  %v10620_v22 = vcombine.high %v634_v54, %v638_v48  ;;  %v650_v54 = vld [vmem:[%s12806_s2 + $0xe18] sm:$0xff] }
 0x1df   : > { %4116 = vmatprep.subr.bf16.mxu0 %v10563_v12  ;;  %4368 = vmatprep.subr.bf16.mxu1 %v10566_v16  ;;  %v10613_v16 = vcombine.low %v626_v61, %v630_v15  ;;  %v10615_v12 = vcombine.high %v633_v25, %v637_v24  ;;  %v642_v15 = vld [vmem:[%s12806_s2 + $0xdd8] sm:$0xff] }
 0x1e0   : > { %13750 = vst [vmem:[#allocation452_spill] sm:$0xff] %v10620_v22  ;;  %v654_v48 = vld [vmem:[%s12806_s2 + $0xe38] sm:$0xff] }
 0x1e1   : > { %4098 = vmatmul.mubr.bf16.gmra.mrb[20].mxu0 %v8970_v1  ;;  %4350 = vmatmul.mubr.bf16.gmra.mrb[20].mxu1 %v8970_v1  ;;  %13748 = vst [vmem:[#allocation450_spill] sm:$0xff] %v10613_v16  ;;  %13749 = vst [vmem:[#allocation451_spill] sm:$0xff] %v10615_v12  ;;  %v645_v1 = vld [vmem:[%s12806_s2 + $0xdf0] sm:$0xff]  ;;  %v10686_v38 = vcombine.high %v650_v54, %v654_v48  ;;  %v10717_v56 = vcombine.low %v650_v54, %v654_v48  ;;  %v666_v54 = vld [vmem:[%s12806_s2 + $0xe98] sm:$0xff] }
 0x1e2   : > { %4117 = vmatpush1.bf16.msra.mxu0 %v10583_v57  ;;  %4369 = vmatpush1.bf16.msra.mxu1 %v10587_v46  ;;  %v10645_v57 = vcombine.low %v633_v25, %v637_v24  ;;  %v10655_v31 = vcombine.high %v641_v52, %v645_v1  ;;  %v649_v25 = vld [vmem:[%s12806_s2 + $0xe10] sm:$0xff]  ;;  %v670_v48 = vld [vmem:[%s12806_s2 + $0xeb8] sm:$0xff] }
 0x1e3   : > { %4118 = vmatprep.subr.bf16.mxu0 %v10589_v33  ;;  %4370 = vmatprep.subr.bf16.mxu1 %v10592_v2  ;;  %v646_v2 = vld [vmem:[%s12806_s2 + $0xdf8] sm:$0xff]  ;;  %v653_v24 = vld [vmem:[%s12806_s2 + $0xe30] sm:$0xff]  ;;  %13758 = vst [vmem:[#allocation460_spill] sm:$0xff] %v10686_v38  ;;  %13760 = vst [vmem:[#allocation462_spill] sm:$0xff] %v10717_v56  ;;  %v10750_v39 = vcombine.high %v666_v54, %v670_v48 }
 0x1e4   : > { %v10617_v49 = vpop.f32.mrb[0].mxu0  ;;  %4140 = vmatprep.mubr.bf16.mxu0 %v8998_v17  ;;  %v10629_v6 = vpop.f32.mrb[0].mxu1  ;;  %4392 = vmatprep.mubr.bf16.mxu1 %v8998_v17  ;;  %13751 = vst [vmem:[#allocation453_spill] sm:$0xff] %v10645_v57  ;;  %13753 = vst [vmem:[#allocation455_spill] sm:$0xff] %v10655_v31  ;;  %v10660_v60 = vcombine.high %v642_v15, %v646_v2  ;;  %v10709_v47 = vcombine.low %v649_v25, %v653_v24 }
 0x1e5   : > { %v10631_v61 = vpop.f32.mrb[1].mxu0  ;;  %v10640_v33 = vpop.f32.mrb[1].mxu1  ;;  %13767 = vst [vmem:[#allocation469_spill] sm:$0xff] %v10750_v39 }
 0x1e6   : > { %v10642_v46 = vpop.f32.mrb[2].mxu0  ;;  %4119 = vmatpush1.bf16.msra.mxu0 %v10608_v41  ;;  %v10647_v32 = vpop.f32.mrb[2].mxu1  ;;  %4371 = vmatpush1.bf16.msra.mxu1 %v10613_v16  ;;  %13754 = vst [vmem:[#allocation456_spill] sm:$0xff] %v10660_v60  ;;  %v10681_v16 = vcombine.high %v649_v25, %v653_v24  ;;  %13759 = vst [vmem:[#allocation461_spill] sm:$0xff] %v10709_v47  ;;  %v665_v25 = vld [vmem:[%s12806_s2 + $0xe90] sm:$0xff] }
 0x1e7   : > { %v10650_v11 = vpop.f32.mrb[3].mxu0  ;;  %4120 = vmatprep.subr.bf16.mxu0 %v10615_v12  ;;  %v10657_v17 = vpop.f32.mrb[3].mxu1  ;;  %4372 = vmatprep.subr.bf16.mxu1 %v10620_v22  ;;  %v10675_v22 = vcombine.low %v641_v52, %v645_v1  ;;  %v10679_v12 = vcombine.low %v642_v15, %v646_v2  ;;  %v661_v52 = vld [vmem:[%s12806_s2 + $0xe70] sm:$0xff]  ;;  %v658_v15 = vld [vmem:[%s12806_s2 + $0xe58] sm:$0xff] }
 0x1e8   : > { %13757 = vst [vmem:[#allocation459_spill] sm:$0xff] %v10681_v16  ;;  %v669_v24 = vld [vmem:[%s12806_s2 + $0xeb0] sm:$0xff] }
 0x1e9   : > { %13755 = vst [vmem:[#allocation457_spill] sm:$0xff] %v10675_v22  ;;  %13756 = vst [vmem:[#allocation458_spill] sm:$0xff] %v10679_v12  ;;  %v10773_v51 = vcombine.low %v665_v25, %v669_v24 }
 0x1ea   : > { %4121 = vmatpush1.bf16.msra.mxu0 %v10645_v57  ;;  %4373 = vmatpush1.bf16.msra.mxu1 %v10653_v63  ;;  %v657_v57 = vld [vmem:[%s12806_s2 + $0xe50] sm:$0xff] }
 0x1eb   : > { %4122 = vmatprep.subr.bf16.mxu0 %v10655_v31  ;;  %4374 = vmatprep.subr.bf16.mxu1 %v10660_v60  ;;  %v662_v60 = vld [vmem:[%s12806_s2 + $0xe78] sm:$0xff]  ;;  %v10719_v40 = vcombine.high %v657_v57, %v661_v52  ;;  %13771 = vst [vmem:[#allocation473_spill] sm:$0xff] %v10773_v51 }
 0x1ec   : > { %v10683_v41 = vpop.f32.mrb[4].mxu0  ;;  %v10694_v1 = vpop.f32.mrb[4].mxu1  ;;  %v10724_v30 = vcombine.high %v658_v15, %v662_v60 }
 0x1ed   : > { %v10696_v2 = vpop.f32.mrb[5].mxu0  ;;  %v10704_v31 = vpop.f32.mrb[5].mxu1  ;;  %13761 = vst [vmem:[#allocation463_spill] sm:$0xff] %v10719_v40 }
 0x1ee   : > { %v10706_v63 = vpop.f32.mrb[6].mxu0  ;;  %4123 = vmatpush1.bf16.msra.mxu0 %v10675_v22  ;;  %v10711_v0 = vpop.f32.mrb[6].mxu1  ;;  %4375 = vmatpush1.bf16.msra.mxu1 %v10679_v12  ;;  %13762 = vst [vmem:[#allocation464_spill] sm:$0xff] %v10724_v30  ;;  %v10745_v12 = vcombine.high %v665_v25, %v669_v24  ;;  %v681_v25 = vld [vmem:[%s12806_s2 + $0xf10] sm:$0xff] }
 0x1ef   : > { %v10714_v55 = vpop.f32.mrb[7].mxu0  ;;  %4124 = vmatprep.subr.bf16.mxu0 %v10681_v16  ;;  %v10721_v13 = vpop.f32.mrb[7].mxu1  ;;  %4376 = vmatprep.subr.bf16.mxu1 %v10686_v38  ;;  %v10739_v38 = vcombine.low %v657_v57, %v661_v52  ;;  %v10743_v16 = vcombine.low %v658_v15, %v662_v60  ;;  %v677_v57 = vld [vmem:[%s12806_s2 + $0xef0] sm:$0xff]  ;;  %v674_v15 = vld [vmem:[%s12806_s2 + $0xed8] sm:$0xff] }
 0x1f0   : > { %13765 = vst [vmem:[#allocation467_spill] sm:$0xff] %v10745_v12  ;;  %v685_v24 = vld [vmem:[%s12806_s2 + $0xf30] sm:$0xff] }
 0x1f1   : > { %13763 = vst [vmem:[#allocation465_spill] sm:$0xff] %v10739_v38  ;;  %13764 = vst [vmem:[#allocation466_spill] sm:$0xff] %v10743_v16 }
 0x1f2   : > { %4125 = vmatpush1.bf16.msra.mxu0 %v10709_v47  ;;  %4377 = vmatpush1.bf16.msra.mxu1 %v10717_v56  ;;  %v673_v47 = vld [vmem:[%s12806_s2 + $0xed0] sm:$0xff] }
 0x1f3   : > { %4126 = vmatprep.subr.bf16.mxu0 %v10719_v40  ;;  %4378 = vmatprep.subr.bf16.mxu1 %v10724_v30  ;;  %v678_v30 = vld [vmem:[%s12806_s2 + $0xef8] sm:$0xff] }
 0x1f4   : > { %v10747_v22 = vpop.f32.mrb[8].mxu0  ;;  %v10758_v52 = vpop.f32.mrb[8].mxu1 }
 0x1f5   : > { %13766 = vst [vmem:[#allocation468_spill] sm:$0xff] %v10747_v22  ;;  %13768 = vst [vmem:[#allocation470_spill] sm:$0xff] %v10758_v52  ;;  %v10760_v60 = vpop.f32.mrb[9].mxu0  ;;  %v10768_v40 = vpop.f32.mrb[9].mxu1  ;;  %v10783_v52 = vcombine.high %v673_v47, %v677_v57 }
 0x1f6   : > { %13769 = vst [vmem:[#allocation471_spill] sm:$0xff] %v10760_v60  ;;  %v10770_v56 = vpop.f32.mrb[10].mxu0  ;;  %4127 = vmatpush1.bf16.msra.mxu0 %v10739_v38  ;;  %v10775_v58 = vpop.f32.mrb[10].mxu1  ;;  %4379 = vmatpush1.bf16.msra.mxu1 %v10743_v16  ;;  %v10781_v60 = vcombine.low %v666_v54, %v670_v48  ;;  %v682_v54 = vld [vmem:[%s12806_s2 + $0xf18] sm:$0xff]  ;;  %v10809_v16 = vcombine.high %v681_v25, %v685_v24 }
 0x1f7   : > { %13770 = vst [vmem:[#allocation472_spill] sm:$0xff] %v10770_v56  ;;  %v10778_v62 = vpop.f32.mrb[11].mxu0  ;;  %4128 = vmatprep.subr.bf16.mxu0 %v10745_v12  ;;  %13773 = vst [vmem:[#allocation475_spill] sm:$0xff] %v10783_v52  ;;  %v10785_v22 = vpop.f32.mrb[11].mxu1  ;;  %4380 = vmatprep.subr.bf16.mxu1 %v10750_v39  ;;  %v10788_v56 = vcombine.high %v674_v15, %v678_v30  ;;  %v686_v48 = vld [vmem:[%s12806_s2 + $0xf38] sm:$0xff]  ;;  %v10803_v39 = vcombine.low %v673_v47, %v677_v57  ;;  %v693_v47 = vld [vmem:[%s12806_s2 + $0xf70] sm:$0xff] }
 0x1f8   : > { %13772 = vst [vmem:[#allocation474_spill] sm:$0xff] %v10781_v60  ;;  %13774 = vst [vmem:[#allocation476_spill] sm:$0xff] %v10785_v22  ;;  %v10807_v12 = vcombine.low %v674_v15, %v678_v30  ;;  %v10812_v38 = vcombine.high %v682_v54, %v686_v48  ;;  %v689_v22 = vld [vmem:[%s12806_s2 + $0xf50] sm:$0xff]  ;;  %v690_v57 = vld [vmem:[%s12806_s2 + $0xf58] sm:$0xff]  ;;  %v10827_v15 = vcombine.low %v681_v25, %v685_v24 }
 0x1f9   : > { %13775 = vst [vmem:[#allocation477_spill] sm:$0xff] %v10788_v56  ;;  %13776 = vst [vmem:[#allocation478_spill] sm:$0xff] %v10803_v39  ;;  %v694_v30 = vld [vmem:[%s12806_s2 + $0xf78] sm:$0xff]  ;;  %v701_v25 = vld [vmem:[%s12806_s2 + $0xfb0] sm:$0xff] }
 0x1fa   : > { %4129 = vmatpush1.bf16.msra.mxu0 %v10773_v51  ;;  %4381 = vmatpush1.bf16.msra.mxu1 %v10781_v60  ;;  %13777 = vst [vmem:[#allocation479_spill] sm:$0xff] %v10807_v12  ;;  %13778 = vst [vmem:[#allocation480_spill] sm:$0xff] %v10809_v16  ;;  %v10836_v60 = vcombine.high %v690_v57, %v694_v30  ;;  %v697_v51 = vld [vmem:[%s12806_s2 + $0xf90] sm:$0xff]  ;;  %v698_v24 = vld [vmem:[%s12806_s2 + $0xf98] sm:$0xff] }
 0x1fb   : > { %4130 = vmatprep.subr.bf16.mxu0 %v10783_v52  ;;  %4382 = vmatprep.subr.bf16.mxu1 %v10788_v56  ;;  %13779 = vst [vmem:[#allocation481_spill] sm:$0xff] %v10812_v38  ;;  %13780 = vst [vmem:[#allocation482_spill] sm:$0xff] %v10827_v15  ;;  %v10831_v56 = vcombine.low %v682_v54, %v686_v48  ;;  %v10833_v52 = vcombine.high %v689_v22, %v693_v47  ;;  %v702_v54 = vld [vmem:[%s12806_s2 + $0xfb8] sm:$0xff] }
 0x1fc   : > { %13783 = vst [vmem:[#allocation485_spill] sm:$0xff] %v10836_v60  ;;  %v10851_v48 = vcombine.low %v689_v22, %v693_v47  ;;  %v709_v22 = vld [vmem:[%s12806_s2 + $0xff0] sm:$0xff]  ;;  %v706_v47 = vld [vmem:[%s12806_s2 + $0xfd8] sm:$0xff] }
 0x1fd   : > { %13781 = vst [vmem:[#allocation483_spill] sm:$0xff] %v10831_v56  ;;  %13782 = vst [vmem:[#allocation484_spill] sm:$0xff] %v10833_v52 }
 0x1fe   : > { %4131 = vmatpush1.bf16.msra.mxu0 %v10803_v39  ;;  %4383 = vmatpush1.bf16.msra.mxu1 %v10807_v12  ;;  %v10860_v12 = vcombine.high %v698_v24, %v702_v54  ;;  %v705_v39 = vld [vmem:[%s12806_s2 + $0xfd0] sm:$0xff] }
 0x1ff   : > { %4132 = vmatprep.subr.bf16.mxu0 %v10809_v16  ;;  %4384 = vmatprep.subr.bf16.mxu1 %v10812_v38  ;;  %v10855_v38 = vcombine.low %v690_v57, %v694_v30  ;;  %v10857_v16 = vcombine.high %v697_v51, %v701_v25  ;;  %v710_v57 = vld [vmem:[%s12806_s2 + $0xff8] sm:$0xff]  ;;  %v10875_v30 = vcombine.low %v697_v51, %v701_v25  ;;  %v13815_v25 = vld [vmem:[#allocation28_spill] sm:$0xff] }
 0x200   : > { %v10891_v51 = vcombine.low %v706_v47, %v710_v57 }
 0x202   : > { %4133 = vmatpush1.bf16.msra.mxu0 %v10827_v15  ;;  %4385 = vmatpush1.bf16.msra.mxu1 %v10831_v56  ;;  %v10884_v56 = vcombine.high %v706_v47, %v710_v57  ;;  %v10887_v15 = vcombine.low %v705_v39, %v709_v22  ;;  %13788 = vst [vmem:[#allocation490_spill] sm:$0xff] %v10891_v51  ;;  %v13819_v47 = vld [vmem:[#allocation32_spill] sm:$0xff]  ;;  %v13820_v57 = vld [vmem:[#allocation33_spill] sm:$0xff] }
 0x203   : > { %4134 = vmatprep.subr.bf16.mxu0 %v10833_v52  ;;  %4386 = vmatprep.subr.bf16.mxu1 %v10836_v60  ;;  %v10879_v60 = vcombine.low %v698_v24, %v702_v54  ;;  %v10881_v52 = vcombine.high %v705_v39, %v709_v22  ;;  %v13814_v39 = vld [vmem:[#allocation27_spill] sm:$0xff]  ;;  %v13816_v24 = vld [vmem:[#allocation29_spill] sm:$0xff]  ;;  %v13817_v54 = vld [vmem:[#allocation30_spill] sm:$0xff] }
 0x204   : > { %13786 = vst [vmem:[#allocation488_spill] sm:$0xff] %v10884_v56  ;;  %13787 = vst [vmem:[#allocation489_spill] sm:$0xff] %v10887_v15  ;;  %v13818_v22 = vld [vmem:[#allocation31_spill] sm:$0xff] }
 0x205   : > { %13784 = vst [vmem:[#allocation486_spill] sm:$0xff] %v10879_v60  ;;  %13785 = vst [vmem:[#allocation487_spill] sm:$0xff] %v10881_v52 }
 0x206   : > { %4135 = vmatpush1.bf16.msra.mxu0 %v10851_v48  ;;  %4387 = vmatpush1.bf16.msra.mxu1 %v10855_v38 }
 0x207   : > { %4136 = vmatprep.subr.bf16.mxu0 %v10857_v16  ;;  %4388 = vmatprep.subr.bf16.mxu1 %v10860_v12 }
 0x20a   : > { %4137 = vmatpush1.bf16.msra.mxu0 %v10875_v30  ;;  %4389 = vmatpush1.bf16.msra.mxu1 %v10879_v60  ;;  %v13983_v60 = vld [vmem:[#allocation196_spill] sm:$0xff] }
 0x20b   : > { %4138 = vmatprep.subr.bf16.mxu0 %v10881_v52  ;;  %4390 = vmatprep.subr.bf16.mxu1 %v10884_v56  ;;  %v13982_v56 = vld [vmem:[#allocation195_spill] sm:$0xff] }
 0x20e   : > { %4139 = vmatpush1.bf16.msra.mxu0 %v10887_v15  ;;  %4391 = vmatpush1.bf16.msra.mxu1 %v10891_v51  ;;  %v13981_v51 = vld [vmem:[#allocation194_spill] sm:$0xff] }
 0x20f   : > { %4567 = vmatprep.subr.bf16.mxu0 %v7584_v3  ;;  %4819 = vmatprep.subr.bf16.mxu1 %v7597_v8  ;;  %v4423_v3 = vld [vmem:[%s10918_s29] sm:$0xff] }
 0x211   : > { %4141 = vmatmul.mubr.bf16.vlgmr.msra.gmra.mrb[12].mxu0 %v9273_v53  ;;  %4393 = vmatmul.mubr.bf16.vlgmr.msra.gmra.mrb[12].mxu1 %v9273_v53  ;;  %v13809_v53 = vld [vmem:[#allocation22_spill] sm:$0xff] }
 0x212   : > { %4568 = vmatpush1.bf16.msra.mxu0 %v7589_v5  ;;  %4820 = vmatpush1.bf16.msra.mxu1 %v7599_v9  ;;  %v4427_v5 = vld [vmem:[%s10918_s29 + $0x20] sm:$0xff] }
 0x213   : > { %4569 = vmatprep.subr.bf16.mxu0 %v7601_v10  ;;  %4821 = vmatprep.subr.bf16.mxu1 %v7613_v14  ;;  %v10931_v8 = vcombine.high %v4423_v3, %v4427_v5  ;;  %v13789_v9 = vld [vmem:[#allocation2_spill] sm:$0xff]  ;;  %v13790_v10 = vld [vmem:[#allocation3_spill] sm:$0xff]  ;;  %v13791_v14 = vld [vmem:[#allocation4_spill] sm:$0xff] }
 0x214   : > { %4150 = vmatprep.mubr.bf16.mxu0 %v9292_v7  ;;  %4402 = vmatprep.mubr.bf16.mxu1 %v9292_v7  ;;  %v13810_v7 = vld [vmem:[#allocation23_spill] sm:$0xff] }
 0x216   : > { %4570 = vmatpush1.bf16.msra.mxu0 %v7627_v18  ;;  %4822 = vmatpush1.bf16.msra.mxu1 %v7631_v19  ;;  %v13792_v18 = vld [vmem:[#allocation5_spill] sm:$0xff]  ;;  %v13793_v19 = vld [vmem:[#allocation6_spill] sm:$0xff] }
 0x217   : > { %4571 = vmatprep.subr.bf16.mxu0 %v7633_v20  ;;  %4823 = vmatprep.subr.bf16.mxu1 %v7636_v21  ;;  %v13794_v20 = vld [vmem:[#allocation7_spill] sm:$0xff]  ;;  %v13795_v21 = vld [vmem:[#allocation8_spill] sm:$0xff] }
 0x219   : > { %4151 = vmatmul.mubr.bf16.gmra.mrb[16].mxu0 %v9331_v59  ;;  %4403 = vmatmul.mubr.bf16.gmra.mrb[16].mxu1 %v9331_v59  ;;  %v13811_v59 = vld [vmem:[#allocation24_spill] sm:$0xff] }
 0x21a   : > { %4572 = vmatpush1.bf16.msra.mxu0 %v7651_v26  ;;  %4824 = vmatpush1.bf16.msra.mxu1 %v7655_v27  ;;  %v13796_v26 = vld [vmem:[#allocation9_spill] sm:$0xff]  ;;  %v13797_v27 = vld [vmem:[#allocation10_spill] sm:$0xff] }
 0x21b   : > { %4573 = vmatprep.subr.bf16.mxu0 %v7657_v28  ;;  %4825 = vmatprep.subr.bf16.mxu1 %v7660_v29  ;;  %v13798_v28 = vld [vmem:[#allocation11_spill] sm:$0xff]  ;;  %v13799_v29 = vld [vmem:[#allocation12_spill] sm:$0xff] }
 0x21c   : > { %4160 = vmatprep.mubr.bf16.mxu0 %v9350_v4  ;;  %4412 = vmatprep.mubr.bf16.mxu1 %v9350_v4  ;;  %v13812_v4 = vld [vmem:[#allocation25_spill] sm:$0xff] }
 0x21e   : > { %4574 = vmatpush1.bf16.msra.mxu0 %v7677_v34  ;;  %4826 = vmatpush1.bf16.msra.mxu1 %v7681_v35  ;;  %v13800_v34 = vld [vmem:[#allocation13_spill] sm:$0xff]  ;;  %v13801_v35 = vld [vmem:[#allocation14_spill] sm:$0xff] }
 0x21f   : > { %4575 = vmatprep.subr.bf16.mxu0 %v7683_v36  ;;  %4827 = vmatprep.subr.bf16.mxu1 %v7686_v37  ;;  %v13802_v36 = vld [vmem:[#allocation15_spill] sm:$0xff]  ;;  %v13803_v37 = vld [vmem:[#allocation16_spill] sm:$0xff] }
 0x221   : > { %4161 = vmatmul.mubr.bf16.gmra.mrb[20].mxu0 %v9386_v23  ;;  %4413 = vmatmul.mubr.bf16.gmra.mrb[20].mxu1 %v9386_v23  ;;  %v13813_v23 = vld [vmem:[#allocation26_spill] sm:$0xff] }
 0x222   : > { %4576 = vmatpush1.bf16.msra.mxu0 %v7702_v42  ;;  %4828 = vmatpush1.bf16.msra.mxu1 %v7706_v43  ;;  %v13804_v42 = vld [vmem:[#allocation17_spill] sm:$0xff]  ;;  %v13805_v43 = vld [vmem:[#allocation18_spill] sm:$0xff] }
 0x223   : > { %4577 = vmatprep.subr.bf16.mxu0 %v7708_v44  ;;  %4829 = vmatprep.subr.bf16.mxu1 %v7711_v45  ;;  %v13806_v44 = vld [vmem:[#allocation19_spill] sm:$0xff]  ;;  %v13807_v45 = vld [vmem:[#allocation20_spill] sm:$0xff] }
 0x224   : > { %4599 = vmatprep.mubr.bf16.mxu0 %v10931_v8  ;;  %4851 = vmatprep.mubr.bf16.mxu1 %v10931_v8 }
 0x226   : > { %4578 = vmatpush1.bf16.msra.mxu0 %v7733_v50  ;;  %4830 = vmatpush1.bf16.msra.mxu1 %v13789_v9  ;;  %v13808_v50 = vld [vmem:[#allocation21_spill] sm:$0xff]  ;;  %v13821_v9 = vld [vmem:[#allocation34_spill] sm:$0xff] }
 0x227   : > { %4579 = vmatprep.subr.bf16.mxu0 %v13790_v10  ;;  %4831 = vmatprep.subr.bf16.mxu1 %v13791_v14  ;;  %v13822_v10 = vld [vmem:[#allocation35_spill] sm:$0xff]  ;;  %v13823_v14 = vld [vmem:[#allocation36_spill] sm:$0xff] }
 0x22a   : > { %4580 = vmatpush1.bf16.msra.mxu0 %v13792_v18  ;;  %4832 = vmatpush1.bf16.msra.mxu1 %v13793_v19  ;;  %v13824_v18 = vld [vmem:[#allocation37_spill] sm:$0xff]  ;;  %v13825_v19 = vld [vmem:[#allocation38_spill] sm:$0xff] }
 0x22b   : > { %4581 = vmatprep.subr.bf16.mxu0 %v13794_v20  ;;  %4833 = vmatprep.subr.bf16.mxu1 %v13795_v21  ;;  %v13826_v20 = vld [vmem:[#allocation39_spill] sm:$0xff]  ;;  %v13827_v21 = vld [vmem:[#allocation40_spill] sm:$0xff] }
 0x22e   : > { %4582 = vmatpush1.bf16.msra.mxu0 %v13796_v26  ;;  %4834 = vmatpush1.bf16.msra.mxu1 %v13797_v27  ;;  %v10981_v26 = vcombine.low %v4423_v3, %v4427_v5  ;;  %v4431_v27 = vld [vmem:[%s10918_s29 + $0x40] sm:$0xff]  ;;  %v13834_v5 = vld [vmem:[#allocation47_spill] sm:$0xff] }
 0x22f   : > { %4583 = vmatprep.subr.bf16.mxu0 %v13798_v28  ;;  %4835 = vmatprep.subr.bf16.mxu1 %v13799_v29  ;;  %v4435_v28 = vld [vmem:[%s10918_s29 + $0x60] sm:$0xff]  ;;  %v13828_v29 = vld [vmem:[#allocation41_spill] sm:$0xff] }
 0x230   : > { %v13833_v3 = vld [vmem:[#allocation46_spill] sm:$0xff] }
 0x232   : > { %4584 = vmatpush1.bf16.msra.mxu0 %v13800_v34  ;;  %4836 = vmatpush1.bf16.msra.mxu1 %v13801_v35  ;;  %v13829_v34 = vld [vmem:[#allocation42_spill] sm:$0xff]  ;;  %v13830_v35 = vld [vmem:[#allocation43_spill] sm:$0xff] }
 0x233   : > { %4585 = vmatprep.subr.bf16.mxu0 %v13802_v36  ;;  %4837 = vmatprep.subr.bf16.mxu1 %v13803_v37  ;;  %v13831_v36 = vld [vmem:[#allocation44_spill] sm:$0xff]  ;;  %v10989_v37 = vcombine.high %v4431_v27, %v4435_v28 }
 0x236   : > { %4586 = vmatpush1.bf16.msra.mxu0 %v13804_v42  ;;  %4838 = vmatpush1.bf16.msra.mxu1 %v13805_v43  ;;  %v13832_v42 = vld [vmem:[#allocation45_spill] sm:$0xff]  ;;  %v13835_v43 = vld [vmem:[#allocation48_spill] sm:$0xff] }
 0x237   : > { %4587 = vmatprep.subr.bf16.mxu0 %v13806_v44  ;;  %4839 = vmatprep.subr.bf16.mxu1 %v13807_v45  ;;  %v10999_v44 = vcombine.low %v4431_v27, %v4435_v28  ;;  %v4439_v45 = vld [vmem:[%s10918_s29 + $0x80] sm:$0xff]  ;;  %v13850_v27 = vld [vmem:[#allocation63_spill] sm:$0xff]  ;;  %v13851_v28 = vld [vmem:[#allocation64_spill] sm:$0xff] }
 0x23a   : > { %4588 = vmatpush1.bf16.msra.mxu0 %v13808_v50  ;;  %4840 = vmatpush1.bf16.msra.mxu1 %v13809_v53  ;;  %v4443_v50 = vld [vmem:[%s10918_s29 + $0xa0] sm:$0xff]  ;;  %v13836_v53 = vld [vmem:[#allocation49_spill] sm:$0xff] }
 0x23b   : > { %4589 = vmatprep.subr.bf16.mxu0 %v13810_v7  ;;  %4841 = vmatprep.subr.bf16.mxu1 %v13811_v59  ;;  %v13837_v7 = vld [vmem:[#allocation50_spill] sm:$0xff]  ;;  %v13838_v59 = vld [vmem:[#allocation51_spill] sm:$0xff] }
 0x23e   : > { %4590 = vmatpush1.bf16.msra.mxu0 %v13812_v4  ;;  %4842 = vmatpush1.bf16.msra.mxu1 %v13813_v23  ;;  %v13839_v4 = vld [vmem:[#allocation52_spill] sm:$0xff]  ;;  %v11007_v23 = vcombine.high %v4439_v45, %v4443_v50 }
 0x23f   : > { %4591 = vmatprep.subr.bf16.mxu0 %v13814_v39  ;;  %4843 = vmatprep.subr.bf16.mxu1 %v13815_v25  ;;  %v13840_v39 = vld [vmem:[#allocation53_spill] sm:$0xff]  ;;  %v13841_v25 = vld [vmem:[#allocation54_spill] sm:$0xff] }
 0x242   : > { %4592 = vmatpush1.bf16.msra.mxu0 %v13816_v24  ;;  %4844 = vmatpush1.bf16.msra.mxu1 %v13817_v54  ;;  %v13842_v24 = vld [vmem:[#allocation55_spill] sm:$0xff]  ;;  %v13843_v54 = vld [vmem:[#allocation56_spill] sm:$0xff] }
 0x243   : > { %4593 = vmatprep.subr.bf16.mxu0 %v13818_v22  ;;  %4845 = vmatprep.subr.bf16.mxu1 %v13819_v47  ;;  %v11017_v22 = vcombine.low %v4439_v45, %v4443_v50  ;;  %v4424_v47 = vld [vmem:[%s10918_s29 + $0x8] sm:$0xff]  ;;  %v13860_v45 = vld [vmem:[#allocation73_spill] sm:$0xff]  ;;  %v13861_v50 = vld [vmem:[#allocation74_spill] sm:$0xff] }
 0x246   : > { %4594 = vmatpush1.bf16.msra.mxu0 %v13820_v57  ;;  %4846 = vmatpush1.bf16.msra.mxu1 %v13821_v9  ;;  %v4428_v57 = vld [vmem:[%s10918_s29 + $0x28] sm:$0xff]  ;;  %v13844_v9 = vld [vmem:[#allocation57_spill] sm:$0xff] }
 0x247   : > { %4595 = vmatprep.subr.bf16.mxu0 %v13822_v10  ;;  %4847 = vmatprep.subr.bf16.mxu1 %v13823_v14  ;;  %v13845_v10 = vld [vmem:[#allocation58_spill] sm:$0xff]  ;;  %v13846_v14 = vld [vmem:[#allocation59_spill] sm:$0xff] }
 0x24a   : > { %4596 = vmatpush1.bf16.msra.mxu0 %v13824_v18  ;;  %4848 = vmatpush1.bf16.msra.mxu1 %v13825_v19  ;;  %v13847_v18 = vld [vmem:[#allocation60_spill] sm:$0xff]  ;;  %v11025_v19 = vcombine.high %v4424_v47, %v4428_v57 }
 0x24b   : > { %4597 = vmatprep.subr.bf16.mxu0 %v13826_v20  ;;  %4849 = vmatprep.subr.bf16.mxu1 %v13827_v21  ;;  %v13848_v20 = vld [vmem:[#allocation61_spill] sm:$0xff]  ;;  %v13849_v21 = vld [vmem:[#allocation62_spill] sm:$0xff] }
 0x24e   : > { %4598 = vmatpush1.bf16.msra.mxu0 %v13828_v29  ;;  %4850 = vmatpush1.bf16.msra.mxu1 %v13829_v34  ;;  %v13852_v29 = vld [vmem:[#allocation65_spill] sm:$0xff]  ;;  %v13853_v34 = vld [vmem:[#allocation66_spill] sm:$0xff] }
 0x24f   : > { %4630 = vmatprep.subr.bf16.mxu0 %v13830_v35  ;;  %4882 = vmatprep.subr.bf16.mxu1 %v13831_v36  ;;  %v13854_v35 = vld [vmem:[#allocation67_spill] sm:$0xff]  ;;  %v13855_v36 = vld [vmem:[#allocation68_spill] sm:$0xff] }
 0x251   : > { %4600 = vmatmul.mubr.bf16.vlgmr.msra.gmra.mrb[24].mxu0 %v10981_v26  ;;  %4852 = vmatmul.mubr.bf16.vlgmr.msra.gmra.mrb[24].mxu1 %v10981_v26 }
 0x252   : > { %4631 = vmatpush1.bf16.msra.mxu0 %v13832_v42  ;;  %4883 = vmatpush1.bf16.msra.mxu1 %v13833_v3  ;;  %v13856_v42 = vld [vmem:[#allocation69_spill] sm:$0xff]  ;;  %v13857_v3 = vld [vmem:[#allocation70_spill] sm:$0xff] }
 0x253   : > { %4632 = vmatprep.subr.bf16.mxu0 %v13834_v5  ;;  %4884 = vmatprep.subr.bf16.mxu1 %v13835_v43  ;;  %v13858_v5 = vld [vmem:[#allocation71_spill] sm:$0xff]  ;;  %v13859_v43 = vld [vmem:[#allocation72_spill] sm:$0xff] }
 0x254   : > { %4609 = vmatprep.mubr.bf16.mxu0 %v10989_v37  ;;  %4861 = vmatprep.mubr.bf16.mxu1 %v10989_v37 }
 0x256   : > { %4633 = vmatpush1.bf16.msra.mxu0 %v13836_v53  ;;  %4885 = vmatpush1.bf16.msra.mxu1 %v13837_v7  ;;  %v13862_v53 = vld [vmem:[#allocation75_spill] sm:$0xff]  ;;  %v13863_v7 = vld [vmem:[#allocation76_spill] sm:$0xff] }
 0x257   : > { %4634 = vmatprep.subr.bf16.mxu0 %v13838_v59  ;;  %4886 = vmatprep.subr.bf16.mxu1 %v13839_v4  ;;  %v13864_v59 = vld [vmem:[#allocation77_spill] sm:$0xff]  ;;  %v13865_v4 = vld [vmem:[#allocation78_spill] sm:$0xff] }
 0x259   : > { %4610 = vmatmul.mubr.bf16.gmra.mrb[28].mxu0 %v10999_v44  ;;  %4862 = vmatmul.mubr.bf16.gmra.mrb[28].mxu1 %v10999_v44 }
 0x25a   : > { %4635 = vmatpush1.bf16.msra.mxu0 %v13840_v39  ;;  %4887 = vmatpush1.bf16.msra.mxu1 %v13841_v25  ;;  %v13866_v39 = vld [vmem:[#allocation79_spill] sm:$0xff]  ;;  %v13867_v25 = vld [vmem:[#allocation80_spill] sm:$0xff] }
 0x25b   : > { %4636 = vmatprep.subr.bf16.mxu0 %v13842_v24  ;;  %4888 = vmatprep.subr.bf16.mxu1 %v13843_v54  ;;  %v13868_v24 = vld [vmem:[#allocation81_spill] sm:$0xff]  ;;  %v13869_v54 = vld [vmem:[#allocation82_spill] sm:$0xff] }
 0x25c   : > { %4619 = vmatprep.mubr.bf16.mxu0 %v11007_v23  ;;  %4871 = vmatprep.mubr.bf16.mxu1 %v11007_v23 }
 0x25e   : > { %4637 = vmatpush1.bf16.msra.mxu0 %v13844_v9  ;;  %4889 = vmatpush1.bf16.msra.mxu1 %v13845_v10  ;;  %v13870_v9 = vld [vmem:[#allocation83_spill] sm:$0xff]  ;;  %v13871_v10 = vld [vmem:[#allocation84_spill] sm:$0xff] }
 0x25f   : > { %4638 = vmatprep.subr.bf16.mxu0 %v13846_v14  ;;  %4890 = vmatprep.subr.bf16.mxu1 %v13847_v18  ;;  %v13872_v14 = vld [vmem:[#allocation85_spill] sm:$0xff]  ;;  %v13873_v18 = vld [vmem:[#allocation86_spill] sm:$0xff] }
 0x261   : > { %4620 = vmatmul.mubr.bf16.gmra.mrb[32].mxu0 %v11017_v22  ;;  %4872 = vmatmul.mubr.bf16.gmra.mrb[32].mxu1 %v11017_v22 }
 0x262   : > { %4639 = vmatpush1.bf16.msra.mxu0 %v13848_v20  ;;  %4891 = vmatpush1.bf16.msra.mxu1 %v13849_v21  ;;  %v13874_v20 = vld [vmem:[#allocation87_spill] sm:$0xff]  ;;  %v13875_v21 = vld [vmem:[#allocation88_spill] sm:$0xff] }
 0x263   : > { %4640 = vmatprep.subr.bf16.mxu0 %v13850_v27  ;;  %4892 = vmatprep.subr.bf16.mxu1 %v13851_v28  ;;  %v13876_v27 = vld [vmem:[#allocation89_spill] sm:$0xff]  ;;  %v13877_v28 = vld [vmem:[#allocation90_spill] sm:$0xff] }
 0x264   : > { %4662 = vmatprep.mubr.bf16.mxu0 %v11025_v19  ;;  %4914 = vmatprep.mubr.bf16.mxu1 %v11025_v19 }
 0x266   : > { %4641 = vmatpush1.bf16.msra.mxu0 %v13852_v29  ;;  %4893 = vmatpush1.bf16.msra.mxu1 %v13853_v34  ;;  %v13878_v29 = vld [vmem:[#allocation91_spill] sm:$0xff]  ;;  %v13879_v34 = vld [vmem:[#allocation92_spill] sm:$0xff] }
 0x267   : > { %4642 = vmatprep.subr.bf16.mxu0 %v13854_v35  ;;  %4894 = vmatprep.subr.bf16.mxu1 %v13855_v36  ;;  %v13880_v35 = vld [vmem:[#allocation93_spill] sm:$0xff]  ;;  %v13881_v36 = vld [vmem:[#allocation94_spill] sm:$0xff] }
 0x26a   : > { %4643 = vmatpush1.bf16.msra.mxu0 %v13856_v42  ;;  %4895 = vmatpush1.bf16.msra.mxu1 %v13857_v3  ;;  %v13882_v42 = vld [vmem:[#allocation95_spill] sm:$0xff]  ;;  %v13883_v3 = vld [vmem:[#allocation96_spill] sm:$0xff] }
 0x26b   : > { %4644 = vmatprep.subr.bf16.mxu0 %v13858_v5  ;;  %4896 = vmatprep.subr.bf16.mxu1 %v13859_v43  ;;  %v13884_v5 = vld [vmem:[#allocation97_spill] sm:$0xff]  ;;  %v13885_v43 = vld [vmem:[#allocation98_spill] sm:$0xff] }
 0x26e   : > { %4645 = vmatpush1.bf16.msra.mxu0 %v13860_v45  ;;  %4897 = vmatpush1.bf16.msra.mxu1 %v13861_v50  ;;  %v13886_v45 = vld [vmem:[#allocation99_spill] sm:$0xff]  ;;  %v13887_v50 = vld [vmem:[#allocation100_spill] sm:$0xff] }
 0x26f   : > { %4646 = vmatprep.subr.bf16.mxu0 %v13862_v53  ;;  %4898 = vmatprep.subr.bf16.mxu1 %v13863_v7  ;;  %v13888_v53 = vld [vmem:[#allocation101_spill] sm:$0xff]  ;;  %v13889_v7 = vld [vmem:[#allocation102_spill] sm:$0xff] }
 0x272   : > { %4647 = vmatpush1.bf16.msra.mxu0 %v13864_v59  ;;  %4899 = vmatpush1.bf16.msra.mxu1 %v13865_v4  ;;  %v13890_v59 = vld [vmem:[#allocation103_spill] sm:$0xff]  ;;  %v13891_v4 = vld [vmem:[#allocation104_spill] sm:$0xff] }
 0x273   : > { %4648 = vmatprep.subr.bf16.mxu0 %v13866_v39  ;;  %4900 = vmatprep.subr.bf16.mxu1 %v13867_v25  ;;  %v11075_v39 = vcombine.low %v4424_v47, %v4428_v57  ;;  %v4432_v25 = vld [vmem:[%s10918_s29 + $0x48] sm:$0xff]  ;;  %v13897_v47 = vld [vmem:[#allocation110_spill] sm:$0xff] }
 0x274   : > { %v13898_v57 = vld [vmem:[#allocation111_spill] sm:$0xff] }
 0x276   : > { %4649 = vmatpush1.bf16.msra.mxu0 %v13868_v24  ;;  %4901 = vmatpush1.bf16.msra.mxu1 %v13869_v54  ;;  %v4436_v24 = vld [vmem:[%s10918_s29 + $0x68] sm:$0xff]  ;;  %v13892_v54 = vld [vmem:[#allocation105_spill] sm:$0xff] }
 0x277   : > { %4650 = vmatprep.subr.bf16.mxu0 %v13870_v9  ;;  %4902 = vmatprep.subr.bf16.mxu1 %v13871_v10  ;;  %v13893_v9 = vld [vmem:[#allocation106_spill] sm:$0xff]  ;;  %v13894_v10 = vld [vmem:[#allocation107_spill] sm:$0xff] }
 0x27a   : > { %4651 = vmatpush1.bf16.msra.mxu0 %v13872_v14  ;;  %4903 = vmatpush1.bf16.msra.mxu1 %v13873_v18  ;;  %v13895_v14 = vld [vmem:[#allocation108_spill] sm:$0xff]  ;;  %v11083_v18 = vcombine.high %v4432_v25, %v4436_v24 }
 0x27b   : > { %4652 = vmatprep.subr.bf16.mxu0 %v13874_v20  ;;  %4904 = vmatprep.subr.bf16.mxu1 %v13875_v21  ;;  %v13896_v20 = vld [vmem:[#allocation109_spill] sm:$0xff]  ;;  %v13899_v21 = vld [vmem:[#allocation112_spill] sm:$0xff] }
 0x27e   : > { %4653 = vmatpush1.bf16.msra.mxu0 %v13876_v27  ;;  %4905 = vmatpush1.bf16.msra.mxu1 %v13877_v28  ;;  %v11093_v27 = vcombine.low %v4432_v25, %v4436_v24  ;;  %v4440_v28 = vld [vmem:[%s10918_s29 + $0x88] sm:$0xff]  ;;  %v13909_v25 = vld [vmem:[#allocation122_spill] sm:$0xff] }
 0x27f   : > { %4654 = vmatprep.subr.bf16.mxu0 %v13878_v29  ;;  %4906 = vmatprep.subr.bf16.mxu1 %v13879_v34  ;;  %v4444_v29 = vld [vmem:[%s10918_s29 + $0xa8] sm:$0xff]  ;;  %v13900_v34 = vld [vmem:[#allocation113_spill] sm:$0xff] }
 0x280   : > { %v13910_v24 = vld [vmem:[#allocation123_spill] sm:$0xff] }
 0x282   : > { %4655 = vmatpush1.bf16.msra.mxu0 %v13880_v35  ;;  %4907 = vmatpush1.bf16.msra.mxu1 %v13881_v36  ;;  %v13901_v35 = vld [vmem:[#allocation114_spill] sm:$0xff]  ;;  %v13902_v36 = vld [vmem:[#allocation115_spill] sm:$0xff] }
 0x283   : > { %4656 = vmatprep.subr.bf16.mxu0 %v13882_v42  ;;  %4908 = vmatprep.subr.bf16.mxu1 %v13883_v3  ;;  %v13903_v42 = vld [vmem:[#allocation116_spill] sm:$0xff]  ;;  %v11101_v3 = vcombine.high %v4440_v28, %v4444_v29 }
 0x286   : > { %4657 = vmatpush1.bf16.msra.mxu0 %v13884_v5  ;;  %4909 = vmatpush1.bf16.msra.mxu1 %v13885_v43  ;;  %v13904_v5 = vld [vmem:[#allocation117_spill] sm:$0xff]  ;;  %v13905_v43 = vld [vmem:[#allocation118_spill] sm:$0xff] }
 0x287   : > { %4658 = vmatprep.subr.bf16.mxu0 %v13886_v45  ;;  %4910 = vmatprep.subr.bf16.mxu1 %v13887_v50  ;;  %v13906_v45 = vld [vmem:[#allocation119_spill] sm:$0xff]  ;;  %v13907_v50 = vld [vmem:[#allocation120_spill] sm:$0xff] }
 0x28a   : > { %4659 = vmatpush1.bf16.msra.mxu0 %v13888_v53  ;;  %4911 = vmatpush1.bf16.msra.mxu1 %v13889_v7  ;;  %v11111_v53 = vcombine.low %v4440_v28, %v4444_v29  ;;  %v4425_v7 = vld [vmem:[%s10918_s29 + $0x10] sm:$0xff]  ;;  %v13918_v28 = vld [vmem:[#allocation131_spill] sm:$0xff] }
 0x28b   : > { %4660 = vmatprep.subr.bf16.mxu0 %v13890_v59  ;;  %4912 = vmatprep.subr.bf16.mxu1 %v13891_v4  ;;  %v4429_v59 = vld [vmem:[%s10918_s29 + $0x30] sm:$0xff]  ;;  %v13908_v4 = vld [vmem:[#allocation121_spill] sm:$0xff] }
 0x28c   : > { %v13919_v29 = vld [vmem:[#allocation132_spill] sm:$0xff] }
 0x28e   : > { %4661 = vmatpush1.bf16.msra.mxu0 %v13892_v54  ;;  %4913 = vmatpush1.bf16.msra.mxu1 %v13893_v9  ;;  %v13911_v54 = vld [vmem:[#allocation124_spill] sm:$0xff]  ;;  %v11119_v9 = vcombine.high %v4425_v7, %v4429_v59 }
 0x28f   : > { %4693 = vmatprep.subr.bf16.mxu0 %v13894_v10  ;;  %4945 = vmatprep.subr.bf16.mxu1 %v13895_v14  ;;  %v13912_v10 = vld [vmem:[#allocation125_spill] sm:$0xff]  ;;  %v13913_v14 = vld [vmem:[#allocation126_spill] sm:$0xff] }
 0x291   : > { %4663 = vmatmul.mubr.bf16.vlgmr.msra.gmra.mrb[24].mxu0 %v11075_v39  ;;  %4915 = vmatmul.mubr.bf16.vlgmr.msra.gmra.mrb[24].mxu1 %v11075_v39 }
 0x292   : > { %4694 = vmatpush1.bf16.msra.mxu0 %v13896_v20  ;;  %4946 = vmatpush1.bf16.msra.mxu1 %v13897_v47  ;;  %v13914_v20 = vld [vmem:[#allocation127_spill] sm:$0xff]  ;;  %v13915_v47 = vld [vmem:[#allocation128_spill] sm:$0xff] }
 0x293   : > { %4695 = vmatprep.subr.bf16.mxu0 %v13898_v57  ;;  %4947 = vmatprep.subr.bf16.mxu1 %v13899_v21  ;;  %v13916_v57 = vld [vmem:[#allocation129_spill] sm:$0xff]  ;;  %v13917_v21 = vld [vmem:[#allocation130_spill] sm:$0xff] }
 0x294   : > { %4672 = vmatprep.mubr.bf16.mxu0 %v11083_v18  ;;  %4924 = vmatprep.mubr.bf16.mxu1 %v11083_v18 }
 0x296   : > { %4696 = vmatpush1.bf16.msra.mxu0 %v13900_v34  ;;  %4948 = vmatpush1.bf16.msra.mxu1 %v13901_v35  ;;  %v13920_v34 = vld [vmem:[#allocation133_spill] sm:$0xff]  ;;  %v13921_v35 = vld [vmem:[#allocation134_spill] sm:$0xff] }
 0x297   : > { %4697 = vmatprep.subr.bf16.mxu0 %v13902_v36  ;;  %4949 = vmatprep.subr.bf16.mxu1 %v13903_v42  ;;  %v13922_v36 = vld [vmem:[#allocation135_spill] sm:$0xff]  ;;  %v13923_v42 = vld [vmem:[#allocation136_spill] sm:$0xff] }
 0x299   : > { %4673 = vmatmul.mubr.bf16.gmra.mrb[28].mxu0 %v11093_v27  ;;  %4925 = vmatmul.mubr.bf16.gmra.mrb[28].mxu1 %v11093_v27 }
 0x29a   : > { %4698 = vmatpush1.bf16.msra.mxu0 %v13904_v5  ;;  %4950 = vmatpush1.bf16.msra.mxu1 %v13905_v43  ;;  %v13924_v5 = vld [vmem:[#allocation137_spill] sm:$0xff]  ;;  %v13925_v43 = vld [vmem:[#allocation138_spill] sm:$0xff] }
 0x29b   : > { %4699 = vmatprep.subr.bf16.mxu0 %v13906_v45  ;;  %4951 = vmatprep.subr.bf16.mxu1 %v13907_v50  ;;  %v13926_v45 = vld [vmem:[#allocation139_spill] sm:$0xff]  ;;  %v13927_v50 = vld [vmem:[#allocation140_spill] sm:$0xff] }
 0x29c   : > { %4682 = vmatprep.mubr.bf16.mxu0 %v11101_v3  ;;  %4934 = vmatprep.mubr.bf16.mxu1 %v11101_v3 }
 0x29e   : > { %4700 = vmatpush1.bf16.msra.mxu0 %v13908_v4  ;;  %4952 = vmatpush1.bf16.msra.mxu1 %v13909_v25  ;;  %v13928_v4 = vld [vmem:[#allocation141_spill] sm:$0xff]  ;;  %v13929_v25 = vld [vmem:[#allocation142_spill] sm:$0xff] }
 0x29f   : > { %4701 = vmatprep.subr.bf16.mxu0 %v13910_v24  ;;  %4953 = vmatprep.subr.bf16.mxu1 %v13911_v54  ;;  %v13930_v24 = vld [vmem:[#allocation143_spill] sm:$0xff]  ;;  %v13931_v54 = vld [vmem:[#allocation144_spill] sm:$0xff] }
 0x2a1   : > { %4683 = vmatmul.mubr.bf16.gmra.mrb[32].mxu0 %v11111_v53  ;;  %4935 = vmatmul.mubr.bf16.gmra.mrb[32].mxu1 %v11111_v53 }
 0x2a2   : > { %4702 = vmatpush1.bf16.msra.mxu0 %v13912_v10  ;;  %4954 = vmatpush1.bf16.msra.mxu1 %v13913_v14  ;;  %v13932_v10 = vld [vmem:[#allocation145_spill] sm:$0xff]  ;;  %v13933_v14 = vld [vmem:[#allocation146_spill] sm:$0xff] }
 0x2a3   : > { %4703 = vmatprep.subr.bf16.mxu0 %v13914_v20  ;;  %4955 = vmatprep.subr.bf16.mxu1 %v13915_v47  ;;  %v13934_v20 = vld [vmem:[#allocation147_spill] sm:$0xff]  ;;  %v13935_v47 = vld [vmem:[#allocation148_spill] sm:$0xff] }
 0x2a4   : > { %4725 = vmatprep.mubr.bf16.mxu0 %v11119_v9  ;;  %4977 = vmatprep.mubr.bf16.mxu1 %v11119_v9 }
 0x2a6   : > { %4704 = vmatpush1.bf16.msra.mxu0 %v13916_v57  ;;  %4956 = vmatpush1.bf16.msra.mxu1 %v13917_v21  ;;  %v13936_v57 = vld [vmem:[#allocation149_spill] sm:$0xff]  ;;  %v13937_v21 = vld [vmem:[#allocation150_spill] sm:$0xff] }
 0x2a7   : > { %4705 = vmatprep.subr.bf16.mxu0 %v13918_v28  ;;  %4957 = vmatprep.subr.bf16.mxu1 %v13919_v29  ;;  %v13938_v28 = vld [vmem:[#allocation151_spill] sm:$0xff]  ;;  %v13939_v29 = vld [vmem:[#allocation152_spill] sm:$0xff] }
 0x2aa   : > { %4706 = vmatpush1.bf16.msra.mxu0 %v13920_v34  ;;  %4958 = vmatpush1.bf16.msra.mxu1 %v13921_v35  ;;  %v13940_v34 = vld [vmem:[#allocation153_spill] sm:$0xff]  ;;  %v13941_v35 = vld [vmem:[#allocation154_spill] sm:$0xff] }
 0x2ab   : > { %4707 = vmatprep.subr.bf16.mxu0 %v13922_v36  ;;  %4959 = vmatprep.subr.bf16.mxu1 %v13923_v42  ;;  %v13942_v36 = vld [vmem:[#allocation155_spill] sm:$0xff]  ;;  %v13943_v42 = vld [vmem:[#allocation156_spill] sm:$0xff] }
 0x2ae   : > { %4708 = vmatpush1.bf16.msra.mxu0 %v13924_v5  ;;  %4960 = vmatpush1.bf16.msra.mxu1 %v13925_v43  ;;  %v13944_v5 = vld [vmem:[#allocation157_spill] sm:$0xff]  ;;  %v13945_v43 = vld [vmem:[#allocation158_spill] sm:$0xff] }
 0x2af   : > { %4709 = vmatprep.subr.bf16.mxu0 %v13926_v45  ;;  %4961 = vmatprep.subr.bf16.mxu1 %v13927_v50  ;;  %v13946_v45 = vld [vmem:[#allocation159_spill] sm:$0xff]  ;;  %v13947_v50 = vld [vmem:[#allocation160_spill] sm:$0xff] }
 0x2b2   : > { %4710 = vmatpush1.bf16.msra.mxu0 %v13928_v4  ;;  %4962 = vmatpush1.bf16.msra.mxu1 %v13929_v25  ;;  %v13948_v4 = vld [vmem:[#allocation161_spill] sm:$0xff]  ;;  %v13949_v25 = vld [vmem:[#allocation162_spill] sm:$0xff] }
 0x2b3   : > { %4711 = vmatprep.subr.bf16.mxu0 %v13930_v24  ;;  %4963 = vmatprep.subr.bf16.mxu1 %v13931_v54  ;;  %v13950_v24 = vld [vmem:[#allocation163_spill] sm:$0xff]  ;;  %v13951_v54 = vld [vmem:[#allocation164_spill] sm:$0xff] }
 0x2b6   : > { %4712 = vmatpush1.bf16.msra.mxu0 %v13932_v10  ;;  %4964 = vmatpush1.bf16.msra.mxu1 %v13933_v14  ;;  %v13952_v10 = vld [vmem:[#allocation165_spill] sm:$0xff]  ;;  %v13953_v14 = vld [vmem:[#allocation166_spill] sm:$0xff] }
 0x2b7   : > { %4713 = vmatprep.subr.bf16.mxu0 %v13934_v20  ;;  %4965 = vmatprep.subr.bf16.mxu1 %v13935_v47  ;;  %v13954_v20 = vld [vmem:[#allocation167_spill] sm:$0xff]  ;;  %v13955_v47 = vld [vmem:[#allocation168_spill] sm:$0xff] }
 0x2ba   : > { %4714 = vmatpush1.bf16.msra.mxu0 %v13936_v57  ;;  %4966 = vmatpush1.bf16.msra.mxu1 %v13937_v21  ;;  %v11169_v57 = vcombine.low %v4425_v7, %v4429_v59  ;;  %v4433_v21 = vld [vmem:[%s10918_s29 + $0x50] sm:$0xff]  ;;  %v13961_v7 = vld [vmem:[#allocation174_spill] sm:$0xff]  ;;  %v13962_v59 = vld [vmem:[#allocation175_spill] sm:$0xff] }
 0x2bb   : > { %4715 = vmatprep.subr.bf16.mxu0 %v13938_v28  ;;  %4967 = vmatprep.subr.bf16.mxu1 %v13939_v29  ;;  %v4437_v28 = vld [vmem:[%s10918_s29 + $0x70] sm:$0xff]  ;;  %v13956_v29 = vld [vmem:[#allocation169_spill] sm:$0xff] }
 0x2be   : > { %4716 = vmatpush1.bf16.msra.mxu0 %v13940_v34  ;;  %4968 = vmatpush1.bf16.msra.mxu1 %v13941_v35  ;;  %v13957_v34 = vld [vmem:[#allocation170_spill] sm:$0xff]  ;;  %v13958_v35 = vld [vmem:[#allocation171_spill] sm:$0xff] }
 0x2bf   : > { %4717 = vmatprep.subr.bf16.mxu0 %v13942_v36  ;;  %4969 = vmatprep.subr.bf16.mxu1 %v13943_v42  ;;  %v13959_v36 = vld [vmem:[#allocation172_spill] sm:$0xff]  ;;  %v11177_v42 = vcombine.high %v4433_v21, %v4437_v28 }
 0x2c2   : > { %4718 = vmatpush1.bf16.msra.mxu0 %v13944_v5  ;;  %4970 = vmatpush1.bf16.msra.mxu1 %v13945_v43  ;;  %v13960_v5 = vld [vmem:[#allocation173_spill] sm:$0xff]  ;;  %v13963_v43 = vld [vmem:[#allocation176_spill] sm:$0xff] }
 0x2c3   : > { %4719 = vmatprep.subr.bf16.mxu0 %v13946_v45  ;;  %4971 = vmatprep.subr.bf16.mxu1 %v13947_v50  ;;  %v11187_v45 = vcombine.low %v4433_v21, %v4437_v28  ;;  %v4441_v50 = vld [vmem:[%s10918_s29 + $0x90] sm:$0xff]  ;;  %v13970_v21 = vld [vmem:[#allocation183_spill] sm:$0xff] }
 0x2c4   : > { %v13971_v28 = vld [vmem:[#allocation184_spill] sm:$0xff] }
 0x2c6   : > { %4720 = vmatpush1.bf16.msra.mxu0 %v13948_v4  ;;  %4972 = vmatpush1.bf16.msra.mxu1 %v13949_v25  ;;  %v4445_v4 = vld [vmem:[%s10918_s29 + $0xb0] sm:$0xff]  ;;  %v13964_v25 = vld [vmem:[#allocation177_spill] sm:$0xff] }
 0x2c7   : > { %4721 = vmatprep.subr.bf16.mxu0 %v13950_v24  ;;  %4973 = vmatprep.subr.bf16.mxu1 %v13951_v54  ;;  %v13965_v24 = vld [vmem:[#allocation178_spill] sm:$0xff]  ;;  %v13966_v54 = vld [vmem:[#allocation179_spill] sm:$0xff] }
 0x2ca   : > { %4722 = vmatpush1.bf16.msra.mxu0 %v13952_v10  ;;  %4974 = vmatpush1.bf16.msra.mxu1 %v13953_v14  ;;  %v13967_v10 = vld [vmem:[#allocation180_spill] sm:$0xff]  ;;  %v11195_v14 = vcombine.high %v4441_v50, %v4445_v4 }
 0x2cb   : > { %4723 = vmatprep.subr.bf16.mxu0 %v13954_v20  ;;  %4975 = vmatprep.subr.bf16.mxu1 %v13955_v47  ;;  %v13968_v20 = vld [vmem:[#allocation181_spill] sm:$0xff]  ;;  %v13969_v47 = vld [vmem:[#allocation182_spill] sm:$0xff] }
 0x2ce   : > { %4724 = vmatpush1.bf16.msra.mxu0 %v13956_v29  ;;  %4976 = vmatpush1.bf16.msra.mxu1 %v13957_v34  ;;  %v11205_v29 = vcombine.low %v4441_v50, %v4445_v4  ;;  %v11208_v34 = vld [vmem:[%s10918_s29 + $0x18] sm:$0xff]  ;;  %v13977_v4 = vld [vmem:[#allocation190_spill] sm:$0xff] }
 0x2cf   : > { %4756 = vmatprep.subr.bf16.mxu0 %v13958_v35  ;;  %5008 = vmatprep.subr.bf16.mxu1 %v13959_v36  ;;  %v11211_v35 = vld [vmem:[%s10918_s29 + $0x38] sm:$0xff] }
 0x2d0   : > { %v13972_v36 = vld [vmem:[#allocation185_spill] sm:$0xff] }
 0x2d1   : > { %4726 = vmatmul.mubr.bf16.vlgmr.msra.gmra.mrb[24].mxu0 %v11169_v57  ;;  %4978 = vmatmul.mubr.bf16.vlgmr.msra.gmra.mrb[24].mxu1 %v11169_v57  ;;  %v13976_v50 = vld [vmem:[#allocation189_spill] sm:$0xff] }
 0x2d2   : > { %4757 = vmatpush1.bf16.msra.mxu0 %v13960_v5  ;;  %5009 = vmatpush1.bf16.msra.mxu1 %v13961_v7  ;;  %v13973_v5 = vld [vmem:[#allocation186_spill] sm:$0xff]  ;;  %v13974_v7 = vld [vmem:[#allocation187_spill] sm:$0xff] }
 0x2d3   : > { %4758 = vmatprep.subr.bf16.mxu0 %v13962_v59  ;;  %5010 = vmatprep.subr.bf16.mxu1 %v13963_v43  ;;  %v13975_v59 = vld [vmem:[#allocation188_spill] sm:$0xff]  ;;  %v11219_v43 = vcombine.high %v11208_v34, %v11211_v35 }
 0x2d4   : > { %4735 = vmatprep.mubr.bf16.mxu0 %v11177_v42  ;;  %4987 = vmatprep.mubr.bf16.mxu1 %v11177_v42 }
 0x2d6   : > { %4759 = vmatpush1.bf16.msra.mxu0 %v13964_v25  ;;  %5011 = vmatpush1.bf16.msra.mxu1 %v13965_v24  ;;  %v13978_v25 = vld [vmem:[#allocation191_spill] sm:$0xff]  ;;  %v5575_v24 = vmul.f32 %v10617_v49, %v10617_v49 }
 0x2d7   : > { %4760 = vmatprep.subr.bf16.mxu0 %v13966_v54  ;;  %5012 = vmatprep.subr.bf16.mxu1 %v13967_v10  ;;  %v5577_v54 = vmul.f32 %v10629_v6, %v10629_v6  ;;  %v5581_v6 = vmul.f32 %v10647_v32, %v10647_v32 }
 0x2d9   : > { %4736 = vmatmul.mubr.bf16.gmra.mrb[28].mxu0 %v11187_v45  ;;  %4988 = vmatmul.mubr.bf16.gmra.mrb[28].mxu1 %v11187_v45 }
 0x2da   : > { %4761 = vmatpush1.bf16.msra.mxu0 %v13968_v20  ;;  %5013 = vmatpush1.bf16.msra.mxu1 %v13969_v47  ;;  %v13979_v20 = vld [vmem:[#allocation192_spill] sm:$0xff]  ;;  %v5576_v47 = vmul.f32 %v10631_v61, %v10631_v61 }
 0x2db   : > { %4762 = vmatprep.subr.bf16.mxu0 %v13970_v21  ;;  %5014 = vmatprep.subr.bf16.mxu1 %v13971_v28  ;;  %v5578_v21 = vmul.f32 %v10640_v33, %v10640_v33  ;;  %v5579_v28 = vmul.f32 %v10642_v46, %v10642_v46 }
 0x2dc   : > { %4745 = vmatprep.mubr.bf16.mxu0 %v11195_v14  ;;  %4997 = vmatprep.mubr.bf16.mxu1 %v11195_v14 }
 0x2de   : > { %4763 = vmatpush1.bf16.msra.mxu0 %v13972_v36  ;;  %5015 = vmatpush1.bf16.msra.mxu1 %v13973_v5 }
 0x2df   : > { %4764 = vmatprep.subr.bf16.mxu0 %v13974_v7  ;;  %5016 = vmatprep.subr.bf16.mxu1 %v13975_v59  ;;  %v5580_v7 = vmul.f32 %v10650_v11, %v10650_v11 }
 0x2e1   : > { %4746 = vmatmul.mubr.bf16.gmra.mrb[32].mxu0 %v11205_v29  ;;  %4998 = vmatmul.mubr.bf16.gmra.mrb[32].mxu1 %v11205_v29 }
 0x2e2   : > { %4765 = vmatpush1.bf16.msra.mxu0 %v13976_v50  ;;  %5017 = vmatpush1.bf16.msra.mxu1 %v13977_v4 }
 0x2e3   : > { %4766 = vmatprep.subr.bf16.mxu0 %v13978_v25  ;;  %5018 = vmatprep.subr.bf16.mxu1 %v13979_v20  ;;  %v13980_v25 = vld [vmem:[#allocation193_spill] sm:$0xff] }
 0x2e4   : > { %v4142_v10 = vpop.f32.mrb[12].mxu0  ;;  %4788 = vmatprep.mubr.bf16.mxu0 %v11219_v43  ;;  %v4394_v5 = vpop.f32.mrb[12].mxu1  ;;  %5040 = vmatprep.mubr.bf16.mxu1 %v11219_v43 }
 0x2e5   : > { %v5599_v36 = vmul.f32 %v4142_v10, %v4142_v10  ;;  %v4144_v49 = vpop.f32.mrb[13].mxu0  ;;  %v5601_v59 = vmul.f32 %v4394_v5, %v4394_v5  ;;  %v4396_v61 = vpop.f32.mrb[13].mxu1 }
 0x2e6   : > { %v5600_v50 = vmul.f32 %v4144_v49, %v4144_v49  ;;  %v4146_v4 = vpop.f32.mrb[14].mxu0  ;;  %4767 = vmatpush1.bf16.msra.mxu0 %v13980_v25  ;;  %v5602_v46 = vmul.f32 %v4396_v61, %v4396_v61  ;;  %v4398_v20 = vpop.f32.mrb[14].mxu1  ;;  %5019 = vmatpush1.bf16.msra.mxu1 %v13981_v51  ;;  %v13987_v51 = vld [vmem:[#allocation197_spill] sm:$0xff] }
 0x2e7   : > { %v11244_v33 = vadd.f32 %v5599_v36, %v5575_v24  ;;  %v5603_v10 = vmul.f32 %v4146_v4, %v4146_v4  ;;  %v4148_v15 = vpop.f32.mrb[15].mxu0  ;;  %4768 = vmatprep.subr.bf16.mxu0 %v13982_v56  ;;  %v11248_v32 = vadd.f32 %v5601_v59, %v5577_v54  ;;  %v5605_v11 = vmul.f32 %v4398_v20, %v4398_v20  ;;  %v4400_v49 = vpop.f32.mrb[15].mxu1  ;;  %v13988_v54 = vld [vmem:[#allocation198_spill] sm:$0xff] }
 0x2e8   : > { %v11250_v52 = vadd.f32 %v5600_v50, %v5576_v47  ;;  %v5604_v5 = vmul.f32 %v4148_v15, %v4148_v15  ;;  %5020 = vmatprep.subr.bf16.mxu1 %v13983_v60  ;;  %v11253_v25 = vadd.f32 %v5602_v46, %v5578_v21  ;;  %v5606_v56 = vmul.f32 %v4400_v49, %v4400_v49  ;;  %v13989_v47 = vld [vmem:[#allocation199_spill] sm:$0xff]  ;;  %v13990_v15 = vld [vmem:[#allocation200_spill] sm:$0xff]  ;;  %v13991_v50 = vld [vmem:[#allocation201_spill] sm:$0xff] }
 0x2e9   : > { %v11255_v24 = vadd.f32 %v5603_v10, %v5579_v28  ;;  %v11257_v36 = vadd.f32 %v5605_v11, %v5581_v6  ;;  %v5582_v60 = vmul.f32 %v10657_v17, %v10657_v17  ;;  %v13993_v46 = vld [vmem:[#allocation202_spill] sm:$0xff]  ;;  %v13994_v10 = vld [vmem:[#allocation203_spill] sm:$0xff]  ;;  %v13995_v49 = vld [vmem:[#allocation204_spill] sm:$0xff]  ;;  %v5583_v17 = vmul.f32 %v10683_v41, %v10683_v41 }
 0x2ea   : > { %v11259_v61 = vadd.f32 %v5604_v5, %v5580_v7  ;;  %4769 = vmatpush1.bf16.msra.mxu0 %v13987_v51  ;;  %5021 = vmatpush1.bf16.msra.mxu1 %v13988_v54  ;;  %v13996_v54 = vld [vmem:[#allocation205_spill] sm:$0xff] }
 0x2eb   : > { %13984 = vst [vmem:[#allocation2_spill] sm:$0xff] %v11255_v24  ;;  %13985 = vst [vmem:[#allocation3_spill] sm:$0xff] %v11257_v36  ;;  %4770 = vmatprep.subr.bf16.mxu0 %v13989_v47  ;;  %5022 = vmatprep.subr.bf16.mxu1 %v13990_v15  ;;  %v11268_v6 = vadd.f32 %v5606_v56, %v5582_v60  ;;  %v13997_v47 = vld [vmem:[#allocation206_spill] sm:$0xff]  ;;  %v13998_v56 = vld [vmem:[#allocation207_spill] sm:$0xff] }
 0x2ec   : > { %13986 = vst [vmem:[#allocation4_spill] sm:$0xff] %v11259_v61  ;;  %v4152_v59 = vpop.f32.mrb[16].mxu0  ;;  %v4404_v21 = vpop.f32.mrb[16].mxu1  ;;  %v14001_v41 = vld [vmem:[#allocation209_spill] sm:$0xff]  ;;  %v14007_v24 = vld [vmem:[#allocation214_spill] sm:$0xff] }
 0x2ed   : > { %v4154_v28 = vpop.f32.mrb[17].mxu0  ;;  %13992 = vst [vmem:[#allocation5_spill] sm:$0xff] %v11268_v6  ;;  %v4406_v7 = vpop.f32.mrb[17].mxu1  ;;  %v5607_v20 = vmul.f32 %v4152_v59, %v4152_v59  ;;  %v5609_v60 = vmul.f32 %v4404_v21, %v4404_v21  ;;  %v14006_v36 = vld [vmem:[#allocation213_spill] sm:$0xff] }
 0x2ee   : > { %4771 = vmatpush1.bf16.msra.mxu0 %v13991_v50  ;;  %v4156_v4 = vpop.f32.mrb[18].mxu0  ;;  %5023 = vmatpush1.bf16.msra.mxu1 %v13993_v46  ;;  %v4408_v11 = vpop.f32.mrb[18].mxu1  ;;  %v14000_v46 = vld [vmem:[#allocation208_spill] sm:$0xff] }
 0x2ef   : > { %4772 = vmatprep.subr.bf16.mxu0 %v13994_v10  ;;  %v4158_v5 = vpop.f32.mrb[19].mxu0  ;;  %5024 = vmatprep.subr.bf16.mxu1 %v13995_v49  ;;  %v4410_v51 = vpop.f32.mrb[19].mxu1  ;;  %v11278_v15 = vadd.f32 %v5607_v20, %v5583_v17  ;;  %v5585_v49 = vmul.f32 %v10694_v1, %v10694_v1  ;;  %v14003_v20 = vld [vmem:[#allocation211_spill] sm:$0xff]  ;;  %v5608_v1 = vmul.f32 %v4154_v28, %v4154_v28 }
 0x2f0   : > { %v5611_v28 = vmul.f32 %v4156_v4, %v4156_v4  ;;  %v14017_v4 = vld [vmem:[#allocation224_spill] sm:$0xff] }
 0x2f1   : > { %13999 = vst [vmem:[#allocation6_spill] sm:$0xff] %v11278_v15  ;;  %v11290_v21 = vadd.f32 %v5609_v60, %v5585_v49  ;;  %v5610_v15 = vmul.f32 %v4406_v7, %v4406_v7  ;;  %v14008_v60 = vld [vmem:[#allocation215_spill] sm:$0xff]  ;;  %v14009_v49 = vld [vmem:[#allocation216_spill] sm:$0xff]  ;;  %v14010_v7 = vld [vmem:[#allocation217_spill] sm:$0xff] }
 0x2f2   : > { %4773 = vmatpush1.bf16.msra.mxu0 %v13996_v54  ;;  %5025 = vmatpush1.bf16.msra.mxu1 %v13997_v47  ;;  %v14002_v47 = vld [vmem:[#allocation210_spill] sm:$0xff] }
 0x2f3   : > { %4774 = vmatprep.subr.bf16.mxu0 %v13998_v56  ;;  %5026 = vmatprep.subr.bf16.mxu1 %v14000_v46  ;;  %14004 = vst [vmem:[#allocation7_spill] sm:$0xff] %v11290_v21  ;;  %v14005_v46 = vld [vmem:[#allocation212_spill] sm:$0xff] }
 0x2f4   : > { %v4162_v50 = vpop.f32.mrb[20].mxu0  ;;  %v4414_v59 = vpop.f32.mrb[20].mxu1 }
 0x2f5   : > { %v4164_v10 = vpop.f32.mrb[21].mxu0  ;;  %v4416_v6 = vpop.f32.mrb[21].mxu1 }
 0x2f6   : > { %v11283_v61 = vpop.f32.mrb[22].mxu0  ;;  %4775 = vmatpush1.bf16.msra.mxu0 %v14001_v41  ;;  %v11286_v54 = vpop.f32.mrb[22].mxu1  ;;  %5027 = vmatpush1.bf16.msra.mxu1 %v14002_v47  ;;  %v5584_v41 = vmul.f32 %v10696_v2, %v10696_v2  ;;  %v5586_v47 = vmul.f32 %v10704_v31, %v10704_v31  ;;  %v14011_v2 = vld [vmem:[#allocation218_spill] sm:$0xff]  ;;  %v14013_v31 = vld [vmem:[#allocation220_spill] sm:$0xff] }
 0x2f7   : > { %4776 = vmatprep.subr.bf16.mxu0 %v14003_v20  ;;  %v11292_v17 = vpop.f32.mrb[23].mxu0  ;;  %v11294_v56 = vpop.f32.mrb[23].mxu1  ;;  %5028 = vmatprep.subr.bf16.mxu1 %v14005_v46  ;;  %v14012_v46 = vld [vmem:[#allocation219_spill] sm:$0xff] }
 0x2f8   : > { %v11305_v20 = vadd.f32 %v5608_v1, %v5584_v41  ;;  %v11307_v21 = vadd.f32 %v5610_v15, %v5586_v47  ;;  %v14015_v1 = vld [vmem:[#allocation222_spill] sm:$0xff]  ;;  %v14016_v15 = vld [vmem:[#allocation223_spill] sm:$0xff]  ;;  %v14018_v41 = vld [vmem:[#allocation225_spill] sm:$0xff]  ;;  %v5613_v47 = vmul.f32 %v4408_v11, %v4408_v11 }
 0x2fa   : > { %4777 = vmatpush1.bf16.msra.mxu0 %v14006_v36  ;;  %5029 = vmatpush1.bf16.msra.mxu1 %v14007_v24  ;;  %v5587_v36 = vmul.f32 %v10706_v63, %v10706_v63  ;;  %v14019_v63 = vld [vmem:[#allocation226_spill] sm:$0xff] }
 0x2fb   : > { %4778 = vmatprep.subr.bf16.mxu0 %v14008_v60  ;;  %5030 = vmatprep.subr.bf16.mxu1 %v14009_v49  ;;  %v14014_v60 = vld [vmem:[#allocation221_spill] sm:$0xff]  ;;  %v14020_v49 = vld [vmem:[#allocation227_spill] sm:$0xff] }
 0x2fc   : > { %v11315_v24 = vadd.f32 %v5611_v28, %v5587_v36  ;;  %v5612_v28 = vmul.f32 %v4158_v5, %v4158_v5  ;;  %v5614_v36 = vmul.f32 %v4410_v51, %v4410_v51 }
 0x2fe   : > { %4779 = vmatpush1.bf16.msra.mxu0 %v14010_v7  ;;  %5031 = vmatpush1.bf16.msra.mxu1 %v14011_v2  ;;  %v5589_v7 = vmul.f32 %v10711_v0, %v10711_v0  ;;  %v5615_v2 = vmul.f32 %v4162_v50, %v4162_v50  ;;  %v14026_v50 = vld [vmem:[#allocation231_spill] sm:$0xff] }
 0x2ff   : > { %4780 = vmatprep.subr.bf16.mxu0 %v14012_v46  ;;  %5032 = vmatprep.subr.bf16.mxu1 %v14013_v31  ;;  %v14021_v46 = vld [vmem:[#allocation228_spill] sm:$0xff]  ;;  %v5588_v31 = vmul.f32 %v10714_v55, %v10714_v55  ;;  %v14025_v55 = vld [vmem:[#allocation230_spill] sm:$0xff] }
 0x301   : > { %v11338_v5 = vadd.f32 %v5612_v28, %v5588_v31  ;;  %v11351_v28 = vcombine.low %v11208_v34, %v11211_v35  ;;  %v14033_v34 = vld [vmem:[#allocation472_spill] sm:$0xff] }
 0x302   : > { %4781 = vmatpush1.bf16.msra.mxu0 %v14014_v60  ;;  %5033 = vmatpush1.bf16.msra.mxu1 %v14015_v1  ;;  %v5590_v60 = vmul.f32 %v10721_v13, %v10721_v13  ;;  %v14022_v1 = vld [vmem:[#allocation468_spill] sm:$0xff]  ;;  %v14027_v13 = vld [vmem:[#allocation471_spill] sm:$0xff]  ;;  %v5595_v35 = vmul.f32 %v14033_v34, %v14033_v34  ;;  %v14039_v34 = vld [vmem:[#allocation241_spill] sm:$0xff] }
 0x303   : > { %4782 = vmatprep.subr.bf16.mxu0 %v14016_v15  ;;  %5034 = vmatprep.subr.bf16.mxu1 %v14017_v4  ;;  %v5591_v11 = vmul.f32 %v14022_v1, %v14022_v1  ;;  %v11333_v15 = vadd.f32 %v5613_v47, %v5589_v7  ;;  %v14023_v4 = vld [vmem:[#allocation229_spill] sm:$0xff]  ;;  %v5616_v7 = vmul.f32 %v4164_v10, %v4164_v10  ;;  %v14031_v10 = vld [vmem:[#allocation235_spill] sm:$0xff] }
 0x304   : > { %v11340_v51 = vadd.f32 %v5614_v36, %v5590_v60  ;;  %v5618_v1 = vmul.f32 %v4416_v6, %v4416_v6  ;;  %v14029_v60 = vld [vmem:[#allocation233_spill] sm:$0xff]  ;;  %v14032_v6 = vld [vmem:[#allocation236_spill] sm:$0xff] }
 0x305   : > { %v11346_v47 = vadd.f32 %v5615_v2, %v5591_v11  ;;  %v5594_v2 = vmul.f32 %v10768_v40, %v10768_v40  ;;  %v5597_v40 = vmul.f32 %v10775_v58, %v10775_v58  ;;  %v5622_v58 = vmul.f32 %v11294_v56, %v11294_v56 }
 0x306   : > { %4783 = vmatpush1.bf16.msra.mxu0 %v14018_v41  ;;  %5035 = vmatpush1.bf16.msra.mxu1 %v14019_v63  ;;  %v14024_v41 = vld [vmem:[#allocation470_spill] sm:$0xff]  ;;  %v5592_v63 = vmul.f32 %v14027_v13, %v14027_v13  ;;  %v5620_v13 = vmul.f32 %v11292_v17, %v11292_v17 }
 0x307   : > { %4784 = vmatprep.subr.bf16.mxu0 %v14020_v49  ;;  %5036 = vmatprep.subr.bf16.mxu1 %v14021_v46  ;;  %v5593_v0 = vmul.f32 %v14024_v41, %v14024_v41  ;;  %v5617_v49 = vmul.f32 %v4414_v59, %v4414_v59  ;;  %v14028_v46 = vld [vmem:[#allocation232_spill] sm:$0xff]  ;;  %v4438_v41 = vld [vmem:[%s10918_s29 + $0x78] sm:$0xff]  ;;  %v14030_v59 = vld [vmem:[#allocation234_spill] sm:$0xff]  ;;  %v11367_v11 = vadd.f32 %v5618_v1, %v5594_v2 }
 0x308   : > { %v11355_v31 = vadd.f32 %v5616_v7, %v5592_v63  ;;  %v5596_v63 = vmul.f32 %v10778_v62, %v10778_v62  ;;  %v4442_v1 = vld [vmem:[%s10918_s29 + $0x98] sm:$0xff]  ;;  %v14037_v2 = vld [vmem:[#allocation239_spill] sm:$0xff] }
 0x309   : > { %v11353_v36 = vadd.f32 %v5617_v49, %v5593_v0  ;;  %v14034_v49 = vld [vmem:[#allocation476_spill] sm:$0xff] }
 0x30a   : > { %4785 = vmatpush1.bf16.msra.mxu0 %v14023_v4  ;;  %5037 = vmatpush1.bf16.msra.mxu1 %v14025_v55  ;;  %v4434_v4 = vld [vmem:[%s10918_s29 + $0x58] sm:$0xff]  ;;  %v5619_v55 = vmul.f32 %v11283_v61, %v11283_v61  ;;  %v5598_v7 = vmul.f32 %v14034_v49, %v14034_v49  ;;  %v14036_v61 = vld [vmem:[#allocation238_spill] sm:$0xff]  ;;  %v11397_v62 = vadd.f32 %v5620_v13, %v5596_v63  ;;  %v14046_v13 = vld [vmem:[#allocation248_spill] sm:$0xff] }
 0x30b   : > { %4786 = vmatprep.subr.bf16.mxu0 %v14026_v50  ;;  %5038 = vmatprep.subr.bf16.mxu1 %v14028_v46  ;;  %v11370_v0 = vcombine.high %v4434_v4, %v4438_v41  ;;  %v5621_v50 = vmul.f32 %v11286_v54, %v11286_v54  ;;  %v14035_v46 = vld [vmem:[#allocation237_spill] sm:$0xff]  ;;  %v11403_v56 = vcombine.low %v4434_v4, %v4438_v41  ;;  %v14044_v4 = vld [vmem:[#allocation246_spill] sm:$0xff]  ;;  %v14045_v41 = vld [vmem:[#allocation247_spill] sm:$0xff] }
 0x30c   : > { %v4446_v54 = vld [vmem:[%s10918_s29 + $0xb8] sm:$0xff] }
 0x30d   : > { %v11393_v17 = vadd.f32 %v5621_v50, %v5597_v40  ;;  %v14041_v40 = vld [vmem:[#allocation243_spill] sm:$0xff]  ;;  %v14043_v50 = vld [vmem:[#allocation245_spill] sm:$0xff]  ;;  %v11419_v63 = vcombine.low %v4442_v1, %v4446_v54 }
 0x30e   : > { %4787 = vmatpush1.bf16.msra.mxu0 %v14029_v60  ;;  %5039 = vmatpush1.bf16.msra.mxu1 %v14030_v59  ;;  %v11391_v60 = vadd.f32 %v5619_v55, %v5595_v35  ;;  %v14038_v59 = vld [vmem:[#allocation240_spill] sm:$0xff]  ;;  %v14040_v35 = vld [vmem:[#allocation242_spill] sm:$0xff]  ;;  %v14047_v49 = vld [vmem:[#allocation249_spill] sm:$0xff] }
 0x30f   : > { %5071 = vmatprep.subr.bf16.mxu0 %v14031_v10  ;;  %5323 = vmatprep.subr.bf16.mxu1 %v14032_v6  ;;  %v11399_v10 = vadd.f32 %v5622_v58, %v5598_v7  ;;  %v11405_v6 = vcombine.high %v4442_v1, %v4446_v54  ;;  %v14042_v55 = vld [vmem:[#allocation244_spill] sm:$0xff]  ;;  %v14048_v7 = vld [vmem:[#allocation250_spill] sm:$0xff]  ;;  %v14049_v58 = vld [vmem:[#allocation251_spill] sm:$0xff] }
 0x310   : > { %v14053_v1 = vld [vmem:[#allocation255_spill] sm:$0xff]  ;;  %v14054_v54 = vld [vmem:[#allocation256_spill] sm:$0xff] }
 0x311   : > { %4789 = vmatmul.mubr.bf16.vlgmr.msra.gmra.mrb[24].mxu0 %v11351_v28  ;;  %5041 = vmatmul.mubr.bf16.vlgmr.msra.gmra.mrb[24].mxu1 %v11351_v28 }
 0x312   : > { %5072 = vmatpush1.bf16.msra.mxu0 %v14035_v46  ;;  %5324 = vmatpush1.bf16.msra.mxu1 %v14036_v61  ;;  %v14050_v46 = vld [vmem:[#allocation252_spill] sm:$0xff]  ;;  %v14051_v61 = vld [vmem:[#allocation253_spill] sm:$0xff] }
 0x313   : > { %5073 = vmatprep.subr.bf16.mxu0 %v14037_v2  ;;  %5325 = vmatprep.subr.bf16.mxu1 %v14038_v59  ;;  %v14052_v2 = vld [vmem:[#allocation254_spill] sm:$0xff]  ;;  %v14055_v59 = vld [vmem:[#allocation257_spill] sm:$0xff] }
 0x314   : > { %4798 = vmatprep.mubr.bf16.mxu0 %v11370_v0  ;;  %5050 = vmatprep.mubr.bf16.mxu1 %v11370_v0 }
 0x316   : > { %5074 = vmatpush1.bf16.msra.mxu0 %v14039_v34  ;;  %5326 = vmatpush1.bf16.msra.mxu1 %v14040_v35  ;;  %v14056_v34 = vld [vmem:[#allocation258_spill] sm:$0xff]  ;;  %v14057_v35 = vld [vmem:[#allocation259_spill] sm:$0xff] }
 0x317   : > { %5075 = vmatprep.subr.bf16.mxu0 %v14041_v40  ;;  %5327 = vmatprep.subr.bf16.mxu1 %v14042_v55  ;;  %v14058_v40 = vld [vmem:[#allocation260_spill] sm:$0xff]  ;;  %v14059_v55 = vld [vmem:[#allocation261_spill] sm:$0xff] }
 0x319   : > { %4799 = vmatmul.mubr.bf16.gmra.mrb[28].mxu0 %v11403_v56  ;;  %5051 = vmatmul.mubr.bf16.gmra.mrb[28].mxu1 %v11403_v56 }
 0x31a   : > { %4808 = vmatprep.mubr.bf16.mxu0 %v11405_v6  ;;  %5076 = vmatpush1.bf16.msra.mxu0 %v14043_v50  ;;  %v14060_v50 = vld [vmem:[#allocation262_spill] sm:$0xff] }
 0x31b   : > { %5328 = vmatpush1.bf16.msra.mxu1 %v14044_v4  ;;  %5077 = vmatprep.subr.bf16.mxu0 %v14045_v41  ;;  %v14061_v4 = vld [vmem:[#allocation263_spill] sm:$0xff]  ;;  %v14062_v41 = vld [vmem:[#allocation264_spill] sm:$0xff] }
 0x31c   : > { %5329 = vmatprep.subr.bf16.mxu1 %v14046_v13  ;;  %5060 = vmatprep.mubr.bf16.mxu1 %v11405_v6  ;;  %v14063_v13 = vld [vmem:[#allocation265_spill] sm:$0xff] }
 0x31e   : > { %5078 = vmatpush1.bf16.msra.mxu0 %v14047_v49  ;;  %v14064_v49 = vld [vmem:[#allocation266_spill] sm:$0xff] }
 0x31f   : > { %5330 = vmatpush1.bf16.msra.mxu1 %v14048_v7  ;;  %5079 = vmatprep.subr.bf16.mxu0 %v14049_v58  ;;  %v14066_v7 = vld [vmem:[#allocation268_spill] sm:$0xff]  ;;  %v14067_v58 = vld [vmem:[#allocation269_spill] sm:$0xff] }
 0x320   : > { %5331 = vmatprep.subr.bf16.mxu1 %v14050_v46  ;;  %v14068_v46 = vld [vmem:[#allocation270_spill] sm:$0xff] }
 0x321   : > { %4809 = vmatmul.mubr.bf16.gmra.mrb[32].mxu0 %v11419_v63  ;;  %5061 = vmatmul.mubr.bf16.gmra.mrb[32].mxu1 %v11419_v63 }
 0x322   : > { %5103 = vmatprep.mubr.bf16.mxu0 %v10931_v8  ;;  %5080 = vmatpush1.bf16.msra.mxu0 %v14051_v61  ;;  %v14069_v61 = vld [vmem:[#allocation271_spill] sm:$0xff] }
 0x323   : > { %5332 = vmatpush1.bf16.msra.mxu1 %v14052_v2  ;;  %5081 = vmatprep.subr.bf16.mxu0 %v14053_v1  ;;  %v14070_v2 = vld [vmem:[#allocation272_spill] sm:$0xff]  ;;  %v14071_v1 = vld [vmem:[#allocation273_spill] sm:$0xff] }
 0x324   : > { %5333 = vmatprep.subr.bf16.mxu1 %v14054_v54  ;;  %5355 = vmatprep.mubr.bf16.mxu1 %v10931_v8  ;;  %v14065_v8 = vld [vmem:[#allocation267_spill] sm:$0xff]  ;;  %v14072_v54 = vld [vmem:[#allocation274_spill] sm:$0xff] }
 0x326   : > { %5082 = vmatpush1.bf16.msra.mxu0 %v14055_v59  ;;  %v14073_v59 = vld [vmem:[#allocation275_spill] sm:$0xff] }
 0x327   : > { %5334 = vmatpush1.bf16.msra.mxu1 %v14056_v34  ;;  %5083 = vmatprep.subr.bf16.mxu0 %v14057_v35  ;;  %v14074_v34 = vld [vmem:[#allocation276_spill] sm:$0xff]  ;;  %v14075_v35 = vld [vmem:[#allocation277_spill] sm:$0xff] }
 0x328   : > { %5335 = vmatprep.subr.bf16.mxu1 %v14058_v40  ;;  %v14076_v40 = vld [vmem:[#allocation278_spill] sm:$0xff] }
 0x32a   : > { %5084 = vmatpush1.bf16.msra.mxu0 %v14059_v55  ;;  %v14077_v55 = vld [vmem:[#allocation279_spill] sm:$0xff] }
 0x32b   : > { %5336 = vmatpush1.bf16.msra.mxu1 %v14060_v50  ;;  %5085 = vmatprep.subr.bf16.mxu0 %v14061_v4  ;;  %v14078_v50 = vld [vmem:[#allocation280_spill] sm:$0xff]  ;;  %v14079_v4 = vld [vmem:[#allocation281_spill] sm:$0xff] }
 0x32c   : > { %5337 = vmatprep.subr.bf16.mxu1 %v14062_v41  ;;  %v14080_v41 = vld [vmem:[#allocation282_spill] sm:$0xff] }
 0x32e   : > { %5086 = vmatpush1.bf16.msra.mxu0 %v14063_v13  ;;  %v14081_v13 = vld [vmem:[#allocation283_spill] sm:$0xff] }
 0x32f   : > { %5338 = vmatpush1.bf16.msra.mxu1 %v14064_v49  ;;  %5087 = vmatprep.subr.bf16.mxu0 %v14065_v8  ;;  %v14082_v49 = vld [vmem:[#allocation284_spill] sm:$0xff]  ;;  %v14083_v8 = vld [vmem:[#allocation285_spill] sm:$0xff] }
 0x330   : > { %5339 = vmatprep.subr.bf16.mxu1 %v14066_v7  ;;  %v14084_v7 = vld [vmem:[#allocation286_spill] sm:$0xff] }
 0x332   : > { %5088 = vmatpush1.bf16.msra.mxu0 %v14067_v58  ;;  %v14085_v58 = vld [vmem:[#allocation287_spill] sm:$0xff] }
 0x333   : > { %5340 = vmatpush1.bf16.msra.mxu1 %v14068_v46  ;;  %5089 = vmatprep.subr.bf16.mxu0 %v14069_v61  ;;  %v14086_v46 = vld [vmem:[#allocation288_spill] sm:$0xff]  ;;  %v14087_v61 = vld [vmem:[#allocation289_spill] sm:$0xff] }
 0x334   : > { %5341 = vmatprep.subr.bf16.mxu1 %v14070_v2  ;;  %v14088_v2 = vld [vmem:[#allocation290_spill] sm:$0xff] }
 0x336   : > { %5090 = vmatpush1.bf16.msra.mxu0 %v14071_v1  ;;  %v14089_v1 = vld [vmem:[#allocation291_spill] sm:$0xff] }
 0x337   : > { %5342 = vmatpush1.bf16.msra.mxu1 %v14072_v54  ;;  %5091 = vmatprep.subr.bf16.mxu0 %v14073_v59  ;;  %v14090_v54 = vld [vmem:[#allocation292_spill] sm:$0xff]  ;;  %v14091_v59 = vld [vmem:[#allocation293_spill] sm:$0xff] }
 0x338   : > { %5343 = vmatprep.subr.bf16.mxu1 %v14074_v34  ;;  %v14092_v34 = vld [vmem:[#allocation294_spill] sm:$0xff] }
 0x33a   : > { %5092 = vmatpush1.bf16.msra.mxu0 %v14075_v35  ;;  %v14093_v35 = vld [vmem:[#allocation295_spill] sm:$0xff] }
 0x33b   : > { %5344 = vmatpush1.bf16.msra.mxu1 %v14076_v40  ;;  %5093 = vmatprep.subr.bf16.mxu0 %v14077_v55  ;;  %v14094_v40 = vld [vmem:[#allocation296_spill] sm:$0xff]  ;;  %v14095_v55 = vld [vmem:[#allocation297_spill] sm:$0xff] }
 0x33c   : > { %5345 = vmatprep.subr.bf16.mxu1 %v14078_v50  ;;  %v14096_v50 = vld [vmem:[#allocation298_spill] sm:$0xff] }
 0x33e   : > { %5094 = vmatpush1.bf16.msra.mxu0 %v14079_v4  ;;  %v14097_v4 = vld [vmem:[#allocation299_spill] sm:$0xff] }
 0x33f   : > { %5346 = vmatpush1.bf16.msra.mxu1 %v14080_v41  ;;  %5095 = vmatprep.subr.bf16.mxu0 %v14081_v13  ;;  %v14098_v41 = vld [vmem:[#allocation300_spill] sm:$0xff]  ;;  %v14099_v13 = vld [vmem:[#allocation301_spill] sm:$0xff] }
 0x340   : > { %5347 = vmatprep.subr.bf16.mxu1 %v14082_v49  ;;  %v14100_v49 = vld [vmem:[#allocation302_spill] sm:$0xff] }
 0x342   : > { %5096 = vmatpush1.bf16.msra.mxu0 %v14083_v8  ;;  %v14101_v8 = vld [vmem:[#allocation303_spill] sm:$0xff] }
 0x343   : > { %5348 = vmatpush1.bf16.msra.mxu1 %v14084_v7  ;;  %5097 = vmatprep.subr.bf16.mxu0 %v14085_v58  ;;  %v14102_v7 = vld [vmem:[#allocation304_spill] sm:$0xff]  ;;  %v14103_v58 = vld [vmem:[#allocation305_spill] sm:$0xff] }
 0x344   : > { %5349 = vmatprep.subr.bf16.mxu1 %v14086_v46  ;;  %v14104_v46 = vld [vmem:[#allocation306_spill] sm:$0xff] }
 0x346   : > { %5098 = vmatpush1.bf16.msra.mxu0 %v14087_v61  ;;  %v14105_v61 = vld [vmem:[#allocation307_spill] sm:$0xff] }
 0x347   : > { %5350 = vmatpush1.bf16.msra.mxu1 %v14088_v2  ;;  %5099 = vmatprep.subr.bf16.mxu0 %v14089_v1  ;;  %v14106_v2 = vld [vmem:[#allocation308_spill] sm:$0xff]  ;;  %v14108_v1 = vld [vmem:[#allocation310_spill] sm:$0xff] }
 0x348   : > { %5351 = vmatprep.subr.bf16.mxu1 %v14090_v54  ;;  %v14109_v54 = vld [vmem:[#allocation311_spill] sm:$0xff] }
 0x34a   : > { %5100 = vmatpush1.bf16.msra.mxu0 %v14091_v59  ;;  %v14110_v59 = vld [vmem:[#allocation312_spill] sm:$0xff] }
 0x34b   : > { %5352 = vmatpush1.bf16.msra.mxu1 %v14092_v34  ;;  %5101 = vmatprep.subr.bf16.mxu0 %v14093_v35  ;;  %v14112_v34 = vld [vmem:[#allocation314_spill] sm:$0xff]  ;;  %v14113_v35 = vld [vmem:[#allocation315_spill] sm:$0xff] }
 0x34c   : > { %5353 = vmatprep.subr.bf16.mxu1 %v14094_v40  ;;  %v14114_v40 = vld [vmem:[#allocation316_spill] sm:$0xff] }
 0x34e   : > { %5102 = vmatpush1.bf16.msra.mxu0 %v14095_v55  ;;  %v14116_v55 = vld [vmem:[#allocation318_spill] sm:$0xff] }
 0x34f   : > { %5354 = vmatpush1.bf16.msra.mxu1 %v14096_v50  ;;  %5134 = vmatprep.subr.bf16.mxu0 %v14097_v4  ;;  %v14117_v50 = vld [vmem:[#allocation319_spill] sm:$0xff]  ;;  %v14118_v4 = vld [vmem:[#allocation320_spill] sm:$0xff] }
 0x350   : > { %5386 = vmatprep.subr.bf16.mxu1 %v14098_v41  ;;  %v14120_v41 = vld [vmem:[#allocation322_spill] sm:$0xff] }
 0x351   : > { %5104 = vmatmul.mubr.bf16.vlgmr.msra.gmra.mrb[36].mxu0 %v10981_v26 }
 0x352   : > { %5356 = vmatmul.mubr.bf16.vlgmr.msra.gmra.mrb[36].mxu1 %v10981_v26  ;;  %5135 = vmatpush1.bf16.msra.mxu0 %v14099_v13  ;;  %v14107_v26 = vld [vmem:[#allocation309_spill] sm:$0xff]  ;;  %v14121_v13 = vld [vmem:[#allocation323_spill] sm:$0xff] }
 0x353   : > { %5387 = vmatpush1.bf16.msra.mxu1 %v14100_v49  ;;  %5136 = vmatprep.subr.bf16.mxu0 %v14101_v8  ;;  %v14122_v49 = vld [vmem:[#allocation324_spill] sm:$0xff]  ;;  %v14124_v8 = vld [vmem:[#allocation326_spill] sm:$0xff] }
 0x354   : > { %5388 = vmatprep.subr.bf16.mxu1 %v14102_v7  ;;  %5113 = vmatprep.mubr.bf16.mxu0 %v10989_v37  ;;  %v14125_v7 = vld [vmem:[#allocation327_spill] sm:$0xff] }
 0x355   : > { %5365 = vmatprep.mubr.bf16.mxu1 %v10989_v37  ;;  %v14111_v37 = vld [vmem:[#allocation313_spill] sm:$0xff] }
 0x356   : > { %5137 = vmatpush1.bf16.msra.mxu0 %v14103_v58  ;;  %v14126_v58 = vld [vmem:[#allocation328_spill] sm:$0xff] }
 0x357   : > { %5389 = vmatpush1.bf16.msra.mxu1 %v14104_v46  ;;  %5138 = vmatprep.subr.bf16.mxu0 %v14105_v61  ;;  %v14127_v46 = vld [vmem:[#allocation329_spill] sm:$0xff]  ;;  %v14128_v61 = vld [vmem:[#allocation330_spill] sm:$0xff] }
 0x358   : > { %5390 = vmatprep.subr.bf16.mxu1 %v14106_v2  ;;  %v14130_v2 = vld [vmem:[#allocation332_spill] sm:$0xff] }
 0x359   : > { %5114 = vmatmul.mubr.bf16.gmra.mrb[40].mxu0 %v10999_v44 }
 0x35a   : > { %5366 = vmatmul.mubr.bf16.gmra.mrb[40].mxu1 %v10999_v44  ;;  %5139 = vmatpush1.bf16.msra.mxu0 %v14107_v26  ;;  %v14115_v44 = vld [vmem:[#allocation317_spill] sm:$0xff] }
 0x35b   : > { %5391 = vmatpush1.bf16.msra.mxu1 %v14108_v1  ;;  %5140 = vmatprep.subr.bf16.mxu0 %v14109_v54  ;;  %v14131_v26 = vld [vmem:[#allocation333_spill] sm:$0xff]  ;;  %v14132_v1 = vld [vmem:[#allocation334_spill] sm:$0xff]  ;;  %v14133_v54 = vld [vmem:[#allocation335_spill] sm:$0xff] }
 0x35c   : > { %5392 = vmatprep.subr.bf16.mxu1 %v14110_v59  ;;  %5123 = vmatprep.mubr.bf16.mxu0 %v11007_v23  ;;  %v14134_v59 = vld [vmem:[#allocation336_spill] sm:$0xff] }
 0x35d   : > { %5375 = vmatprep.mubr.bf16.mxu1 %v11007_v23  ;;  %v14119_v23 = vld [vmem:[#allocation321_spill] sm:$0xff] }
 0x35e   : > { %5141 = vmatpush1.bf16.msra.mxu0 %v14111_v37  ;;  %v14135_v37 = vld [vmem:[#allocation337_spill] sm:$0xff] }
 0x35f   : > { %5393 = vmatpush1.bf16.msra.mxu1 %v14112_v34  ;;  %5142 = vmatprep.subr.bf16.mxu0 %v14113_v35  ;;  %v14136_v34 = vld [vmem:[#allocation338_spill] sm:$0xff]  ;;  %v14137_v35 = vld [vmem:[#allocation339_spill] sm:$0xff] }
 0x360   : > { %5394 = vmatprep.subr.bf16.mxu1 %v14114_v40  ;;  %v14138_v40 = vld [vmem:[#allocation340_spill] sm:$0xff] }
 0x361   : > { %5124 = vmatmul.mubr.bf16.gmra.mrb[44].mxu0 %v11017_v22 }
 0x362   : > { %5376 = vmatmul.mubr.bf16.gmra.mrb[44].mxu1 %v11017_v22  ;;  %5143 = vmatpush1.bf16.msra.mxu0 %v14115_v44  ;;  %v14123_v22 = vld [vmem:[#allocation325_spill] sm:$0xff] }
 0x363   : > { %5395 = vmatpush1.bf16.msra.mxu1 %v14116_v55  ;;  %5144 = vmatprep.subr.bf16.mxu0 %v14117_v50  ;;  %v14139_v44 = vld [vmem:[#allocation341_spill] sm:$0xff]  ;;  %v14140_v55 = vld [vmem:[#allocation342_spill] sm:$0xff]  ;;  %v14141_v50 = vld [vmem:[#allocation343_spill] sm:$0xff] }
 0x364   : > { %5396 = vmatprep.subr.bf16.mxu1 %v14118_v4  ;;  %5166 = vmatprep.mubr.bf16.mxu0 %v11025_v19  ;;  %v14142_v4 = vld [vmem:[#allocation344_spill] sm:$0xff] }
 0x365   : > { %5418 = vmatprep.mubr.bf16.mxu1 %v11025_v19  ;;  %v14129_v19 = vld [vmem:[#allocation331_spill] sm:$0xff] }
 0x366   : > { %5145 = vmatpush1.bf16.msra.mxu0 %v14119_v23  ;;  %v14143_v23 = vld [vmem:[#allocation345_spill] sm:$0xff] }
 0x367   : > { %5397 = vmatpush1.bf16.msra.mxu1 %v14120_v41  ;;  %5146 = vmatprep.subr.bf16.mxu0 %v14121_v13  ;;  %v14144_v41 = vld [vmem:[#allocation346_spill] sm:$0xff]  ;;  %v14145_v13 = vld [vmem:[#allocation347_spill] sm:$0xff] }
 0x368   : > { %5398 = vmatprep.subr.bf16.mxu1 %v14122_v49  ;;  %v14146_v49 = vld [vmem:[#allocation348_spill] sm:$0xff] }
 0x36a   : > { %5147 = vmatpush1.bf16.msra.mxu0 %v14123_v22  ;;  %v14147_v22 = vld [vmem:[#allocation349_spill] sm:$0xff] }
 0x36b   : > { %5399 = vmatpush1.bf16.msra.mxu1 %v14124_v8  ;;  %5148 = vmatprep.subr.bf16.mxu0 %v14125_v7  ;;  %v14148_v8 = vld [vmem:[#allocation350_spill] sm:$0xff]  ;;  %v14149_v7 = vld [vmem:[#allocation351_spill] sm:$0xff] }
 0x36c   : > { %5400 = vmatprep.subr.bf16.mxu1 %v14126_v58  ;;  %v14150_v58 = vld [vmem:[#allocation352_spill] sm:$0xff] }
 0x36e   : > { %5149 = vmatpush1.bf16.msra.mxu0 %v14127_v46  ;;  %v14151_v46 = vld [vmem:[#allocation353_spill] sm:$0xff] }
 0x36f   : > { %5401 = vmatpush1.bf16.msra.mxu1 %v14128_v61  ;;  %5150 = vmatprep.subr.bf16.mxu0 %v14129_v19  ;;  %v14152_v61 = vld [vmem:[#allocation354_spill] sm:$0xff]  ;;  %v14153_v19 = vld [vmem:[#allocation355_spill] sm:$0xff] }
 0x370   : > { %5402 = vmatprep.subr.bf16.mxu1 %v14130_v2  ;;  %v14154_v2 = vld [vmem:[#allocation356_spill] sm:$0xff] }
 0x372   : > { %5151 = vmatpush1.bf16.msra.mxu0 %v14131_v26  ;;  %v14155_v26 = vld [vmem:[#allocation357_spill] sm:$0xff] }
 0x373   : > { %5403 = vmatpush1.bf16.msra.mxu1 %v14132_v1  ;;  %5152 = vmatprep.subr.bf16.mxu0 %v14133_v54  ;;  %v14156_v1 = vld [vmem:[#allocation358_spill] sm:$0xff]  ;;  %v14157_v54 = vld [vmem:[#allocation359_spill] sm:$0xff] }
 0x374   : > { %5404 = vmatprep.subr.bf16.mxu1 %v14134_v59  ;;  %v14158_v59 = vld [vmem:[#allocation360_spill] sm:$0xff] }
 0x376   : > { %5153 = vmatpush1.bf16.msra.mxu0 %v14135_v37  ;;  %v14159_v37 = vld [vmem:[#allocation361_spill] sm:$0xff] }
 0x377   : > { %5405 = vmatpush1.bf16.msra.mxu1 %v14136_v34  ;;  %5154 = vmatprep.subr.bf16.mxu0 %v14137_v35  ;;  %v14160_v34 = vld [vmem:[#allocation362_spill] sm:$0xff]  ;;  %v14161_v35 = vld [vmem:[#allocation363_spill] sm:$0xff] }
 0x378   : > { %5406 = vmatprep.subr.bf16.mxu1 %v14138_v40  ;;  %v14162_v40 = vld [vmem:[#allocation364_spill] sm:$0xff] }
 0x37a   : > { %5155 = vmatpush1.bf16.msra.mxu0 %v14139_v44  ;;  %v14163_v44 = vld [vmem:[#allocation365_spill] sm:$0xff] }
 0x37b   : > { %5407 = vmatpush1.bf16.msra.mxu1 %v14140_v55  ;;  %5156 = vmatprep.subr.bf16.mxu0 %v14141_v50  ;;  %v14164_v55 = vld [vmem:[#allocation366_spill] sm:$0xff]  ;;  %v14165_v50 = vld [vmem:[#allocation367_spill] sm:$0xff] }
 0x37c   : > { %5408 = vmatprep.subr.bf16.mxu1 %v14142_v4  ;;  %v14166_v4 = vld [vmem:[#allocation368_spill] sm:$0xff] }
 0x37e   : > { %5157 = vmatpush1.bf16.msra.mxu0 %v14143_v23  ;;  %v14167_v23 = vld [vmem:[#allocation369_spill] sm:$0xff] }
 0x37f   : > { %5409 = vmatpush1.bf16.msra.mxu1 %v14144_v41  ;;  %5158 = vmatprep.subr.bf16.mxu0 %v14145_v13  ;;  %v14168_v41 = vld [vmem:[#allocation370_spill] sm:$0xff]  ;;  %v14169_v13 = vld [vmem:[#allocation371_spill] sm:$0xff] }
 0x380   : > { %5410 = vmatprep.subr.bf16.mxu1 %v14146_v49  ;;  %v14170_v49 = vld [vmem:[#allocation372_spill] sm:$0xff] }
 0x382   : > { %5159 = vmatpush1.bf16.msra.mxu0 %v14147_v22  ;;  %v14172_v22 = vld [vmem:[#allocation374_spill] sm:$0xff] }
 0x383   : > { %5411 = vmatpush1.bf16.msra.mxu1 %v14148_v8  ;;  %5160 = vmatprep.subr.bf16.mxu0 %v14149_v7  ;;  %v14173_v8 = vld [vmem:[#allocation375_spill] sm:$0xff]  ;;  %v14174_v7 = vld [vmem:[#allocation376_spill] sm:$0xff] }
 0x384   : > { %5412 = vmatprep.subr.bf16.mxu1 %v14150_v58  ;;  %v14176_v58 = vld [vmem:[#allocation378_spill] sm:$0xff] }
 0x386   : > { %5161 = vmatpush1.bf16.msra.mxu0 %v14151_v46  ;;  %v14177_v46 = vld [vmem:[#allocation379_spill] sm:$0xff] }
 0x387   : > { %5413 = vmatpush1.bf16.msra.mxu1 %v14152_v61  ;;  %5162 = vmatprep.subr.bf16.mxu0 %v14153_v19  ;;  %v14178_v61 = vld [vmem:[#allocation380_spill] sm:$0xff]  ;;  %v14180_v19 = vld [vmem:[#allocation382_spill] sm:$0xff] }
 0x388   : > { %5414 = vmatprep.subr.bf16.mxu1 %v14154_v2  ;;  %v14181_v2 = vld [vmem:[#allocation383_spill] sm:$0xff] }
 0x38a   : > { %5163 = vmatpush1.bf16.msra.mxu0 %v14155_v26  ;;  %v14182_v26 = vld [vmem:[#allocation384_spill] sm:$0xff] }
 0x38b   : > { %5415 = vmatpush1.bf16.msra.mxu1 %v14156_v1  ;;  %5164 = vmatprep.subr.bf16.mxu0 %v14157_v54  ;;  %v14184_v1 = vld [vmem:[#allocation386_spill] sm:$0xff]  ;;  %v14185_v54 = vld [vmem:[#allocation387_spill] sm:$0xff] }
 0x38c   : > { %5416 = vmatprep.subr.bf16.mxu1 %v14158_v59  ;;  %v14186_v59 = vld [vmem:[#allocation388_spill] sm:$0xff] }
 0x38e   : > { %5165 = vmatpush1.bf16.msra.mxu0 %v14159_v37  ;;  %v14188_v37 = vld [vmem:[#allocation390_spill] sm:$0xff] }
 0x38f   : > { %5417 = vmatpush1.bf16.msra.mxu1 %v14160_v34  ;;  %5197 = vmatprep.subr.bf16.mxu0 %v14161_v35  ;;  %v14189_v34 = vld [vmem:[#allocation391_spill] sm:$0xff]  ;;  %v14190_v35 = vld [vmem:[#allocation392_spill] sm:$0xff] }
 0x390   : > { %5449 = vmatprep.subr.bf16.mxu1 %v14162_v40  ;;  %v14191_v40 = vld [vmem:[#allocation393_spill] sm:$0xff] }
 0x391   : > { %5167 = vmatmul.mubr.bf16.vlgmr.msra.gmra.mrb[36].mxu0 %v11075_v39 }
 0x392   : > { %5419 = vmatmul.mubr.bf16.vlgmr.msra.gmra.mrb[36].mxu1 %v11075_v39  ;;  %5198 = vmatpush1.bf16.msra.mxu0 %v14163_v44  ;;  %v14171_v39 = vld [vmem:[#allocation373_spill] sm:$0xff]  ;;  %v14192_v44 = vld [vmem:[#allocation394_spill] sm:$0xff] }
 0x393   : > { %5450 = vmatpush1.bf16.msra.mxu1 %v14164_v55  ;;  %5199 = vmatprep.subr.bf16.mxu0 %v14165_v50  ;;  %v14194_v55 = vld [vmem:[#allocation396_spill] sm:$0xff]  ;;  %v14195_v50 = vld [vmem:[#allocation397_spill] sm:$0xff] }
 0x394   : > { %5451 = vmatprep.subr.bf16.mxu1 %v14166_v4  ;;  %5176 = vmatprep.mubr.bf16.mxu0 %v11083_v18  ;;  %v14196_v4 = vld [vmem:[#allocation398_spill] sm:$0xff] }
 0x395   : > { %5428 = vmatprep.mubr.bf16.mxu1 %v11083_v18  ;;  %v14175_v18 = vld [vmem:[#allocation377_spill] sm:$0xff] }
 0x396   : > { %5200 = vmatpush1.bf16.msra.mxu0 %v14167_v23  ;;  %v14197_v23 = vld [vmem:[#allocation399_spill] sm:$0xff] }
 0x397   : > { %5452 = vmatpush1.bf16.msra.mxu1 %v14168_v41  ;;  %5201 = vmatprep.subr.bf16.mxu0 %v14169_v13  ;;  %v14198_v41 = vld [vmem:[#allocation400_spill] sm:$0xff]  ;;  %v14199_v13 = vld [vmem:[#allocation401_spill] sm:$0xff] }
 0x398   : > { %5453 = vmatprep.subr.bf16.mxu1 %v14170_v49  ;;  %v14200_v49 = vld [vmem:[#allocation402_spill] sm:$0xff] }
 0x399   : > { %5177 = vmatmul.mubr.bf16.gmra.mrb[40].mxu0 %v11093_v27 }
 0x39a   : > { %5429 = vmatmul.mubr.bf16.gmra.mrb[40].mxu1 %v11093_v27  ;;  %5202 = vmatpush1.bf16.msra.mxu0 %v14171_v39  ;;  %v14179_v27 = vld [vmem:[#allocation381_spill] sm:$0xff]  ;;  %v14201_v39 = vld [vmem:[#allocation403_spill] sm:$0xff] }
 0x39b   : > { %5454 = vmatpush1.bf16.msra.mxu1 %v14172_v22  ;;  %5203 = vmatprep.subr.bf16.mxu0 %v14173_v8  ;;  %v14202_v22 = vld [vmem:[#allocation404_spill] sm:$0xff]  ;;  %v14203_v8 = vld [vmem:[#allocation405_spill] sm:$0xff] }
 0x39c   : > { %5455 = vmatprep.subr.bf16.mxu1 %v14174_v7  ;;  %5186 = vmatprep.mubr.bf16.mxu0 %v11101_v3  ;;  %v14204_v7 = vld [vmem:[#allocation406_spill] sm:$0xff] }
 0x39d   : > { %5438 = vmatprep.mubr.bf16.mxu1 %v11101_v3  ;;  %v14183_v3 = vld [vmem:[#allocation385_spill] sm:$0xff] }
 0x39e   : > { %5204 = vmatpush1.bf16.msra.mxu0 %v14175_v18  ;;  %v14205_v18 = vld [vmem:[#allocation407_spill] sm:$0xff] }
 0x39f   : > { %5456 = vmatpush1.bf16.msra.mxu1 %v14176_v58  ;;  %5205 = vmatprep.subr.bf16.mxu0 %v14177_v46  ;;  %v14206_v58 = vld [vmem:[#allocation408_spill] sm:$0xff]  ;;  %v14207_v46 = vld [vmem:[#allocation409_spill] sm:$0xff] }
 0x3a0   : > { %5457 = vmatprep.subr.bf16.mxu1 %v14178_v61  ;;  %v14208_v61 = vld [vmem:[#allocation410_spill] sm:$0xff] }
 0x3a1   : > { %5187 = vmatmul.mubr.bf16.gmra.mrb[44].mxu0 %v11111_v53 }
 0x3a2   : > { %5439 = vmatmul.mubr.bf16.gmra.mrb[44].mxu1 %v11111_v53  ;;  %5206 = vmatpush1.bf16.msra.mxu0 %v14179_v27  ;;  %v14187_v53 = vld [vmem:[#allocation389_spill] sm:$0xff]  ;;  %v14209_v27 = vld [vmem:[#allocation411_spill] sm:$0xff] }
 0x3a3   : > { %5458 = vmatpush1.bf16.msra.mxu1 %v14180_v19  ;;  %5207 = vmatprep.subr.bf16.mxu0 %v14181_v2  ;;  %v14210_v19 = vld [vmem:[#allocation412_spill] sm:$0xff]  ;;  %v14211_v2 = vld [vmem:[#allocation413_spill] sm:$0xff] }
 0x3a4   : > { %5459 = vmatprep.subr.bf16.mxu1 %v14182_v26  ;;  %5229 = vmatprep.mubr.bf16.mxu0 %v11119_v9  ;;  %v14212_v26 = vld [vmem:[#allocation414_spill] sm:$0xff] }
 0x3a5   : > { %5481 = vmatprep.mubr.bf16.mxu1 %v11119_v9  ;;  %v14193_v9 = vld [vmem:[#allocation395_spill] sm:$0xff] }
 0x3a6   : > { %5208 = vmatpush1.bf16.msra.mxu0 %v14183_v3  ;;  %v14213_v3 = vld [vmem:[#allocation415_spill] sm:$0xff] }
 0x3a7   : > { %5460 = vmatpush1.bf16.msra.mxu1 %v14184_v1  ;;  %5209 = vmatprep.subr.bf16.mxu0 %v14185_v54  ;;  %v14214_v1 = vld [vmem:[#allocation416_spill] sm:$0xff]  ;;  %v14215_v54 = vld [vmem:[#allocation417_spill] sm:$0xff] }
 0x3a8   : > { %5461 = vmatprep.subr.bf16.mxu1 %v14186_v59  ;;  %v14216_v59 = vld [vmem:[#allocation418_spill] sm:$0xff] }
 0x3aa   : > { %5210 = vmatpush1.bf16.msra.mxu0 %v14187_v53  ;;  %v14217_v53 = vld [vmem:[#allocation419_spill] sm:$0xff] }
 0x3ab   : > { %5462 = vmatpush1.bf16.msra.mxu1 %v14188_v37  ;;  %5211 = vmatprep.subr.bf16.mxu0 %v14189_v34  ;;  %v14218_v37 = vld [vmem:[#allocation420_spill] sm:$0xff]  ;;  %v14219_v34 = vld [vmem:[#allocation421_spill] sm:$0xff] }
 0x3ac   : > { %5463 = vmatprep.subr.bf16.mxu1 %v14190_v35  ;;  %v14220_v35 = vld [vmem:[#allocation422_spill] sm:$0xff] }
 0x3ae   : > { %5212 = vmatpush1.bf16.msra.mxu0 %v14191_v40  ;;  %v14221_v40 = vld [vmem:[#allocation423_spill] sm:$0xff] }
 0x3af   : > { %5464 = vmatpush1.bf16.msra.mxu1 %v14192_v44  ;;  %5213 = vmatprep.subr.bf16.mxu0 %v14193_v9  ;;  %v14222_v44 = vld [vmem:[#allocation424_spill] sm:$0xff]  ;;  %v14223_v9 = vld [vmem:[#allocation425_spill] sm:$0xff] }
 0x3b0   : > { %5465 = vmatprep.subr.bf16.mxu1 %v14194_v55  ;;  %v14224_v55 = vld [vmem:[#allocation426_spill] sm:$0xff] }
 0x3b2   : > { %5214 = vmatpush1.bf16.msra.mxu0 %v14195_v50  ;;  %v14225_v50 = vld [vmem:[#allocation427_spill] sm:$0xff] }
 0x3b3   : > { %5466 = vmatpush1.bf16.msra.mxu1 %v14196_v4  ;;  %5215 = vmatprep.subr.bf16.mxu0 %v14197_v23  ;;  %v14226_v4 = vld [vmem:[#allocation428_spill] sm:$0xff]  ;;  %v14227_v23 = vld [vmem:[#allocation429_spill] sm:$0xff] }
 0x3b4   : > { %5467 = vmatprep.subr.bf16.mxu1 %v14198_v41  ;;  %v14228_v41 = vld [vmem:[#allocation430_spill] sm:$0xff] }
 0x3b6   : > { %5216 = vmatpush1.bf16.msra.mxu0 %v14199_v13  ;;  %v14229_v13 = vld [vmem:[#allocation431_spill] sm:$0xff] }
 0x3b7   : > { %5468 = vmatpush1.bf16.msra.mxu1 %v14200_v49  ;;  %5217 = vmatprep.subr.bf16.mxu0 %v14201_v39  ;;  %v14230_v49 = vld [vmem:[#allocation432_spill] sm:$0xff]  ;;  %v14231_v39 = vld [vmem:[#allocation433_spill] sm:$0xff] }
 0x3b8   : > { %5469 = vmatprep.subr.bf16.mxu1 %v14202_v22  ;;  %v14232_v22 = vld [vmem:[#allocation434_spill] sm:$0xff] }
 0x3ba   : > { %5218 = vmatpush1.bf16.msra.mxu0 %v14203_v8  ;;  %v14233_v8 = vld [vmem:[#allocation435_spill] sm:$0xff] }
 0x3bb   : > { %5470 = vmatpush1.bf16.msra.mxu1 %v14204_v7  ;;  %5219 = vmatprep.subr.bf16.mxu0 %v14205_v18  ;;  %v14234_v7 = vld [vmem:[#allocation436_spill] sm:$0xff]  ;;  %v14236_v18 = vld [vmem:[#allocation438_spill] sm:$0xff] }
 0x3bc   : > { %5471 = vmatprep.subr.bf16.mxu1 %v14206_v58  ;;  %v14237_v58 = vld [vmem:[#allocation439_spill] sm:$0xff] }
 0x3be   : > { %5220 = vmatpush1.bf16.msra.mxu0 %v14207_v46  ;;  %v14238_v46 = vld [vmem:[#allocation440_spill] sm:$0xff] }
 0x3bf   : > { %5472 = vmatpush1.bf16.msra.mxu1 %v14208_v61  ;;  %5221 = vmatprep.subr.bf16.mxu0 %v14209_v27  ;;  %v14240_v61 = vld [vmem:[#allocation442_spill] sm:$0xff]  ;;  %v14241_v27 = vld [vmem:[#allocation443_spill] sm:$0xff] }
 0x3c0   : > { %5473 = vmatprep.subr.bf16.mxu1 %v14210_v19  ;;  %v14242_v19 = vld [vmem:[#allocation444_spill] sm:$0xff] }
 0x3c2   : > { %5222 = vmatpush1.bf16.msra.mxu0 %v14211_v2  ;;  %v14244_v2 = vld [vmem:[#allocation446_spill] sm:$0xff] }
 0x3c3   : > { %5474 = vmatpush1.bf16.msra.mxu1 %v14212_v26  ;;  %5223 = vmatprep.subr.bf16.mxu0 %v14213_v3  ;;  %v14245_v3 = vld [vmem:[#allocation447_spill] sm:$0xff] }
 0x3c4   : > { %5475 = vmatprep.subr.bf16.mxu1 %v14214_v1 }
 0x3c6   : > { %5224 = vmatpush1.bf16.msra.mxu0 %v14215_v54 }
 0x3c7   : > { %5476 = vmatpush1.bf16.msra.mxu1 %v14216_v59  ;;  %5225 = vmatprep.subr.bf16.mxu0 %v14217_v53 }
 0x3c8   : > { %5477 = vmatprep.subr.bf16.mxu1 %v14218_v37  ;;  %v14247_v37 = vld [vmem:[#allocation449_spill] sm:$0xff] }
 0x3ca   : > { %5226 = vmatpush1.bf16.msra.mxu0 %v14219_v34  ;;  %v14248_v34 = vld [vmem:[#allocation450_spill] sm:$0xff] }
 0x3cb   : > { %5478 = vmatpush1.bf16.msra.mxu1 %v14220_v35  ;;  %5227 = vmatprep.subr.bf16.mxu0 %v14221_v40 }
 0x3cc   : > { %5479 = vmatprep.subr.bf16.mxu1 %v14222_v44  ;;  %v14249_v44 = vld [vmem:[#allocation451_spill] sm:$0xff] }
 0x3ce   : > { %5228 = vmatpush1.bf16.msra.mxu0 %v14223_v9  ;;  %v14250_v9 = vld [vmem:[#allocation452_spill] sm:$0xff] }
 0x3cf   : > { %5480 = vmatpush1.bf16.msra.mxu1 %v14224_v55  ;;  %5260 = vmatprep.subr.bf16.mxu0 %v14225_v50  ;;  %v14251_v55 = vld [vmem:[#allocation453_spill] sm:$0xff] }
 0x3d0   : > { %5512 = vmatprep.subr.bf16.mxu1 %v14226_v4  ;;  %v14253_v4 = vld [vmem:[#allocation455_spill] sm:$0xff] }
 0x3d1   : > { %5230 = vmatmul.mubr.bf16.vlgmr.msra.gmra.mrb[36].mxu0 %v11169_v57 }
 0x3d2   : > { %5482 = vmatmul.mubr.bf16.vlgmr.msra.gmra.mrb[36].mxu1 %v11169_v57  ;;  %5261 = vmatpush1.bf16.msra.mxu0 %v14227_v23  ;;  %v14235_v57 = vld [vmem:[#allocation437_spill] sm:$0xff]  ;;  %v14254_v23 = vld [vmem:[#allocation456_spill] sm:$0xff] }
 0x3d3   : > { %5513 = vmatpush1.bf16.msra.mxu1 %v14228_v41  ;;  %5262 = vmatprep.subr.bf16.mxu0 %v14229_v13 }
 0x3d4   : > { %5514 = vmatprep.subr.bf16.mxu1 %v14230_v49  ;;  %5239 = vmatprep.mubr.bf16.mxu0 %v11177_v42 }
 0x3d5   : > { %5491 = vmatprep.mubr.bf16.mxu1 %v11177_v42  ;;  %v14239_v42 = vld [vmem:[#allocation441_spill] sm:$0xff] }
 0x3d6   : > { %5263 = vmatpush1.bf16.msra.mxu0 %v14231_v39 }
 0x3d7   : > { %5515 = vmatpush1.bf16.msra.mxu1 %v14232_v22  ;;  %5264 = vmatprep.subr.bf16.mxu0 %v14233_v8  ;;  %v14258_v8 = vld [vmem:[#allocation457_spill] sm:$0xff] }
 0x3d8   : > { %5516 = vmatprep.subr.bf16.mxu1 %v14234_v7  ;;  %v14259_v7 = vld [vmem:[#allocation458_spill] sm:$0xff] }
 0x3d9   : > { %5240 = vmatmul.mubr.bf16.gmra.mrb[40].mxu0 %v11187_v45 }
 0x3da   : > { %5492 = vmatmul.mubr.bf16.gmra.mrb[40].mxu1 %v11187_v45  ;;  %5265 = vmatpush1.bf16.msra.mxu0 %v14235_v57  ;;  %v14243_v45 = vld [vmem:[#allocation445_spill] sm:$0xff] }
 0x3db   : > { %5517 = vmatpush1.bf16.msra.mxu1 %v14236_v18  ;;  %5266 = vmatprep.subr.bf16.mxu0 %v14237_v58  ;;  %v14262_v58 = vld [vmem:[#allocation459_spill] sm:$0xff] }
 0x3dc   : > { %5518 = vmatprep.subr.bf16.mxu1 %v14238_v46  ;;  %5249 = vmatprep.mubr.bf16.mxu0 %v11195_v14  ;;  %v14263_v46 = vld [vmem:[#allocation460_spill] sm:$0xff] }
 0x3dd   : > { %5501 = vmatprep.mubr.bf16.mxu1 %v11195_v14  ;;  %v14246_v14 = vld [vmem:[#allocation448_spill] sm:$0xff] }
 0x3de   : > { %5267 = vmatpush1.bf16.msra.mxu0 %v14239_v42  ;;  %v14264_v42 = vld [vmem:[#allocation461_spill] sm:$0xff] }
 0x3df   : > { %5519 = vmatpush1.bf16.msra.mxu1 %v14240_v61  ;;  %5268 = vmatprep.subr.bf16.mxu0 %v14241_v27  ;;  %v14265_v61 = vld [vmem:[#allocation462_spill] sm:$0xff] }
 0x3e0   : > { %5520 = vmatprep.subr.bf16.mxu1 %v14242_v19  ;;  %v14267_v19 = vld [vmem:[#allocation463_spill] sm:$0xff] }
 0x3e1   : > { %5250 = vmatmul.mubr.bf16.gmra.mrb[44].mxu0 %v11205_v29 }
 0x3e2   : > { %5502 = vmatmul.mubr.bf16.gmra.mrb[44].mxu1 %v11205_v29  ;;  %5269 = vmatpush1.bf16.msra.mxu0 %v14243_v45  ;;  %v14268_v45 = vld [vmem:[#allocation464_spill] sm:$0xff] }
 0x3e3   : > { %5521 = vmatpush1.bf16.msra.mxu1 %v14244_v2  ;;  %5270 = vmatprep.subr.bf16.mxu0 %v14245_v3 }
 0x3e4   : > { %v11657_v26 = vpop.f32.mrb[24].mxu0  ;;  %5522 = vmatprep.subr.bf16.mxu1 %v14246_v14  ;;  %v11661_v1 = vpop.f32.mrb[24].mxu1  ;;  %5292 = vmatprep.mubr.bf16.mxu0 %v11219_v43 }
 0x3e5   : > { %v11663_v54 = vpop.f32.mrb[25].mxu0  ;;  %5544 = vmatprep.mubr.bf16.mxu1 %v11219_v43  ;;  %v11667_v59 = vpop.f32.mrb[25].mxu1  ;;  %v14252_v43 = vld [vmem:[#allocation454_spill] sm:$0xff] }
 0x3e6   : > { %v11669_v29 = vpop.f32.mrb[26].mxu0  ;;  %v11671_v53 = vpop.f32.mrb[26].mxu1  ;;  %5271 = vmatpush1.bf16.msra.mxu0 %v14247_v37 }
 0x3e7   : > { %5523 = vmatpush1.bf16.msra.mxu1 %v14248_v34  ;;  %v11675_v35 = vpop.f32.mrb[27].mxu0  ;;  %v11677_v40 = vpop.f32.mrb[27].mxu1  ;;  %5272 = vmatprep.subr.bf16.mxu0 %v14249_v44  ;;  %v14274_v44 = vld [vmem:[#allocation465_spill] sm:$0xff] }
 0x3e8   : > { %5524 = vmatprep.subr.bf16.mxu1 %v14250_v9  ;;  %v14275_v9 = vld [vmem:[#allocation466_spill] sm:$0xff] }
 0x3ea   : > { %5273 = vmatpush1.bf16.msra.mxu0 %v14251_v55 }
 0x3eb   : > { %5525 = vmatpush1.bf16.msra.mxu1 %v14252_v43  ;;  %5274 = vmatprep.subr.bf16.mxu0 %v14253_v4  ;;  %v14278_v4 = vld [vmem:[#allocation467_spill] sm:$0xff] }
 0x3ec   : > { %v11683_v50 = vpop.f32.mrb[28].mxu0  ;;  %5526 = vmatprep.subr.bf16.mxu1 %v14254_v23  ;;  %v11687_v41 = vpop.f32.mrb[28].mxu1  ;;  %v14279_v23 = vld [vmem:[#allocation469_spill] sm:$0xff] }
 0x3ed   : > { %v11689_v13 = vpop.f32.mrb[29].mxu0  ;;  %v11691_v49 = vpop.f32.mrb[29].mxu1 }
 0x3ee   : > { %14255 = vst [vmem:[#allocation8_spill] sm:$0xff] %v11691_v49  ;;  %v11693_v39 = vpop.f32.mrb[30].mxu0  ;;  %v11695_v22 = vpop.f32.mrb[30].mxu1  ;;  %5275 = vmatpush1.bf16.msra.mxu0 %v14258_v8  ;;  %v14280_v8 = vld [vmem:[#allocation473_spill] sm:$0xff] }
 0x3ef   : > { %14256 = vst [vmem:[#allocation9_spill] sm:$0xff] %v11693_v39  ;;  %14257 = vst [vmem:[#allocation10_spill] sm:$0xff] %v11695_v22  ;;  %5527 = vmatpush1.bf16.msra.mxu1 %v14259_v7  ;;  %v11699_v57 = vpop.f32.mrb[31].mxu0  ;;  %v11701_v18 = vpop.f32.mrb[31].mxu1  ;;  %5276 = vmatprep.subr.bf16.mxu0 %v14262_v58  ;;  %v14281_v7 = vld [vmem:[#allocation474_spill] sm:$0xff]  ;;  %v14282_v58 = vld [vmem:[#allocation475_spill] sm:$0xff] }
 0x3f0   : > { %14260 = vst [vmem:[#allocation11_spill] sm:$0xff] %v11699_v57  ;;  %14261 = vst [vmem:[#allocation12_spill] sm:$0xff] %v11701_v18  ;;  %5528 = vmatprep.subr.bf16.mxu1 %v14263_v46  ;;  %v14283_v46 = vld [vmem:[#allocation477_spill] sm:$0xff] }
 0x3f2   : > { %5277 = vmatpush1.bf16.msra.mxu0 %v14264_v42  ;;  %v14284_v42 = vld [vmem:[#allocation478_spill] sm:$0xff] }
 0x3f3   : > { %5529 = vmatpush1.bf16.msra.mxu1 %v14265_v61  ;;  %5278 = vmatprep.subr.bf16.mxu0 %v14267_v19  ;;  %v14285_v61 = vld [vmem:[#allocation479_spill] sm:$0xff]  ;;  %v14286_v19 = vld [vmem:[#allocation480_spill] sm:$0xff] }
 0x3f4   : > { %v11707_v27 = vpop.f32.mrb[32].mxu0  ;;  %5530 = vmatprep.subr.bf16.mxu1 %v14268_v45  ;;  %v11711_v2 = vpop.f32.mrb[32].mxu1  ;;  %v14287_v45 = vld [vmem:[#allocation481_spill] sm:$0xff] }
 0x3f5   : > { %14266 = vst [vmem:[#allocation13_spill] sm:$0xff] %v11707_v27  ;;  %14269 = vst [vmem:[#allocation14_spill] sm:$0xff] %v11711_v2  ;;  %v11713_v3 = vpop.f32.mrb[33].mxu0  ;;  %v11715_v14 = vpop.f32.mrb[33].mxu1 }
 0x3f6   : > { %14270 = vst [vmem:[#allocation15_spill] sm:$0xff] %v11713_v3  ;;  %14271 = vst [vmem:[#allocation16_spill] sm:$0xff] %v11715_v14  ;;  %v11717_v37 = vpop.f32.mrb[34].mxu0  ;;  %v11719_v34 = vpop.f32.mrb[34].mxu1  ;;  %5279 = vmatpush1.bf16.msra.mxu0 %v14274_v44  ;;  %v14288_v44 = vld [vmem:[#allocation482_spill] sm:$0xff] }
 0x3f7   : > { %14272 = vst [vmem:[#allocation17_spill] sm:$0xff] %v11717_v37  ;;  %14273 = vst [vmem:[#allocation18_spill] sm:$0xff] %v11719_v34  ;;  %5531 = vmatpush1.bf16.msra.mxu1 %v14275_v9  ;;  %v11723_v55 = vpop.f32.mrb[35].mxu0  ;;  %v11725_v43 = vpop.f32.mrb[35].mxu1  ;;  %5280 = vmatprep.subr.bf16.mxu0 %v14278_v4  ;;  %v14289_v9 = vld [vmem:[#allocation483_spill] sm:$0xff]  ;;  %v14290_v4 = vld [vmem:[#allocation484_spill] sm:$0xff] }
 0x3f8   : > { %14276 = vst [vmem:[#allocation19_spill] sm:$0xff] %v11723_v55  ;;  %14277 = vst [vmem:[#allocation20_spill] sm:$0xff] %v11725_v43  ;;  %5532 = vmatprep.subr.bf16.mxu1 %v14279_v23  ;;  %v14291_v23 = vld [vmem:[#allocation485_spill] sm:$0xff]  ;;  %v11856_v14 = vmax.f32 %v11333_v15, 1e-07 }
 0x3fa   : > { %5281 = vmatpush1.bf16.msra.mxu0 %v14280_v8  ;;  %v14292_v8 = vld [vmem:[#allocation486_spill] sm:$0xff] }
 0x3fb   : > { %5533 = vmatpush1.bf16.msra.mxu1 %v14281_v7  ;;  %5282 = vmatprep.subr.bf16.mxu0 %v14282_v58  ;;  %v14293_v7 = vld [vmem:[#allocation487_spill] sm:$0xff]  ;;  %v14294_v58 = vld [vmem:[#allocation488_spill] sm:$0xff] }
 0x3fc   : > { %5534 = vmatprep.subr.bf16.mxu1 %v14283_v46  ;;  %v14295_v46 = vld [vmem:[#allocation489_spill] sm:$0xff] }
 0x3fe   : > { %5283 = vmatpush1.bf16.msra.mxu0 %v14284_v42  ;;  %v14296_v42 = vld [vmem:[#allocation490_spill] sm:$0xff] }
 0x3ff   : > { %5535 = vmatpush1.bf16.msra.mxu1 %v14285_v61  ;;  %5284 = vmatprep.subr.bf16.mxu0 %v14286_v19  ;;  %v14301_v19 = vld [vmem:[#allocation6_spill] sm:$0xff] }
 0x400   : > { %5536 = vmatprep.subr.bf16.mxu1 %v14287_v45  ;;  %v11799_v45 = vmax.f32 %v14301_v19, 1e-07 }
 0x402   : > { %5285 = vmatpush1.bf16.msra.mxu0 %v14288_v44  ;;  %vm5993_vm14 = vcmp.eq.f32.partialorder %v11799_v45, inf }
 0x403   : > { %5537 = vmatpush1.bf16.msra.mxu1 %v14289_v9  ;;  %5286 = vmatprep.subr.bf16.mxu0 %v14290_v4  ;;  %v14302_v4 = vld [vmem:[#allocation7_spill] sm:$0xff] }
 0x404   : > { %5538 = vmatprep.subr.bf16.mxu1 %v14291_v23  ;;  %v11804_v23 = vmax.f32 %v14302_v4, 1e-07 }
 0x406   : > { %5287 = vmatpush1.bf16.msra.mxu0 %v10851_v48  ;;  %v11774_v48 = vmax.f32 %v11253_v25, 1e-07  ;;  %v14299_v25 = vld [vmem:[#allocation4_spill] sm:$0xff] }
 0x407   : > { %5539 = vmatpush1.bf16.msra.mxu1 %v10855_v38  ;;  %5288 = vmatprep.subr.bf16.mxu0 %v10857_v16  ;;  %v11762_v16 = vmax.f32 %v11244_v33, 1e-07  ;;  %v11769_v38 = vmax.f32 %v11250_v52, 1e-07  ;;  %v14298_v52 = vld [vmem:[#allocation3_spill] sm:$0xff] }
 0x408   : > { %5540 = vmatprep.subr.bf16.mxu1 %v10860_v12  ;;  %v11765_v12 = vmax.f32 %v11248_v32, 1e-07  ;;  %v11784_v32 = vmax.f32 %v14298_v52, 1e-07  ;;  %vm5958_vm5 = vcmp.eq.f32.partialorder %v11774_v48, inf  ;;  %vm5960_vm8 = vcmp.eq.f32.partialorder %v11774_v48, 0.0 }
 0x409   : > { %7345 = vrsqrt.f32 %v11762_v16  ;;  %vm5937_vm0 = vcmp.eq.f32.partialorder %v11762_v16, inf  ;;  %vm5939_vm1 = vcmp.eq.f32.partialorder %v11762_v16, 0.0  ;;  %vm5944_vm4 = vcmp.eq.f32.partialorder %v11769_v38, inf }
 0x40a   : > { %5289 = vmatpush1.bf16.msra.mxu0 %v10875_v30  ;;  %7347 = vlog2.f32 %v11762_v16  ;;  %v14297_v30 = vld [vmem:[#allocation2_spill] sm:$0xff]  ;;  %vm5951_vm2 = vcmp.eq.f32.partialorder %v11765_v12, inf  ;;  %vm5953_vm3 = vcmp.eq.f32.partialorder %v11765_v12, 0.0  ;;  %v5954_v52 = vand.u32 2147483648, %v11765_v12 }
 0x40b   : > { %5541 = vmatpush1.bf16.msra.mxu1 %v14292_v8  ;;  %5290 = vmatprep.subr.bf16.mxu0 %v14293_v7  ;;  %7349 = vrsqrt.f32 %v11765_v12  ;;  %v11779_v33 = vmax.f32 %v14297_v30, 1e-07  ;;  %vm5946_vm7 = vcmp.eq.f32.partialorder %v11769_v38, 0.0  ;;  %vm5979_vm10 = vcmp.eq.f32.partialorder %v11784_v32, inf }
 0x40c   : > { %5542 = vmatprep.subr.bf16.mxu1 %v14294_v58  ;;  %7351 = vlog2.f32 %v11765_v12  ;;  %v5940_v58 = vand.u32 2147483648, %v11762_v16  ;;  %vm5981_vm13 = vcmp.eq.f32.partialorder %v11784_v32, 0.0  ;;  %v14307_v27 = vand.u32 2147483648, %v11769_v38 }
 0x40d   : > { %7353 = vrsqrt.f32 %v11769_v38  ;;  %vm5965_vm6 = vcmp.eq.f32.partialorder %v11779_v33, inf  ;;  %vm5967_vm9 = vcmp.eq.f32.partialorder %v11779_v33, 0.0 }
 0x40e   : > { %5291 = vmatpush1.bf16.msra.mxu0 %v14295_v46  ;;  %7355 = vlog2.f32 %v11769_v38  ;;  %v11815_v46 = vmax.f32 %v11305_v20, 1e-07  ;;  %v11827_v20 = vmax.f32 %v11307_v21, 1e-07  ;;  %v11839_v21 = vmax.f32 %v11315_v24, 1e-07 }
 0x40f   : > { %5543 = vmatpush1.bf16.msra.mxu1 %v14296_v42  ;;  %7357 = vrsqrt.f32 %v11774_v48 }
 0x410   : > { %7359 = vlog2.f32 %v11774_v48 }
 0x411   : > { %5293 = vmatmul.mubr.bf16.vlgmr.msra.gmra.mrb[36].mxu0 %v11351_v28  ;;  %7361 = vrsqrt.f32 %v11779_v33 }
 0x412   : > { %5545 = vmatmul.mubr.bf16.vlgmr.msra.gmra.mrb[36].mxu1 %v11351_v28  ;;  %5302 = vmatprep.mubr.bf16.mxu0 %v11370_v0  ;;  %v11789_v28 = vmax.f32 %v14299_v25, 1e-07  ;;  %7363 = vlog2.f32 %v11779_v33 }
 0x413   : > { %5554 = vmatprep.mubr.bf16.mxu1 %v11370_v0  ;;  %v7346_v0 = vpop.eup %7345  ;;  %7365 = vrsqrt.f32 %v11784_v32 }
 0x414   : > { %7367 = vlog2.f32 %v11784_v32  ;;  %v5936_v30 = vmul.f32 %v7346_v0, %v11762_v16  ;;  %vm5972_vm11 = vcmp.eq.f32.partialorder %v11789_v28, inf  ;;  %vm5974_vm15 = vcmp.eq.f32.partialorder %v11789_v28, 0.0 }
 0x415   : > { %7369 = vrsqrt.f32 %v11789_v28 }
 0x416   : > { %7371 = vlog2.f32 %v11789_v28 }
 0x419   : > { %5303 = vmatmul.mubr.bf16.gmra.mrb[40].mxu0 %v11403_v56 }
 0x41a   : > { %5555 = vmatmul.mubr.bf16.gmra.mrb[40].mxu1 %v11403_v56  ;;  %5312 = vmatprep.mubr.bf16.mxu0 %v11405_v6  ;;  %v14300_v56 = vld [vmem:[#allocation5_spill] sm:$0xff] }
 0x41b   : > { %5564 = vmatprep.mubr.bf16.mxu1 %v11405_v6  ;;  %v11794_v6 = vmax.f32 %v14300_v56, 1e-07 }
 0x41d   : > { %7373 = vrsqrt.f32 %v11794_v6  ;;  %vm5986_vm12 = vcmp.eq.f32.partialorder %v11794_v6, inf }
 0x41e   : > { %7375 = vlog2.f32 %v11794_v6 }
 0x41f   : > { %7377 = vrsqrt.f32 %v11799_v45 }
 0x421   : > { %5313 = vmatmul.mubr.bf16.gmra.mrb[44].mxu0 %v11419_v63 }
 0x422   : > { %5565 = vmatmul.mubr.bf16.gmra.mrb[44].mxu1 %v11419_v63  ;;  %v7348_v63 = vpop.eup %7347  ;;  %7379 = vlog2.f32 %v11799_v45 }
 0x423   : > { %v7350_v61 = vpop.eup %7349  ;;  %7381 = vrsqrt.f32 %v11804_v23  ;;  %v11850_v37 = vmul.f32 0.6931472, %v7348_v63  ;;  %v11868_v63 = vmax.f32 %v11338_v5, 1e-07 }
 0x424   : > { %v7352_v44 = vpop.eup %7351  ;;  %v5950_v0 = vmul.f32 %v7350_v61, %v11765_v12  ;;  %7383 = vlog2.f32 %v11804_v23  ;;  %v5938_v61 = vsel %vm5937_vm0, %v11762_v16, %v5936_v30  ;;  %v11888_v16 = vmax.f32 %v11346_v47, 1e-07 }
 0x425   : > { %v7354_v9 = vpop.eup %7353  ;;  %7385 = vrsqrt.f32 %v11815_v46  ;;  %v11872_v15 = vsel %vm5939_vm1, %v5940_v58, %v5938_v61  ;;  %v11882_v2 = vmul.f32 0.6931472, %v7352_v44  ;;  %vm5988_vm0 = vcmp.eq.f32.partialorder %v11794_v6, 0.0 }
 0x426   : > { %v11806_v8 = vpop.eup %7355  ;;  %7387 = vlog2.f32 %v11815_v46  ;;  %v5952_v34 = vsel %vm5951_vm2, %v11765_v12, %v5950_v0  ;;  %v5943_v4 = vmul.f32 %v7354_v9, %v11769_v38  ;;  %v11878_v9 = vmax.f32 %v11340_v51, 1e-07  ;;  %14303 = vst [vmem:[#allocation21_spill] sm:$0xff] %v11888_v16 }
 0x427   : > { %v7358_v7 = vpop.eup %7357  ;;  %7389 = vrsqrt.f32 %v11827_v20  ;;  %v11892_v58 = vsel %vm5953_vm3, %v5954_v52, %v5952_v34  ;;  %v11898_v51 = vmax.f32 %v11353_v36, 1e-07  ;;  %v11909_v34 = vmax.f32 %v11355_v31, 1e-07 }
 0x428   : > { %v11817_v42 = vpop.eup %7359  ;;  %7391 = vlog2.f32 %v11827_v20  ;;  %v5957_v3 = vmul.f32 %v7358_v7, %v11774_v48  ;;  %v5945_v47 = vsel %vm5944_vm4, %v11769_v38, %v5943_v4  ;;  %vm5995_vm1 = vcmp.eq.f32.partialorder %v11799_v45, 0.0 }
 0x429   : > { %v7362_v25 = vpop.eup %7361  ;;  %7393 = vrsqrt.f32 %v11839_v21  ;;  %14304 = vst [vmem:[#allocation22_spill] sm:$0xff] %v11898_v51  ;;  %14305 = vst [vmem:[#allocation23_spill] sm:$0xff] %v11909_v34  ;;  %v11933_v18 = vsel %vm5946_vm7, %v14307_v27, %v5945_v47  ;;  %v11947_v39 = vmul.f32 0.6931472, %v11817_v42  ;;  %vm6000_vm2 = vcmp.eq.f32.partialorder %v11815_v46, inf }
 0x42a   : > { %v11829_v19 = vpop.eup %7363  ;;  %v5964_v5 = vmul.f32 %v7362_v25, %v11779_v33  ;;  %7395 = vlog2.f32 %v11839_v21  ;;  %v11904_v25 = vmul.f32 0.6931472, %v11806_v8  ;;  %v5959_v36 = vsel %vm5958_vm5, %v11774_v48, %v5957_v3 }
 0x42b   : > { %v7366_v43 = vpop.eup %7365  ;;  %7397 = vrsqrt.f32 %v11856_v14  ;;  %v11919_v8 = vmax.f32 %v11367_v11, 1e-07  ;;  %v5996_v3 = vand.u32 2147483648, %v11799_v45  ;;  %v11950_v27 = vmul.f32 0.6931472, %v11829_v19 }
 0x42c   : > { %v11841_v55 = vpop.eup %7367  ;;  %7399 = vrsqrt.f32 %v11868_v63  ;;  %v5978_v52 = vmul.f32 %v7366_v43, %v11784_v32  ;;  %v5966_v31 = vsel %vm5965_vm6, %v11779_v33, %v5964_v5  ;;  %vm6007_vm3 = vcmp.eq.f32.partialorder %v11804_v23, inf }
 0x42d   : > { %v7370_v56 = vpop.eup %7369  ;;  %7401 = vrsqrt.f32 %v11878_v9  ;;  %14306 = vst [vmem:[#allocation24_spill] sm:$0xff] %v11919_v8  ;;  %v11967_v19 = vmul.f32 0.6931472, %v11841_v55  ;;  %vm6002_vm4 = vcmp.eq.f32.partialorder %v11815_v46, 0.0  ;;  %vm6014_vm5 = vcmp.eq.f32.partialorder %v11827_v20, inf }
 0x42e   : > { %v11858_v30 = vpop.eup %7371  ;;  %v5971_v61 = vmul.f32 %v7370_v56, %v11789_v28  ;;  %7403 = vrsqrt.f32 %v11888_v16  ;;  %v14308_v56 = vand.u32 2147483648, %v11774_v48  ;;  %v5980_v48 = vsel %vm5979_vm10, %v11784_v32, %v5978_v52 }
 0x42f   : > { %v7374_v24 = vpop.eup %7373  ;;  %7405 = vrsqrt.f32 %v11898_v51  ;;  %14310 = vst [vmem:[#allocation25_spill] sm:$0xff] %v11967_v19  ;;  %v11993_v47 = vmul.f32 0.6931472, %v11858_v30  ;;  %vm6021_vm6 = vcmp.eq.f32.partialorder %v11839_v21, inf  ;;  %vm6009_vm7 = vcmp.eq.f32.partialorder %v11804_v23, 0.0 }
 0x430   : > { %v11880_v0 = vpop.eup %7375  ;;  %v5985_v11 = vmul.f32 %v7374_v24, %v11794_v6  ;;  %v11944_v22 = vsel %vm5960_vm8, %v14308_v56, %v5959_v36  ;;  %7407 = vrsqrt.f32 %v11909_v34  ;;  %v14309_v24 = vand.u32 2147483648, %v11779_v33 }
 0x431   : > { %v7378_v7 = vpop.eup %7377  ;;  %7409 = vrsqrt.f32 %v11919_v8  ;;  %v5973_v36 = vsel %vm5972_vm11, %v11789_v28, %v5971_v61  ;;  %v14311_v61 = vand.u32 2147483648, %v11784_v32  ;;  %14313 = vst [vmem:[#allocation27_spill] sm:$0xff] %v11993_v47  ;;  %v12006_v49 = vmul.f32 0.6931472, %v11880_v0 }
 0x432   : > { %v7380_v44 = vpop.eup %7379  ;;  %v5992_v57 = vmul.f32 %v7378_v7, %v11799_v45  ;;  %v11957_v7 = vsel %vm5967_vm9, %v14309_v24, %v5966_v31  ;;  %7411 = vlog2.f32 %v11868_v63  ;;  %v5987_v52 = vsel %vm5986_vm12, %v11794_v6, %v5985_v11 }
 0x433   : > { %v7382_v12 = vpop.eup %7381  ;;  %7413 = vlog2.f32 %v11856_v14  ;;  %v11990_v24 = vsel %vm5981_vm13, %v14311_v61, %v5980_v48  ;;  %14315 = vst [vmem:[#allocation28_spill] sm:$0xff] %v12006_v49  ;;  %v14316_v48 = vand.u32 2147483648, %v11794_v6  ;;  %v5675_v32 = vmul.f32 %v11669_v29, %v11669_v29 }
 0x434   : > { %v11921_v4 = vpop.eup %7383  ;;  %v5994_v31 = vsel %vm5993_vm14, %v11799_v45, %v5992_v57  ;;  %14312 = vst [vmem:[#allocation26_spill] sm:$0xff] %v11990_v24  ;;  %7415 = vlog2.f32 %v11878_v9  ;;  %v5677_v11 = vmul.f32 %v11671_v53, %v11671_v53  ;;  %vm6016_vm8 = vcmp.eq.f32.partialorder %v11827_v20, 0.0 }
 0x435   : > { %v7386_v43 = vpop.eup %7385  ;;  %7417 = vlog2.f32 %v11888_v16  ;;  %v12016_v61 = vsel %vm5988_vm0, %v14316_v48, %v5987_v52  ;;  %v5672_v52 = vmul.f32 %v11663_v54, %v11663_v54  ;;  %v5676_v54 = vmul.f32 %v11675_v35, %v11675_v35 }
 0x436   : > { %v11938_v5 = vpop.eup %7387  ;;  %v5999_v55 = vmul.f32 %v7386_v43, %v11815_v46  ;;  %v14314_v43 = vand.u32 2147483648, %v11789_v28  ;;  %14317 = vst [vmem:[#allocation29_spill] sm:$0xff] %v12016_v61  ;;  %v12020_v28 = vsel %vm5995_vm1, %v5996_v3, %v5994_v31  ;;  %7419 = vlog2.f32 %v11909_v34 }
 0x437   : > { %v7390_v38 = vpop.eup %7389  ;;  %14318 = vst [vmem:[#allocation30_spill] sm:$0xff] %v12020_v28  ;;  %7421 = vlog2.f32 %v11898_v51  ;;  %v5671_v3 = vmul.f32 %v11657_v26, %v11657_v26  ;;  %v5674_v31 = vmul.f32 %v11667_v59, %v11667_v59  ;;  %v5678_v59 = vmul.f32 %v11677_v40, %v11677_v40 }
 0x438   : > { %v11964_v42 = vpop.eup %7391  ;;  %v12003_v19 = vsel %vm5974_vm15, %v14314_v43, %v5973_v36  ;;  %v12022_v36 = vmul.f32 0.6931472, %v7380_v44  ;;  %v6006_v43 = vmul.f32 %v7382_v12, %v11804_v23  ;;  %v6001_v6 = vsel %vm6000_vm2, %v11815_v46, %v5999_v55 }
 0x439   : > { %v11974_v33 = vpop.eup %7393  ;;  %v12034_v45 = vmul.f32 %v7390_v38, %v11827_v20  ;;  %v5673_v12 = vmul.f32 %v11661_v1, %v11661_v1  ;;  %7423 = vlog2.f32 %v11919_v8  ;;  %vm6023_vm0 = vcmp.eq.f32.partialorder %v11839_v21, 0.0 }
 0x43a   : > { %v11984_v56 = vpop.eup %7395  ;;  %14319 = vst [vmem:[#allocation31_spill] sm:$0xff] %v12022_v36 }
 0x43b   : > { %v11997_v57 = vpop.eup %7397 }
 0x43c   : > { %v12010_v30 = vpop.eup %7399 }
 0x43d   : > { %v12026_v0 = vpop.eup %7401 }
 0x43e   : > { %14320 = vst [vmem:[#allocation32_spill] sm:$0xff] %v12026_v0  ;;  %v12037_v44 = vpop.eup %7403 }
 0x43f   : > { %14321 = vst [vmem:[#allocation33_spill] sm:$0xff] %v12037_v44  ;;  %v12048_v48 = vpop.eup %7405 }
 0x440   : > { %14322 = vst [vmem:[#allocation34_spill] sm:$0xff] %v12048_v48  ;;  %v12054_v24 = vpop.eup %7407 }
 0x441   : > { %14323 = vst [vmem:[#allocation35_spill] sm:$0xff] %v12054_v24  ;;  %v12061_v34 = vpop.eup %7409 }
 0x442   : > { %14324 = vst [vmem:[#allocation36_spill] sm:$0xff] %v12061_v34  ;;  %v12063_v16 = vpop.eup %7411 }
 0x443   : > { %14325 = vst [vmem:[#allocation37_spill] sm:$0xff] %v12063_v16  ;;  %v12067_v47 = vpop.eup %7413 }
 0x444   : > { %14326 = vst [vmem:[#allocation38_spill] sm:$0xff] %v12067_v47 }
 0x4e4   : > { %v5294_v38 = vpop.f32.mrb[36].mxu0 }
 0x4e5   : > { %v5546_v55 = vpop.f32.mrb[36].mxu1  ;;  %v5695_v26 = vmul.f32 %v5294_v38, %v5294_v38  ;;  %v5296_v61 = vpop.f32.mrb[37].mxu0 }
 0x4e6   : > { %v5697_v28 = vmul.f32 %v5546_v55, %v5546_v55  ;;  %v5548_v1 = vpop.f32.mrb[37].mxu1  ;;  %v5696_v48 = vmul.f32 %v5296_v61, %v5296_v61  ;;  %v5298_v29 = vpop.f32.mrb[38].mxu0 }
 0x4e7   : > { %v5698_v51 = vmul.f32 %v5548_v1, %v5548_v1  ;;  %v5550_v36 = vpop.f32.mrb[38].mxu1  ;;  %v5719_v53 = vadd.f32 %v5695_v26, %v5671_v3  ;;  %v5699_v55 = vmul.f32 %v5298_v29, %v5298_v29  ;;  %v5300_v44 = vpop.f32.mrb[39].mxu0 }
 0x4e8   : > { %v5721_v38 = vadd.f32 %v5697_v28, %v5673_v12  ;;  %v5701_v49 = vmul.f32 %v5550_v36, %v5550_v36  ;;  %v5552_v24 = vpop.f32.mrb[39].mxu1  ;;  %v5720_v35 = vadd.f32 %v5696_v48, %v5672_v52  ;;  %v5700_v61 = vmul.f32 %v5300_v44, %v5300_v44  ;;  %v12075_v12 = vpop.eup %7415 }
 0x4e9   : > { %v5722_v40 = vadd.f32 %v5698_v51, %v5674_v31  ;;  %v5702_v1 = vmul.f32 %v5552_v24, %v5552_v24  ;;  %v12069_v0 = vmax.f32 %v5719_v53, 1e-07  ;;  %v5723_v28 = vadd.f32 %v5699_v55, %v5675_v32  ;;  %14327 = vst [vmem:[#allocation39_spill] sm:$0xff] %v12075_v12  ;;  %v12082_v51 = vpop.eup %7417 }
 0x4ea   : > { %v12071_v3 = vmax.f32 %v5721_v38, 1e-07  ;;  %v12073_v36 = vadd.f32 %v5701_v49, %v5677_v11  ;;  %v12077_v26 = vmax.f32 %v5720_v35, 1e-07  ;;  %v5724_v29 = vadd.f32 %v5700_v61, %v5676_v54  ;;  %14328 = vst [vmem:[#allocation40_spill] sm:$0xff] %v12082_v51  ;;  %v12091_v11 = vpop.eup %7419 }
 0x4eb   : > { %v12079_v34 = vadd.f32 %v5702_v1, %v5678_v59  ;;  %v6008_v24 = vsel %vm6007_vm3, %v11804_v23, %v6006_v43  ;;  %v6020_v32 = vmul.f32 %v11974_v33, %v11839_v21  ;;  %7425 = vrsqrt.f32 %v12069_v0  ;;  %14329 = vst [vmem:[#allocation41_spill] sm:$0xff] %v12091_v11  ;;  %v12106_v54 = vpop.eup %7421 }
 0x4ec   : > { %v12094_v44 = vmul.f32 0.6931472, %v11921_v4  ;;  %v14331_v52 = vand.u32 2147483648, %v11815_v46  ;;  %v12103_v43 = vmul.f32 0.6931472, %v11938_v5  ;;  %7427 = vlog2.f32 %v12069_v0  ;;  %v5304_v33 = vpop.f32.mrb[40].mxu0 }
 0x4ed   : > { %v5556_v48 = vpop.f32.mrb[40].mxu1  ;;  %14334 = vst [vmem:[#allocation45_spill] sm:$0xff] %v12106_v54  ;;  %v6015_v4 = vsel %vm6014_vm5, %v11827_v20, %v12034_v45  ;;  %7429 = vrsqrt.f32 %v12071_v3  ;;  %v12114_v46 = vmax.f32 %v5722_v40, 1e-07  ;;  %v6183_v53 = vadd.f32 %v12077_v26, %v12069_v0 }
 0x4ee   : > { %14330 = vst [vmem:[#allocation42_spill] sm:$0xff] %v12094_v44  ;;  %v12100_v31 = vsel %vm6002_vm4, %v14331_v52, %v6001_v6  ;;  %14333 = vst [vmem:[#allocation44_spill] sm:$0xff] %v12103_v43  ;;  %v12116_v6 = vpop.f32.mrb[41].mxu0  ;;  %v12118_v5 = vpop.f32.mrb[41].mxu1  ;;  %7431 = vlog2.f32 %v12071_v3  ;;  %v12128_v45 = vmul.f32 0.6931472, %v11964_v42  ;;  %v12136_v40 = vsel %vm6021_vm6, %v11839_v21, %v6020_v32 }
 0x4ef   : > { %14332 = vst [vmem:[#allocation43_spill] sm:$0xff] %v12100_v31  ;;  %v12123_v38 = vpop.f32.mrb[42].mxu0  ;;  %v12125_v55 = vpop.f32.mrb[42].mxu1  ;;  %v12131_v35 = vmul.f32 0.6931472, %v11984_v56  ;;  %7433 = vrsqrt.f32 %v12077_v26  ;;  %v6184_v32 = vadd.f32 %v6183_v53, %v12071_v3  ;;  %v5679_v53 = vmul.f32 %v11683_v50, %v11683_v50 }
 0x4f0   : > { %14335 = vst [vmem:[#allocation46_spill] sm:$0xff] %v12128_v45  ;;  %v12139_v61 = vmax.f32 %v11391_v60, 1e-07  ;;  %v12142_v1 = vmax.f32 %v5723_v28, 1e-07  ;;  %v12144_v52 = vpop.f32.mrb[43].mxu0  ;;  %7435 = vlog2.f32 %v12077_v26  ;;  %v5705_v54 = vmul.f32 %v5556_v48, %v5556_v48 }
 0x4f1   : > { %14336 = vst [vmem:[#allocation47_spill] sm:$0xff] %v12131_v35  ;;  %v12147_v42 = vmax.f32 %v11393_v17, 1e-07  ;;  %v12150_v56 = vmax.f32 %v11397_v62, 1e-07  ;;  %v12154_v59 = vpop.f32.mrb[43].mxu1  ;;  %7437 = vrsqrt.f32 %v12114_v46  ;;  %v6185_v31 = vadd.f32 %v6184_v32, %v12114_v46 }
 0x4f2   : > { %v12157_v60 = vmax.f32 %v11399_v10, 1e-07  ;;  %v14337_v28 = vand.u32 2147483648, %v11804_v23  ;;  %v14339_v62 = vand.u32 2147483648, %v11827_v20  ;;  %v5681_v10 = vmul.f32 %v11687_v41, %v11687_v41  ;;  %v12183_v20 = vpop.eup %7423 }
 0x4f3   : > { %7439 = vlog2.f32 %v12114_v46  ;;  %vm5769_vm9 = vcmp.eq.f32.partialorder %v12069_v0, inf  ;;  %vm5771_vm10 = vcmp.eq.f32.partialorder %v12069_v0, 0.0  ;;  %v12181_v23 = vmax.f32 %v5724_v29, 1e-07  ;;  %14341 = vst [vmem:[#allocation50_spill] sm:$0xff] %v12183_v20 }
 0x4f4   : > { %v12164_v17 = vsel %vm6009_vm7, %v14337_v28, %v6008_v24  ;;  %v12170_v49 = vsel %vm6016_vm8, %v14339_v62, %v6015_v4  ;;  %7441 = vrsqrt.f32 %v12142_v1  ;;  %v5772_v24 = vand.u32 2147483648, %v12069_v0  ;;  %v12189_v41 = vpop.f32.mrb[44].mxu0 }
 0x4f5   : > { %14338 = vst [vmem:[#allocation48_spill] sm:$0xff] %v12164_v17  ;;  %14340 = vst [vmem:[#allocation49_spill] sm:$0xff] %v12170_v49  ;;  %vm5783_vm11 = vcmp.eq.f32.partialorder %v12071_v3, inf  ;;  %v6186_v50 = vadd.f32 %v6185_v31, %v12142_v1  ;;  %7443 = vlog2.f32 %v12142_v1  ;;  %v12191_v4 = vpop.f32.mrb[44].mxu1  ;;  %v7426_v32 = vpop.eup %7425  ;;  %vm5785_vm12 = vcmp.eq.f32.partialorder %v12071_v3, 0.0 }
 0x4f6   : > { %v5786_v29 = vand.u32 2147483648, %v12071_v3  ;;  %vm5776_vm13 = vcmp.eq.f32.partialorder %v12077_v26, inf  ;;  %v5703_v28 = vmul.f32 %v5304_v33, %v5304_v33  ;;  %v12196_v62 = vpop.f32.mrb[45].mxu0  ;;  %v12198_v49 = vpop.f32.mrb[45].mxu1  ;;  %v5768_v31 = vmul.f32 %v7426_v32, %v12069_v0 }
 0x4f7   : > { %v7428_v17 = vpop.eup %7427  ;;  %vm5778_vm14 = vcmp.eq.f32.partialorder %v12077_v26, 0.0  ;;  %v12203_v20 = vadd.f32 %v6186_v50, %v12181_v23  ;;  %v12205_v11 = vpop.f32.mrb[46].mxu0  ;;  %v5779_v33 = vand.u32 2147483648, %v12077_v26  ;;  %7445 = vrsqrt.f32 %v12181_v23 }
 0x4f8   : > { %v12207_v51 = vpop.f32.mrb[46].mxu1  ;;  %v7430_v8 = vpop.eup %7429  ;;  %v6216_v12 = vmul.f32 0.6931472, %v7428_v17  ;;  %v12211_v35 = vadd.f32 %v5703_v28, %v5679_v53  ;;  %v5770_v48 = vsel %vm5769_vm9, %v12069_v0, %v5768_v31  ;;  %vm5790_vm15 = vcmp.eq.f32.partialorder %v12114_v46, inf }
 0x4f9   : > { %14342 = vst [vmem:[#allocation51_spill] sm:$0xff] %v12203_v20  ;;  %v12213_v47 = vpop.f32.mrb[47].mxu0  ;;  %v12215_v32 = vpop.f32.mrb[47].mxu1  ;;  %v5782_v50 = vmul.f32 %v7430_v8, %v12071_v3  ;;  %v12222_v17 = vadd.f32 %v5705_v54, %v5681_v10  ;;  %v5773_v53 = vsel %vm5771_vm10, %v5772_v24, %v5770_v48  ;;  %vm5792_vm1 = vcmp.eq.f32.partialorder %v12114_v46, 0.0 }
 0x4fa   : > { %v7432_v45 = vpop.eup %7431  ;;  %v6311_v28 = vsub.f32 %v6216_v12, %v11850_v37  ;;  %v6103_v31 = vsub.f32 %v5773_v53, %v11872_v15  ;;  %v5793_v10 = vand.u32 2147483648, %v12114_v46  ;;  %vm5797_vm2 = vcmp.eq.f32.partialorder %v12142_v1, inf }
 0x4fb   : > { %v7434_v20 = vpop.eup %7433  ;;  %v12228_v44 = vmul.f32 0.6931472, %v7432_v45  ;;  %v5784_v8 = vsel %vm5783_vm11, %v12071_v3, %v5782_v50  ;;  %v5800_v48 = vand.u32 2147483648, %v12142_v1  ;;  %vm5799_vm3 = vcmp.eq.f32.partialorder %v12142_v1, 0.0 }
 0x4fc   : > { %v7436_v16 = vpop.eup %7435  ;;  %v5775_v54 = vmul.f32 %v7434_v20, %v12077_v26  ;;  %v5787_v0 = vsel %vm5785_vm12, %v5786_v29, %v5784_v8  ;;  %v6335_v29 = vand.u32 2147483647, %v6311_v28  ;;  %7447 = vlog2.f32 %v12139_v61 }
 0x4fd   : > { %v7438_v43 = vpop.eup %7437  ;;  %v6218_v12 = vmul.f32 0.6931472, %v7436_v16  ;;  %v12243_v15 = vsub.f32 %v5787_v0, %v11892_v58  ;;  %v6127_v58 = vmul.f32 %v6103_v31, %v6103_v31  ;;  %7449 = vlog2.f32 %v12150_v56 }
 0x4fe   : > { %v7440_v45 = vpop.eup %7439  ;;  %v5777_v20 = vsel %vm5776_vm13, %v12077_v26, %v5775_v54  ;;  %v5789_v24 = vmul.f32 %v7438_v43, %v12114_v46  ;;  %vm5804_vm4 = vcmp.eq.f32.partialorder %v12181_v23, inf  ;;  %vm5806_vm5 = vcmp.eq.f32.partialorder %v12181_v23, 0.0 }
 0x4ff   : > { %v7442_v3 = vpop.eup %7441  ;;  %v5780_v50 = vsel %vm5778_vm14, %v5779_v33, %v5777_v20  ;;  %v6312_v16 = vsub.f32 %v6218_v12, %v11904_v25  ;;  %v12253_v53 = vmul.f32 0.6931472, %v7440_v45  ;;  %v5704_v20 = vmul.f32 %v12116_v6, %v12116_v6 }
 0x500   : > { %v7444_v8 = vpop.eup %7443  ;;  %v6104_v0 = vsub.f32 %v5780_v50, %v11933_v18  ;;  %v5791_v54 = vsel %vm5790_vm15, %v12114_v46, %v5789_v24  ;;  %v5796_v43 = vmul.f32 %v7442_v3, %v12142_v1  ;;  %v5680_v6 = vmul.f32 %v11689_v13, %v11689_v13 }
 0x501   : > { %v6336_v37 = vand.u32 2147483647, %v6312_v16  ;;  %v5794_v28 = vsel %vm5792_vm1, %v5793_v10, %v5791_v54  ;;  %v6314_v26 = vsub.f32 %v12253_v53, %v11947_v39  ;;  %v12264_v25 = vmul.f32 0.6931472, %v7444_v8  ;;  %v7446_v12 = vpop.eup %7445  ;;  %v14347_v16 = vld [vmem:[#allocation9_spill] sm:$0xff] }
 0x502   : > { %v6128_v33 = vmul.f32 %v6104_v0, %v6104_v0  ;;  %v12267_v31 = vsub.f32 %v5794_v28, %v11944_v22  ;;  %v5798_v18 = vsel %vm5797_vm2, %v12142_v1, %v5796_v43  ;;  %v14344_v1 = vand.u32 2147483648, %v11839_v21  ;;  %v14348_v0 = vld [vmem:[#allocation10_spill] sm:$0xff]  ;;  %v14369_v53 = vld [vmem:[#allocation25_spill] sm:$0xff] }
 0x503   : > { %v12273_v45 = vadd.f32 %v6336_v37, %v6335_v29  ;;  %v5801_v46 = vsel %vm5799_vm3, %v5800_v48, %v5798_v18  ;;  %v6315_v10 = vsub.f32 %v12264_v25, %v11950_v27  ;;  %v12294_v48 = vmul.f32 %v11997_v57, %v11856_v14  ;;  %v14346_v29 = vld [vmem:[#allocation8_spill] sm:$0xff] }
 0x504   : > { %v12279_v24 = vadd.f32 %v6128_v33, %v6127_v58  ;;  %v12282_v22 = vsub.f32 %v5801_v46, %v11957_v7  ;;  %v12290_v37 = vsel %vm6023_vm0, %v14344_v1, %v12136_v40  ;;  %v5803_v3 = vmul.f32 %v7446_v12, %v12181_v23 }
 0x505   : > { %14345 = vst [vmem:[#allocation53_spill] sm:$0xff] %v12290_v37  ;;  %v5807_v7 = vand.u32 2147483648, %v12181_v23  ;;  %7451 = vlog2.f32 %v12181_v23  ;;  %v5728_v40 = vadd.f32 %v5704_v20, %v5680_v6  ;;  %v5706_v57 = vmul.f32 %v12118_v5, %v12118_v5  ;;  %v14351_v20 = vld [vmem:[#allocation12_spill] sm:$0xff]  ;;  %v14352_v6 = vld [vmem:[#allocation13_spill] sm:$0xff] }
 0x506   : > { %14343 = vst [vmem:[#allocation52_spill] sm:$0xff] %v12279_v24  ;;  %v5805_v21 = vsel %vm5804_vm4, %v12181_v23, %v5803_v3  ;;  %v5707_v13 = vmul.f32 %v12123_v38, %v12123_v38  ;;  %v5682_v50 = vmul.f32 %v14346_v29, %v14346_v29  ;;  %v5683_v8 = vmul.f32 %v14347_v16, %v14347_v16  ;;  %v14350_v38 = vld [vmem:[#allocation11_spill] sm:$0xff]  ;;  %v14353_v3 = vld [vmem:[#allocation14_spill] sm:$0xff] }
 0x507   : > { %v5808_v58 = vsel %vm5806_vm5, %v5807_v7, %v5805_v21  ;;  %7453 = vlog2.f32 %v12147_v42  ;;  %v5685_v54 = vmul.f32 %v14348_v0, %v14348_v0  ;;  %v12317_v23 = vmax.f32 %v12073_v36, 1e-07  ;;  %v14354_v21 = vld [vmem:[#allocation15_spill] sm:$0xff] }
 0x508   : > { %v12320_v5 = vsub.f32 %v5808_v58, %v12003_v19  ;;  %7455 = vlog2.f32 %v12157_v60  ;;  %v5684_v43 = vmul.f32 %v14350_v38, %v14350_v38  ;;  %v12326_v28 = vmax.f32 %v12079_v34, 1e-07  ;;  %v14356_v38 = vld [vmem:[#allocation17_spill] sm:$0xff] }
 0x509   : > { %v5730_v33 = vadd.f32 %v5706_v57, %v5682_v50  ;;  %v5731_v18 = vadd.f32 %v5707_v13, %v5683_v8  ;;  %v5709_v12 = vmul.f32 %v12125_v55, %v12125_v55  ;;  %v5708_v36 = vmul.f32 %v12144_v52, %v12144_v52 }
 0x50a   : > { %14349 = vst [vmem:[#allocation54_spill] sm:$0xff] %v12320_v5  ;;  %v5710_v19 = vmul.f32 %v12154_v59, %v12154_v59  ;;  %v5711_v46 = vmul.f32 %v12189_v41, %v12189_v41  ;;  %v5686_v1 = vmul.f32 %v14351_v20, %v14351_v20  ;;  %v5687_v34 = vmul.f32 %v14352_v6, %v14352_v6  ;;  %v12348_v41 = vpop.eup %7447  ;;  %v14380_v5 = vld [vmem:[#allocation46_spill] sm:$0xff] }
 0x50b   : > { %v5689_v7 = vmul.f32 %v14353_v3, %v14353_v3  ;;  %7457 = vrsqrt.f32 %v12139_v61  ;;  %v12345_v55 = vmax.f32 %v12211_v35, 1e-07  ;;  %v5733_v59 = vadd.f32 %v5709_v12, %v5685_v54  ;;  %v12356_v16 = vpop.eup %7449  ;;  %v14355_v35 = vld [vmem:[#allocation16_spill] sm:$0xff]  ;;  %v14357_v12 = vld [vmem:[#allocation18_spill] sm:$0xff] }
 0x50c   : > { %7459 = vlog2.f32 %v12317_v23  ;;  %v5732_v52 = vadd.f32 %v5708_v36, %v5684_v43  ;;  %vm6035_vm6 = vcmp.eq.f32.partialorder %v11856_v14, inf  ;;  %v5688_v57 = vmul.f32 %v14354_v21, %v14354_v21 }
 0x50d   : > { %v5734_v13 = vadd.f32 %v5710_v19, %v5686_v1  ;;  %v12352_v29 = vadd.f32 %v5711_v46, %v5687_v34  ;;  %v5713_v50 = vmul.f32 %v12191_v4, %v12191_v4  ;;  %vm6028_vm7 = vcmp.eq.f32.partialorder %v11868_v63, inf  ;;  %v14358_v1 = vld [vmem:[#allocation19_spill] sm:$0xff] }
 0x50e   : > { %v5690_v8 = vmul.f32 %v14355_v35, %v14355_v35  ;;  %7461 = vlog2.f32 %v12326_v28  ;;  %v12362_v58 = vmax.f32 %v5728_v40, 1e-07  ;;  %v5712_v0 = vmul.f32 %v12196_v62, %v12196_v62 }
 0x50f   : > { %v7452_v54 = vpop.eup %7451  ;;  %v5691_v43 = vmul.f32 %v14356_v38, %v14356_v38  ;;  %v5693_v4 = vmul.f32 %v14357_v12, %v14357_v12  ;;  %v12370_v36 = vadd.f32 %v5713_v50, %v5689_v7  ;;  %v5714_v19 = vmul.f32 %v12198_v49, %v12198_v49  ;;  %v14360_v38 = vld [vmem:[#allocation32_spill] sm:$0xff] }
 0x510   : > { %vm6037_vm8 = vcmp.eq.f32.partialorder %v11856_v14, 0.0  ;;  %7463 = vlog2.f32 %v12345_v55  ;;  %v12376_v40 = vadd.f32 %v5712_v0, %v5688_v57  ;;  %v5715_v62 = vmul.f32 %v12205_v11, %v12205_v11 }
 0x511   : > { %v5717_v46 = vmul.f32 %v12207_v51, %v12207_v51  ;;  %v12382_v20 = vpop.eup %7453  ;;  %v5692_v6 = vmul.f32 %v14358_v1, %v14358_v1  ;;  %v12387_v34 = vmax.f32 %v12222_v17, 1e-07  ;;  %v12389_v49 = vadd.f32 %v5714_v19, %v5690_v8 }
 0x512   : > { %v5716_v3 = vmul.f32 %v12213_v47, %v12213_v47  ;;  %vm6030_vm9 = vcmp.eq.f32.partialorder %v11868_v63, 0.0  ;;  %v12394_v7 = vpop.eup %7455  ;;  %v6027_v51 = vmul.f32 %v12010_v30, %v11868_v63  ;;  %7465 = vlog2.f32 %v12362_v58  ;;  %v14359_v47 = vld [vmem:[#allocation20_spill] sm:$0xff] }
 0x513   : > { %v12399_v11 = vmax.f32 %v5730_v33, 1e-07  ;;  %v12401_v21 = vadd.f32 %v5715_v62, %v5691_v43  ;;  %v6226_v17 = vmul.f32 0.6931472, %v7452_v54  ;;  %v12403_v57 = vadd.f32 %v5717_v46, %v5693_v4  ;;  %v14361_v4 = vld [vmem:[#allocation27_spill] sm:$0xff] }
 0x514   : > { %v12405_v50 = vadd.f32 %v5716_v3, %v5692_v6  ;;  %7467 = vrsqrt.f32 %v12150_v56  ;;  %v5694_v35 = vmul.f32 %v14359_v47, %v14359_v47  ;;  %v12410_v8 = vmax.f32 %v5731_v18, 1e-07 }
 0x515   : > { %v5718_v30 = vmul.f32 %v12215_v32, %v12215_v32  ;;  %7469 = vrsqrt.f32 %v12147_v42  ;;  %v12415_v33 = vpop.eup %7457  ;;  %v6036_v0 = vsel %vm6035_vm6, %v11856_v14, %v12294_v48  ;;  %v6038_v54 = vand.u32 2147483648, %v11856_v14 }
 0x516   : > { %7471 = vlog2.f32 %v12387_v34  ;;  %v6041_v18 = vmul.f32 %v14360_v38, %v11878_v9  ;;  %v7460_v43 = vpop.eup %7459  ;;  %v12425_v12 = vmax.f32 %v5732_v52, 1e-07  ;;  %vm6042_vm10 = vcmp.eq.f32.partialorder %v11878_v9, inf }
 0x517   : > { %v12427_v32 = vadd.f32 %v5718_v30, %v5694_v35  ;;  %7473 = vlog2.f32 %v12399_v11  ;;  %v6316_v19 = vsub.f32 %v6226_v17, %v14361_v4  ;;  %v6029_v48 = vsel %vm6028_vm7, %v11868_v63, %v6027_v51  ;;  %v14366_v30 = vld [vmem:[#allocation21_spill] sm:$0xff] }
 0x518   : > { %vm6044_vm11 = vcmp.eq.f32.partialorder %v11878_v9, 0.0  ;;  %7475 = vrsqrt.f32 %v12157_v60  ;;  %v7462_v62 = vpop.eup %7461  ;;  %v12437_v46 = vmax.f32 %v5733_v59, 1e-07  ;;  %v12442_v52 = vsel %vm6037_vm8, %v6038_v54, %v6036_v0  ;;  %v14367_v0 = vld [vmem:[#allocation33_spill] sm:$0xff] }
 0x519   : > { %7477 = vlog2.f32 %v12410_v8  ;;  %14362 = vst [vmem:[#allocation55_spill] sm:$0xff] %v12442_v52  ;;  %v6045_v1 = vand.u32 2147483648, %v11878_v9  ;;  %v14363_v6 = vsub.f32 %v12228_v44, %v11882_v2  ;;  %v6228_v51 = vmul.f32 0.6931472, %v7460_v43 }
 0x51a   : > { %7479 = vrsqrt.f32 %v12317_v23  ;;  %v6043_v17 = vsel %vm6042_vm10, %v11878_v9, %v6041_v18  ;;  %v7464_v47 = vpop.eup %7463  ;;  %v12450_v59 = vmax.f32 %v5734_v13, 1e-07  ;;  %v14364_v14 = vand.u32 2147483648, %v11868_v63 }
 0x51b   : > { %v6337_v3 = vand.u32 2147483647, %v14363_v6  ;;  %7481 = vlog2.f32 %v12425_v12  ;;  %v6048_v2 = vmul.f32 %v14367_v0, %v14366_v30  ;;  %v6338_v44 = vand.u32 2147483647, %v6314_v26 }
 0x51c   : > { %v12457_v35 = vsel %vm6030_vm9, %v14364_v14, %v6029_v48  ;;  %7483 = vrsqrt.f32 %v12326_v28  ;;  %v6230_v54 = vmul.f32 0.6931472, %v7462_v62  ;;  %v7466_v38 = vpop.eup %7465  ;;  %v12467_v18 = vmax.f32 %v12352_v29, 1e-07 }
 0x51d   : > { %14365 = vst [vmem:[#allocation56_spill] sm:$0xff] %v12457_v35  ;;  %v6360_v13 = vadd.f32 %v12273_v45, %v6337_v3  ;;  %7485 = vlog2.f32 %v12437_v46  ;;  %v12472_v63 = vsel %vm6044_vm11, %v6045_v1, %v6043_v17  ;;  %vm6049_vm12 = vcmp.eq.f32.partialorder %v14366_v30, inf  ;;  %v14370_v3 = vld [vmem:[#allocation28_spill] sm:$0xff] }
 0x51e   : > { %14368 = vst [vmem:[#allocation57_spill] sm:$0xff] %v12472_v63  ;;  %v12475_v43 = vpop.eup %7467  ;;  %v6232_v39 = vmul.f32 0.6931472, %v7464_v47  ;;  %v6317_v26 = vsub.f32 %v6228_v51, %v14369_v53  ;;  %v6339_v45 = vand.u32 2147483647, %v6315_v10  ;;  %vm6051_vm13 = vcmp.eq.f32.partialorder %v14366_v30, 0.0 }
 0x51f   : > { %v6361_v4 = vadd.f32 %v6360_v13, %v6338_v44  ;;  %v12482_v29 = vpop.eup %7469  ;;  %v12485_v9 = vmax.f32 %v12376_v40, 1e-07  ;;  %7487 = vlog2.f32 %v12450_v59  ;;  %v6050_v48 = vsel %vm6049_vm12, %v14366_v30, %v6048_v2  ;;  %v14371_v40 = vld [vmem:[#allocation23_spill] sm:$0xff] }
 0x520   : > { %v6052_v62 = vand.u32 2147483648, %v14366_v30  ;;  %v7472_v1 = vpop.eup %7471  ;;  %v6234_v6 = vmul.f32 0.6931472, %v7466_v38  ;;  %v6318_v51 = vsub.f32 %v6230_v54, %v14370_v3  ;;  %v6340_v27 = vand.u32 2147483647, %v6316_v19  ;;  %v14372_v47 = vld [vmem:[#allocation35_spill] sm:$0xff] }
 0x521   : > { %v6362_v25 = vadd.f32 %v6361_v4, %v6339_v45  ;;  %v7474_v10 = vpop.eup %7473  ;;  %v12492_v17 = vmax.f32 %v12370_v36, 1e-07  ;;  %7489 = vlog2.f32 %v12467_v18  ;;  %v6055_v14 = vmul.f32 %v14372_v47, %v14371_v40  ;;  %v14373_v44 = vld [vmem:[#allocation31_spill] sm:$0xff]  ;;  %v14374_v3 = vld [vmem:[#allocation44_spill] sm:$0xff] }
 0x522   : > { %vm6056_vm14 = vcmp.eq.f32.partialorder %v14371_v40, inf  ;;  %v12498_v0 = vpop.eup %7475  ;;  %v6236_v2 = vmul.f32 0.6931472, %v7472_v1  ;;  %v6319_v13 = vsub.f32 %v6232_v39, %v14373_v44  ;;  %v6341_v38 = vand.u32 2147483647, %v6317_v26 }
 0x523   : > { %v6363_v54 = vadd.f32 %v6362_v25, %v6340_v27  ;;  %v7478_v19 = vpop.eup %7477  ;;  %v12502_v53 = vmax.f32 %v12389_v49, 1e-07  ;;  %7491 = vlog2.f32 %v12485_v9  ;;  %vm6058_vm15 = vcmp.eq.f32.partialorder %v14371_v40, 0.0  ;;  %v14375_v49 = vld [vmem:[#allocation37_spill] sm:$0xff] }
 0x524   : > { %v6059_v36 = vand.u32 2147483648, %v14371_v40  ;;  %v12507_v45 = vpop.eup %7479  ;;  %v6238_v4 = vmul.f32 0.6931472, %v7474_v10  ;;  %v6320_v47 = vsub.f32 %v6234_v6, %v14374_v3  ;;  %v6342_v1 = vand.u32 2147483647, %v6318_v51  ;;  %v14376_v10 = vld [vmem:[#allocation42_spill] sm:$0xff] }
 0x525   : > { %v6364_v63 = vadd.f32 %v6363_v54, %v6341_v38  ;;  %v7482_v39 = vpop.eup %7481  ;;  %v12511_v26 = vmax.f32 %v12401_v21, 1e-07  ;;  %7493 = vlog2.f32 %v12492_v17  ;;  %v6290_v27 = vmul.f32 0.6931472, %v14375_v49  ;;  %v14378_v3 = vld [vmem:[#allocation22_spill] sm:$0xff] }
 0x526   : > { %v6057_v25 = vsel %vm6056_vm14, %v14371_v40, %v6055_v14  ;;  %v12518_v44 = vpop.eup %7483  ;;  %v6240_v52 = vmul.f32 0.6931472, %v7478_v19  ;;  %v6321_v35 = vsub.f32 %v6236_v2, %v14376_v10  ;;  %v6343_v6 = vand.u32 2147483647, %v6319_v13  ;;  %v14379_v49 = vld [vmem:[#allocation34_spill] sm:$0xff] }
 0x527   : > { %v6365_v51 = vadd.f32 %v6364_v63, %v6342_v1  ;;  %v7486_v38 = vpop.eup %7485  ;;  %v12522_v54 = vmax.f32 %v12405_v50, 1e-07  ;;  %7495 = vlog2.f32 %v12502_v53  ;;  %v12527_v21 = vsel %vm6051_vm13, %v6052_v62, %v6050_v48  ;;  %v14381_v50 = vld [vmem:[#allocation38_spill] sm:$0xff]  ;;  %v14383_v62 = vld [vmem:[#allocation47_spill] sm:$0xff] }
 0x528   : > { %14377 = vst [vmem:[#allocation58_spill] sm:$0xff] %v12527_v21  ;;  %v6062_v14 = vmul.f32 %v14379_v49, %v14378_v3  ;;  %v6242_v37 = vmul.f32 0.6931472, %v7482_v39  ;;  %v6322_v19 = vsub.f32 %v6238_v4, %v14380_v5  ;;  %v6344_v24 = vand.u32 2147483647, %v6320_v47 }
 0x529   : > { %v6366_v2 = vadd.f32 %v6365_v51, %v6343_v6  ;;  %v7488_v13 = vpop.eup %7487  ;;  %v12533_v63 = vmax.f32 %v12403_v57, 1e-07  ;;  %7497 = vlog2.f32 %v12511_v26  ;;  %v6292_v1 = vmul.f32 0.6931472, %v14381_v50  ;;  %v14385_v6 = vld [vmem:[#allocation24_spill] sm:$0xff] }
 0x52a   : > { %v12539_v30 = vsel %vm6058_vm15, %v6059_v36, %v6057_v25  ;;  %v6244_v48 = vmul.f32 0.6931472, %v7486_v38  ;;  %v6323_v10 = vsub.f32 %v6240_v52, %v14383_v62  ;;  %v6345_v39 = vand.u32 2147483647, %v6321_v35  ;;  %v14384_v52 = vld [vmem:[#allocation39_spill] sm:$0xff] }
 0x52b   : > { %14382 = vst [vmem:[#allocation59_spill] sm:$0xff] %v12539_v30  ;;  %v6367_v49 = vadd.f32 %v6366_v2, %v6344_v24  ;;  %v7490_v5 = vpop.eup %7489  ;;  %v12543_v4 = vmax.f32 %v12427_v32, 1e-07  ;;  %7499 = vlog2.f32 %v12522_v54  ;;  %vm6063_vm0 = vcmp.eq.f32.partialorder %v14378_v3, inf  ;;  %v14386_v32 = vld [vmem:[#allocation36_spill] sm:$0xff] }
 0x52c   : > { %vm6065_vm1 = vcmp.eq.f32.partialorder %v14378_v3, 0.0  ;;  %v6246_v57 = vmul.f32 0.6931472, %v7488_v13  ;;  %v6324_v47 = vsub.f32 %v6242_v37, %v6290_v27  ;;  %v6346_v40 = vand.u32 2147483647, %v6322_v19  ;;  %v14387_v37 = vld [vmem:[#allocation40_spill] sm:$0xff] }
 0x52d   : > { %v6368_v36 = vadd.f32 %v6367_v49, %v6345_v39  ;;  %v7492_v25 = vpop.eup %7491  ;;  %7501 = vlog2.f32 %v12533_v63  ;;  %v6294_v35 = vmul.f32 0.6931472, %v14384_v52  ;;  %v6064_v24 = vsel %vm6063_vm0, %v14378_v3, %v6062_v14 }
 0x52e   : > { %v6069_v51 = vmul.f32 %v14386_v32, %v14385_v6  ;;  %v6248_v38 = vmul.f32 0.6931472, %v7490_v5  ;;  %v6325_v2 = vsub.f32 %v6244_v48, %v6292_v1  ;;  %v6347_v50 = vand.u32 2147483647, %v6323_v10  ;;  %v14388_v5 = vld [vmem:[#allocation41_spill] sm:$0xff] }
 0x52f   : > { %v6369_v62 = vadd.f32 %v6368_v36, %v6346_v40  ;;  %v7494_v30 = vpop.eup %7493  ;;  %7503 = vlog2.f32 %v12543_v4  ;;  %v6296_v27 = vmul.f32 0.6931472, %v14387_v37  ;;  %v6066_v19 = vand.u32 2147483648, %v14378_v3 }
 0x530   : > { %vm6070_vm2 = vcmp.eq.f32.partialorder %v14385_v6, inf  ;;  %v6250_v13 = vmul.f32 0.6931472, %v7492_v25  ;;  %v6326_v39 = vsub.f32 %v6246_v57, %v6294_v35  ;;  %v6348_v49 = vand.u32 2147483647, %v6324_v47  ;;  %v14389_v25 = vld [vmem:[#allocation45_spill] sm:$0xff] }
 0x531   : > { %v6370_v14 = vadd.f32 %v6369_v62, %v6347_v50  ;;  %v7496_v52 = vpop.eup %7495  ;;  %7505 = vrsqrt.f32 %v12345_v55  ;;  %v6298_v1 = vmul.f32 0.6931472, %v14388_v5  ;;  %v6071_v48 = vsel %vm6070_vm2, %v14385_v6, %v6069_v51 }
 0x532   : > { %vm6072_vm3 = vcmp.eq.f32.partialorder %v14385_v6, 0.0  ;;  %v6252_v10 = vmul.f32 0.6931472, %v7494_v30  ;;  %v6327_v40 = vsub.f32 %v6248_v38, %v6296_v27  ;;  %v6349_v36 = vand.u32 2147483647, %v6325_v2  ;;  %v14390_v30 = vld [vmem:[#allocation50_spill] sm:$0xff] }
 0x533   : > { %v6371_v32 = vadd.f32 %v6370_v14, %v6348_v49  ;;  %v7498_v37 = vpop.eup %7497  ;;  %7507 = vrsqrt.f32 %v12387_v34  ;;  %v6300_v57 = vmul.f32 0.6931472, %v14389_v25  ;;  %v12565_v47 = vsel %vm6065_vm1, %v6066_v19, %v6064_v24 }
 0x534   : > { %v6073_v35 = vand.u32 2147483648, %v14385_v6  ;;  %v6254_v50 = vmul.f32 0.6931472, %v7496_v52  ;;  %v6328_v62 = vsub.f32 %v6250_v13, %v6298_v1  ;;  %v6350_v51 = vand.u32 2147483647, %v6326_v39 }
 0x535   : > { %v6372_v5 = vadd.f32 %v6371_v32, %v6349_v36  ;;  %v7500_v21 = vpop.eup %7499  ;;  %7509 = vrsqrt.f32 %v12362_v58  ;;  %v6302_v38 = vmul.f32 0.6931472, %v14390_v30  ;;  %vm6077_vm4 = vcmp.eq.f32.partialorder %v12139_v61, inf }
 0x536   : > { %v12572_v2 = vsel %vm6072_vm3, %v6073_v35, %v6071_v48  ;;  %v6256_v3 = vmul.f32 0.6931472, %v7498_v37  ;;  %v6329_v24 = vsub.f32 %v6252_v10, %v6300_v57  ;;  %v6351_v27 = vand.u32 2147483647, %v6327_v40 }
 0x537   : > { %v6373_v19 = vadd.f32 %v6372_v5, %v6350_v51  ;;  %v7502_v49 = vpop.eup %7501  ;;  %7511 = vrsqrt.f32 %v12399_v11  ;;  %v6304_v13 = vmul.f32 0.6931472, %v12348_v41  ;;  %v6076_v39 = vmul.f32 %v12415_v33, %v12139_v61 }
 0x538   : > { %vm6079_vm5 = vcmp.eq.f32.partialorder %v12139_v61, 0.0  ;;  %v6258_v14 = vmul.f32 0.6931472, %v7500_v21  ;;  %v6330_v6 = vsub.f32 %v6254_v50, %v6302_v38  ;;  %v6352_v52 = vand.u32 2147483647, %v6328_v62 }
 0x539   : > { %v6374_v1 = vadd.f32 %v6373_v19, %v6351_v27  ;;  %v7504_v48 = vpop.eup %7503  ;;  %7513 = vrsqrt.f32 %v12410_v8  ;;  %v6306_v10 = vmul.f32 0.6931472, %v12356_v16  ;;  %v6308_v40 = vmul.f32 0.6931472, %v12382_v20 }
 0x53a   : > { %v6080_v36 = vand.u32 2147483648, %v12139_v61  ;;  %v6260_v32 = vmul.f32 0.6931472, %v7502_v49  ;;  %v6331_v41 = vsub.f32 %v6256_v3, %v6304_v13  ;;  %v6353_v37 = vand.u32 2147483647, %v6329_v24 }
 0x53b   : > { %v6375_v25 = vadd.f32 %v6374_v1, %v6352_v52  ;;  %v7506_v33 = vpop.eup %7505  ;;  %7515 = vrsqrt.f32 %v12425_v12  ;;  %v6078_v21 = vsel %vm6077_vm4, %v12139_v61, %v6076_v39  ;;  %v6083_v57 = vmul.f32 %v12475_v43, %v12150_v56 }
 0x53c   : > { %v6090_v16 = vmul.f32 %v12482_v29, %v12147_v42  ;;  %v6262_v20 = vmul.f32 0.6931472, %v7504_v48  ;;  %v6332_v35 = vsub.f32 %v6258_v14, %v6306_v10  ;;  %v6354_v50 = vand.u32 2147483647, %v6330_v6 }
 0x53d   : > { %v6376_v62 = vadd.f32 %v6375_v25, %v6353_v37  ;;  %v7508_v51 = vpop.eup %7507  ;;  %v6310_v5 = vmul.f32 0.6931472, %v12394_v7  ;;  %vm6084_vm6 = vcmp.eq.f32.partialorder %v12150_v56, inf  ;;  %v6087_v30 = vand.u32 2147483648, %v12150_v56 }
 0x53e   : > { %vm6091_vm7 = vcmp.eq.f32.partialorder %v12147_v42, inf  ;;  %v5810_v38 = vmul.f32 %v12507_v45, %v12317_v23  ;;  %v6333_v43 = vsub.f32 %v6260_v32, %v6308_v40  ;;  %v6355_v3 = vand.u32 2147483647, %v6331_v41 }
 0x53f   : > { %v6377_v24 = vadd.f32 %v6376_v62, %v6354_v50  ;;  %v7510_v29 = vpop.eup %7509  ;;  %v12600_v27 = vsel %vm6079_vm5, %v6080_v36, %v6078_v21  ;;  %v12603_v19 = vsel %vm6084_vm6, %v12150_v56, %v6083_v57  ;;  %v12606_v7 = vsel %vm6091_vm7, %v12147_v42, %v6090_v16 }
 0x540   : > { %v6094_v49 = vand.u32 2147483648, %v12147_v42  ;;  %v6334_v13 = vsub.f32 %v6262_v20, %v6310_v5  ;;  %v6356_v39 = vand.u32 2147483647, %v6332_v35  ;;  %v12611_v45 = vmul.f32 %v12498_v0, %v12157_v60 }
 0x541   : > { %v6378_v14 = vadd.f32 %v6377_v24, %v6355_v3  ;;  %v7512_v6 = vpop.eup %7511  ;;  %vm5811_vm8 = vcmp.eq.f32.partialorder %v12317_v23, inf  ;;  %vm5813_vm9 = vcmp.eq.f32.partialorder %v12317_v23, 0.0  ;;  %v5814_v61 = vand.u32 2147483648, %v12317_v23 }
 0x542   : > { %vm5818_vm10 = vcmp.eq.f32.partialorder %v12326_v28, inf  ;;  %v5812_v52 = vsel %vm5811_vm8, %v12317_v23, %v5810_v38  ;;  %vm5820_vm11 = vcmp.eq.f32.partialorder %v12326_v28, 0.0  ;;  %v6357_v1 = vand.u32 2147483647, %v6333_v43 }
 0x543   : > { %v6379_v48 = vadd.f32 %v6378_v14, %v6356_v39  ;;  %v7514_v10 = vpop.eup %7513  ;;  %v5817_v0 = vmul.f32 %v12518_v44, %v12326_v28  ;;  %v5821_v40 = vand.u32 2147483648, %v12326_v28  ;;  %v5824_v36 = vmul.f32 %v7506_v33, %v12345_v55 }
 0x544   : > { %7517 = vrsqrt.f32 %v12437_v46  ;;  %v5831_v32 = vmul.f32 %v7510_v29, %v12362_v58  ;;  %v6358_v41 = vand.u32 2147483647, %v6334_v13  ;;  %v6129_v21 = vmul.f32 %v12243_v15, %v12243_v15 }
 0x545   : > { %7519 = vrsqrt.f32 %v12450_v59  ;;  %v6380_v37 = vadd.f32 %v6379_v48, %v6357_v1  ;;  %v7516_v25 = vpop.eup %7515  ;;  %v6130_v57 = vmul.f32 %v12267_v31, %v12267_v31  ;;  %v5815_v44 = vsel %vm5813_vm9, %v5814_v61, %v5812_v52 }
 0x546   : > { %7521 = vrsqrt.f32 %v12467_v18  ;;  %v6131_v33 = vmul.f32 %v12282_v22, %v12282_v22  ;;  %v5838_v16 = vmul.f32 %v7508_v51, %v12387_v34  ;;  %v5845_v35 = vmul.f32 %v7512_v6, %v12399_v11 }
 0x547   : > { %v6381_v20 = vadd.f32 %v6380_v37, %v6358_v41  ;;  %v5819_v15 = vsel %vm5818_vm10, %v12326_v28, %v5817_v0  ;;  %vm5825_vm12 = vcmp.eq.f32.partialorder %v12345_v55, inf  ;;  %vm5827_vm13 = vcmp.eq.f32.partialorder %v12345_v55, 0.0  ;;  %v14392_v41 = vld [vmem:[#allocation51_spill] sm:$0xff] }
 0x548   : > { %vm5832_vm14 = vcmp.eq.f32.partialorder %v12362_v58, inf  ;;  %v5826_v31 = vsel %vm5825_vm12, %v12345_v55, %v5824_v36  ;;  %v5828_v50 = vand.u32 2147483648, %v12345_v55  ;;  %v5835_v22 = vand.u32 2147483648, %v12362_v58  ;;  %v14391_v36 = vld [vmem:[#allocation52_spill] sm:$0xff] }
 0x549   : > { %6382 = vadd.xlane.f32.xlu1 %v6381_v20  ;;  %v5833_v62 = vsel %vm5832_vm14, %v12362_v58, %v5831_v32  ;;  %vm5839_vm15 = vcmp.eq.f32.partialorder %v12387_v34, inf  ;;  %vm5846_vm0 = vcmp.eq.f32.partialorder %v12399_v11, inf  ;;  %v5852_v51 = vmul.f32 %v7514_v10, %v12410_v8 }
 0x54a   : > { %v5859_v5 = vmul.f32 %v7516_v25, %v12425_v12  ;;  %v5822_v38 = vsel %vm5820_vm11, %v5821_v40, %v5819_v15  ;;  %vm5834_vm1 = vcmp.eq.f32.partialorder %v12362_v58, 0.0  ;;  %v5840_v43 = vsel %vm5839_vm15, %v12387_v34, %v5838_v16 }
 0x54b   : > { %v5847_v3 = vsel %vm5846_vm0, %v12399_v11, %v5845_v35  ;;  %v5829_v24 = vsel %vm5827_vm13, %v5828_v50, %v5826_v31  ;;  %v5836_v29 = vsel %vm5834_vm1, %v5835_v22, %v5833_v62  ;;  %v5842_v13 = vand.u32 2147483648, %v12387_v34  ;;  %v14393_v35 = vld [vmem:[#allocation26_spill] sm:$0xff]  ;;  %v14394_v62 = vld [vmem:[#allocation29_spill] sm:$0xff] }
 0x54c   : > { %v5849_v39 = vand.u32 2147483648, %v12399_v11  ;;  %vm5841_vm2 = vcmp.eq.f32.partialorder %v12387_v34, 0.0  ;;  %vm5848_vm3 = vcmp.eq.f32.partialorder %v12399_v11, 0.0  ;;  %vm5853_vm4 = vcmp.eq.f32.partialorder %v12410_v8, inf }
 0x54d   : > { %vm5860_vm5 = vcmp.eq.f32.partialorder %v12425_v12, inf  ;;  %v5843_v6 = vsel %vm5841_vm2, %v5842_v13, %v5840_v43  ;;  %v5854_v52 = vsel %vm5853_vm4, %v12410_v8, %v5852_v51  ;;  %vm5855_vm6 = vcmp.eq.f32.partialorder %v12410_v8, 0.0 }
 0x54e   : > { %v7518_v14 = vpop.eup %7517  ;;  %v5850_v61 = vsel %vm5848_vm3, %v5849_v39, %v5847_v3  ;;  %v5861_v1 = vsel %vm5860_vm5, %v12425_v12, %v5859_v5  ;;  %v5856_v10 = vand.u32 2147483648, %v12410_v8  ;;  %v5863_v0 = vand.u32 2147483648, %v12425_v12  ;;  %v14395_v5 = vld [vmem:[#allocation54_spill] sm:$0xff] }
 0x54f   : > { %v7520_v48 = vpop.eup %7519  ;;  %7523 = vrsqrt.f32 %v12485_v9  ;;  %vm5862_vm7 = vcmp.eq.f32.partialorder %v12425_v12, 0.0  ;;  %v6152_v32 = vadd.f32 %v14391_v36, %v6129_v21  ;;  %v6188_v37 = vadd.f32 %v14392_v41, %v12317_v23  ;;  %v14398_v41 = vld [vmem:[#allocation48_spill] sm:$0xff] }
 0x550   : > { %v7522_v40 = vpop.eup %7521  ;;  %7525 = vrsqrt.f32 %v12492_v17  ;;  %v5857_v25 = vsel %vm5855_vm6, %v5856_v10, %v5854_v52  ;;  %v12673_v16 = vsel %vm5862_vm7, %v5863_v0, %v5861_v1  ;;  %v5866_v20 = vmul.f32 %v7518_v14, %v12437_v46 }
 0x551   : > { %vm5867_vm8 = vcmp.eq.f32.partialorder %v12437_v46, inf  ;;  %vm5869_vm9 = vcmp.eq.f32.partialorder %v12437_v46, 0.0  ;;  %v6109_v15 = vsub.f32 %v5815_v44, %v14393_v35  ;;  %v6153_v31 = vadd.f32 %v6152_v32, %v6130_v57 }
 0x552   : > { %v6189_v50 = vadd.f32 %v6188_v37, %v12326_v28  ;;  %v5870_v22 = vand.u32 2147483648, %v12437_v46  ;;  %v5873_v21 = vmul.f32 %v7520_v48, %v12450_v59  ;;  %v5880_v23 = vmul.f32 %v7522_v40, %v12467_v18  ;;  %v14396_v28 = vld [vmem:[#allocation30_spill] sm:$0xff] }
 0x553   : > { %7527 = vrsqrt.f32 %v12502_v53  ;;  %v6110_v51 = vsub.f32 %v5822_v38, %v14394_v62  ;;  %v6132_v43 = vmul.f32 %v14395_v5, %v14395_v5  ;;  %v6154_v3 = vadd.f32 %v6153_v31, %v6131_v33  ;;  %v14397_v33 = vld [vmem:[#allocation43_spill] sm:$0xff]  ;;  %v14399_v31 = vld [vmem:[#allocation49_spill] sm:$0xff] }
 0x554   : > { %v6190_v13 = vadd.f32 %v6189_v50, %v12345_v55  ;;  %v5868_v57 = vsel %vm5867_vm8, %v12437_v46, %v5866_v20  ;;  %vm5874_vm10 = vcmp.eq.f32.partialorder %v12450_v59, inf  ;;  %vm5881_vm11 = vcmp.eq.f32.partialorder %v12467_v18, inf }
 0x555   : > { %7529 = vrsqrt.f32 %v12511_v26  ;;  %v6111_v44 = vsub.f32 %v5829_v24, %v14396_v28  ;;  %v6133_v39 = vmul.f32 %v6109_v15, %v6109_v15  ;;  %v6155_v14 = vadd.f32 %v6154_v3, %v6132_v43  ;;  %v14401_v28 = vld [vmem:[#allocation56_spill] sm:$0xff] }
 0x556   : > { %v6191_v38 = vadd.f32 %v6190_v13, %v12362_v58  ;;  %v5875_v52 = vsel %vm5874_vm10, %v12450_v59, %v5873_v21  ;;  %vm5876_vm12 = vcmp.eq.f32.partialorder %v12450_v59, 0.0  ;;  %v5882_v55 = vsel %vm5881_vm11, %v12467_v18, %v5880_v23 }
 0x557   : > { %7531 = vrsqrt.f32 %v12522_v54  ;;  %v6112_v1 = vsub.f32 %v5836_v29, %v14397_v33  ;;  %v6134_v48 = vmul.f32 %v6110_v51, %v6110_v51  ;;  %v6156_v10 = vadd.f32 %v6155_v14, %v6133_v39  ;;  %v14400_v51 = vld [vmem:[#allocation53_spill] sm:$0xff]  ;;  %v14402_v33 = vld [vmem:[#allocation55_spill] sm:$0xff] }
 0x558   : > { %v6192_v0 = vadd.f32 %v6191_v38, %v12387_v34  ;;  %v5871_v24 = vsel %vm5869_vm9, %v5870_v22, %v5868_v57  ;;  %v5877_v58 = vand.u32 2147483648, %v12450_v59  ;;  %vm5883_vm13 = vcmp.eq.f32.partialorder %v12467_v18, 0.0 }
 0x559   : > { %v7524_v40 = vpop.eup %7523  ;;  %v5884_v36 = vand.u32 2147483648, %v12467_v18  ;;  %v6113_v37 = vsub.f32 %v5843_v6, %v14398_v41  ;;  %v6135_v20 = vmul.f32 %v6111_v44, %v6111_v44  ;;  %v6157_v35 = vadd.f32 %v6156_v10, %v6134_v48 }
 0x55a   : > { %v7526_v32 = vpop.eup %7525  ;;  %v6193_v29 = vadd.f32 %v6192_v0, %v12399_v11  ;;  %v5878_v34 = vsel %vm5876_vm12, %v5877_v58, %v5875_v52  ;;  %vm5888_vm14 = vcmp.eq.f32.partialorder %v12485_v9, inf  ;;  %7533 = vrsqrt.f32 %v12533_v63  ;;  %v14404_v58 = vld [vmem:[#allocation58_spill] sm:$0xff] }
 0x55b   : > { %v5885_v15 = vsel %vm5883_vm13, %v5884_v36, %v5882_v55  ;;  %v6114_v50 = vsub.f32 %v5850_v61, %v14399_v31  ;;  %v6136_v22 = vmul.f32 %v6112_v1, %v6112_v1  ;;  %v6158_v21 = vadd.f32 %v6157_v35, %v6135_v20 }
 0x55c   : > { %v6194_v23 = vadd.f32 %v6193_v29, %v12410_v8  ;;  %v5887_v6 = vmul.f32 %v7524_v40, %v12485_v9  ;;  %vm5890_vm15 = vcmp.eq.f32.partialorder %v12485_v9, 0.0  ;;  %v5894_v11 = vmul.f32 %v7526_v32, %v12492_v17 }
 0x55d   : > { %v7528_v62 = vpop.eup %7527  ;;  %7535 = vrsqrt.f32 %v12543_v4  ;;  %v6115_v5 = vsub.f32 %v5857_v25, %v14400_v51  ;;  %v6137_v43 = vmul.f32 %v6113_v37, %v6113_v37  ;;  %v6159_v3 = vadd.f32 %v6158_v21, %v6136_v22 }
 0x55e   : > { %v6195_v13 = vadd.f32 %v6194_v23, %v12425_v12  ;;  %v5891_v57 = vand.u32 2147483648, %v12485_v9  ;;  %vm5895_vm0 = vcmp.eq.f32.partialorder %v12492_v17, inf  ;;  %vm5897_vm1 = vcmp.eq.f32.partialorder %v12492_v17, 0.0 }
 0x55f   : > { %v7530_v61 = vpop.eup %7529  ;;  %v5898_v8 = vand.u32 2147483648, %v12492_v17  ;;  %v6116_v44 = vsub.f32 %v12673_v16, %v14401_v28  ;;  %v6138_v39 = vmul.f32 %v6114_v50, %v6114_v50  ;;  %v6160_v14 = vadd.f32 %v6159_v3, %v6137_v43 }
 0x560   : > { %v6196_v25 = vadd.f32 %v6195_v13, %v12437_v46  ;;  %v5889_v12 = vsel %vm5888_vm14, %v12485_v9, %v5887_v6  ;;  %v5896_v52 = vsel %vm5895_vm0, %v12492_v17, %v5894_v11  ;;  %v5901_v55 = vmul.f32 %v7528_v62, %v12502_v53  ;;  %v14403_v46 = vld [vmem:[#allocation57_spill] sm:$0xff]  ;;  %v14405_v62 = vld [vmem:[#allocation59_spill] sm:$0xff] }
 0x561   : > { %v7532_v38 = vpop.eup %7531  ;;  %v6117_v1 = vsub.f32 %v5871_v24, %v14402_v33  ;;  %v5908_v48 = vmul.f32 %v7530_v61, %v12511_v26  ;;  %v6139_v10 = vmul.f32 %v6115_v5, %v6115_v5  ;;  %v6161_v0 = vadd.f32 %v6160_v14, %v6138_v39 }
 0x562   : > { %v6197_v16 = vadd.f32 %v6196_v25, %v12450_v59  ;;  %vm5902_vm2 = vcmp.eq.f32.partialorder %v12502_v53, inf  ;;  %vm5904_vm3 = vcmp.eq.f32.partialorder %v12502_v53, 0.0  ;;  %vm5909_vm4 = vcmp.eq.f32.partialorder %v12511_v26, inf }
 0x563   : > { %v6118_v40 = vsub.f32 %v5878_v34, %v14403_v46  ;;  %v6119_v36 = vsub.f32 %v5885_v15, %v14404_v58  ;;  %v6140_v32 = vmul.f32 %v6116_v44, %v6116_v44  ;;  %v6162_v41 = vadd.f32 %v6161_v0, %v6139_v10 }
 0x564   : > { %v6198_v24 = vadd.f32 %v6197_v16, %v12467_v18  ;;  %v7534_v37 = vpop.eup %7533  ;;  %v5892_v20 = vsel %vm5890_vm15, %v5891_v57, %v5889_v12  ;;  %v5899_v59 = vsel %vm5897_vm1, %v5898_v8, %v5896_v52  ;;  %v5903_v35 = vsel %vm5902_vm2, %v12502_v53, %v5901_v55 }
 0x565   : > { %v5915_v29 = vmul.f32 %v7532_v38, %v12522_v54  ;;  %v5910_v31 = vsel %vm5909_vm4, %v12511_v26, %v5908_v48  ;;  %vm6086_vm5 = vcmp.eq.f32.partialorder %v12150_v56, 0.0  ;;  %vm6098_vm6 = vcmp.eq.f32.partialorder %v12157_v60, inf }
 0x566   : > { %v6141_v34 = vmul.f32 %v6117_v1, %v6117_v1  ;;  %v6163_v15 = vadd.f32 %v6162_v41, %v6140_v32  ;;  %v6199_v18 = vadd.f32 %v6198_v24, %v12485_v9  ;;  %v5905_v22 = vand.u32 2147483648, %v12502_v53 }
 0x567   : > { %v7536_v50 = vpop.eup %7535  ;;  %vm5911_vm7 = vcmp.eq.f32.partialorder %v12511_v26, 0.0  ;;  %v5912_v21 = vand.u32 2147483648, %v12511_v26  ;;  %vm5916_vm8 = vcmp.eq.f32.partialorder %v12522_v54, inf  ;;  %v5922_v23 = vmul.f32 %v7534_v37, %v12533_v63 }
 0x568   : > { %vm6093_vm9 = vcmp.eq.f32.partialorder %v12147_v42, 0.0  ;;  %v6120_v6 = vsub.f32 %v5892_v20, %v14405_v62  ;;  %v6142_v11 = vmul.f32 %v6118_v40, %v6118_v40  ;;  %v6164_v51 = vadd.f32 %v6163_v15, %v6141_v34 }
 0x569   : > { %v5906_v9 = vsel %vm5904_vm3, %v5905_v22, %v5903_v35  ;;  %v5913_v5 = vsel %vm5911_vm7, %v5912_v21, %v5910_v31  ;;  %v5917_v43 = vsel %vm5916_vm8, %v12522_v54, %v5915_v29  ;;  %v6121_v3 = vsub.f32 %v5899_v59, %v12565_v47 }
 0x56a   : > { %v5929_v13 = vmul.f32 %v7536_v50, %v12543_v4  ;;  %v6143_v61 = vmul.f32 %v6119_v36, %v6119_v36  ;;  %v6165_v57 = vadd.f32 %v6164_v51, %v6142_v11  ;;  %v6200_v8 = vadd.f32 %v6199_v18, %v12492_v17 }
 0x56b   : > { %vm5918_vm10 = vcmp.eq.f32.partialorder %v12522_v54, 0.0  ;;  %v5919_v28 = vand.u32 2147483648, %v12522_v54  ;;  %vm5923_vm11 = vcmp.eq.f32.partialorder %v12533_v63, inf  ;;  %vm5925_vm12 = vcmp.eq.f32.partialorder %v12533_v63, 0.0 }
 0x56c   : > { %v5924_v44 = vsel %vm5923_vm11, %v12533_v63, %v5922_v23  ;;  %v6122_v39 = vsub.f32 %v5906_v9, %v12572_v2  ;;  %v6144_v14 = vmul.f32 %v6120_v6, %v6120_v6  ;;  %v6166_v47 = vadd.f32 %v6165_v57, %v6143_v61 }
 0x56d   : > { %v5920_v25 = vsel %vm5918_vm10, %v5919_v28, %v5917_v43  ;;  %v5926_v38 = vand.u32 2147483648, %v12533_v63  ;;  %vm5930_vm13 = vcmp.eq.f32.partialorder %v12543_v4, inf  ;;  %v6123_v17 = vsub.f32 %v5913_v5, %v12600_v27 }
 0x56e   : > { %v5931_v12 = vsel %vm5930_vm13, %v12543_v4, %v5929_v13  ;;  %v6145_v52 = vmul.f32 %v6121_v3, %v6121_v3  ;;  %v6167_v55 = vadd.f32 %v6166_v47, %v6144_v14  ;;  %v6201_v33 = vadd.f32 %v6200_v8, %v12502_v53 }
 0x56f   : > { %v5927_v1 = vsel %vm5925_vm12, %v5926_v38, %v5924_v44  ;;  %v5933_v48 = vand.u32 2147483648, %v12543_v4  ;;  %v6088_v2 = vsel %vm6086_vm5, %v6087_v30, %v12603_v19  ;;  %v6099_v27 = vsel %vm6098_vm6, %v12157_v60, %v12611_v45 }
 0x570   : > { %vm5932_vm14 = vcmp.eq.f32.partialorder %v12543_v4, 0.0  ;;  %v6124_v10 = vsub.f32 %v5920_v25, %v6088_v2  ;;  %v6146_v0 = vmul.f32 %v6122_v39, %v6122_v39  ;;  %v6168_v16 = vadd.f32 %v6167_v55, %v6145_v52 }
 0x571   : > { %v5934_v53 = vsel %vm5932_vm14, %v5933_v48, %v5931_v12  ;;  %v6095_v46 = vsel %vm6093_vm9, %v6094_v49, %v12606_v7  ;;  %vm6100_vm15 = vcmp.eq.f32.partialorder %v12157_v60, 0.0  ;;  %v6101_v56 = vand.u32 2147483648, %v12157_v60 }
 0x572   : > { %v6125_v30 = vsub.f32 %v5927_v1, %v6095_v46  ;;  %v6147_v19 = vmul.f32 %v6123_v17, %v6123_v17  ;;  %v6169_v40 = vadd.f32 %v6168_v16, %v6146_v0  ;;  %v6202_v45 = vadd.f32 %v6201_v33, %v12511_v26 }
 0x573   : > { %v6102_v58 = vsel %vm6100_vm15, %v6101_v56, %v6099_v27  ;;  %v6148_v32 = vmul.f32 %v6124_v10, %v6124_v10  ;;  %v6392_v3 = vlaneseq }
 0x574   : > { %v6126_v36 = vsub.f32 %v5934_v53, %v6102_v58  ;;  %v6170_v41 = vadd.f32 %v6169_v40, %v6147_v19  ;;  %v6149_v24 = vmul.f32 %v6125_v30, %v6125_v30  ;;  %v6203_v20 = vadd.f32 %v6202_v45, %v12522_v54 }
 0x575   : > { %v6393_v13 = vand.u32 127, %v6392_v3 }
 0x576   : > { %v6171_v37 = vadd.f32 %v6170_v41, %v6148_v32  ;;  %v6150_v59 = vmul.f32 %v6126_v36, %v6126_v36  ;;  %v6204_v49 = vadd.f32 %v6203_v20, %v12533_v63 }
 0x577   : > { %vm6396_vm0 = vcmp.eq.s32.totalorder %v6393_v13, 2  ;;  %vm6395_vm1 = vcmp.eq.s32.totalorder %v6393_v13, 1  ;;  %vm6394_vm2 = vcmp.eq.s32.totalorder %v6393_v13, 0 }
 0x578   : > { %v6172_v42 = vadd.f32 %v6171_v37, %v6149_v24  ;;  %v6205_v60 = vadd.f32 %v6204_v49, %v12543_v4 }
 0x57a   : > { %v6173_v7 = vadd.f32 %v6172_v42, %v6150_v59 }
 0x57c   : > { %6174 = vadd.xlane.f32.xlu0 %v6173_v7 }
 0x580   : > { %6206 = vadd.xlane.f32.xlu0 %v6205_v60 }
 0x5d6   : > { %v6383_v35 = vpop.xlane.xlu1 %6382 }
 0x5d7   : > { %v6384_v29 = vrot.slane %v6383_v35, 4 }
 0x5d9   : > { %v6385_v26 = vadd.f32 %v6384_v29, %v6383_v35 }
 0x5db   : > { %v6386_v18 = vrot.slane %v6385_v26, 2 }
 0x5dd   : > { %v6387_v62 = vadd.f32 %v6386_v18, %v6385_v26 }
 0x5df   : > { %v6388_v51 = vrot.slane %v6387_v62, 1 }
 0x5e1   : > { %v6389_v43 = vadd.f32 %v6388_v51, %v6387_v62 }
 0x609   : > { %v6175_v31 = vpop.xlane.xlu0 %6174 }
 0x60a   : > { %v6176_v34 = vrot.slane %v6175_v31, 4 }
 0x60c   : > { %v6177_v15 = vadd.f32 %v6176_v34, %v6175_v31 }
 0x60d   : > { %v6207_v50 = vpop.xlane.xlu0 %6206 }
 0x60e   : > { %v6178_v22 = vrot.slane %v6177_v15, 2  ;;  %v6208_v54 = vrot.slane %v6207_v50, 4 }
 0x610   : > { %v6209_v21 = vadd.f32 %v6208_v54, %v6207_v50  ;;  %v6179_v23 = vadd.f32 %v6178_v22, %v6177_v15 }
 0x612   : > { %v6210_v63 = vrot.slane %v6209_v21, 2  ;;  %v6180_v6 = vrot.slane %v6179_v23, 1 }
 0x614   : > { %v6211_v11 = vadd.f32 %v6210_v63, %v6209_v21  ;;  %v6181_v4 = vadd.f32 %v6180_v6, %v6179_v23 }
 0x616   : > { %7331 = vpush %v6181_v4  ;;  %v6212_v9 = vrot.slane %v6211_v11, 1 }
 0x618   : > { %v6213_v5 = vadd.f32 %v6212_v9, %v6211_v11 }
 0x61a   : > { %7333 = vpush %v6213_v5 }
 0x61b   : > { %7335 = vpush %v6389_v43 }
 0x647   : > { %s7332_s11 = spop %7331 }
 0x648   : > { %v6401_v28 = vstv %s7332_s11 }
 0x64b   : > { %s7334_s14 = spop %7333 }
 0x64c   : > { %s7336_s30 = spop %7335  ;;  %v6399_v57 = vstv %s7334_s14 }
 0x64d   : > { %s6391_s4 = smul.f32 0.5, %s7336_s30 }
 0x64f   : > { %v6397_v61 = vstv %s6391_s4 }
 0x650   : > { %v6398_v8 = vsel %vm6396_vm0, %v6397_v61, 0.0 }
 0x651   : > { %v6400_v44 = vsel %vm6395_vm1, %v6399_v57, %v6398_v8 }
 0x652   : > { %v6402_v39 = vsel %vm6394_vm2, %v6401_v28, %v6400_v44 }
 0x653   : > { %6403 = vst [vmem:[%s198_s7] sm:$0xff] %v6402_v39 }
 0x654 PF: > { %s13_s12 = sadd.s32 1, %s7543_s12  }
 0x655   : > { %p10_p5 = scmp.ge.s32.totalorder %s13_s12, 4  }
 0x657   :  { %12 = sbr.rel (!%p10_p5) target bundleno = 1 (0x1), region = 65 }

</bundles_post_ra>
